<compile_context>
chip_gen: v6e
topology: v6e:2x2x1
jax: 0.10.0
libtpu: 0.0.40
codegen_flags: <defaults>
</compile_context>

<pallas_src>
import functools

import jax
import jax.numpy as jnp
import numpy as np
from jax.experimental import pallas as pl
from jax.experimental.pallas import tpu as pltpu


# ----------------------------------------------------------------------------
# Pallas kernel: one block of Bt batch elements per grid step.
# ----------------------------------------------------------------------------
def graph_layer_kernel(
    x_ref,      # (Bt, N, F)    f32
    area_ref,   # (Bt, N, 1, 1) f32
    co_ref,     # (N, 1, N)     f32   raw co-occurrence (j on lanes)
    wqkv_ref,   # (F, 3H)       bf16  fused q/k/v projection weight
    otw_ref,    # (H, H)        bf16  output_transform Linear weight
    pv_ref,     # (11, H)       f32   packed row-vector params
    pc_ref,     # (H, 4)        f32   packed column params of the edge MLP
    o_ref,      # (Bt, N, H)    f32
    *,
    tj,         # static j-tile size (divides N)
):
    Bt, N, F = x_ref.shape
    H = otw_ref.shape[0]
    n_jt = N // tj

    # ---- packed row-vector parameters (f32, H on lanes) ----
    bq = pv_ref[0:1, :]
    bk = pv_ref[1:2, :]
    bv = pv_ref[2:3, :]
    otb = pv_ref[3:4, :]
    n1_g = pv_ref[4:5, :]
    n1_b = pv_ref[5:6, :]
    ot_g = pv_ref[6:7, :]
    ot_b = pv_ref[7:8, :]
    n2_g = pv_ref[8:9, :]
    n2_b = pv_ref[9:10, :]
    e2b = pv_ref[10:11, 0:1]           # (1, 1) edge-MLP output bias

    # ---- packed column parameters (H on sublanes) for the edge MLP ----
    w1a_col = pc_ref[:, 0:1]           # (H, 1)  first-layer weight, `area` input
    w1c_col = pc_ref[:, 1:2]           # (H, 1)  first-layer weight, `co` input
    w2_col = pc_ref[:, 2:3]            # (H, 1)  second-layer weight
    b1_col = pc_ref[:, 3:4]            # (H, 1)  first-layer bias

    # ---- fused q/k/v projection: one folded bf16 MXU matmul ----
    x2 = x_ref[...].reshape(Bt * N, F)                      # f32, reused in residual
    qkv = jnp.dot(x2.astype(jnp.bfloat16), wqkv_ref[...],
                  preferred_element_type=jnp.float32)       # (Bt*N, 3H) f32
    q3 = (qkv[:, 0 * H:1 * H] + bq).reshape(Bt, N, H)
    k3 = (qkv[:, 1 * H:2 * H] + bk).reshape(Bt, N, H)
    v3 = (qkv[:, 2 * H:3 * H] + bv).reshape(Bt, N, H)
    qb = q3.astype(jnp.bfloat16)
    kb = k3.astype(jnp.bfloat16)
    vb = v3.astype(jnp.bfloat16)

    scale = 1.0 / float(H) ** 0.5
    scores = jnp.einsum("bnh,bmh->bnm", qb, kb,
                        preferred_element_type=jnp.float32) * scale   # (Bt,N,N)

    # ---- edge-weight MLP: Linear(2,H) -> ReLU -> Linear(H,1) -> Sigmoid ----
    # hid[b,i,h,j] = relu(area[b,i]*W1a[h] + b1[h] + co[i,j]*W1c[h]); the j axis
    # is tiled so nothing O(N^2 * H) is materialized, and all broadcasts are
    # layout-safe (unit-minor lane broadcasts / leading-dim broadcasts).
    area_term = area_ref[...] * w1a_col[None, None] + b1_col[None, None]  # (Bt,N,H,1)
    # TODO(synk): for very large N*H, also tile the i axis (or switch the edge
    # loop to lax.fori_loop) to bound the lane-padded area_term footprint and
    # the unrolled loop length; optionally stream co from HBM via pl.ANY.
    ew_tiles = []
    for t in range(n_jt):
        co_slab = co_ref[:, :, t * tj:(t + 1) * tj]         # (N, 1, tj)
        co_term = co_slab * w1c_col[None]                   # (N, H, tj)
        hid = jnp.maximum(co_term[None] + area_term, 0.0)   # (Bt, N, H, tj)
        ew_tiles.append(jnp.sum(hid * w2_col[None, None], axis=2))   # (Bt, N, tj)
    ew_pre = ew_tiles[0] if n_jt == 1 else jnp.concatenate(ew_tiles, axis=-1)
    ew = jax.nn.sigmoid(ew_pre + e2b)                       # (Bt, N, N)

    scores = scores * ew

    # ---- softmax over last dim (denominator reciprocal on the EUP) ----
    m = jnp.max(scores, axis=-1, keepdims=True)
    e = jnp.exp(scores - m)
    inv = pl.reciprocal(jnp.sum(e, axis=-1, keepdims=True), approx=True)
    probs = e * inv
    # TODO(synk): attention dropout skipped (eval mode -> identity).

    out = jnp.einsum("bnm,bmh->bnh", probs.astype(jnp.bfloat16), vb,
                     preferred_element_type=jnp.float32)    # (Bt, N, H)
    out2 = out.reshape(Bt * N, H)

    def layer_norm(z, g, b):
        # single-pass statistics: mean and E[z^2] together
        mu = jnp.mean(z, axis=-1, keepdims=True)
        ms = jnp.mean(z * z, axis=-1, keepdims=True)
        var = jnp.maximum(ms - mu * mu, 0.0)
        return (z - mu) * jax.lax.rsqrt(var + 1e-5) * g + b

    out2 = layer_norm(out2, n1_g, n1_b)                     # norm1

    # ---- output_transform: Linear -> LayerNorm -> ReLU -> Dropout(identity) --
    h = jnp.dot(out2.astype(jnp.bfloat16), otw_ref[...],
                preferred_element_type=jnp.float32) + otb
    h = layer_norm(h, ot_g, ot_b)
    h = jnp.maximum(h, 0.0)
    # TODO(synk): output_transform dropout skipped (eval mode -> identity).

    res = layer_norm(h + x2, n2_g, n2_b)                    # norm2(residual)
    # TODO(synk): for H < 128 a lane-dense (B, N*H) output slab would avoid
    # masked partial stores, but the required in-kernel sublane->lane repack is
    # skipped here for lowering robustness (production H >= 128 is already
    # lane-dense).
    o_ref[...] = res.reshape(Bt, N, H)


# ----------------------------------------------------------------------------
# Generation-aware tiling / compiler-parameter heuristics
# ----------------------------------------------------------------------------
def _tpu_generation_config():
    kind = ""
    try:
        kind = jax.devices()[0].device_kind.lower()
    except Exception:
        pass
    if "v7" in kind or "tpu7" in kind:
        # v7x: 2 TensorCores per chip, 64 MiB VMEM per TC.
        return dict(num_tc=2, target_rows=256, vmem_limit=56 * 1024 * 1024)
    if "v6" in kind or "v5e" in kind or "v5 lite" in kind or "v5lite" in kind:
        # v5e / v6e: single TensorCore, 128 MiB physical VMEM (default scoped
        # limit is only 16/32 MiB, so raise it explicitly).
        return dict(num_tc=1, target_rows=1024, vmem_limit=100 * 1024 * 1024)
    # Unknown / v4 / v5p: conservative defaults, leave the VMEM limit alone.
    return dict(num_tc=2, target_rows=512, vmem_limit=None)


def _choose_block_batch(B, N, num_tc, target_rows):
    """Largest divisor Bt of B with Bt*N <= target_rows; on multi-TC chips
    prefer a Bt whose grid length is divisible by the TensorCore count."""
    divisors = [d for d in range(1, B + 1) if B % d == 0]
    fits = [d for d in divisors if d * N <= max(target_rows, N)] or [1]
    bt = max(fits)
    if num_tc > 1 and B >= num_tc:
        balanced = [d for d in fits if (B // d) % num_tc == 0]
        if balanced:
            bt = max(balanced)
    return bt


def _choose_tile_j(N, H, Bt, budget_bytes=4 << 20):
    """Largest j-tile (<=128, dividing N) keeping the (Bt,N,H,TJ) hid tile
    under ~4 MiB."""
    best = 1
    for tj in range(1, min(N, 128) + 1):
        if N % tj == 0 and Bt * N * tj * H * 4 <= budget_bytes:
            best = tj
    return best


# ----------------------------------------------------------------------------
# Wrapper
# ----------------------------------------------------------------------------
def graph_layer_forward(x, area_matrix, co_occurrence, params):
    B, N, F = x.shape
    H = params["wq"].shape[1]
    assert F == H, "residual norm2(out + x) requires feature_dim == hidden_dim"

    cfg = _tpu_generation_config()
    Bt = _choose_block_batch(B, N, cfg["num_tc"], cfg["target_rows"])
    grid_len = B // Bt
    TJ = _choose_tile_j(N, H, Bt)

    x = x.astype(jnp.float32)
    # area with trailing unit dims so in-kernel broadcasts stay layout-safe
    area4 = area_matrix.reshape(B, N, 1, 1).astype(jnp.float32)
    # co with j on the lane (minor) dim and a unit second-minor dim
    co3 = co_occurrence.reshape(N, 1, N).astype(jnp.float32)

    # fused q/k/v weight (bf16) and output-transform weight (bf16)
    wqkv = jnp.concatenate(
        [params["wq"], params["wk"], params["wv"]], axis=1).astype(jnp.bfloat16)
    otw = params["otw"].astype(jnp.bfloat16)

    # packed row-vector parameters (f32)
    pvec = jnp.concatenate([
        params["bq"], params["bk"], params["bv"], params["otb"],
        params["g1"], params["bn1"], params["gt"], params["bt"],
        params["g2"], params["bn2"],
        jnp.broadcast_to(params["e2b"], (1, H)),
    ], axis=0).astype(jnp.float32)                          # (11, H)

    # column-packed edge-MLP parameters (f32): [w1_area, w1_co, w2, b1]
    pcol = jnp.stack([params["e1w"][0], params["e1w"][1],
                      params["e2w"][0], params["e1b"][0]],
                     axis=1).astype(jnp.float32)            # (H, 4)

    kernel = functools.partial(graph_layer_kernel, tj=TJ)

    in_specs = [
        pl.BlockSpec((Bt, N, F), lambda b: (b, 0, 0)),          # x
        pl.BlockSpec((Bt, N, 1, 1), lambda b: (b, 0, 0, 0)),    # area
        pl.BlockSpec((N, 1, N), lambda b: (0, 0, 0)),           # co (grid-invariant)
        pl.BlockSpec((F, 3 * H), lambda b: (0, 0)),             # fused qkv weight
        pl.BlockSpec((H, H), lambda b: (0, 0)),                 # output transform W
        pl.BlockSpec((11, H), lambda b: (0, 0)),                # packed row params
        pl.BlockSpec((H, 4), lambda b: (0, 0)),                 # packed col params
    ]
    out_spec = pl.BlockSpec((Bt, N, H), lambda b: (b, 0, 0))

    cp_kwargs = dict(dimension_semantics=("parallel",))
    if cfg["vmem_limit"] is not None:
        cp_kwargs["vmem_limit_bytes"] = cfg["vmem_limit"]

    fn = pl.pallas_call(
        kernel,
        out_shape=jax.ShapeDtypeStruct((B, N, H), jnp.float32),
        grid_spec=pltpu.PrefetchScalarGridSpec(
            num_scalar_prefetch=0,
            grid=(grid_len,),
            in_specs=in_specs,
            out_specs=out_spec,
        ),
        compiler_params=pltpu.CompilerParams(**cp_kwargs),
    )
    return fn(x, area4, co3, wqkv, otw, pvec, pcol)


# ----------------------------------------------------------------------------
# Pure-JAX reference (correctness check only, f32 throughout)
# ----------------------------------------------------------------------------
def graph_layer_reference(x, area_matrix, co_occurrence, p):
    B, N, F = x.shape
    H = p["wq"].shape[1]

    def ln(z, g, b):
        mu = z.mean(-1, keepdims=True)
        var = ((z - mu) ** 2).mean(-1, keepdims=True)
        return (z - mu) / jnp.sqrt(var + 1e-5) * g + b

    q = x @ p["wq"] + p["bq"]
    k = x @ p["wk"] + p["bk"]
    v = x @ p["wv"] + p["bv"]
    scores = jnp.einsum("bnd,bmd->bnm", q, k) / H ** 0.5

    ein0 = jnp.broadcast_to(area_matrix[:, :, None], (B, N, N))
    ein1 = jnp.broadcast_to(co_occurrence[None], (B, N, N))
    hid = jnp.maximum(
        ein0[..., None] * p["e1w"][0] + ein1[..., None] * p["e1w"][1] + p["e1b"][0],
        0.0)
    ew = jax.nn.sigmoid((hid * p["e2w"][0]).sum(-1) + p["e2b"][0, 0])

    scores = scores * ew
    probs = jax.nn.softmax(scores, axis=-1)
    out = jnp.einsum("bnm,bmd->bnd", probs, v)
    out = ln(out, p["g1"], p["bn1"])
    h = out @ p["otw"] + p["otb"]
    h = jnp.maximum(ln(h, p["gt"], p["bt"]), 0.0)
    return ln(h + x, p["g2"], p["bn2"])


# ----------------------------------------------------------------------------
# Deterministic parameter init (mimics nn.Linear / nn.LayerNorm defaults)
# ----------------------------------------------------------------------------
def init_params(key, feature_dim, hidden_dim):
    def linear(kw, kb, fan_in, fan_out):
        bound = 1.0 / fan_in ** 0.5
        w = jax.random.uniform(kw, (fan_in, fan_out), jnp.float32, -bound, bound)
        b = jax.random.uniform(kb, (1, fan_out), jnp.float32, -bound, bound)
        return w, b

    ks = jax.random.split(key, 12)
    wq, bq = linear(ks[0], ks[1], feature_dim, hidden_dim)
    wk, bk = linear(ks[2], ks[3], feature_dim, hidden_dim)
    wv, bv = linear(ks[4], ks[5], feature_dim, hidden_dim)
    e1w, e1b = linear(ks[6], ks[7], 2, hidden_dim)
    e2w_t, e2b_t = linear(ks[8], ks[9], hidden_dim, 1)      # (H,1), (1,1)
    otw, otb = linear(ks[10], ks[11], hidden_dim, hidden_dim)

    ones = jnp.ones((1, hidden_dim), jnp.float32)
    zeros = jnp.zeros((1, hidden_dim), jnp.float32)
    return {
        "wq": wq, "bq": bq, "wk": wk, "bk": bk, "wv": wv, "bv": bv,
        "e1w": e1w, "e1b": e1b,
        "e2w": e2w_t.T,            # (1, H)
        "e2b": e2b_t,              # (1, 1)
        "otw": otw, "otb": otb,
        "g1": ones, "bn1": zeros,
        "gt": ones, "bt": zeros,
        "g2": ones, "bn2": zeros,
    }


if __name__ == "__main__":
    B = 4              # batch
    N = 8              # num_diseases
    F = H = 128        # feature_dim == hidden_dim (required by the residual)

    key = jax.random.PRNGKey(0)
    k_x, k_area, k_co, k_params = jax.random.split(key, 4)

    x = jax.random.normal(k_x, (B, N, F), jnp.float32)
    area_matrix = jax.random.uniform(k_area, (B, N), jnp.float32)
    co_occurrence = jax.random.uniform(k_co, (N, N), jnp.float32)
    params = init_params(k_params, F, H)

    out = graph_layer_forward(x, area_matrix, co_occurrence, params)
    out = jax.block_until_ready(out)

    ref = graph_layer_reference(x, area_matrix, co_occurrence, params)
    # tolerance loosened for bf16 MXU operands (accumulation is f32)
    np.testing.assert_allclose(np.asarray(out), np.asarray(ref),
                               rtol=5e-2, atol=5e-2)

    print("KERNEL_OK")
</pallas_src>

<mosaic_0001>
module attributes {stable_mosaic.version = 11 : i64} {
  func.func @graph_layer_kernel(%arg0: i32, %arg1: memref<2x8x128xf32, #tpu.memory_space<vmem>>, %arg2: memref<2x8x1x1xf32, #tpu.memory_space<vmem>>, %arg3: memref<8x1x8xf32, #tpu.memory_space<vmem>>, %arg4: memref<128x384xbf16, #tpu.memory_space<vmem>>, %arg5: memref<128x128xbf16, #tpu.memory_space<vmem>>, %arg6: memref<11x128xf32, #tpu.memory_space<vmem>>, %arg7: memref<128x4xf32, #tpu.memory_space<vmem>>, %arg8: memref<2x8x128xf32, #tpu.memory_space<vmem>>) attributes {dimension_semantics = [#tpu.dimension_semantics<parallel>], iteration_bounds = array<i64: 2>, scalar_prefetch = 0 : i64, scratch_operands = 0 : i64, tpu.core_type = #tpu.core_type<tc>, window_params = [{transform_indices = @transform_0, window_bounds = array<i64: 2, 8, 128>}, {transform_indices = @transform_1, window_bounds = array<i64: 2, 8, 1, 1>}, {pipeline_mode = #tpu.pipeline_mode<synchronous>, transform_indices = @transform_2, window_bounds = array<i64: 8, 1, 8>}, {pipeline_mode = #tpu.pipeline_mode<synchronous>, transform_indices = @transform_3, window_bounds = array<i64: 128, 384>}, {pipeline_mode = #tpu.pipeline_mode<synchronous>, transform_indices = @transform_4, window_bounds = array<i64: 128, 128>}, {pipeline_mode = #tpu.pipeline_mode<synchronous>, transform_indices = @transform_5, window_bounds = array<i64: 11, 128>}, {pipeline_mode = #tpu.pipeline_mode<synchronous>, transform_indices = @transform_6, window_bounds = array<i64: 128, 4>}, {transform_indices = @transform_7, window_bounds = array<i64: 2, 8, 128>}]} {
    %c0 = arith.constant 0 : index
    %c0_0 = arith.constant 0 : index
    %0 = vector.load %arg6[%c0, %c0_0] : memref<11x128xf32, #tpu.memory_space<vmem>>, vector<1x128xf32>
    %c1 = arith.constant 1 : index
    %c0_1 = arith.constant 0 : index
    %1 = vector.load %arg6[%c1, %c0_1] : memref<11x128xf32, #tpu.memory_space<vmem>>, vector<1x128xf32>
    %c2 = arith.constant 2 : index
    %c0_2 = arith.constant 0 : index
    %2 = vector.load %arg6[%c2, %c0_2] : memref<11x128xf32, #tpu.memory_space<vmem>>, vector<1x128xf32>
    %c3 = arith.constant 3 : index
    %c0_3 = arith.constant 0 : index
    %3 = vector.load %arg6[%c3, %c0_3] : memref<11x128xf32, #tpu.memory_space<vmem>>, vector<1x128xf32>
    %c4 = arith.constant 4 : index
    %c0_4 = arith.constant 0 : index
    %4 = vector.load %arg6[%c4, %c0_4] : memref<11x128xf32, #tpu.memory_space<vmem>>, vector<1x128xf32>
    %c5 = arith.constant 5 : index
    %c0_5 = arith.constant 0 : index
    %5 = vector.load %arg6[%c5, %c0_5] : memref<11x128xf32, #tpu.memory_space<vmem>>, vector<1x128xf32>
    %c6 = arith.constant 6 : index
    %c0_6 = arith.constant 0 : index
    %6 = vector.load %arg6[%c6, %c0_6] : memref<11x128xf32, #tpu.memory_space<vmem>>, vector<1x128xf32>
    %c7 = arith.constant 7 : index
    %c0_7 = arith.constant 0 : index
    %7 = vector.load %arg6[%c7, %c0_7] : memref<11x128xf32, #tpu.memory_space<vmem>>, vector<1x128xf32>
    %c8 = arith.constant 8 : index
    %c0_8 = arith.constant 0 : index
    %8 = vector.load %arg6[%c8, %c0_8] : memref<11x128xf32, #tpu.memory_space<vmem>>, vector<1x128xf32>
    %c9 = arith.constant 9 : index
    %c0_9 = arith.constant 0 : index
    %9 = vector.load %arg6[%c9, %c0_9] : memref<11x128xf32, #tpu.memory_space<vmem>>, vector<1x128xf32>
    %c10 = arith.constant 10 : index
    %c0_10 = arith.constant 0 : index
    %10 = vector.load %arg6[%c10, %c0_10] : memref<11x128xf32, #tpu.memory_space<vmem>>, vector<1x1xf32>
    %c0_11 = arith.constant 0 : index
    %c0_12 = arith.constant 0 : index
    %11 = vector.load %arg7[%c0_11, %c0_12] : memref<128x4xf32, #tpu.memory_space<vmem>>, vector<128x1xf32>
    %c0_13 = arith.constant 0 : index
    %c1_14 = arith.constant 1 : index
    %12 = vector.load %arg7[%c0_13, %c1_14] : memref<128x4xf32, #tpu.memory_space<vmem>>, vector<128x1xf32>
    %c0_15 = arith.constant 0 : index
    %c2_16 = arith.constant 2 : index
    %13 = vector.load %arg7[%c0_15, %c2_16] : memref<128x4xf32, #tpu.memory_space<vmem>>, vector<128x1xf32>
    %c0_17 = arith.constant 0 : index
    %c3_18 = arith.constant 3 : index
    %14 = vector.load %arg7[%c0_17, %c3_18] : memref<128x4xf32, #tpu.memory_space<vmem>>, vector<128x1xf32>
    %c0_19 = arith.constant 0 : index
    %c0_20 = arith.constant 0 : index
    %c0_21 = arith.constant 0 : index
    %15 = vector.load %arg1[%c0_19, %c0_20, %c0_21] : memref<2x8x128xf32, #tpu.memory_space<vmem>>, vector<2x8x128xf32>
    %16 = vector.shape_cast %15 : vector<2x8x128xf32> to vector<16x128xf32>
    %17 = arith.truncf %16 : vector<16x128xf32> to vector<16x128xbf16>
    %c0_22 = arith.constant 0 : index
    %c0_23 = arith.constant 0 : index
    %18 = vector.load %arg4[%c0_22, %c0_23] : memref<128x384xbf16, #tpu.memory_space<vmem>>, vector<128x384xbf16>
    %cst = arith.constant dense<0.000000e+00> : vector<16x384xf32>
    %19 = tpu.matmul %17, %18, %cst {dimension_numbers = #tpu.dot_dimension_numbers<[1], [0], [0], [1], [0, 0, 1, 1], [], []>} : vector<16x128xbf16>, vector<128x384xbf16>, vector<16x384xf32> -> vector<16x384xf32>
    %20 = vector.extract_strided_slice %19 {offsets = [0, 0], sizes = [16, 128], strides = [1, 1]} : vector<16x384xf32> to vector<16x128xf32>
    %21 = vector.broadcast %0 : vector<1x128xf32> to vector<16x128xf32>
    %22 = arith.addf %20, %21 : vector<16x128xf32>
    %23 = vector.shape_cast %22 : vector<16x128xf32> to vector<2x8x128xf32>
    %24 = vector.extract_strided_slice %19 {offsets = [0, 128], sizes = [16, 128], strides = [1, 1]} : vector<16x384xf32> to vector<16x128xf32>
    %25 = vector.broadcast %1 : vector<1x128xf32> to vector<16x128xf32>
    %26 = arith.addf %24, %25 : vector<16x128xf32>
    %27 = vector.shape_cast %26 : vector<16x128xf32> to vector<2x8x128xf32>
    %28 = vector.extract_strided_slice %19 {offsets = [0, 256], sizes = [16, 128], strides = [1, 1]} : vector<16x384xf32> to vector<16x128xf32>
    %29 = vector.broadcast %2 : vector<1x128xf32> to vector<16x128xf32>
    %30 = arith.addf %28, %29 : vector<16x128xf32>
    %31 = vector.shape_cast %30 : vector<16x128xf32> to vector<2x8x128xf32>
    %32 = arith.truncf %23 : vector<2x8x128xf32> to vector<2x8x128xbf16>
    %33 = arith.truncf %27 : vector<2x8x128xf32> to vector<2x8x128xbf16>
    %34 = arith.truncf %31 : vector<2x8x128xf32> to vector<2x8x128xbf16>
    "tpu.trace_start"() <{level = 10 : i32, message = "bnh,bmh->bnm"}> : () -> ()
    %cst_24 = arith.constant dense<0.000000e+00> : vector<2x8x8xf32>
    %35 = tpu.matmul %32, %33, %cst_24 {dimension_numbers = #tpu.dot_dimension_numbers<[2], [2], [1], [1], [0, 0, 0, 1, 1, 1], [0], [0]>} : vector<2x8x128xbf16>, vector<2x8x128xbf16>, vector<2x8x8xf32> -> vector<2x8x8xf32>
    "tpu.trace_stop"() : () -> ()
    %cst_25 = arith.constant 0.0883883461 : f32
    %36 = vector.broadcast %cst_25 : f32 to vector<2x8x8xf32>
    %37 = arith.mulf %35, %36 : vector<2x8x8xf32>
    %c0_26 = arith.constant 0 : index
    %c0_27 = arith.constant 0 : index
    %c0_28 = arith.constant 0 : index
    %c0_29 = arith.constant 0 : index
    %38 = vector.load %arg2[%c0_26, %c0_27, %c0_28, %c0_29] : memref<2x8x1x1xf32, #tpu.memory_space<vmem>>, vector<2x8x1x1xf32>
    %39 = vector.shape_cast %11 : vector<128x1xf32> to vector<1x1x128x1xf32>
    %40 = vector.broadcast %38 : vector<2x8x1x1xf32> to vector<2x8x128x1xf32>
    %41 = vector.broadcast %39 : vector<1x1x128x1xf32> to vector<2x8x128x1xf32>
    %42 = arith.mulf %40, %41 : vector<2x8x128x1xf32>
    %43 = vector.shape_cast %14 : vector<128x1xf32> to vector<1x1x128x1xf32>
    %44 = vector.broadcast %43 : vector<1x1x128x1xf32> to vector<2x8x128x1xf32>
    %45 = arith.addf %42, %44 : vector<2x8x128x1xf32>
    %c0_30 = arith.constant 0 : index
    %c0_31 = arith.constant 0 : index
    %c0_32 = arith.constant 0 : index
    %46 = vector.load %arg3[%c0_30, %c0_31, %c0_32] : memref<8x1x8xf32, #tpu.memory_space<vmem>>, vector<8x1x8xf32>
    %47 = vector.shape_cast %12 : vector<128x1xf32> to vector<1x128x1xf32>
    %48 = vector.broadcast %46 : vector<8x1x8xf32> to vector<8x128x8xf32>
    %49 = vector.broadcast %47 : vector<1x128x1xf32> to vector<8x128x8xf32>
    %50 = arith.mulf %48, %49 : vector<8x128x8xf32>
    %51 = vector.shape_cast %50 : vector<8x128x8xf32> to vector<1x8x128x8xf32>
    %52 = vector.broadcast %51 : vector<1x8x128x8xf32> to vector<2x8x128x8xf32>
    %53 = vector.broadcast %45 : vector<2x8x128x1xf32> to vector<2x8x128x8xf32>
    %54 = arith.addf %52, %53 : vector<2x8x128x8xf32>
    %cst_33 = arith.constant 0.000000e+00 : f32
    %55 = vector.broadcast %cst_33 : f32 to vector<2x8x128x8xf32>
    %56 = arith.maximumf %54, %55 : vector<2x8x128x8xf32>
    %57 = vector.shape_cast %13 : vector<128x1xf32> to vector<1x1x128x1xf32>
    %58 = vector.broadcast %57 : vector<1x1x128x1xf32> to vector<2x8x128x8xf32>
    %59 = arith.mulf %56, %58 : vector<2x8x128x8xf32>
    %cst_34 = arith.constant dense<0.000000e+00> : vector<2x8x8xf32>
    %60 = vector.multi_reduction <add>, %59, %cst_34 [2] : vector<2x8x128x8xf32> to vector<2x8x8xf32>
    %61 = vector.shape_cast %10 : vector<1x1xf32> to vector<1x1x1xf32>
    %62 = vector.broadcast %61 : vector<1x1x1xf32> to vector<2x8x8xf32>
    %63 = arith.addf %60, %62 : vector<2x8x8xf32>
    %64 = arith.negf %63 : vector<2x8x8xf32>
    %65 = math.exp %64 : vector<2x8x8xf32>
    %cst_35 = arith.constant 1.000000e+00 : f32
    %66 = vector.broadcast %cst_35 : f32 to vector<2x8x8xf32>
    %67 = arith.addf %66, %65 : vector<2x8x8xf32>
    %68 = arith.divf %66, %67 : vector<2x8x8xf32>
    %69 = arith.mulf %37, %68 : vector<2x8x8xf32>
    %cst_36 = arith.constant dense<0xFF800000> : vector<2x8xf32>
    %70 = vector.multi_reduction <maximumf>, %69, %cst_36 [2] : vector<2x8x8xf32> to vector<2x8xf32>
    %71 = vector.shape_cast %70 : vector<2x8xf32> to vector<2x8x1xf32>
    %72 = vector.broadcast %71 : vector<2x8x1xf32> to vector<2x8x8xf32>
    %73 = arith.subf %69, %72 : vector<2x8x8xf32>
    %74 = math.exp %73 : vector<2x8x8xf32>
    %cst_37 = arith.constant dense<0.000000e+00> : vector<2x8xf32>
    %75 = vector.multi_reduction <add>, %74, %cst_37 [2] : vector<2x8x8xf32> to vector<2x8xf32>
    %76 = vector.shape_cast %75 : vector<2x8xf32> to vector<2x8x1xf32>
    %77 = tpu.reciprocal %76 {approx = true} : vector<2x8x1xf32> -> vector<2x8x1xf32>
    %78 = vector.broadcast %77 : vector<2x8x1xf32> to vector<2x8x8xf32>
    %79 = arith.mulf %74, %78 : vector<2x8x8xf32>
    %80 = arith.truncf %79 : vector<2x8x8xf32> to vector<2x8x8xbf16>
    "tpu.trace_start"() <{level = 10 : i32, message = "bnm,bmh->bnh"}> : () -> ()
    %cst_38 = arith.constant dense<0.000000e+00> : vector<2x8x128xf32>
    %81 = tpu.matmul %80, %34, %cst_38 {dimension_numbers = #tpu.dot_dimension_numbers<[2], [1], [1], [2], [0, 0, 0, 1, 1, 2], [0], [0]>} : vector<2x8x8xbf16>, vector<2x8x128xbf16>, vector<2x8x128xf32> -> vector<2x8x128xf32>
    "tpu.trace_stop"() : () -> ()
    %82 = vector.shape_cast %81 : vector<2x8x128xf32> to vector<16x128xf32>
    %cst_39 = arith.constant dense<0.000000e+00> : vector<16xf32>
    %83 = vector.multi_reduction <add>, %82, %cst_39 [1] : vector<16x128xf32> to vector<16xf32>
    %84 = vector.shape_cast %83 : vector<16xf32> to vector<16x1xf32>
    %cst_40 = arith.constant 1.280000e+02 : f32
    %85 = vector.broadcast %cst_40 : f32 to vector<16x1xf32>
    %86 = arith.divf %84, %85 : vector<16x1xf32>
    %87 = arith.mulf %82, %82 : vector<16x128xf32>
    %cst_41 = arith.constant dense<0.000000e+00> : vector<16xf32>
    %88 = vector.multi_reduction <add>, %87, %cst_41 [1] : vector<16x128xf32> to vector<16xf32>
    %89 = vector.shape_cast %88 : vector<16xf32> to vector<16x1xf32>
    %cst_42 = arith.constant 1.280000e+02 : f32
    %90 = vector.broadcast %cst_42 : f32 to vector<16x1xf32>
    %91 = arith.divf %89, %90 : vector<16x1xf32>
    %92 = arith.mulf %86, %86 : vector<16x1xf32>
    %93 = arith.subf %91, %92 : vector<16x1xf32>
    %cst_43 = arith.constant 0.000000e+00 : f32
    %94 = vector.broadcast %cst_43 : f32 to vector<16x1xf32>
    %95 = arith.maximumf %93, %94 : vector<16x1xf32>
    %96 = vector.broadcast %86 : vector<16x1xf32> to vector<16x128xf32>
    %97 = arith.subf %82, %96 : vector<16x128xf32>
    %cst_44 = arith.constant 9.99999974E-6 : f32
    %98 = vector.broadcast %cst_44 : f32 to vector<16x1xf32>
    %99 = arith.addf %95, %98 : vector<16x1xf32>
    %100 = math.rsqrt %99 : vector<16x1xf32>
    %101 = vector.broadcast %100 : vector<16x1xf32> to vector<16x128xf32>
    %102 = arith.mulf %97, %101 : vector<16x128xf32>
    %103 = vector.broadcast %4 : vector<1x128xf32> to vector<16x128xf32>
    %104 = arith.mulf %102, %103 : vector<16x128xf32>
    %105 = vector.broadcast %5 : vector<1x128xf32> to vector<16x128xf32>
    %106 = arith.addf %104, %105 : vector<16x128xf32>
    %107 = arith.truncf %106 : vector<16x128xf32> to vector<16x128xbf16>
    %c0_45 = arith.constant 0 : index
    %c0_46 = arith.constant 0 : index
    %108 = vector.load %arg5[%c0_45, %c0_46] : memref<128x128xbf16, #tpu.memory_space<vmem>>, vector<128x128xbf16>
    %cst_47 = arith.constant dense<0.000000e+00> : vector<16x128xf32>
    %109 = tpu.matmul %107, %108, %cst_47 {dimension_numbers = #tpu.dot_dimension_numbers<[1], [0], [0], [1], [0, 0, 1, 1], [], []>} : vector<16x128xbf16>, vector<128x128xbf16>, vector<16x128xf32> -> vector<16x128xf32>
    %110 = vector.broadcast %3 : vector<1x128xf32> to vector<16x128xf32>
    %111 = arith.addf %109, %110 : vector<16x128xf32>
    %cst_48 = arith.constant dense<0.000000e+00> : vector<16xf32>
    %112 = vector.multi_reduction <add>, %111, %cst_48 [1] : vector<16x128xf32> to vector<16xf32>
    %113 = vector.shape_cast %112 : vector<16xf32> to vector<16x1xf32>
    %cst_49 = arith.constant 1.280000e+02 : f32
    %114 = vector.broadcast %cst_49 : f32 to vector<16x1xf32>
    %115 = arith.divf %113, %114 : vector<16x1xf32>
    %116 = arith.mulf %111, %111 : vector<16x128xf32>
    %cst_50 = arith.constant dense<0.000000e+00> : vector<16xf32>
    %117 = vector.multi_reduction <add>, %116, %cst_50 [1] : vector<16x128xf32> to vector<16xf32>
    %118 = vector.shape_cast %117 : vector<16xf32> to vector<16x1xf32>
    %cst_51 = arith.constant 1.280000e+02 : f32
    %119 = vector.broadcast %cst_51 : f32 to vector<16x1xf32>
    %120 = arith.divf %118, %119 : vector<16x1xf32>
    %121 = arith.mulf %115, %115 : vector<16x1xf32>
    %122 = arith.subf %120, %121 : vector<16x1xf32>
    %cst_52 = arith.constant 0.000000e+00 : f32
    %123 = vector.broadcast %cst_52 : f32 to vector<16x1xf32>
    %124 = arith.maximumf %122, %123 : vector<16x1xf32>
    %125 = vector.broadcast %115 : vector<16x1xf32> to vector<16x128xf32>
    %126 = arith.subf %111, %125 : vector<16x128xf32>
    %cst_53 = arith.constant 9.99999974E-6 : f32
    %127 = vector.broadcast %cst_53 : f32 to vector<16x1xf32>
    %128 = arith.addf %124, %127 : vector<16x1xf32>
    %129 = math.rsqrt %128 : vector<16x1xf32>
    %130 = vector.broadcast %129 : vector<16x1xf32> to vector<16x128xf32>
    %131 = arith.mulf %126, %130 : vector<16x128xf32>
    %132 = vector.broadcast %6 : vector<1x128xf32> to vector<16x128xf32>
    %133 = arith.mulf %131, %132 : vector<16x128xf32>
    %134 = vector.broadcast %7 : vector<1x128xf32> to vector<16x128xf32>
    %135 = arith.addf %133, %134 : vector<16x128xf32>
    %cst_54 = arith.constant 0.000000e+00 : f32
    %136 = vector.broadcast %cst_54 : f32 to vector<16x128xf32>
    %137 = arith.maximumf %135, %136 : vector<16x128xf32>
    %138 = arith.addf %137, %16 : vector<16x128xf32>
    %cst_55 = arith.constant dense<0.000000e+00> : vector<16xf32>
    %139 = vector.multi_reduction <add>, %138, %cst_55 [1] : vector<16x128xf32> to vector<16xf32>
    %140 = vector.shape_cast %139 : vector<16xf32> to vector<16x1xf32>
    %cst_56 = arith.constant 1.280000e+02 : f32
    %141 = vector.broadcast %cst_56 : f32 to vector<16x1xf32>
    %142 = arith.divf %140, %141 : vector<16x1xf32>
    %143 = arith.mulf %138, %138 : vector<16x128xf32>
    %cst_57 = arith.constant dense<0.000000e+00> : vector<16xf32>
    %144 = vector.multi_reduction <add>, %143, %cst_57 [1] : vector<16x128xf32> to vector<16xf32>
    %145 = vector.shape_cast %144 : vector<16xf32> to vector<16x1xf32>
    %cst_58 = arith.constant 1.280000e+02 : f32
    %146 = vector.broadcast %cst_58 : f32 to vector<16x1xf32>
    %147 = arith.divf %145, %146 : vector<16x1xf32>
    %148 = arith.mulf %142, %142 : vector<16x1xf32>
    %149 = arith.subf %147, %148 : vector<16x1xf32>
    %cst_59 = arith.constant 0.000000e+00 : f32
    %150 = vector.broadcast %cst_59 : f32 to vector<16x1xf32>
    %151 = arith.maximumf %149, %150 : vector<16x1xf32>
    %152 = vector.broadcast %142 : vector<16x1xf32> to vector<16x128xf32>
    %153 = arith.subf %138, %152 : vector<16x128xf32>
    %cst_60 = arith.constant 9.99999974E-6 : f32
    %154 = vector.broadcast %cst_60 : f32 to vector<16x1xf32>
    %155 = arith.addf %151, %154 : vector<16x1xf32>
    %156 = math.rsqrt %155 : vector<16x1xf32>
    %157 = vector.broadcast %156 : vector<16x1xf32> to vector<16x128xf32>
    %158 = arith.mulf %153, %157 : vector<16x128xf32>
    %159 = vector.broadcast %8 : vector<1x128xf32> to vector<16x128xf32>
    %160 = arith.mulf %158, %159 : vector<16x128xf32>
    %161 = vector.broadcast %9 : vector<1x128xf32> to vector<16x128xf32>
    %162 = arith.addf %160, %161 : vector<16x128xf32>
    %163 = vector.shape_cast %162 : vector<16x128xf32> to vector<2x8x128xf32>
    %c0_61 = arith.constant 0 : index
    %c0_62 = arith.constant 0 : index
    %c0_63 = arith.constant 0 : index
    %164 = vector.load %arg8[%c0_61, %c0_62, %c0_63] : memref<2x8x128xf32, #tpu.memory_space<vmem>>, vector<2x8x128xf32>
    tpu.vector_store %arg8[%c0_61, %c0_62, %c0_63], %163 {strides = array<i32>} : memref<2x8x128xf32, #tpu.memory_space<vmem>>, vector<2x8x128xf32>,
    return
  }
  func.func @transform_0(%arg0: i32) -> (i32, i32, i32) {
    %c0_i32 = arith.constant 0 : i32
    %c0_i32_0 = arith.constant 0 : i32
    %c0_i32_1 = arith.constant 0 : i32
    return %arg0, %c0_i32, %c0_i32_0 : i32, i32, i32
  }
  func.func @transform_1(%arg0: i32) -> (i32, i32, i32, i32) {
    %c0_i32 = arith.constant 0 : i32
    %c0_i32_0 = arith.constant 0 : i32
    %c0_i32_1 = arith.constant 0 : i32
    %c0_i32_2 = arith.constant 0 : i32
    return %arg0, %c0_i32, %c0_i32_0, %c0_i32_1 : i32, i32, i32, i32
  }
  func.func @transform_2(%arg0: i32) -> (i32, i32, i32) {
    %c0_i32 = arith.constant 0 : i32
    %c0_i32_0 = arith.constant 0 : i32
    %c0_i32_1 = arith.constant 0 : i32
    %c0_i32_2 = arith.constant 0 : i32
    return %c0_i32, %c0_i32_0, %c0_i32_1 : i32, i32, i32
  }
  func.func @transform_3(%arg0: i32) -> (i32, i32) {
    %c0_i32 = arith.constant 0 : i32
    %c0_i32_0 = arith.constant 0 : i32
    %c0_i32_1 = arith.constant 0 : i32
    return %c0_i32, %c0_i32_0 : i32, i32
  }
  func.func @transform_4(%arg0: i32) -> (i32, i32) {
    %c0_i32 = arith.constant 0 : i32
    %c0_i32_0 = arith.constant 0 : i32
    %c0_i32_1 = arith.constant 0 : i32
    return %c0_i32, %c0_i32_0 : i32, i32
  }
  func.func @transform_5(%arg0: i32) -> (i32, i32) {
    %c0_i32 = arith.constant 0 : i32
    %c0_i32_0 = arith.constant 0 : i32
    %c0_i32_1 = arith.constant 0 : i32
    return %c0_i32, %c0_i32_0 : i32, i32
  }
  func.func @transform_6(%arg0: i32) -> (i32, i32) {
    %c0_i32 = arith.constant 0 : i32
    %c0_i32_0 = arith.constant 0 : i32
    %c0_i32_1 = arith.constant 0 : i32
    return %c0_i32, %c0_i32_0 : i32, i32
  }
  func.func @transform_7(%arg0: i32) -> (i32, i32, i32) {
    %c0_i32 = arith.constant 0 : i32
    %c0_i32_0 = arith.constant 0 : i32
    %c0_i32_1 = arith.constant 0 : i32
    return %arg0, %c0_i32, %c0_i32_0 : i32, i32, i32
  }
}

</mosaic_0001>

<bundles_post_ra>
// kernel: tpu_custom_call.1
= control target key start
LH: loop header
LB: loop body
LE: loop exit
PB: predicated region body
PF: predicated region fallthrough
CT: control target
= control target key end

     0   :  { %12 = vsyncpa [#allocation3], 0  ;;  %s10422_s0 = inlined_call_operand.vmem [shape: f32[4,8,128], index: 0, kind: input, shape index: {}]   ;;  %s10423_s1 = inlined_call_operand.vmem [shape: f32[4,8,1,1], index: 1, kind: input, shape index: {}]   ;;  %s10424_s2 = inlined_call_operand.vmem [shape: f32[8,1,8], index: 2, kind: input, shape index: {}]   ;;  %s10425_s3 = inlined_call_operand.hbm [shape: bf16[128,384], index: 3, kind: input, shape index: {}]   ;;  %s10426_s4 = inlined_call_operand.vmem [shape: bf16[128,128], index: 4, kind: input, shape index: {}]   ;;  %s10427_s5 = inlined_call_operand.vmem [shape: f32[11,128], index: 5, kind: input, shape index: {}]   ;;  %s10428_s6 = inlined_call_operand.vmem [shape: f32[128,4], index: 6, kind: input, shape index: {}]   ;;  %s10429_s7 = inlined_call_operand.hbm [shape: f32[4,8,128], index: 7, kind: output, shape index: {}]  }
   0x1   :  { %13 = vsyncpa [#allocation4], 0 }
   0x2   :  { %15 = vsyncpa [#allocation4 + $0x1], 0  ;;  %s5538_s24 = smov 0   ;;  %s5540_s25 = smov 0  }
   0x3   :  { %s5542_s26 = smov 0   ;;  %s5544_s27 = smov 0  }
   0x4 LB: > { %s5559_s28 = sadd.s32 4294967295, %s5484_s27   ;;  %s4950_s29 = sadd.s32 4294967294, %s5484_s27   ;;  %s5484_s27 = sphi %s5544_s27, %s11847_s27   ;;  %s5480_s26 = sphi %s5542_s26, %s11846_s26   ;;  %s5476_s25 = sphi %s5540_s25, %s11845_s25   ;;  %s5472_s24 = sphi %s5538_s24, %s11844_s24  }
   0x5   : > { %s5563_s30 = sadd.s32 1, %s5484_s27   ;;  %s185_s8 = sadd.s32 1, %s5480_s26 }
   0x6   : > { %s182_s9 = ssub.s32 %s5484_s27, %s5563_s30  ;;  %p195_p0 = scmp.ne.s32.totalorder %s5480_s26, %s5476_s25 }
   0x7   : > { %p183_p1 = scmp.eq.s32.totalorder %s182_s9, 0  ;;  %p196_p2 = scmp.eq.s32.totalorder %s5559_s28, 1 }
   0x8   : > { %p201_p3 = scmp.ne.s32.totalorder %s5476_s25, %s5472_s24  ;;  %p202_p4 = scmp.eq.s32.totalorder %s4950_s29, 1 }
   0x9   : > { %s5574_s10 = scalar_select %p183_p1, %s5480_s26, %s185_s8  }
   0xa   : > { %p5576_p5 = por %p196_p2, %p195_p0  ;;  %p5580_p6 = por %p202_p4, %p201_p3 }
   0xb   : > { %p4951_p7 = scmp.ge.s32.totalorder %s5484_s27, 1  ;;  %p209_p8 = scmp.lt.s32.totalorder %s5484_s27, 3 }
   0xc   : > { %s10632_s12 = scalar_select %p5580_p6, 1, 0 }
   0xd   : > { %p5157_p9 = scmp.eq.s32.totalorder %s5559_s28, 0  ;;  %p5587_p10 = pnand %p4951_p7, %p209_p8 }
   0xe   : > { %s5486_s14 = smov [#allocation2]  }
   0xf   : > { %s224_s15 = sshll.u32 %s5486_s14, 4  ;;  %p5149_p11 = pneg %p5587_p10  ;;  %s225_s15 = int_to_ptr.vmem [resolvable:$true] %s224_s15 }
  0x10   : > { %s5405_s16 = scalar_lea.vmem %s225_s15, 3072  ;;  %p5413_p3 = scmp.lt.s32.totalorder %s225_s15, %s225_s15 }
  0x11   : > { %p5150_p12 = pnand %p5157_p9, %p5149_p11  ;;  %p5406_p0 = scmp.ne.s32.totalorder %s225_s15, %s5405_s16 }
  0x12   : > { %p5414_p4 = scmp.lt.s32.totalorder %s5405_s16, %s5405_s16 }
  0x13   : > { %p5396_p13 = pneg %p5150_p12 }
  0x14   : > { %p5415_p6 = por %p5414_p4, %p5413_p3 }
  0x15   : > { %p5408_p1 = pnand %p5406_p0, %p5396_p13 }
  0x17   : > { %p5409_p2 = pneg %p5408_p1 }
  0x19   : > { %p5416_p7 = pnand %p5415_p6, %p5409_p2 }
  0x1b   : > { %5419 = shalt.err (!%p5416_p7)
}
  0x1c   : > { %s5487_s17 = smov 192   ;;  %s5488_s18 = smov 12  }
  0x1d   : > { %5152 = dma.hbm_to_vmem [thread:$0]  (!%p5150_p12), %s10425_s3, 3072, %s225_s15, [#allocation3], %s5487_s17, %s5487_s17, %s5488_s18  }
  0x1e   : > { %267 = sbr.rel (%p5587_p10) target bundleno = 2234 (0x8ba), region = 48 }
  0x23   : > { %5463 = dma.done.wait (%p5157_p9), [#allocation3], 3072  }
  0x24   : > { %5465 = vsyncadd (%p5157_p9), [#allocation3], 4294964224  ;;  %v5489_v0 = vmov 1   ;;  %v10430_v1 = vmov 0   ;;  %v5608_v2 = vld [vmem:[%s10428_s6] sm:$0xff]  ;;  %v5613_v3 = vld [vmem:[%s10428_s6 + $0x10] sm:$0xff] }
  0x25   : > { %5204 = vset.pattern.permute.xlu1 %v5489_v0  ;;  %5203 = vset.pattern.permute.xlu0 %v5489_v0  ;;  %s5491_s8 = smov 125   ;;  %v5620_v4 = vld [vmem:[%s10428_s6 + $0x8] sm:$0xff]  ;;  %v5625_v5 = vld [vmem:[%s10428_s6 + $0x18] sm:$0xff]  ;;  %v5632_v6 = vld [vmem:[%s10428_s6 + $0x20] sm:$0xff]  ;;  %v10432_v18 = vmov 2   ;;  %vm3746_vm0 = vcmask 64512  }
  0x26   : > { %540 = vmatprep.mubr.bf16.mxu0 %v10430_v1  ;;  %1082 = vrot.lane.b32.xlu0 %v5608_v2, %s5491_s8  ;;  %v5637_v7 = vld [vmem:[%s10428_s6 + $0x28] sm:$0xff]  ;;  %v5644_v8 = vld [vmem:[%s10428_s6 + $0x30] sm:$0xff]  ;;  %v5649_v9 = vld [vmem:[%s10428_s6 + $0x38] sm:$0xff]  ;;  %vm5494_vm1 = vmmov 0   ;;  %vm4523_vm2 = vcmask 1043456   ;;  %vm4471_vm3 = vcmask 1041409  }
  0x27   : > { %1086 = vrot.lane.b32.xlu1 %v5613_v3, %s5491_s8  ;;  %v5654_v10 = vld [vmem:[%s10428_s6 + $0x40] sm:$0xff]  ;;  %v5659_v11 = vld [vmem:[%s10428_s6 + $0x48] sm:$0xff]  ;;  %v5666_v12 = vld [vmem:[%s10428_s6 + $0x50] sm:$0xff]  ;;  %vm4473_vm4 = vcmask 1042434   ;;  %vm4475_vm5 = vcmask 1043459   ;;  %vm4477_vm6 = vcmask 1044484  }
  0x28   : > { %v5671_v13 = vld [vmem:[%s10428_s6 + $0x58] sm:$0xff]  ;;  %v5678_v14 = vld [vmem:[%s10428_s6 + $0x60] sm:$0xff]  ;;  %v5683_v15 = vld [vmem:[%s10428_s6 + $0x68] sm:$0xff]  ;;  %vm4479_vm7 = vcmask 1045509   ;;  %vm4481_vm8 = vcmask 1046534   ;;  %vm4483_vm9 = vcmask 1047559  }
  0x29   : > { %v5690_v16 = vld [vmem:[%s10428_s6 + $0x70] sm:$0xff]  ;;  %v5695_v17 = vld [vmem:[%s10428_s6 + $0x78] sm:$0xff]  ;;  %s5050_s15 = sshll.u32 %s5559_s28, 8 }
  0x2a   : > { %1084 = vrot.lane.b32.xlu0 %v5620_v4, %s5491_s8 }
  0x2b   : > { %1088 = vrot.lane.b32.xlu1 %v5625_v5, %s5491_s8 }
  0x2e   : > { %1090 = vrot.lane.b32.xlu0 %v5632_v6, %s5491_s8 }
  0x2f   : > { %1092 = vrot.lane.b32.xlu1 %v5637_v7, %s5491_s8 }
  0x32   : > { %1094 = vrot.lane.b32.xlu0 %v5644_v8, %s5491_s8 }
  0x33   : > { %1096 = vrot.lane.b32.xlu1 %v5649_v9, %s5491_s8 }
  0x36   : > { %1098 = vrot.lane.b32.xlu0 %v5654_v10, %s5491_s8 }
  0x37   : > { %1100 = vrot.lane.b32.xlu1 %v5659_v11, %s5491_s8 }
  0x3a   : > { %1102 = vrot.lane.b32.xlu0 %v5666_v12, %s5491_s8 }
  0x3b   : > { %1104 = vrot.lane.b32.xlu1 %v5671_v13, %s5491_s8 }
  0x3e   : > { %1106 = vrot.lane.b32.xlu0 %v5678_v14, %s5491_s8 }
  0x3f   : > { %1108 = vrot.lane.b32.xlu1 %v5683_v15, %s5491_s8 }
  0x42   : > { %1110 = vrot.lane.b32.xlu0 %v5690_v16, %s5491_s8 }
  0x43   : > { %1112 = vrot.lane.b32.xlu1 %v5695_v17, %s5491_s8  ;;  %s4957_s8 = sshll.u32 %s5559_s28, 1  ;;  %s5495_s28 = smov [#allocation5]  }
  0x44   : > { %p305_p6 = scmp.lt.s32.totalorder %s4957_s8, 3  ;;  %s5424_s29 = sshll.u32 %s5495_s28, 4  ;;  %s5425_s29 = int_to_ptr.vmem [resolvable:$false] %s5424_s29 }
  0x45   : > { %s5426_s9 = scalar_lea.vmem %s5425_s29, 512 }
  0x46   : > { %1443 = vperm.xlu0 %5203, %v5608_v2   ;;  %s11849_s8 = smov (!%p305_p6, %s4957_s8), 3 }
  0x47   : > { %1447 = vperm.xlu1 %5204, %v5620_v4   ;;  %s4958_s14 = sshll.u32 %s11849_s8, 3 }
  0x48   : > { %s5733_s17 = scalar_lea.vmem %s10423_s1, %s4958_s14  ;;  %s6179_s20 = scalar_lea.vmem %s10422_s0, %s4958_s14 }
  0x49   : > { %v4988_v19 = vld [vmem:[%s5733_s17] ss:$0 sm:$0xff]  ;;  %v5793_v62 = vld [vmem:[%s5733_s17 + $0x1] ss:$0 sm:$0xff] }
  0x4a   : > { %1455 = vperm.xlu0 %5203, %v5625_v5   ;;  %v810_v20 = vmul.f32 %v4988_v19, %v5608_v2  ;;  %v812_v21 = vmul.f32 %v4988_v19, %v5613_v3  ;;  %v811_v25 = vmul.f32 %v4988_v19, %v5620_v4  ;;  %v813_v27 = vmul.f32 %v4988_v19, %v5625_v5 }
  0x4b   : > { %1451 = vperm.xlu1 %5204, %v5613_v3   ;;  %v814_v31 = vmul.f32 %v4988_v19, %v5632_v6  ;;  %v815_v33 = vmul.f32 %v4988_v19, %v5637_v7  ;;  %v816_v37 = vmul.f32 %v4988_v19, %v5644_v8  ;;  %v817_v39 = vmul.f32 %v4988_v19, %v5649_v9 }
  0x4c   : > { %v818_v43 = vmul.f32 %v4988_v19, %v5654_v10  ;;  %v819_v45 = vmul.f32 %v4988_v19, %v5659_v11  ;;  %v820_v49 = vmul.f32 %v4988_v19, %v5666_v12  ;;  %v821_v51 = vmul.f32 %v4988_v19, %v5671_v13 }
  0x4d   : > { %v822_v55 = vmul.f32 %v4988_v19, %v5678_v14  ;;  %v823_v57 = vmul.f32 %v4988_v19, %v5683_v15  ;;  %v824_v61 = vmul.f32 %v4988_v19, %v5690_v16  ;;  %v825_v0 = vmul.f32 %v4988_v19, %v5695_v17 }
  0x4e   : > { %1463 = vperm.xlu0 %5203, %v5637_v7  }
  0x4f   : > { %1459 = vperm.xlu1 %5204, %v5632_v6  }
  0x52   : > { %1471 = vperm.xlu0 %5203, %v5649_v9  }
  0x53   : > { %1467 = vperm.xlu1 %5204, %v5644_v8  }
  0x56   : > { %1479 = vperm.xlu0 %5203, %v5659_v11  }
  0x57   : > { %1475 = vperm.xlu1 %5204, %v5654_v10  }
  0x5a   : > { %1487 = vperm.xlu0 %5203, %v5671_v13  }
  0x5b   : > { %1483 = vperm.xlu1 %5204, %v5666_v12  }
  0x5e   : > { %1495 = vperm.xlu0 %5203, %v5683_v15   ;;  %v826_v15 = vmul.f32 %v5793_v62, %v5608_v2 }
  0x5f   : > { %1491 = vperm.xlu1 %5204, %v5678_v14  }
  0x62   : > { %1503 = vperm.xlu0 %5203, %v5695_v17   ;;  %v828_v17 = vmul.f32 %v5793_v62, %v5613_v3 }
  0x63   : > { %1499 = vperm.xlu1 %5204, %v5690_v16  }
  0x66   : > { %5206 = vset.pattern.permute.xlu0 %v10432_v18 }
  0x67   : > { %5205 = vset.pattern.permute.xlu1 %v10430_v1  ;;  %3427 = vperm.xlu0 %5206, %v5608_v2  }
  0x6b   : > { %3435 = vperm.xlu0 %5206, %v5613_v3  }
  0x6f   : > { %3443 = vperm.xlu0 %5206, %v5632_v6  }
  0x73   : > { %3483 = vperm.xlu0 %5206, %v5690_v16  }
  0x77   : > { %5229 = vset.pattern.permute.xlu0 %v10430_v1 }
  0x98   : > { %v5738_v22 = vpop.permute.xlu0 %1082 }
  0x99   : > { %v5740_v23 = vpop.permute.xlu1 %1086  ;;  %v1130_v24 = vadd.f32 %v5738_v22, %v810_v20  ;;  %v827_v20 = vmul.f32 %v5793_v62, %v5620_v4 }
  0x9a   : > { %v1132_v26 = vadd.f32 %v5740_v23, %v812_v21  ;;  %v1146_v21 = vadd.f32 %v5738_v22, %v826_v15 }
  0x9b   : > { %1636 = vperm.xlu1 %5205, %v1130_v24   ;;  %v830_v24 = vmul.f32 %v5793_v62, %v5632_v6 }
  0x9c   : > { %v5746_v28 = vpop.permute.xlu0 %1084 }
  0x9d   : > { %v5748_v29 = vpop.permute.xlu1 %1088  ;;  %v1131_v30 = vadd.f32 %v5746_v28, %v811_v25  ;;  %v1147_v19 = vadd.f32 %v5746_v28, %v827_v20  ;;  %v1148_v25 = vadd.f32 %v5740_v23, %v828_v17 }
  0x9e   : > { %v1133_v32 = vadd.f32 %v5748_v29, %v813_v27 }
  0x9f   : > { %1641 = vperm.xlu0 %5229, %v1131_v30   ;;  %1646 = vperm.xlu1 %5205, %v1132_v26   ;;  %v829_v26 = vmul.f32 %v5793_v62, %v5625_v5  ;;  %v832_v30 = vmul.f32 %v5793_v62, %v5644_v8 }
  0xa0   : > { %v5754_v34 = vpop.permute.xlu0 %1090 }
  0xa1   : > { %v5756_v35 = vpop.permute.xlu1 %1092  ;;  %v1134_v36 = vadd.f32 %v5754_v34, %v814_v31  ;;  %v1150_v27 = vadd.f32 %v5754_v34, %v830_v24  ;;  %v1149_v31 = vadd.f32 %v5748_v29, %v829_v26 }
  0xa2   : > { %v1135_v38 = vadd.f32 %v5756_v35, %v815_v33  ;;  %v5823_v33 = vld [vmem:[%s5733_s17 + $0x2] ss:$0 sm:$0xff] }
  0xa3   : > { %1656 = vperm.xlu0 %5229, %v1134_v36   ;;  %1651 = vperm.xlu1 %5205, %v1133_v32   ;;  %v831_v32 = vmul.f32 %v5793_v62, %v5637_v7 }
  0xa4   : > { %v5762_v40 = vpop.permute.xlu0 %1094 }
  0xa5   : > { %v5764_v41 = vpop.permute.xlu1 %1096  ;;  %v1136_v42 = vadd.f32 %v5762_v40, %v816_v37  ;;  %v1152_v36 = vadd.f32 %v5762_v40, %v832_v30  ;;  %v1151_v37 = vadd.f32 %v5756_v35, %v831_v32 }
  0xa6   : > { %v1137_v44 = vadd.f32 %v5764_v41, %v817_v39  ;;  %v833_v39 = vmul.f32 %v5793_v62, %v5649_v9 }
  0xa7   : > { %1666 = vperm.xlu0 %5229, %v1136_v42   ;;  %1661 = vperm.xlu1 %5205, %v1135_v38   ;;  %v842_v38 = vmul.f32 %v5823_v33, %v5608_v2  ;;  %v5832_v42 = vld [vmem:[%s5733_s17 + $0x3] ss:$0 sm:$0xff] }
  0xa8   : > { %v5770_v46 = vpop.permute.xlu0 %1098  ;;  %v860_v20 = vmul.f32 %v5832_v42, %v5613_v3  ;;  %v861_v30 = vmul.f32 %v5832_v42, %v5625_v5 }
  0xa9   : > { %v5772_v47 = vpop.permute.xlu1 %1100  ;;  %v1138_v48 = vadd.f32 %v5770_v46, %v818_v43  ;;  %v1162_v43 = vadd.f32 %v5738_v22, %v842_v38  ;;  %v845_v38 = vmul.f32 %v5823_v33, %v5625_v5 }
  0xaa   : > { %v1139_v50 = vadd.f32 %v5772_v47, %v819_v45  ;;  %v858_v45 = vmul.f32 %v5832_v42, %v5608_v2 }
  0xab   : > { %1676 = vperm.xlu0 %5229, %v1138_v48   ;;  %1671 = vperm.xlu1 %5205, %v1137_v44   ;;  %v1153_v44 = vadd.f32 %v5764_v41, %v833_v39  ;;  %v843_v48 = vmul.f32 %v5823_v33, %v5620_v4  ;;  %v5891_v39 = vld [vmem:[%s5733_s17 + $0x6] ss:$0 sm:$0xff] }
  0xac   : > { %v5778_v52 = vpop.permute.xlu0 %1102 }
  0xad   : > { %v5780_v53 = vpop.permute.xlu1 %1104  ;;  %v1140_v54 = vadd.f32 %v5778_v52, %v820_v49  ;;  %v1178_v49 = vadd.f32 %v5738_v22, %v858_v45  ;;  %v908_v45 = vmul.f32 %v5891_v39, %v5613_v3 }
  0xae   : > { %v1141_v56 = vadd.f32 %v5780_v53, %v821_v51  ;;  %v844_v51 = vmul.f32 %v5823_v33, %v5613_v3 }
  0xaf   : > { %1686 = vperm.xlu0 %5229, %v1140_v54   ;;  %1681 = vperm.xlu1 %5205, %v1139_v50   ;;  %v1163_v50 = vadd.f32 %v5746_v28, %v843_v48  ;;  %v859_v54 = vmul.f32 %v5832_v42, %v5620_v4  ;;  %v1165_v48 = vadd.f32 %v5748_v29, %v845_v38 }
  0xb0   : > { %v5786_v58 = vpop.permute.xlu0 %1106  ;;  %v847_v38 = vmul.f32 %v5823_v33, %v5637_v7 }
  0xb1   : > { %v5788_v59 = vpop.permute.xlu1 %1108  ;;  %v1142_v60 = vadd.f32 %v5786_v58, %v822_v55  ;;  %v5847_v55 = vld [vmem:[%s5733_s17 + $0x4] ss:$0 sm:$0xff] }
  0xb2   : > { %v1143_v63 = vadd.f32 %v5788_v59, %v823_v57  ;;  %v1179_v57 = vadd.f32 %v5746_v28, %v859_v54  ;;  %v876_v24 = vmul.f32 %v5847_v55, %v5613_v3 }
  0xb3   : > { %1696 = vperm.xlu0 %5229, %v1142_v60   ;;  %1691 = vperm.xlu1 %5205, %v1141_v56   ;;  %v1164_v56 = vadd.f32 %v5740_v23, %v844_v51  ;;  %v875_v60 = vmul.f32 %v5847_v55, %v5620_v4  ;;  %v1228_v51 = vadd.f32 %v5740_v23, %v908_v45 }
  0xb4   : > { %v5797_v12 = vpop.permute.xlu0 %1110  ;;  %v1196_v26 = vadd.f32 %v5740_v23, %v876_v24 }
  0xb5   : > { %10634 = vst [vmem:[#allocation8_spill] sm:$0xff] %v5797_v12  ;;  %v5799_v13 = vpop.permute.xlu1 %1112  ;;  %v1144_v14 = vadd.f32 %v5797_v12, %v824_v61  ;;  %v874_v61 = vmul.f32 %v5847_v55, %v5608_v2 }
  0xb6   : > { %10635 = vst [vmem:[#allocation9_spill] sm:$0xff] %v5799_v13  ;;  %v1145_v16 = vadd.f32 %v5799_v13, %v825_v0  ;;  %v10655_v13 = vmov 0  }
  0xb7   : > { %1706 = vperm.xlu0 %5229, %v1144_v14   ;;  %1701 = vperm.xlu1 %5205, %v1143_v63   ;;  %v5856_v63 = vld [vmem:[%s5733_s17 + $0x5] ss:$0 sm:$0xff]  ;;  %v1195_v14 = vadd.f32 %v5746_v28, %v875_v60  ;;  %v1194_v15 = vadd.f32 %v5738_v22, %v874_v61  ;;  %v907_v60 = vmul.f32 %v5891_v39, %v5620_v4  ;;  %v5913_v61 = vld [vmem:[%s5733_s17 + $0x8] ss:$0 sm:$0xff] }
  0xbb   : > { %1716 = vperm.xlu0 %5229, %v1146_v21   ;;  %1711 = vperm.xlu1 %5205, %v1145_v16   ;;  %v890_v16 = vmul.f32 %v5856_v63, %v5608_v2 }
  0xbd   : > { %v1210_v17 = vadd.f32 %v5738_v22, %v890_v16 }
  0xbf   : > { %1726 = vperm.xlu0 %5229, %v1148_v25   ;;  %1721 = vperm.xlu1 %5205, %v1147_v19   ;;  %v1180_v19 = vadd.f32 %v5740_v23, %v860_v20  ;;  %v891_v25 = vmul.f32 %v5856_v63, %v5620_v4  ;;  %v1227_v20 = vadd.f32 %v5746_v28, %v907_v60 }
  0xc0   : > { %v877_v60 = vmul.f32 %v5847_v55, %v5625_v5 }
  0xc1   : > { %v5858_v0 = vpop.permute.xlu0 %1443 }
  0xc3   : > { %1736 = vperm.xlu0 %5229, %v1150_v27   ;;  %1731 = vperm.xlu1 %5205, %v1149_v31   ;;  %v1211_v27 = vadd.f32 %v5746_v28, %v891_v25  ;;  %v5879_v31 = vld [vmem:[%s5733_s17 + $0x7] ss:$0 sm:$0xff] }
  0xc4   : > { %v924_v54 = vmul.f32 %v5879_v31, %v5613_v3 }
  0xc5   : > { %v5866_v21 = vpop.permute.xlu0 %1455 }
  0xc7   : > { %1746 = vperm.xlu0 %5229, %v1152_v36   ;;  %1741 = vperm.xlu1 %5205, %v1151_v37   ;;  %v1181_v36 = vadd.f32 %v5748_v29, %v861_v30  ;;  %v922_v37 = vmul.f32 %v5879_v31, %v5608_v2  ;;  %v923_v30 = vmul.f32 %v5879_v31, %v5620_v4 }
  0xc9   : > { %v5881_v32 = vpop.permute.xlu0 %1463  ;;  %v1243_v45 = vadd.f32 %v5746_v28, %v923_v30 }
  0xca   : > { %10636 = vst [vmem:[#allocation10_spill] sm:$0xff] %v5881_v32 }
  0xcb   : > { %1796 = vperm.xlu0 %5229, %v1162_v43   ;;  %1751 = vperm.xlu1 %5205, %v1153_v44   ;;  %v1242_v44 = vadd.f32 %v5738_v22, %v922_v37 }
  0xcd   : > { %v5893_v43 = vpop.permute.xlu0 %1471 }
  0xce   : > { %10637 = vst [vmem:[#allocation11_spill] sm:$0xff] %v5893_v43 }
  0xcf   : > { %1876 = vperm.xlu0 %5229, %v1178_v49   ;;  %1801 = vperm.xlu1 %5205, %v1163_v50   ;;  %v906_v49 = vmul.f32 %v5891_v39, %v5608_v2  ;;  %v5901_v50 = vpop.permute.xlu1 %1447 }
  0xd3   : > { %1806 = vperm.xlu0 %5229, %v1164_v56   ;;  %1881 = vperm.xlu1 %5205, %v1179_v57   ;;  %v5907_v56 = vpop.permute.xlu0 %1479  ;;  %v1226_v57 = vadd.f32 %v5738_v22, %v906_v49  ;;  %v5918_v16 = vpop.permute.xlu1 %1451  ;;  %v1167_v49 = vadd.f32 %v5756_v35, %v847_v38 }
  0xd4   : > { %10638 = vst [vmem:[#allocation12_spill] sm:$0xff] %v5907_v56 }
  0xd7   : > { %1961 = vperm.xlu0 %5229, %v1195_v14   ;;  %1956 = vperm.xlu1 %5205, %v1194_v15   ;;  %v1244_v14 = vadd.f32 %v5740_v23, %v924_v54  ;;  %v939_v15 = vmul.f32 %v5913_v61, %v5620_v4  ;;  %v5926_v24 = vpop.permute.xlu0 %1487 }
  0xd8   : > { %10639 = vst [vmem:[#allocation13_spill] sm:$0xff] %v5926_v24  ;;  %v5236_v24 = vld [vmem:[#allocation2 + $0x94] ss:$12 sps:$4 sm:$0xff]  }
  0xd9   : > { %v1259_v25 = vadd.f32 %v5746_v28, %v939_v15 }
  0xdb   : > { %2036 = vperm.xlu0 %5229, %v1210_v17   ;;  %1886 = vperm.xlu1 %5205, %v1180_v19   ;;  %v892_v17 = vmul.f32 %v5856_v63, %v5613_v3  ;;  %v5924_v19 = vld [vmem:[%s5733_s17 + $0x9] ss:$0 sm:$0xff] }
  0xdf   : > { %1966 = vperm.xlu0 %5229, %v1196_v26   ;;  %2041 = vperm.xlu1 %5205, %v1211_v27   ;;  %v955_v26 = vmul.f32 %v5924_v19, %v5620_v4  ;;  %v1212_v27 = vadd.f32 %v5740_v23, %v892_v17 }
  0xe1   : > { %v1275_v37 = vadd.f32 %v5746_v28, %v955_v26  ;;  %v862_v26 = vmul.f32 %v5832_v42, %v5632_v6 }
  0xe3   : > { %1891 = vperm.xlu0 %5229, %v1181_v36   ;;  %5207 = vset.pattern.permute.xlu1 %v10432_v18  ;;  %v5934_v36 = vpop.permute.xlu1 %1459  ;;  %v6001_v18 = vld [vmem:[%s5733_s17 + $0xc] ss:$0 sm:$0xff] }
  0xe4   : > { %3431 = vperm.xlu1 %5207, %v5620_v4   ;;  %10640 = vst [vmem:[#allocation14_spill] sm:$0xff] %v5934_v36 }
  0xe7   : > { %2196 = vperm.xlu0 %5229, %v1242_v44   ;;  %v5939_v44 = vpop.permute.xlu0 %1495  ;;  %v5947_v54 = vpop.permute.xlu1 %1467 }
  0xe8   : > { %5208 = vset.pattern.permute.xlu1 %v10430_v1  ;;  %10641 = vst [vmem:[#allocation15_spill] sm:$0xff] %v5939_v44  ;;  %10642 = vst [vmem:[#allocation16_spill] sm:$0xff] %v5947_v54  ;;  %v910_v1 = vmul.f32 %v5891_v39, %v5632_v6 }
  0xe9   : > { %1811 = vperm.xlu1 %5208, %v1165_v48   ;;  %v846_v48 = vmul.f32 %v5823_v33, %v5632_v6 }
  0xeb   : > { %2126 = vperm.xlu0 %5229, %v1228_v51   ;;  %v909_v51 = vmul.f32 %v5891_v39, %v5625_v5  ;;  %v5955_v15 = vpop.permute.xlu0 %1503 }
  0xec   : > { %10643 = vst [vmem:[#allocation17_spill] sm:$0xff] %v5955_v15 }
  0xed   : > { %2116 = vperm.xlu1 %5208, %v1226_v57   ;;  %v1166_v57 = vadd.f32 %v5754_v34, %v846_v48  ;;  %v893_v48 = vmul.f32 %v5856_v63, %v5625_v5 }
  0xef   : > { %2206 = vperm.xlu0 %5229, %v1244_v14   ;;  %v5953_v14 = vld [vmem:[%s5733_s17 + $0xa] ss:$0 sm:$0xff]  ;;  %v5968_v38 = vpop.permute.xlu0 %3427 }
  0xf0   : > { %v971_v17 = vmul.f32 %v5953_v14, %v5620_v4  ;;  %10645 = vst [vmem:[#allocation19_spill] sm:$0xff] %v5968_v38 }
  0xf1   : > { %2121 = vperm.xlu1 %5208, %v1227_v20   ;;  %v1229_v20 = vadd.f32 %v5748_v29, %v909_v51  ;;  %v940_v51 = vmul.f32 %v5913_v61, %v5613_v3 }
  0xf2   : > { %v1291_v30 = vadd.f32 %v5746_v28, %v971_v17  ;;  %v938_v17 = vmul.f32 %v5913_v61, %v5608_v2 }
  0xf3   : > { %2281 = vperm.xlu0 %5229, %v1259_v25   ;;  %v1197_v25 = vadd.f32 %v5748_v29, %v877_v60  ;;  %v5979_v60 = vld [vmem:[%s5733_s17 + $0xb] ss:$0 sm:$0xff] }
  0xf5   : > { %2046 = vperm.xlu1 %5208, %v1212_v27   ;;  %v5963_v27 = vpop.permute.xlu1 %1475 }
  0xf6   : > { %10644 = vst [vmem:[#allocation18_spill] sm:$0xff] %v5963_v27  ;;  %v6497_v27 = vld [vmem:[%s5733_s17 + $0x1] ss:$0 sm:$0xff] }
  0xf7   : > { %2361 = vperm.xlu0 %5229, %v1275_v37   ;;  %v894_v37 = vmul.f32 %v5856_v63, %v5632_v6 }
  0xf9   : > { %2201 = vperm.xlu1 %5208, %v1243_v45   ;;  %v1182_v45 = vadd.f32 %v5754_v34, %v862_v26  ;;  %v1260_v26 = vadd.f32 %v5740_v23, %v940_v51 }
  0xfb   : > { %1821 = vperm.xlu0 %5229, %v1167_v49   ;;  %v1214_v49 = vadd.f32 %v5754_v34, %v894_v37  ;;  %v1258_v37 = vadd.f32 %v5738_v22, %v938_v17  ;;  %v1230_v17 = vadd.f32 %v5754_v34, %v910_v1 }
  0xfd   : > { %1816 = vperm.xlu1 %5208, %v1166_v57   ;;  %v5976_v57 = vpop.permute.xlu1 %1483 }
  0xfe   : > { %10646 = vst [vmem:[#allocation20_spill] sm:$0xff] %v5976_v57 }
  0xff   : > { %2131 = vperm.xlu0 %5229, %v1229_v20   ;;  %v1213_v20 = vadd.f32 %v5748_v29, %v893_v48 }
 0x101   : > { %1971 = vperm.xlu1 %5208, %v1197_v25   ;;  %v5984_v25 = vpop.permute.xlu0 %3435 }
 0x102   : > { %10647 = vst [vmem:[#allocation21_spill] sm:$0xff] %v5984_v25 }
 0x103   : > { %2441 = vperm.xlu0 %5229, %v1291_v30   ;;  %v986_v30 = vmul.f32 %v5979_v60, %v5608_v2 }
 0x105   : > { %1896 = vperm.xlu1 %5208, %v1182_v45   ;;  %v954_v45 = vmul.f32 %v5924_v19, %v5608_v2  ;;  %v1306_v48 = vadd.f32 %v5738_v22, %v986_v30 }
 0x107   : > { %2056 = vperm.xlu0 %5229, %v1214_v49   ;;  %v5992_v49 = vpop.permute.xlu1 %1491  ;;  %v1274_v51 = vadd.f32 %v5738_v22, %v954_v45  ;;  %v895_v45 = vmul.f32 %v5856_v63, %v5637_v7 }
 0x108   : > { %10648 = vst [vmem:[#allocation22_spill] sm:$0xff] %v5992_v49 }
 0x109   : > { %2051 = vperm.xlu1 %5208, %v1213_v20   ;;  %v5997_v20 = vpop.permute.xlu0 %3443 }
 0x10a   : > { %10649 = vst [vmem:[#allocation23_spill] sm:$0xff] %v5997_v20 }
 0x10b   : > { %2286 = vperm.xlu0 %5229, %v1260_v26   ;;  %v1003_v26 = vmul.f32 %v6001_v18, %v5620_v4  ;;  %v6006_v25 = vpop.permute.xlu1 %1499 }
 0x10c   : > { %10650 = vst [vmem:[#allocation24_spill] sm:$0xff] %v6006_v25 }
 0x10d   : > { %2276 = vperm.xlu1 %5208, %v1258_v37   ;;  %v6008_v30 = vpop.permute.xlu0 %3483  ;;  %v10652_v37 = vmov 2   ;;  %v1323_v20 = vadd.f32 %v5746_v28, %v1003_v26  ;;  %v970_v26 = vmul.f32 %v5953_v14, %v5608_v2 }
 0x10e   : > { %10651 = vst [vmem:[#allocation25_spill] sm:$0xff] %v6008_v30  ;;  %v941_v30 = vmul.f32 %v5913_v61, %v5625_v5 }
 0x10f   : > { %2516 = vperm.xlu0 %5229, %v1306_v48   ;;  %v878_v48 = vmul.f32 %v5847_v55, %v5632_v6 }
 0x111   : > { %2356 = vperm.xlu1 %5208, %v1274_v51   ;;  %v1215_v51 = vadd.f32 %v5756_v35, %v895_v45  ;;  %v1290_v45 = vadd.f32 %v5738_v22, %v970_v26  ;;  %v925_v26 = vmul.f32 %v5879_v31, %v5625_v5 }
 0x113   : > { %2136 = vperm.xlu0 %5229, %v1230_v17   ;;  %v1198_v17 = vadd.f32 %v5754_v34, %v878_v48  ;;  %v988_v48 = vmul.f32 %v5979_v60, %v5613_v3 }
 0x115   : > { %5209 = vset.pattern.permute.xlu1 %v10652_v37 }
 0x116   : > { %3439 = vperm.xlu1 %5209, %v5625_v5   ;;  %v6017_v1 = vpop.permute.xlu1 %1636 }
 0x117   : > { %10653 = vst [vmem:[#allocation26_spill] sm:$0xff] %v6017_v1  ;;  %2601 = vperm.xlu0 %5229, %v1323_v20   ;;  %v1261_v20 = vadd.f32 %v5748_v29, %v941_v30  ;;  %v863_v1 = vmul.f32 %v5832_v42, %v5637_v7 }
 0x119   : > { %v1183_v30 = vadd.f32 %v5756_v35, %v863_v1  ;;  %v956_v1 = vmul.f32 %v5924_v19, %v5613_v3 }
 0x11a   : > { %v6025_v38 = vpop.permute.xlu0 %1641  ;;  %5210 = vset.pattern.permute.xlu1 %v10655_v13  ;;  %v6028_v15 = vpop.permute.xlu1 %1646 }
 0x11b   : > { %10654 = vst [vmem:[#allocation27_spill] sm:$0xff] %v6025_v38  ;;  %10656 = vst [vmem:[#allocation28_spill] sm:$0xff] %v6028_v15  ;;  %2061 = vperm.xlu0 %5229, %v1215_v51   ;;  %1976 = vperm.xlu1 %5210, %v1198_v17   ;;  %v6041_v38 = vld [vmem:[%s5733_s17 + $0xd] ss:$0 sm:$0xff]  ;;  %v1308_v51 = vadd.f32 %v5740_v23, %v988_v48  ;;  %v849_v48 = vmul.f32 %v5823_v33, %v5649_v9 }
 0x11c   : > { %v1019_v17 = vmul.f32 %v6041_v38, %v5620_v4 }
 0x11e   : > { %v6036_v25 = vpop.permute.xlu0 %1656  ;;  %v6038_v44 = vpop.permute.xlu1 %1651 }
 0x11f   : > { %10657 = vst [vmem:[#allocation29_spill] sm:$0xff] %v6036_v25  ;;  %10658 = vst [vmem:[#allocation30_spill] sm:$0xff] %v6038_v44  ;;  %2291 = vperm.xlu0 %5229, %v1261_v20   ;;  %2436 = vperm.xlu1 %5210, %v1290_v45   ;;  %v1339_v20 = vadd.f32 %v5746_v28, %v1019_v17  ;;  %v1245_v45 = vadd.f32 %v5748_v29, %v925_v26 }
 0x120   : > { %v987_v17 = vmul.f32 %v5979_v60, %v5620_v4 }
 0x122   : > { %v6049_v15 = vpop.permute.xlu0 %1666  ;;  %v6051_v12 = vpop.permute.xlu1 %1661 }
 0x123   : > { %10659 = vst [vmem:[#allocation31_spill] sm:$0xff] %v6049_v15  ;;  %10660 = vst [vmem:[#allocation32_spill] sm:$0xff] %v6051_v12  ;;  %2526 = vperm.xlu0 %5229, %v1308_v51   ;;  %1901 = vperm.xlu1 %5210, %v1183_v30   ;;  %v1169_v12 = vadd.f32 %v5764_v41, %v849_v48  ;;  %v1276_v51 = vadd.f32 %v5740_v23, %v956_v1 }
 0x124   : > { %v911_v30 = vmul.f32 %v5891_v39, %v5637_v7  ;;  %v1004_v48 = vmul.f32 %v6001_v18, %v5613_v3  ;;  %v848_v1 = vmul.f32 %v5823_v33, %v5644_v8 }
 0x126   : > { %v6059_v44 = vpop.permute.xlu0 %1676  ;;  %v6061_v25 = vpop.permute.xlu1 %1671 }
 0x127   : > { %10661 = vst [vmem:[#allocation33_spill] sm:$0xff] %v6059_v44  ;;  %10662 = vst [vmem:[#allocation34_spill] sm:$0xff] %v6061_v25  ;;  %2681 = vperm.xlu0 %5229, %v1339_v20   ;;  %2211 = vperm.xlu1 %5210, %v1245_v45   ;;  %v1231_v20 = vadd.f32 %v5756_v35, %v911_v30  ;;  %v1307_v45 = vadd.f32 %v5746_v28, %v987_v17 }
 0x128   : > { %v879_v17 = vmul.f32 %v5847_v55, %v5637_v7 }
 0x12a   : > { %v6069_v26 = vpop.permute.xlu0 %1686  ;;  %v6071_v15 = vpop.permute.xlu1 %1681 }
 0x12b   : > { %10663 = vst [vmem:[#allocation35_spill] sm:$0xff] %v6069_v26  ;;  %10664 = vst [vmem:[#allocation36_spill] sm:$0xff] %v6071_v15  ;;  %1831 = vperm.xlu0 %5229, %v1169_v12   ;;  %2366 = vperm.xlu1 %5210, %v1276_v51   ;;  %v6084_v26 = vld [vmem:[%s5733_s17 + $0xe] ss:$0 sm:$0xff]  ;;  %v1324_v12 = vadd.f32 %v5740_v23, %v1004_v48  ;;  %v1168_v51 = vadd.f32 %v5762_v40, %v848_v1 }
 0x12c   : > { %v1035_v30 = vmul.f32 %v6084_v26, %v5620_v4  ;;  %v865_v48 = vmul.f32 %v5832_v42, %v5649_v9  ;;  %v972_v1 = vmul.f32 %v5953_v14, %v5613_v3 }
 0x12e   : > { %v6079_v25 = vpop.permute.xlu0 %1696  ;;  %v6081_v44 = vpop.permute.xlu1 %1691 }
 0x12f   : > { %10665 = vst [vmem:[#allocation37_spill] sm:$0xff] %v6079_v25  ;;  %10666 = vst [vmem:[#allocation38_spill] sm:$0xff] %v6081_v44  ;;  %2141 = vperm.xlu0 %5229, %v1231_v20   ;;  %2521 = vperm.xlu1 %5210, %v1307_v45   ;;  %v5233_v25 = vld [vmem:[#allocation2 + $0xac] ss:$12 sps:$4 sm:$0xff]   ;;  %v5235_v44 = vld [vmem:[#allocation2 + $0xa8] ss:$12 sps:$4 sm:$0xff]   ;;  %v1355_v20 = vadd.f32 %v5746_v28, %v1035_v30  ;;  %v1199_v45 = vadd.f32 %v5756_v35, %v879_v17 }
 0x130   : > { %508 = vmatprep.subr.bf16.mxu0 %v5233_v25  ;;  %v1185_v25 = vadd.f32 %v5764_v41, %v865_v48  ;;  %v1002_v30 = vmul.f32 %v6001_v18, %v5608_v2  ;;  %v864_v48 = vmul.f32 %v5832_v42, %v5644_v8 }
 0x131   : > { %509 = vmatpush1.bf16.msra.mxu0 %v5235_v44  ;;  %v5239_v44 = vld [vmem:[#allocation2 + $0x7c] ss:$12 sps:$4 sm:$0xff]  }
 0x132   : > { %v6092_v15 = vpop.permute.xlu0 %1706  ;;  %v6094_v49 = vpop.permute.xlu1 %1701  ;;  %510 = vmatprep.subr.bf16.mxu0 %v5236_v24 }
 0x133   : > { %10667 = vst [vmem:[#allocation39_spill] sm:$0xff] %v6092_v15  ;;  %10668 = vst [vmem:[#allocation40_spill] sm:$0xff] %v6094_v49  ;;  %2606 = vperm.xlu0 %5229, %v1324_v12   ;;  %1826 = vperm.xlu1 %5210, %v1168_v51   ;;  %v5238_v15 = vld [vmem:[#allocation2 + $0x90] ss:$12 sps:$4 sm:$0xff]   ;;  %v1292_v12 = vadd.f32 %v5740_v23, %v972_v1  ;;  %v927_v51 = vmul.f32 %v5879_v31, %v5637_v7 }
 0x135   : > { %511 = vmatpush1.bf16.msra.mxu0 %v5238_v15  ;;  %v1247_v24 = vadd.f32 %v5756_v35, %v927_v51  ;;  %v1184_v51 = vadd.f32 %v5762_v40, %v864_v48 }
 0x136   : > { %v6102_v57 = vpop.permute.xlu0 %1716  ;;  %v6104_v49 = vpop.permute.xlu1 %1711  ;;  %512 = vmatprep.subr.bf16.mxu0 %v5239_v44 }
 0x137   : > { %10669 = vst [vmem:[#allocation41_spill] sm:$0xff] %v6102_v57  ;;  %10670 = vst [vmem:[#allocation42_spill] sm:$0xff] %v6104_v49  ;;  %2761 = vperm.xlu0 %5229, %v1355_v20   ;;  %1981 = vperm.xlu1 %5210, %v1199_v45   ;;  %v5241_v49 = vld [vmem:[#allocation2 + $0x78] ss:$12 sps:$4 sm:$0xff]   ;;  %v1322_v20 = vadd.f32 %v5738_v22, %v1002_v30  ;;  %v958_v45 = vmul.f32 %v5924_v19, %v5632_v6 }
 0x138   : > { %v1020_v30 = vmul.f32 %v6041_v38, %v5613_v3 }
 0x139   : > { %513 = vmatpush1.bf16.msra.mxu0 %v5241_v49  ;;  %v926_v49 = vmul.f32 %v5879_v31, %v5632_v6  ;;  %v957_v6 = vmul.f32 %v5924_v19, %v5625_v5 }
 0x13a   : > { %v6112_v17 = vpop.permute.xlu0 %1726  ;;  %v6114_v57 = vpop.permute.xlu1 %1721 }
 0x13b   : > { %10671 = vst [vmem:[#allocation43_spill] sm:$0xff] %v6112_v17  ;;  %10672 = vst [vmem:[#allocation44_spill] sm:$0xff] %v6114_v57  ;;  %1911 = vperm.xlu0 %5229, %v1185_v25   ;;  %2446 = vperm.xlu1 %5210, %v1292_v12   ;;  %v5242_v57 = vld [vmem:[#allocation2 + $0x64] ss:$12 sps:$4 sm:$0xff]   ;;  %v5244_v25 = vld [vmem:[#allocation2 + $0x60] ss:$12 sps:$4 sm:$0xff]   ;;  %v1278_v12 = vadd.f32 %v5754_v34, %v958_v45 }
 0x13c   : > { %514 = vmatprep.subr.bf16.mxu0 %v5242_v57  ;;  %v5247_v17 = vld [vmem:[#allocation2 + $0x48] ss:$12 sps:$4 sm:$0xff]   ;;  %v6137_v57 = vld [vmem:[%s5733_s17 + $0xf] ss:$0 sm:$0xff] }
 0x13d   : > { %515 = vmatpush1.bf16.msra.mxu0 %v5244_v25  ;;  %10677 = vst [vmem:[#allocation49_spill] sm:$0xff] %v6137_v57  ;;  %v1051_v3 = vmul.f32 %v6137_v57, %v5620_v4  ;;  %v5248_v45 = vld [vmem:[#allocation2 + $0x34] ss:$12 sps:$4 sm:$0xff]   ;;  %v850_v4 = vmul.f32 %v5823_v33, %v5654_v10 }
 0x13e   : > { %v6122_v15 = vpop.permute.xlu0 %1736  ;;  %v6124_v1 = vpop.permute.xlu1 %1731 }
 0x13f   : > { %10673 = vst [vmem:[#allocation45_spill] sm:$0xff] %v6122_v15  ;;  %10674 = vst [vmem:[#allocation46_spill] sm:$0xff] %v6124_v1  ;;  %2221 = vperm.xlu0 %5229, %v1247_v24   ;;  %2596 = vperm.xlu1 %5210, %v1322_v20   ;;  %v5245_v15 = vld [vmem:[#allocation2 + $0x4c] ss:$12 sps:$4 sm:$0xff]   ;;  %v1340_v24 = vadd.f32 %v5740_v23, %v1020_v30  ;;  %v1246_v20 = vadd.f32 %v5754_v34, %v926_v49 }
 0x140   : > { %516 = vmatprep.subr.bf16.mxu0 %v5245_v15  ;;  %v1371_v15 = vadd.f32 %v5746_v28, %v1051_v3  ;;  %v1018_v30 = vmul.f32 %v6041_v38, %v5608_v2  ;;  %v1170_v28 = vadd.f32 %v5770_v46, %v850_v4  ;;  %v345_v4 = vld [vmem:[%s6179_s20] sm:$0xff] }
 0x141   : > { %517 = vmatpush1.bf16.msra.mxu0 %v5247_v17 }
 0x142   : > { %v6132_v44 = vpop.permute.xlu0 %1746  ;;  %v6134_v1 = vpop.permute.xlu1 %1741  ;;  %518 = vmatprep.subr.bf16.mxu0 %v5248_v45  ;;  %v5256_v45 = vld [vmem:[#allocation2] ss:$12 sps:$4 sm:$0xff]  }
 0x143   : > { %10675 = vst [vmem:[#allocation47_spill] sm:$0xff] %v6132_v44  ;;  %10676 = vst [vmem:[#allocation48_spill] sm:$0xff] %v6134_v1  ;;  %2376 = vperm.xlu0 %5229, %v1278_v12   ;;  %1906 = vperm.xlu1 %5210, %v1184_v51   ;;  %v5250_v12 = vld [vmem:[#allocation2 + $0x30] ss:$12 sps:$4 sm:$0xff]   ;;  %v1277_v51 = vadd.f32 %v5748_v29, %v957_v6  ;;  %v5253_v1 = vld [vmem:[#allocation2 + $0x18] ss:$12 sps:$4 sm:$0xff]  }
 0x144   : > { %v5254_v6 = vld [vmem:[#allocation2 + $0x4] ss:$12 sps:$4 sm:$0xff]  }
 0x145   : > { %519 = vmatpush1.bf16.msra.mxu0 %v5250_v12  ;;  %v1005_v12 = vmul.f32 %v6001_v18, %v5625_v5 }
 0x146   : > { %v6145_v48 = vpop.permute.xlu0 %1796  ;;  %v6147_v25 = vpop.permute.xlu1 %1751 }
 0x147   : > { %10678 = vst [vmem:[#allocation50_spill] sm:$0xff] %v6145_v48  ;;  %10679 = vst [vmem:[#allocation51_spill] sm:$0xff] %v6147_v25  ;;  %2686 = vperm.xlu0 %5229, %v1340_v24   ;;  %2216 = vperm.xlu1 %5210, %v1246_v20   ;;  %v5251_v25 = vld [vmem:[#allocation2 + $0x1c] ss:$12 sps:$4 sm:$0xff]   ;;  %v1338_v24 = vadd.f32 %v5738_v22, %v1018_v30  ;;  %v912_v20 = vmul.f32 %v5891_v39, %v5644_v8 }
 0x148   : > { %520 = vmatprep.subr.bf16.mxu0 %v5251_v25  ;;  %v346_v30 = vld [vmem:[%s6179_s20 + $0x8] sm:$0xff] }
 0x149   : > { %521 = vmatpush1.bf16.msra.mxu0 %v5253_v1  ;;  %v1232_v25 = vadd.f32 %v5762_v40, %v912_v20  ;;  %v880_v1 = vmul.f32 %v5847_v55, %v5644_v8  ;;  %v835_v20 = vmul.f32 %v5793_v62, %v5659_v11  ;;  %v897_v11 = vmul.f32 %v5856_v63, %v5649_v9  ;;  %v6217_v9 = vld [vmem:[%s10428_s6 + $0x28] sm:$0xff] }
 0x14a   : > { %v6155_v17 = vpop.permute.xlu0 %1876  ;;  %v6157_v49 = vpop.permute.xlu1 %1801  ;;  %522 = vmatprep.subr.bf16.mxu0 %v5254_v6 }
 0x14b   : > { %10680 = vst [vmem:[#allocation52_spill] sm:$0xff] %v6155_v17  ;;  %10681 = vst [vmem:[#allocation53_spill] sm:$0xff] %v6157_v49  ;;  %2841 = vperm.xlu0 %5229, %v1371_v15   ;;  %2371 = vperm.xlu1 %5210, %v1277_v51   ;;  %v1200_v8 = vadd.f32 %v5762_v40, %v880_v1  ;;  %v5357_v1 = vld [vmem:[%s10428_s6] sm:$0xff] }
 0x14d   : > { %523 = vmatpush1.bf16.msra.mxu0 %v5256_v45 }
 0x14e   : > { %v6163_v2 = vpop.permute.xlu0 %1806  ;;  %v6165_v3 = vpop.permute.xlu1 %1881 }
 0x14f   : > { %10682 = vst [vmem:[#allocation54_spill] sm:$0xff] %v6163_v2  ;;  %10683 = vst [vmem:[#allocation55_spill] sm:$0xff] %v6165_v3  ;;  %1836 = vperm.xlu0 %5229, %v1170_v28   ;;  %2676 = vperm.xlu1 %5210, %v1338_v24   ;;  %v6187_v28 = vpack.c.bf16 %v346_v30, %v345_v4  ;;  %v1325_v24 = vadd.f32 %v5748_v29, %v1005_v12 }
 0x151   : > { %10686 = vst [vmem:[#allocation58_spill] sm:$0xff] %v6187_v28  ;;  %541 = vmatmul.mubr.bf16.vlgmr.msra.gmra.mxu0 %v6187_v28  ;;  %v6232_v28 = vld [vmem:[%s10428_s6 + $0x20] sm:$0xff] }
 0x152   : > { %v6170_v15 = vpop.permute.xlu0 %1961  ;;  %v6172_v51 = vpop.permute.xlu1 %1956  ;;  %v942_v3 = vmul.f32 %v6232_v28, %v5913_v61  ;;  %v1054_v54 = vmul.f32 %v6232_v28, %v6137_v57 }
 0x153   : > { %10684 = vst [vmem:[#allocation56_spill] sm:$0xff] %v6170_v15  ;;  %10685 = vst [vmem:[#allocation57_spill] sm:$0xff] %v6172_v51  ;;  %2146 = vperm.xlu0 %5229, %v1232_v25   ;;  %5211 = vset.pattern.permute.xlu1 %v10652_v37  ;;  %v973_v25 = vmul.f32 %v5953_v14, %v5625_v5  ;;  %v1034_v5 = vmul.f32 %v5357_v1, %v6084_v26 }
 0x154   : > { %3447 = vperm.xlu1 %5211, %v5637_v7   ;;  %v1155_v7 = vadd.f32 %v5772_v47, %v835_v20  ;;  %v943_v20 = vmul.f32 %v6217_v9, %v5913_v61  ;;  %v990_v15 = vmul.f32 %v6232_v28, %v5979_v60  ;;  %v6466_v51 = vmul.f32 %v6217_v9, %v6041_v38 }
 0x155   : > { %v1293_v30 = vadd.f32 %v5748_v29, %v973_v25 }
 0x156   : > { %v6192_v6 = vpop.permute.xlu0 %2036  ;;  %v6194_v45 = vpop.permute.xlu1 %1886 }
 0x157   : > { %10687 = vst [vmem:[#allocation59_spill] sm:$0xff] %v6192_v6  ;;  %10688 = vst [vmem:[#allocation60_spill] sm:$0xff] %v6194_v45  ;;  %2611 = vperm.xlu0 %5229, %v1325_v24   ;;  %v1217_v24 = vadd.f32 %v5764_v41, %v897_v11  ;;  %v1263_v11 = vadd.f32 %v5756_v35, %v943_v20 }
 0x158   : > { %5212 = vset.pattern.permute.xlu1 %v10655_v13 }
 0x159   : > { %1986 = vperm.xlu1 %5212, %v1200_v8  }
 0x15a   : > { %v6204_v12 = vpop.permute.xlu0 %1966  ;;  %v6206_v4 = vpop.permute.xlu1 %2041 }
 0x15b   : > { %10689 = vst [vmem:[#allocation61_spill] sm:$0xff] %v6204_v12  ;;  %10690 = vst [vmem:[#allocation62_spill] sm:$0xff] %v6206_v4  ;;  %1761 = vperm.xlu0 %5229, %v1155_v7   ;;  %v1354_v7 = vadd.f32 %v5738_v22, %v1034_v5  ;;  %v1050_v12 = vmul.f32 %v5357_v1, %v6137_v57  ;;  %v6306_v1 = vld [vmem:[%s10428_s6 + $0x50] sm:$0xff] }
 0x15d   : > { %2451 = vperm.xlu1 %5212, %v1293_v30   ;;  %v834_v30 = vmul.f32 %v5793_v62, %v5654_v10  ;;  %v6242_v10 = vld [vmem:[%s10428_s6 + $0x30] sm:$0xff]  ;;  %v1370_v45 = vadd.f32 %v5738_v22, %v1050_v12 }
 0x15e   : > { %v6221_v8 = vpop.permute.xlu0 %1891  ;;  %v896_v5 = vmul.f32 %v6242_v10, %v5856_v63 }
 0x15f   : > { %10691 = vst [vmem:[#allocation63_spill] sm:$0xff] %v6221_v8  ;;  %2071 = vperm.xlu0 %5229, %v1217_v24   ;;  %v6223_v25 = vpop.permute.xlu1 %3431  ;;  %v1154_v24 = vadd.f32 %v5770_v46, %v834_v30 }
 0x160   : > { %10692 = vst [vmem:[#allocation64_spill] sm:$0xff] %v6223_v25  ;;  %v1216_v25 = vadd.f32 %v5762_v40, %v896_v5  ;;  %v1262_v5 = vadd.f32 %v5754_v34, %v942_v3 }
 0x161   : > { %2756 = vperm.xlu1 %5212, %v1354_v7   ;;  %v1310_v7 = vadd.f32 %v5754_v34, %v990_v15  ;;  %v6264_v15 = vld [vmem:[%s10428_s6 + $0x48] sm:$0xff] }
 0x162   : > { %v6236_v8 = vpop.permute.xlu0 %2196  ;;  %10697 = vst [vmem:[#allocation69_spill] sm:$0xff] %v6264_v15  ;;  %v6470_v2 = vmul.f32 %v6264_v15, %v5913_v61  ;;  %v6488_v48 = vmul.f32 %v6264_v15, %v5879_v31  ;;  %v6520_v36 = vmul.f32 %v6264_v15, %v5979_v60 }
 0x163   : > { %10693 = vst [vmem:[#allocation65_spill] sm:$0xff] %v6236_v8  ;;  %2301 = vperm.xlu0 %5229, %v1263_v11   ;;  %v5361_v8 = vld [vmem:[%s10428_s6 + $0x10] sm:$0xff] }
 0x164   : > { %v6246_v20 = vpop.permute.xlu1 %1811  ;;  %v1052_v11 = vmul.f32 %v5361_v8, %v6137_v57  ;;  %10727 = vst [vmem:[#allocation99_spill] sm:$0xff] %v6488_v48  ;;  %10730 = vst [vmem:[#allocation102_spill] sm:$0xff] %v6520_v36 }
 0x165   : > { %10694 = vst [vmem:[#allocation66_spill] sm:$0xff] %v6246_v20  ;;  %1756 = vperm.xlu1 %5212, %v1154_v24   ;;  %v851_v20 = vmul.f32 %v6264_v15, %v5823_v33 }
 0x166   : > { %v6253_v30 = vpop.permute.xlu0 %2126  ;;  %v1372_v24 = vadd.f32 %v5740_v23, %v1052_v11 }
 0x167   : > { %10695 = vst [vmem:[#allocation67_spill] sm:$0xff] %v6253_v30  ;;  %2536 = vperm.xlu0 %5229, %v1310_v7   ;;  %v6274_v7 = vld [vmem:[%s10428_s6 + $0x18] sm:$0xff] }
 0x168   : > { %v6258_v4 = vpop.permute.xlu1 %2116 }
 0x169   : > { %10696 = vst [vmem:[#allocation68_spill] sm:$0xff] %v6258_v4  ;;  %2066 = vperm.xlu1 %5212, %v1216_v25   ;;  %v989_v25 = vmul.f32 %v6274_v7, %v5979_v60  ;;  %v1171_v4 = vadd.f32 %v5772_v47, %v851_v20 }
 0x16a   : > { %v6268_v30 = vpop.permute.xlu0 %2206 }
 0x16b   : > { %10698 = vst [vmem:[#allocation70_spill] sm:$0xff] %v6268_v30  ;;  %2846 = vperm.xlu0 %5229, %v1372_v24   ;;  %v6284_v30 = vld [vmem:[%s10428_s6 + $0x38] sm:$0xff]  ;;  %v1309_v49 = vadd.f32 %v5748_v29, %v989_v25 }
 0x16c   : > { %v6278_v11 = vpop.permute.xlu1 %2121  ;;  %v913_v3 = vmul.f32 %v6284_v30, %v5891_v39  ;;  %v6474_v17 = vmul.f32 %v6284_v30, %v5953_v14  ;;  %v6540_v36 = vmul.f32 %v6284_v30, %v6041_v38 }
 0x16d   : > { %10699 = vst [vmem:[#allocation71_spill] sm:$0xff] %v6278_v11  ;;  %2296 = vperm.xlu1 %5212, %v1262_v5   ;;  %v1006_v5 = vmul.f32 %v6232_v28, %v6001_v18 }
 0x16e   : > { %v6288_v24 = vpop.permute.xlu0 %2281  ;;  %v1233_v20 = vadd.f32 %v5764_v41, %v913_v3  ;;  %10735 = vst [vmem:[#allocation107_spill] sm:$0xff] %v6540_v36 }
 0x16f   : > { %10700 = vst [vmem:[#allocation72_spill] sm:$0xff] %v6288_v24  ;;  %1841 = vperm.xlu0 %5229, %v1171_v4   ;;  %v1326_v4 = vadd.f32 %v5754_v34, %v1006_v5 }
 0x170   : > { %v6292_v44 = vpop.permute.xlu1 %2046 }
 0x171   : > { %10701 = vst [vmem:[#allocation73_spill] sm:$0xff] %v6292_v44  ;;  %2531 = vperm.xlu1 %5212, %v1309_v49   ;;  %v836_v49 = vmul.f32 %v6306_v1, %v5793_v62 }
 0x172   : > { %v6297_v11 = vpop.permute.xlu0 %2361 }
 0x173   : > { %10702 = vst [vmem:[#allocation74_spill] sm:$0xff] %v6297_v11  ;;  %2151 = vperm.xlu0 %5229, %v1233_v20   ;;  %v1156_v22 = vadd.f32 %v5778_v52, %v836_v49  ;;  %v881_v20 = vmul.f32 %v6284_v30, %v5847_v55  ;;  %v974_v11 = vmul.f32 %v6232_v28, %v5953_v14 }
 0x174   : > { %v6300_v6 = vpop.permute.xlu1 %2201 }
 0x175   : > { %10703 = vst [vmem:[#allocation75_spill] sm:$0xff] %v6300_v6  ;;  %2836 = vperm.xlu1 %5212, %v1370_v45   ;;  %v6319_v45 = vld [vmem:[%s10428_s6 + $0x40] sm:$0xff] }
 0x176   : > { %v6310_v25 = vpop.permute.xlu0 %1821  ;;  %v898_v12 = vmul.f32 %v6319_v45, %v5856_v63 }
 0x177   : > { %10704 = vst [vmem:[#allocation76_spill] sm:$0xff] %v6310_v25  ;;  %2616 = vperm.xlu0 %5229, %v1326_v4   ;;  %v1201_v25 = vadd.f32 %v5764_v41, %v881_v20  ;;  %v991_v20 = vmul.f32 %v6217_v9, %v5979_v60 }
 0x178   : > { %v6312_v3 = vpop.permute.xlu1 %1816  ;;  %v1218_v49 = vadd.f32 %v5770_v46, %v898_v12  ;;  %v1294_v12 = vadd.f32 %v5754_v34, %v974_v11  ;;  %v866_v11 = vmul.f32 %v6319_v45, %v5832_v42 }
 0x179   : > { %10705 = vst [vmem:[#allocation77_spill] sm:$0xff] %v6312_v3  ;;  %5213 = vset.pattern.permute.xlu1 %v10652_v37  ;;  %v944_v3 = vmul.f32 %v6242_v10, %v5913_v61 }
 0x17a   : > { %v6325_v5 = vpop.permute.xlu0 %2131  ;;  %3451 = vperm.xlu1 %5213, %v6242_v10  }
 0x17b   : > { %10706 = vst [vmem:[#allocation78_spill] sm:$0xff] %v6325_v5  ;;  %1766 = vperm.xlu0 %5229, %v1156_v22   ;;  %v1264_v22 = vadd.f32 %v5762_v40, %v944_v3  ;;  %v1053_v3 = vmul.f32 %v6274_v7, %v6137_v57 }
 0x17c   : > { %v6328_v4 = vpop.permute.xlu1 %1971 }
 0x17d   : > { %10707 = vst [vmem:[#allocation79_spill] sm:$0xff] %v6328_v4  ;;  %v1036_v4 = vmul.f32 %v5361_v8, %v6084_v26 }
 0x17e   : > { %v6336_v44 = vpop.permute.xlu0 %2441  ;;  %5214 = vset.pattern.permute.xlu1 %v10655_v13 }
 0x17f   : > { %10708 = vst [vmem:[#allocation80_spill] sm:$0xff] %v6336_v44  ;;  %2076 = vperm.xlu0 %5229, %v1218_v49   ;;  %1991 = vperm.xlu1 %5214, %v1201_v25   ;;  %v1311_v49 = vadd.f32 %v5756_v35, %v991_v20  ;;  %v1356_v25 = vadd.f32 %v5740_v23, %v1036_v4 }
 0x180   : > { %v6339_v5 = vpop.permute.xlu1 %1896  ;;  %v852_v20 = vmul.f32 %v6306_v1, %v5823_v33  ;;  %v928_v23 = vmul.f32 %v6242_v10, %v5879_v31 }
 0x181   : > { %10709 = vst [vmem:[#allocation81_spill] sm:$0xff] %v6339_v5 }
 0x182   : > { %v6346_v6 = vpop.permute.xlu0 %2056 }
 0x183   : > { %10710 = vst [vmem:[#allocation82_spill] sm:$0xff] %v6346_v6  ;;  %2306 = vperm.xlu0 %5229, %v1264_v22   ;;  %2456 = vperm.xlu1 %5214, %v1294_v12   ;;  %v1373_v22 = vadd.f32 %v5748_v29, %v1053_v3  ;;  %v1186_v12 = vadd.f32 %v5770_v46, %v866_v11 }
 0x184   : > { %v6348_v44 = vpop.permute.xlu1 %2051  ;;  %v914_v3 = vmul.f32 %v6319_v45, %v5891_v39  ;;  %v959_v11 = vmul.f32 %v6217_v9, %v5924_v19 }
 0x185   : > { %10711 = vst [vmem:[#allocation83_spill] sm:$0xff] %v6348_v44 }
 0x186   : > { %v6356_v5 = vpop.permute.xlu0 %2286 }
 0x187   : > { %10712 = vst [vmem:[#allocation84_spill] sm:$0xff] %v6356_v5  ;;  %2541 = vperm.xlu0 %5229, %v1311_v49   ;;  %2766 = vperm.xlu1 %5214, %v1356_v25   ;;  %v1172_v49 = vadd.f32 %v5778_v52, %v852_v20  ;;  %v1248_v25 = vadd.f32 %v5762_v40, %v928_v23 }
 0x188   : > { %v6358_v8 = vpop.permute.xlu1 %2276  ;;  %v1007_v20 = vmul.f32 %v6217_v9, %v6001_v18 }
 0x189   : > { %10713 = vst [vmem:[#allocation85_spill] sm:$0xff] %v6358_v8 }
 0x18a   : > { %v6366_v4 = vpop.permute.xlu0 %2516 }
 0x18b   : > { %10714 = vst [vmem:[#allocation86_spill] sm:$0xff] %v6366_v4  ;;  %2851 = vperm.xlu0 %5229, %v1373_v22   ;;  %1916 = vperm.xlu1 %5214, %v1186_v12   ;;  %v1234_v22 = vadd.f32 %v5770_v46, %v914_v3  ;;  %v1279_v12 = vadd.f32 %v5756_v35, %v959_v11 }
 0x18c   : > { %v6368_v44 = vpop.permute.xlu1 %2356  ;;  %v1021_v4 = vmul.f32 %v6274_v7, %v6041_v38 }
 0x18d   : > { %10715 = vst [vmem:[#allocation87_spill] sm:$0xff] %v6368_v44  ;;  %v6454_v44 = vmul.f32 %v6264_v15, %v5847_v55 }
 0x18e   : > { %v6376_v5 = vpop.permute.xlu0 %2136 }
 0x18f   : > { %10716 = vst [vmem:[#allocation88_spill] sm:$0xff] %v6376_v5  ;;  %1846 = vperm.xlu0 %5229, %v1172_v49   ;;  %2226 = vperm.xlu1 %5214, %v1248_v25   ;;  %v1327_v5 = vadd.f32 %v5756_v35, %v1007_v20  ;;  %v6392_v49 = vld [vmem:[%s10428_s6 + $0x58] sm:$0xff] }
 0x190   : > { %v837_v25 = vmul.f32 %v6392_v49, %v5793_v62  ;;  %v882_v62 = vmul.f32 %v6319_v45, %v5847_v55  ;;  %v6509_v48 = vmul.f32 %v6392_v49, %v5891_v39  ;;  %v6565_v36 = vmul.f32 %v6392_v49, %v5879_v31 }
 0x191   : > { %v6378_v6 = vpop.permute.xlu1 %3439 }
 0x192   : > { %10717 = vst [vmem:[#allocation89_spill] sm:$0xff] %v6378_v6  ;;  %v6384_v23 = vpop.permute.xlu0 %2601  ;;  %10729 = vst [vmem:[#allocation101_spill] sm:$0xff] %v6509_v48  ;;  %v6528_v48 = vmul.f32 %v6392_v49, %v5847_v55 }
 0x193   : > { %10718 = vst [vmem:[#allocation90_spill] sm:$0xff] %v6384_v23  ;;  %2156 = vperm.xlu0 %5229, %v1234_v22   ;;  %2381 = vperm.xlu1 %5214, %v1279_v12   ;;  %v1341_v23 = vadd.f32 %v5748_v29, %v1021_v4  ;;  %v1157_v22 = vadd.f32 %v5780_v53, %v837_v25  ;;  %10741 = vst [vmem:[#allocation113_spill] sm:$0xff] %v6565_v36 }
 0x194   : > { %v899_v12 = vmul.f32 %v6264_v15, %v5856_v63  ;;  %v945_v4 = vmul.f32 %v6284_v30, %v5913_v61  ;;  %v6587_v36 = vmul.f32 %v6264_v15, %v6041_v38 }
 0x196   : > { %v6396_v3 = vpop.permute.xlu0 %2061  ;;  %v6398_v11 = vpop.permute.xlu1 %1976  ;;  %10744 = vst [vmem:[#allocation116_spill] sm:$0xff] %v6587_v36 }
 0x197   : > { %10719 = vst [vmem:[#allocation91_spill] sm:$0xff] %v6396_v3  ;;  %10720 = vst [vmem:[#allocation92_spill] sm:$0xff] %v6398_v11  ;;  %2621 = vperm.xlu0 %5229, %v1327_v5   ;;  %2691 = vperm.xlu1 %5214, %v1341_v23   ;;  %v1219_v5 = vadd.f32 %v5772_v47, %v899_v12  ;;  %v1037_v3 = vmul.f32 %v6274_v7, %v6084_v26 }
 0x198   : > { %v6429_v12 = vmul.f32 %v6284_v30, %v5979_v60  ;;  %v6442_v7 = vmul.f32 %v6284_v30, %v6001_v18  ;;  %v992_v11 = vmul.f32 %v6242_v10, %v5979_v60 }
 0x19a   : > { %v6404_v20 = vpop.permute.xlu0 %2291  ;;  %v6406_v6 = vpop.permute.xlu1 %2436 }
 0x19b   : > { %10721 = vst [vmem:[#allocation93_spill] sm:$0xff] %v6404_v20  ;;  %10722 = vst [vmem:[#allocation94_spill] sm:$0xff] %v6406_v6  ;;  %1771 = vperm.xlu0 %5229, %v1157_v22   ;;  %5215 = vset.pattern.permute.xlu1 %v10652_v37  ;;  %v975_v22 = vmul.f32 %v6217_v9, %v5953_v14  ;;  %v6425_v6 = vmul.f32 %v6284_v30, %v5879_v31 }
 0x19c   : > { %3455 = vperm.xlu1 %5215, %v6284_v30   ;;  %v1202_v20 = vadd.f32 %v5770_v46, %v882_v62  ;;  %v6450_v62 = vmul.f32 %v6264_v15, %v5891_v39 }
 0x19d   : > { %v1295_v56 = vadd.f32 %v5756_v35, %v975_v22  ;;  %v1312_v22 = vadd.f32 %v5762_v40, %v992_v11  ;;  %v6532_v11 = vmul.f32 %v6284_v30, %v6137_v57 }
 0x19e   : > { %v6415_v23 = vpop.permute.xlu0 %2526  ;;  %v6417_v25 = vpop.permute.xlu1 %1901 }
 0x19f   : > { %10723 = vst [vmem:[#allocation95_spill] sm:$0xff] %v6415_v23  ;;  %10724 = vst [vmem:[#allocation96_spill] sm:$0xff] %v6417_v25  ;;  %2081 = vperm.xlu0 %5229, %v1219_v5   ;;  %v6434_v25 = vmul.f32 %v6264_v15, %v5832_v42  ;;  %v6438_v5 = vmul.f32 %v6217_v9, %v6137_v57  ;;  %v1265_v23 = vadd.f32 %v5764_v41, %v945_v4 }
 0x1a0   : > { %5216 = vset.pattern.permute.xlu1 %v10655_v13  ;;  %v6462_v4 = vmul.f32 %v6284_v30, %v5924_v19  ;;  %10733 = vst [vmem:[#allocation105_spill] sm:$0xff] %v6532_v11  ;;  %v1357_v11 = vadd.f32 %v5748_v29, %v1037_v3  ;;  %v6575_v29 = vld [vmem:[%s10428_s6 + $0x78] sm:$0xff] }
 0x1a1   : > { %1996 = vperm.xlu1 %5216, %v1202_v20   ;;  %v853_v20 = vmul.f32 %v6392_v49, %v5823_v33 }
 0x1a2   : > { %v6456_v8 = vpop.permute.xlu0 %2681  ;;  %v6458_v24 = vpop.permute.xlu1 %2211 }
 0x1a3   : > { %10725 = vst [vmem:[#allocation97_spill] sm:$0xff] %v6456_v8  ;;  %10726 = vst [vmem:[#allocation98_spill] sm:$0xff] %v6458_v24  ;;  %2311 = vperm.xlu0 %5229, %v1265_v23   ;;  %v6480_v8 = vmul.f32 %v6392_v49, %v5856_v63  ;;  %v6484_v24 = vmul.f32 %v6217_v9, %v6084_v26  ;;  %v6494_v23 = vld [vmem:[%s10428_s6 + $0x68] sm:$0xff]  ;;  %v6505_v9 = vmul.f32 %v6392_v49, %v5832_v42 }
 0x1a4   : > { %v6501_v43 = vmul.f32 %v6497_v27, %v6494_v23  ;;  %v6516_v32 = vmul.f32 %v6494_v23, %v5823_v33  ;;  %v6536_v33 = vmul.f32 %v6264_v15, %v6001_v18  ;;  %v6583_v3 = vmul.f32 %v6494_v23, %v5891_v39 }
 0x1a5   : > { %10728 = vst [vmem:[#allocation100_spill] sm:$0xff] %v6505_v9  ;;  %2461 = vperm.xlu1 %5216, %v1295_v56   ;;  %v6544_v56 = vmul.f32 %v6264_v15, %v5924_v19  ;;  %v6607_v36 = vmul.f32 %v6494_v23, %v5913_v61 }
 0x1a6   : > { %v6522_v13 = vpop.permute.xlu0 %1831  ;;  %v6524_v9 = vpop.permute.xlu1 %2366  ;;  %10734 = vst [vmem:[#allocation106_spill] sm:$0xff] %v6536_v33  ;;  %v6556_v33 = vmul.f32 %v6284_v30, %v6084_v26  ;;  %v6579_v30 = vmul.f32 %v6575_v29, %v6497_v27  ;;  %10743 = vst [vmem:[#allocation115_spill] sm:$0xff] %v6583_v3  ;;  %v6603_v3 = vmul.f32 %v6494_v23, %v5847_v55 }
 0x1a7   : > { %10731 = vst [vmem:[#allocation103_spill] sm:$0xff] %v6522_v13  ;;  %10732 = vst [vmem:[#allocation104_spill] sm:$0xff] %v6524_v9  ;;  %2546 = vperm.xlu0 %5229, %v1312_v22   ;;  %v6548_v13 = vmul.f32 %v6494_v23, %v5856_v63  ;;  %v6552_v9 = vmul.f32 %v6264_v15, %v5953_v14  ;;  %v6561_v22 = vmul.f32 %v6392_v49, %v5913_v61 }
 0x1a8   : > { %10736 = vst [vmem:[#allocation108_spill] sm:$0xff] %v6544_v56  ;;  %10739 = vst [vmem:[#allocation111_spill] sm:$0xff] %v6556_v33  ;;  %v6595_v33 = vmul.f32 %v6494_v23, %v5832_v42  ;;  %v6617_v42 = vld [vmem:[%s5733_s17 + $0x3] ss:$0 sm:$0xff]  ;;  %v6625_v55 = vmul.f32 %v6575_v29, %v5856_v63  ;;  %v1173_v63 = vadd.f32 %v5780_v53, %v853_v20 }
 0x1a9   : > { %10737 = vst [vmem:[#allocation109_spill] sm:$0xff] %v6548_v13  ;;  %10738 = vst [vmem:[#allocation110_spill] sm:$0xff] %v6552_v9  ;;  %v6569_v13 = vmul.f32 %v6392_v49, %v5924_v19  ;;  %v1374_v9 = vadd.f32 %v5754_v34, %v1054_v54  ;;  %2771 = vperm.xlu1 %5216, %v1357_v11   ;;  %v6610_v11 = vld [vmem:[%s5733_s17 + $0x2] ss:$0 sm:$0xff]  ;;  %v6664_v20 = vmul.f32 %v6575_v29, %v5879_v31 }
 0x1aa   : > { %10740 = vst [vmem:[#allocation112_spill] sm:$0xff] %v6561_v22  ;;  %v6591_v54 = vpop.permute.xlu1 %2521  ;;  %10747 = vst [vmem:[#allocation119_spill] sm:$0xff] %v6595_v33  ;;  %v6599_v22 = vmul.f32 %v6494_v23, %v5879_v31  ;;  %v6684_v31 = vmul.f32 %v6494_v23, %v6084_v26 }
 0x1ab   : > { %10742 = vst [vmem:[#allocation114_spill] sm:$0xff] %v6569_v13  ;;  %v6589_v13 = vpop.permute.xlu0 %2141  ;;  %10746 = vst [vmem:[#allocation118_spill] sm:$0xff] %v6591_v54  ;;  %2856 = vperm.xlu0 %5229, %v1374_v9   ;;  %v6621_v54 = vmul.f32 %v6617_v42, %v6575_v29  ;;  %v1187_v9 = vadd.f32 %v5772_v47, %v6434_v25  ;;  %v6652_v25 = vmul.f32 %v6392_v49, %v5979_v60 }
 0x1ac   : > { %10745 = vst [vmem:[#allocation117_spill] sm:$0xff] %v6589_v13  ;;  %10748 = vst [vmem:[#allocation120_spill] sm:$0xff] %v6599_v22  ;;  %v6614_v13 = vmul.f32 %v6610_v11, %v6575_v29  ;;  %v6639_v22 = vmul.f32 %v6392_v49, %v5953_v14 }
 0x1ad   : > { %10749 = vst [vmem:[#allocation121_spill] sm:$0xff] %v6603_v3  ;;  %10750 = vst [vmem:[#allocation122_spill] sm:$0xff] %v6607_v36  ;;  %v6629_v36 = vmul.f32 %v6264_v15, %v6084_v26  ;;  %v6635_v3 = vmul.f32 %v6575_v29, %v5891_v39  ;;  %v6656_v39 = vmul.f32 %v6392_v49, %v6001_v18  ;;  %1921 = vperm.xlu1 %5216, %v1187_v9  }
 0x1ae   : > { %10751 = vst [vmem:[#allocation123_spill] sm:$0xff] %v6614_v13  ;;  %10752 = vst [vmem:[#allocation124_spill] sm:$0xff] %v6621_v54  ;;  %v6643_v54 = vmul.f32 %v6264_v15, %v6137_v57  ;;  %v6680_v9 = vmul.f32 %v6575_v29, %v5953_v14 }
 0x1af   : > { %10753 = vst [vmem:[#allocation125_spill] sm:$0xff] %v6625_v55  ;;  %10754 = vst [vmem:[#allocation126_spill] sm:$0xff] %v6629_v36  ;;  %v6648_v36 = vmul.f32 %v6494_v23, %v6041_v38  ;;  %1851 = vperm.xlu0 %5229, %v1173_v63   ;;  %v960_v63 = vmul.f32 %v6242_v10, %v5924_v19 }
 0x1b0   : > { %10755 = vst [vmem:[#allocation127_spill] sm:$0xff] %v6635_v3  ;;  %10756 = vst [vmem:[#allocation128_spill] sm:$0xff] %v6639_v22  ;;  %v6658_v22 = vpop.permute.xlu0 %2606  ;;  %v6660_v3 = vpop.permute.xlu1 %1826 }
 0x1b1   : > { %10757 = vst [vmem:[#allocation129_spill] sm:$0xff] %v6643_v54  ;;  %10758 = vst [vmem:[#allocation130_spill] sm:$0xff] %v6648_v36  ;;  %v6668_v54 = vmul.f32 %v6575_v29, %v5924_v19 }
 0x1b2   : > { %10759 = vst [vmem:[#allocation131_spill] sm:$0xff] %v6652_v25  ;;  %10760 = vst [vmem:[#allocation132_spill] sm:$0xff] %v6656_v39  ;;  %v6672_v25 = vmul.f32 %v6392_v49, %v6041_v38  ;;  %v6676_v39 = vmul.f32 %v6392_v49, %v6084_v26 }
 0x1b3   : > { %10761 = vst [vmem:[#allocation133_spill] sm:$0xff] %v6658_v22  ;;  %10762 = vst [vmem:[#allocation134_spill] sm:$0xff] %v6660_v3  ;;  %v6688_v3 = vmul.f32 %v6494_v23, %v5924_v19  ;;  %v6692_v22 = vmul.f32 %v6392_v49, %v6137_v57  ;;  %v1235_v49 = vadd.f32 %v5772_v47, %v6450_v62 }
 0x1b4   : > { %10763 = vst [vmem:[#allocation135_spill] sm:$0xff] %v6664_v20  ;;  %10764 = vst [vmem:[#allocation136_spill] sm:$0xff] %v6668_v54  ;;  %v6719_v19 = vmul.f32 %v6575_v29, %v6041_v38  ;;  %v6727_v62 = vmul.f32 %v6575_v29, %v6084_v26  ;;  %v6793_v20 = vld [vmem:[%s5733_s17 + $0x7] ss:$0 sm:$0xff] }
 0x1b5   : > { %10765 = vst [vmem:[#allocation137_spill] sm:$0xff] %v6672_v25  ;;  %10766 = vst [vmem:[#allocation138_spill] sm:$0xff] %v6676_v39  ;;  %v1249_v39 = vadd.f32 %v5764_v41, %v6425_v6  ;;  %v6699_v25 = vld [vmem:[%s5733_s17 + $0x4] ss:$0 sm:$0xff]  ;;  %v6715_v6 = vmul.f32 %v6575_v29, %v6001_v18  ;;  %2161 = vperm.xlu0 %5229, %v1235_v49  }
 0x1b6   : > { %10767 = vst [vmem:[#allocation139_spill] sm:$0xff] %v6680_v9  ;;  %10768 = vst [vmem:[#allocation140_spill] sm:$0xff] %v6684_v31  ;;  %v6703_v9 = vmul.f32 %v6699_v25, %v6575_v29  ;;  %v6707_v31 = vmul.f32 %v6494_v23, %v5953_v14 }
 0x1b7   : > { %10769 = vst [vmem:[#allocation141_spill] sm:$0xff] %v6688_v3  ;;  %10770 = vst [vmem:[#allocation142_spill] sm:$0xff] %v6692_v22  ;;  %v1008_v22 = vmul.f32 %v6242_v10, %v6001_v18  ;;  %2231 = vperm.xlu1 %5216, %v1249_v39   ;;  %v6721_v3 = vpop.permute.xlu0 %2761  ;;  %v1022_v39 = vmul.f32 %v6232_v28, %v6041_v38 }
 0x1b8   : > { %10771 = vst [vmem:[#allocation143_spill] sm:$0xff] %v6703_v9  ;;  %10772 = vst [vmem:[#allocation144_spill] sm:$0xff] %v6707_v31  ;;  %v6723_v9 = vpop.permute.xlu1 %1981  ;;  %v6731_v31 = vmul.f32 %v6494_v23, %v5979_v60 }
 0x1b9   : > { %10773 = vst [vmem:[#allocation145_spill] sm:$0xff] %v6715_v6  ;;  %10774 = vst [vmem:[#allocation146_spill] sm:$0xff] %v6719_v19  ;;  %v6735_v6 = vmul.f32 %v6494_v23, %v6001_v18  ;;  %v6739_v19 = vmul.f32 %v6494_v23, %v6137_v57  ;;  %v1280_v18 = vadd.f32 %v5762_v40, %v960_v63  ;;  %v6757_v23 = vld [vmem:[%s10428_s6 + $0x60] sm:$0xff] }
 0x1ba   : > { %10775 = vst [vmem:[#allocation147_spill] sm:$0xff] %v6721_v3  ;;  %10776 = vst [vmem:[#allocation148_spill] sm:$0xff] %v6723_v9  ;;  %v1038_v9 = vmul.f32 %v6232_v28, %v6084_v26  ;;  %v6747_v3 = vmul.f32 %v6575_v29, %v5913_v61  ;;  %v838_v26 = vmul.f32 %v6757_v23, %v6497_v27  ;;  %v6762_v28 = vld [vmem:[%s5733_s17 + $0x5] ss:$0 sm:$0xff] }
 0x1bb   : > { %10777 = vst [vmem:[#allocation149_spill] sm:$0xff] %v6727_v62  ;;  %10778 = vst [vmem:[#allocation150_spill] sm:$0xff] %v6731_v31  ;;  %v6751_v31 = vmul.f32 %v6575_v29, %v5979_v60  ;;  %v900_v49 = vmul.f32 %v6762_v28, %v6306_v1  ;;  %v976_v63 = vmul.f32 %v6242_v10, %v5953_v14  ;;  %2386 = vperm.xlu1 %5216, %v1280_v18   ;;  %v6779_v62 = vpop.permute.xlu0 %1911  ;;  %v6788_v14 = vld [vmem:[%s5733_s17 + $0x6] ss:$0 sm:$0xff] }
 0x1bc   : > { %10779 = vst [vmem:[#allocation151_spill] sm:$0xff] %v6735_v6  ;;  %10780 = vst [vmem:[#allocation152_spill] sm:$0xff] %v6739_v19  ;;  %v946_v19 = vmul.f32 %v6319_v45, %v5913_v61  ;;  %v6777_v6 = vmul.f32 %v6575_v29, %v6137_v57  ;;  %v6781_v36 = vpop.permute.xlu1 %2446  ;;  %v854_v61 = vmul.f32 %v6757_v23, %v6610_v11 }
 0x1bd   : > { %10781 = vst [vmem:[#allocation153_spill] sm:$0xff] %v6747_v3  ;;  %10782 = vst [vmem:[#allocation154_spill] sm:$0xff] %v6751_v31  ;;  %v1328_v31 = vadd.f32 %v5762_v40, %v1008_v22  ;;  %v6773_v3 = vmul.f32 %v6242_v10, %v6137_v57  ;;  %v868_v22 = vmul.f32 %v6617_v42, %v6306_v1 }
 0x1be   : > { %10783 = vst [vmem:[#allocation155_spill] sm:$0xff] %v6777_v6  ;;  %10784 = vst [vmem:[#allocation156_spill] sm:$0xff] %v6779_v62  ;;  %v916_v54 = vmul.f32 %v6788_v14, %v6306_v1  ;;  %v930_v29 = vmul.f32 %v6793_v20, %v6319_v45  ;;  %v1342_v18 = vadd.f32 %v5754_v34, %v1022_v39  ;;  %v6818_v39 = vld [vmem:[%s10424_s2] ss:$0 sm:$0xff] }
 0x1bf   : > { %10785 = vst [vmem:[#allocation157_spill] sm:$0xff] %v6781_v36  ;;  %2626 = vperm.xlu0 %5229, %v1328_v31   ;;  %v884_v62 = vmul.f32 %v6699_v25, %v6306_v1  ;;  %v994_v36 = vmul.f32 %v6319_v45, %v5979_v60  ;;  %v6804_v6 = vmul.f32 %v6242_v10, %v6041_v38 }
 0x1c0   : > { %v1158_v55 = vadd.f32 %v5786_v58, %v838_v26  ;;  %v1220_v15 = vadd.f32 %v5778_v52, %v900_v49  ;;  %v6809_v33 = vadd.f32 %v5770_v46, %v946_v19  ;;  %v6813_v31 = vadd.f32 %v5772_v47, %v6454_v44  ;;  %v6837_v44 = vld [vmem:[%s10424_s2 + $0x1] ss:$0 sm:$0xff]  ;;  %v6847_v49 = vld [vmem:[%s10424_s2 + $0x3] ss:$0 sm:$0xff]  ;;  %2696 = vperm.xlu1 %5216, %v1342_v18   ;;  %v6868_v18 = vld [vmem:[%s10424_s2 + $0x4] ss:$0 sm:$0xff] }
 0x1c1   : > { %v6822_v38 = vadd.f32 %v5764_v41, %v6429_v12  ;;  %v6825_v60 = vadd.f32 %v5762_v40, %v976_v63  ;;  %v6829_v19 = vadd.f32 %v5756_v35, %v6438_v5  ;;  %v6832_v26 = vadd.f32 %v5754_v34, %v1038_v9  ;;  %v6842_v12 = vld [vmem:[%s10424_s2 + $0x2] ss:$0 sm:$0xff]  ;;  %v6849_v5 = vpop.permute.xlu0 %2221  ;;  %v6851_v34 = vpop.permute.xlu1 %2596 }
 0x1c2   : > { %10786 = vst [vmem:[#allocation158_spill] sm:$0xff] %v6849_v5  ;;  %10787 = vst [vmem:[#allocation159_spill] sm:$0xff] %v6851_v34  ;;  %v6854_v9 = vadd.f32 %v5786_v58, %v854_v61  ;;  %v6857_v63 = vadd.f32 %v5778_v52, %v868_v22  ;;  %v6860_v13 = vadd.f32 %v5778_v52, %v916_v54  ;;  %v6873_v5 = vld [vmem:[%s10424_s2 + $0x5] ss:$0 sm:$0xff]  ;;  %v6878_v61 = vld [vmem:[%s10424_s2 + $0x6] ss:$0 sm:$0xff] }
 0x1c3   : > { %v6863_v57 = vadd.f32 %v5770_v46, %v930_v29  ;;  %1776 = vperm.xlu0 %5229, %v1158_v55   ;;  %v6882_v54 = vadd.f32 %v5764_v41, %v6442_v7  ;;  %v6886_v22 = vadd.f32 %v5764_v41, %v6462_v4  ;;  %v6890_v29 = vadd.f32 %v5788_v59, %v6501_v43  ;;  %v6903_v7 = vld [vmem:[%s10424_s2 + $0x7] ss:$0 sm:$0xff] }
 0x1c4   : > { %v6894_v34 = vadd.f32 %v5756_v35, %v6466_v51  ;;  %v6898_v56 = vmul.f32 %v6818_v39, %v5858_v0  ;;  %v6907_v4 = vadd.f32 %v5780_v53, %v6480_v8  ;;  %v6911_v43 = vadd.f32 %v5772_v47, %v6470_v2  ;;  %5217 = vset.pattern.permute.xlu1 %v10652_v37 }
 0x1c5   : > { %v6914_v51 = vadd.f32 %v5778_v52, %v884_v62  ;;  %v6918_v55 = vmul.f32 %v6818_v39, %v5901_v50  ;;  %v6930_v8 = vmul.f32 %v6842_v12, %v5901_v50  ;;  %v6934_v2 = vmul.f32 %v6847_v49, %v5901_v50  ;;  %3459 = vperm.xlu1 %5217, %v6319_v45  }
 0x1c6   : > { %10788 = vst [vmem:[#allocation160_spill] sm:$0xff] %v6894_v34  ;;  %10789 = vst [vmem:[#allocation161_spill] sm:$0xff] %v6898_v56  ;;  %v6922_v56 = vmul.f32 %v6837_v44, %v5858_v0  ;;  %v6926_v34 = vmul.f32 %v6837_v44, %v5901_v50  ;;  %v6938_v62 = vmul.f32 %v6868_v18, %v5901_v50 }
 0x1c7   : > { %10790 = vst [vmem:[#allocation162_spill] sm:$0xff] %v6918_v55  ;;  %10793 = vst [vmem:[#allocation165_spill] sm:$0xff] %v6930_v8  ;;  %v6942_v55 = vmul.f32 %v6873_v5, %v5901_v50  ;;  %v6951_v8 = vpop.permute.xlu1 %1906  ;;  %2086 = vperm.xlu0 %5229, %v1220_v15   ;;  %v6987_v15 = vmul.f32 %v6837_v44, %v5918_v16 }
 0x1c8   : > { %10791 = vst [vmem:[#allocation163_spill] sm:$0xff] %v6922_v56  ;;  %10792 = vst [vmem:[#allocation164_spill] sm:$0xff] %v6926_v34  ;;  %v6946_v56 = vmul.f32 %v6878_v61, %v5901_v50  ;;  %v6949_v34 = vpop.permute.xlu0 %2376 }
 0x1c9   : > { %10794 = vst [vmem:[#allocation166_spill] sm:$0xff] %v6934_v2  ;;  %10795 = vst [vmem:[#allocation167_spill] sm:$0xff] %v6938_v62  ;;  %v6955_v2 = vmul.f32 %v6842_v12, %v5858_v0  ;;  %v6959_v62 = vmul.f32 %v6903_v7, %v5901_v50  ;;  %v6979_v50 = vadd.f32 %v5756_v35, %v6484_v24 }
 0x1ca   : > { %10796 = vst [vmem:[#allocation168_spill] sm:$0xff] %v6942_v55  ;;  %10797 = vst [vmem:[#allocation169_spill] sm:$0xff] %v6946_v56  ;;  %v6963_v55 = vadd.f32 %v5770_v46, %v994_v36  ;;  %v6967_v56 = vmul.f32 %v6818_v39, %v5918_v16  ;;  %v6983_v36 = vmul.f32 %v6818_v39, %v5866_v21 }
 0x1cb   : > { %10798 = vst [vmem:[#allocation170_spill] sm:$0xff] %v6949_v34  ;;  %10799 = vst [vmem:[#allocation171_spill] sm:$0xff] %v6951_v8  ;;  %v6971_v8 = vadd.f32 %v5764_v41, %v6474_v17  ;;  %v6975_v34 = vadd.f32 %v5762_v40, %v6773_v3  ;;  %v6991_v17 = vmul.f32 %v6837_v44, %v5866_v21  ;;  %2316 = vperm.xlu0 %5229, %v6809_v33  }
 0x1cc   : > { %10800 = vst [vmem:[#allocation172_spill] sm:$0xff] %v6955_v2  ;;  %10801 = vst [vmem:[#allocation173_spill] sm:$0xff] %v6959_v62  ;;  %v6995_v3 = vmul.f32 %v6847_v49, %v5858_v0  ;;  %v6999_v35 = vmul.f32 %v6842_v12, %v5918_v16  ;;  %v7003_v24 = vmul.f32 %v6847_v49, %v5918_v16 }
 0x1cd   : > { %10802 = vst [vmem:[#allocation174_spill] sm:$0xff] %v6967_v56  ;;  %10803 = vst [vmem:[#allocation175_spill] sm:$0xff] %v6983_v36  ;;  %v7007_v62 = vmul.f32 %v6868_v18, %v5918_v16  ;;  %v7011_v2 = vmul.f32 %v6878_v61, %v5918_v16  ;;  %v10880_v56 = vld [vmem:[#allocation20_spill] sm:$0xff] }
 0x1ce   : > { %10804 = vst [vmem:[#allocation176_spill] sm:$0xff] %v6987_v15  ;;  %10805 = vst [vmem:[#allocation177_spill] sm:$0xff] %v6991_v17  ;;  %v7013_v17 = vpop.permute.xlu0 %2686  ;;  %v7015_v15 = vpop.permute.xlu1 %2216 }
 0x1cf   : > { %10806 = vst [vmem:[#allocation178_spill] sm:$0xff] %v6995_v3  ;;  %10807 = vst [vmem:[#allocation179_spill] sm:$0xff] %v6999_v35  ;;  %v7019_v3 = vmul.f32 %v6868_v18, %v5858_v0  ;;  %v7023_v35 = vmul.f32 %v6903_v7, %v5918_v16  ;;  %2551 = vperm.xlu0 %5229, %v6822_v38  }
 0x1d0   : > { %10808 = vst [vmem:[#allocation180_spill] sm:$0xff] %v7003_v24  ;;  %10809 = vst [vmem:[#allocation181_spill] sm:$0xff] %v7007_v62  ;;  %v7027_v24 = vmul.f32 %v6873_v5, %v5918_v16  ;;  %v10816_v62 = vmov 0   ;;  %v7046_v16 = vadd.f32 %v5788_v59, %v6516_v32  ;;  %v7066_v32 = vmul.f32 %v6842_v12, %v5866_v21 }
 0x1d1   : > { %10810 = vst [vmem:[#allocation182_spill] sm:$0xff] %v7011_v2  ;;  %10811 = vst [vmem:[#allocation183_spill] sm:$0xff] %v7013_v17  ;;  %5218 = vset.pattern.permute.xlu1 %v10816_v62  ;;  %v10817_v2 = vld [vmem:[#allocation14_spill] sm:$0xff] }
 0x1d2   : > { %10812 = vst [vmem:[#allocation184_spill] sm:$0xff] %v7015_v15  ;;  %10813 = vst [vmem:[#allocation185_spill] sm:$0xff] %v7019_v3  ;;  %v7033_v17 = vmul.f32 %v6818_v39, %v10817_v2  ;;  %v7037_v15 = vmul.f32 %v6873_v5, %v5858_v0  ;;  %v7041_v3 = vmul.f32 %v6847_v49, %v5866_v21  ;;  %2001 = vperm.xlu1 %5218, %v6813_v31   ;;  %v7082_v36 = vpop.permute.xlu1 %2371 }
 0x1d3   : > { %10814 = vst [vmem:[#allocation186_spill] sm:$0xff] %v7023_v35  ;;  %10815 = vst [vmem:[#allocation187_spill] sm:$0xff] %v7027_v24  ;;  %v10822_v24 = vld [vmem:[#allocation10_spill] sm:$0xff]  ;;  %v7054_v35 = vmul.f32 %v6837_v44, %v10817_v2  ;;  %v7070_v31 = vmul.f32 %v6878_v61, %v5858_v0  ;;  %2861 = vperm.xlu0 %5229, %v6829_v19  }
 0x1d4   : > { %10818 = vst [vmem:[#allocation14_spill] sm:$0xff] %v7033_v17  ;;  %10819 = vst [vmem:[#allocation188_spill] sm:$0xff] %v7037_v15  ;;  %v7050_v33 = vmul.f32 %v6818_v39, %v10822_v24  ;;  %v7058_v15 = vmul.f32 %v6837_v44, %v10822_v24  ;;  %v7190_v19 = vmul.f32 %v6903_v7, %v10822_v24 }
 0x1d5   : > { %10820 = vst [vmem:[#allocation189_spill] sm:$0xff] %v7041_v3  ;;  %10821 = vst [vmem:[#allocation190_spill] sm:$0xff] %v7046_v16  ;;  %v7062_v3 = vmul.f32 %v6903_v7, %v5858_v0  ;;  %v7090_v0 = vmul.f32 %v6878_v61, %v10817_v2  ;;  %v902_v17 = vmul.f32 %v6762_v28, %v6757_v23  ;;  %v10891_v16 = vld [vmem:[#allocation22_spill] sm:$0xff] }
 0x1d6   : > { %10823 = vst [vmem:[#allocation10_spill] sm:$0xff] %v7050_v33  ;;  %10824 = vst [vmem:[#allocation191_spill] sm:$0xff] %v7054_v35  ;;  %v7074_v33 = vmul.f32 %v6842_v12, %v10817_v2  ;;  %v7078_v35 = vmul.f32 %v6847_v49, %v10817_v2  ;;  %2466 = vperm.xlu1 %5218, %v6825_v60   ;;  %v7132_v60 = vmul.f32 %v6878_v61, %v5866_v21 }
 0x1d7   : > { %10825 = vst [vmem:[#allocation192_spill] sm:$0xff] %v7058_v15  ;;  %10826 = vst [vmem:[#allocation193_spill] sm:$0xff] %v7062_v3  ;;  %v7080_v15 = vpop.permute.xlu0 %2841  ;;  %v7086_v3 = vmul.f32 %v6873_v5, %v10817_v2  ;;  %1856 = vperm.xlu0 %5229, %v6854_v9  }
 0x1d8   : > { %10827 = vst [vmem:[#allocation194_spill] sm:$0xff] %v7066_v32  ;;  %10828 = vst [vmem:[#allocation195_spill] sm:$0xff] %v7070_v31  ;;  %v7094_v32 = vmul.f32 %v6868_v18, %v10817_v2 }
 0x1d9   : > { %10829 = vst [vmem:[#allocation196_spill] sm:$0xff] %v7074_v33  ;;  %10830 = vst [vmem:[#allocation197_spill] sm:$0xff] %v7078_v35  ;;  %v7098_v33 = vmul.f32 %v6903_v7, %v10817_v2  ;;  %v10839_v35 = vld [vmem:[#allocation11_spill] sm:$0xff] }
 0x1da   : > { %10831 = vst [vmem:[#allocation198_spill] sm:$0xff] %v7080_v15  ;;  %10832 = vst [vmem:[#allocation199_spill] sm:$0xff] %v7082_v36  ;;  %v10837_v15 = vld [vmem:[#allocation16_spill] sm:$0xff]  ;;  %2776 = vperm.xlu1 %5218, %v6832_v26  }
 0x1db   : > { %10833 = vst [vmem:[#allocation200_spill] sm:$0xff] %v7086_v3  ;;  %10834 = vst [vmem:[#allocation201_spill] sm:$0xff] %v7090_v0  ;;  %v7103_v36 = vmul.f32 %v6818_v39, %v10837_v15  ;;  %v7107_v3 = vmul.f32 %v6818_v39, %v10839_v35  ;;  %v10841_v0 = vld [vmem:[#allocation100_spill] sm:$0xff]  ;;  %v7120_v38 = vmul.f32 %v6837_v44, %v10837_v15  ;;  %2166 = vperm.xlu0 %5229, %v6860_v13  }
 0x1dc   : > { %10835 = vst [vmem:[#allocation202_spill] sm:$0xff] %v7094_v32  ;;  %10836 = vst [vmem:[#allocation203_spill] sm:$0xff] %v7098_v33  ;;  %v7112_v31 = vadd.f32 %v5780_v53, %v10841_v0  ;;  %v10843_v32 = vld [vmem:[#allocation101_spill] sm:$0xff]  ;;  %v7124_v33 = vmul.f32 %v6837_v44, %v10839_v35  ;;  %v7140_v0 = vmul.f32 %v6873_v5, %v5866_v21 }
 0x1dd   : > { %10838 = vst [vmem:[#allocation16_spill] sm:$0xff] %v7103_v36  ;;  %10840 = vst [vmem:[#allocation11_spill] sm:$0xff] %v7107_v3  ;;  %v7116_v2 = vadd.f32 %v5780_v53, %v10843_v32  ;;  %v7128_v3 = vmul.f32 %v6842_v12, %v10822_v24  ;;  %v7136_v32 = vmul.f32 %v6868_v18, %v5866_v21  ;;  %v7152_v36 = vpop.permute.xlu1 %2676 }
 0x1de   : > { %10842 = vst [vmem:[#allocation100_spill] sm:$0xff] %v7112_v31  ;;  %10845 = vst [vmem:[#allocation204_spill] sm:$0xff] %v7120_v38  ;;  %v7144_v38 = vmul.f32 %v6873_v5, %v10822_v24  ;;  %v7208_v26 = vmul.f32 %v6868_v18, %v10837_v15  ;;  %1926 = vperm.xlu1 %5218, %v6857_v63   ;;  %v10882_v63 = vld [vmem:[#allocation13_spill] sm:$0xff]  ;;  %v7318_v13 = vadd.f32 %v5786_v58, %v902_v17 }
 0x1df   : > { %10844 = vst [vmem:[#allocation101_spill] sm:$0xff] %v7116_v2  ;;  %10846 = vst [vmem:[#allocation205_spill] sm:$0xff] %v7124_v33  ;;  %v7148_v33 = vmul.f32 %v6847_v49, %v10822_v24  ;;  %v7267_v2 = vmul.f32 %v6818_v39, %v10882_v63  ;;  %2631 = vperm.xlu0 %5229, %v6882_v54  }
 0x1e0   : > { %10847 = vst [vmem:[#allocation206_spill] sm:$0xff] %v7128_v3  ;;  %10848 = vst [vmem:[#allocation207_spill] sm:$0xff] %v7132_v60  ;;  %v7150_v3 = vpop.permute.xlu0 %1836  ;;  %v7156_v60 = vmul.f32 %v6903_v7, %v5866_v21 }
 0x1e1   : > { %10849 = vst [vmem:[#allocation208_spill] sm:$0xff] %v7136_v32  ;;  %10850 = vst [vmem:[#allocation209_spill] sm:$0xff] %v7140_v0  ;;  %v7160_v32 = vmul.f32 %v6842_v12, %v10839_v35 }
 0x1e2   : > { %10851 = vst [vmem:[#allocation210_spill] sm:$0xff] %v7144_v38  ;;  %10852 = vst [vmem:[#allocation211_spill] sm:$0xff] %v7148_v33  ;;  %v7164_v38 = vmul.f32 %v6878_v61, %v10822_v24  ;;  %v7168_v33 = vmul.f32 %v6842_v12, %v10837_v15  ;;  %2236 = vperm.xlu1 %5218, %v6863_v57   ;;  %v7335_v57 = vld [vmem:[%s5733_s17 + $0xe] ss:$0 sm:$0xff] }
 0x1e3   : > { %10853 = vst [vmem:[#allocation212_spill] sm:$0xff] %v7150_v3  ;;  %10854 = vst [vmem:[#allocation213_spill] sm:$0xff] %v7152_v36  ;;  %v10859_v3 = vld [vmem:[#allocation18_spill] sm:$0xff]  ;;  %v10861_v36 = vld [vmem:[#allocation12_spill] sm:$0xff]  ;;  %v1040_v17 = vmul.f32 %v7335_v57, %v6242_v10  ;;  %v870_v10 = vmul.f32 %v6757_v23, %v6617_v42  ;;  %1781 = vperm.xlu0 %5229, %v6890_v29  }
 0x1e4   : > { %10855 = vst [vmem:[#allocation214_spill] sm:$0xff] %v7156_v60  ;;  %10856 = vst [vmem:[#allocation215_spill] sm:$0xff] %v7160_v32  ;;  %v7173_v21 = vmul.f32 %v6818_v39, %v10859_v3  ;;  %v7177_v60 = vmul.f32 %v6818_v39, %v10861_v36  ;;  %v7181_v32 = vmul.f32 %v6868_v18, %v10822_v24 }
 0x1e5   : > { %10857 = vst [vmem:[#allocation216_spill] sm:$0xff] %v7164_v38  ;;  %10858 = vst [vmem:[#allocation217_spill] sm:$0xff] %v7168_v33  ;;  %v7185_v38 = vmul.f32 %v6847_v49, %v10839_v35  ;;  %v7194_v33 = vmul.f32 %v6847_v49, %v10837_v15  ;;  %v7198_v0 = vmul.f32 %v6842_v12, %v10859_v3 }
 0x1e6   : > { %10860 = vst [vmem:[#allocation18_spill] sm:$0xff] %v7173_v21  ;;  %10862 = vst [vmem:[#allocation12_spill] sm:$0xff] %v7177_v60  ;;  %v7204_v60 = vpop.permute.xlu0 %2146  ;;  %v7212_v24 = vmul.f32 %v6837_v44, %v10861_v36  ;;  %v7242_v21 = vld [vmem:[%s10428_s6 + $0x70] sm:$0xff]  ;;  %2391 = vperm.xlu1 %5218, %v6886_v22  }
 0x1e7   : > { %10863 = vst [vmem:[#allocation218_spill] sm:$0xff] %v7181_v32  ;;  %10864 = vst [vmem:[#allocation219_spill] sm:$0xff] %v7185_v38  ;;  %v7202_v32 = vmul.f32 %v6878_v61, %v10837_v15  ;;  %v7215_v38 = vld [vmem:[%s5733_s17 + $0xc] ss:$0 sm:$0xff]  ;;  %v840_v9 = vmul.f32 %v7242_v21, %v6497_v27  ;;  %v7263_v27 = vmul.f32 %v6818_v39, %v10880_v56  ;;  %2091 = vperm.xlu0 %5229, %v6907_v4  }
 0x1e8   : > { %10865 = vst [vmem:[#allocation220_spill] sm:$0xff] %v7190_v19  ;;  %10866 = vst [vmem:[#allocation221_spill] sm:$0xff] %v7194_v33  ;;  %v1010_v33 = vmul.f32 %v7215_v38, %v6319_v45  ;;  %v7237_v19 = vmul.f32 %v6873_v5, %v10837_v15  ;;  %v7498_v4 = vmul.f32 %v6873_v5, %v10880_v56 }
 0x1e9   : > { %10867 = vst [vmem:[#allocation222_spill] sm:$0xff] %v7198_v0  ;;  %10868 = vst [vmem:[#allocation223_spill] sm:$0xff] %v7202_v32  ;;  %v7220_v0 = vld [vmem:[%s5733_s17 + $0x9] ss:$0 sm:$0xff] }
 0x1ea   : > { %10869 = vst [vmem:[#allocation224_spill] sm:$0xff] %v7204_v60  ;;  %10870 = vst [vmem:[#allocation225_spill] sm:$0xff] %v7208_v26  ;;  %v962_v32 = vmul.f32 %v7220_v0, %v6319_v45  ;;  %v7225_v60 = vpop.permute.xlu1 %3447  ;;  %v7229_v26 = vmul.f32 %v6873_v5, %v10839_v35  ;;  %v7281_v31 = vadd.f32 %v5770_v46, %v1010_v33  ;;  %v10893_v33 = vld [vmem:[#allocation8_spill] sm:$0xff] }
 0x1eb   : > { %10871 = vst [vmem:[#allocation226_spill] sm:$0xff] %v7212_v24  ;;  %10872 = vst [vmem:[#allocation227_spill] sm:$0xff] %v7225_v60  ;;  %v7233_v24 = vmul.f32 %v6837_v44, %v10859_v3  ;;  %v10878_v60 = vld [vmem:[#allocation99_spill] sm:$0xff]  ;;  %2321 = vperm.xlu0 %5229, %v6911_v43   ;;  %v7562_v43 = vmul.f32 %v6903_v7, %v10859_v3 }
 0x1ec   : > { %10873 = vst [vmem:[#allocation228_spill] sm:$0xff] %v7229_v26  ;;  %10875 = vst [vmem:[#allocation230_spill] sm:$0xff] %v7237_v19  ;;  %v7249_v26 = vmul.f32 %v6842_v12, %v10861_v36  ;;  %v7257_v19 = vadd.f32 %v5772_v47, %v10878_v60 }
 0x1ed   : > { %10874 = vst [vmem:[#allocation229_spill] sm:$0xff] %v7233_v24  ;;  %v7253_v24 = vmul.f32 %v6878_v61, %v10839_v35  ;;  %10881 = vst [vmem:[#allocation20_spill] sm:$0xff] %v7263_v27  ;;  %v7284_v27 = vadd.f32 %v5770_v46, %v962_v32  ;;  %v7304_v32 = vmul.f32 %v6847_v49, %v10859_v3 }
 0x1ee   : > { %10876 = vst [vmem:[#allocation231_spill] sm:$0xff] %v7249_v26  ;;  %10879 = vst [vmem:[#allocation99_spill] sm:$0xff] %v7257_v19  ;;  %v7271_v26 = vmul.f32 %v6837_v44, %v10880_v56  ;;  %v7278_v19 = vpop.permute.xlu0 %2611 }
 0x1ef   : > { %10877 = vst [vmem:[#allocation232_spill] sm:$0xff] %v7253_v24  ;;  %10883 = vst [vmem:[#allocation13_spill] sm:$0xff] %v7267_v2  ;;  %v7274_v24 = vld [vmem:[%s5733_s17 + $0x8] ss:$0 sm:$0xff]  ;;  %v7288_v2 = vmul.f32 %v6873_v5, %v10859_v3  ;;  %2556 = vperm.xlu0 %5229, %v6963_v55  }
 0x1f0   : > { %10884 = vst [vmem:[#allocation233_spill] sm:$0xff] %v7271_v26  ;;  %10885 = vst [vmem:[#allocation234_spill] sm:$0xff] %v7274_v24  ;;  %v948_v60 = vmul.f32 %v7274_v24, %v6306_v1  ;;  %v7292_v26 = vadd.f32 %v5762_v40, %v6804_v6  ;;  %v7296_v24 = vmul.f32 %v6818_v39, %v10891_v16 }
 0x1f1   : > { %10886 = vst [vmem:[#allocation235_spill] sm:$0xff] %v7278_v19  ;;  %10887 = vst [vmem:[#allocation236_spill] sm:$0xff] %v7281_v31  ;;  %v7300_v19 = vadd.f32 %v10893_v33, %v840_v9  ;;  %v10897_v31 = vld [vmem:[#allocation15_spill] sm:$0xff]  ;;  %v7321_v9 = vld [vmem:[%s5733_s17 + $0xa] ss:$0 sm:$0xff] }
 0x1f2   : > { %10888 = vst [vmem:[#allocation237_spill] sm:$0xff] %v7284_v27  ;;  %10889 = vst [vmem:[#allocation238_spill] sm:$0xff] %v7288_v2  ;;  %v10895_v27 = vld [vmem:[#allocation102_spill] sm:$0xff]  ;;  %v7312_v6 = vmul.f32 %v6818_v39, %v10897_v31 }
 0x1f3   : > { %10890 = vst [vmem:[#allocation239_spill] sm:$0xff] %v7292_v26  ;;  %10892 = vst [vmem:[#allocation22_spill] sm:$0xff] %v7296_v24  ;;  %v7308_v2 = vadd.f32 %v5772_v47, %v10895_v27  ;;  %v7315_v24 = vpop.permute.xlu1 %1986  ;;  %v856_v27 = vmul.f32 %v7242_v21, %v6610_v11  ;;  %v7345_v11 = vmul.f32 %v6868_v18, %v10839_v35  ;;  %2866 = vperm.xlu0 %5229, %v6975_v34   ;;  %v11002_v34 = vld [vmem:[#allocation135_spill] sm:$0xff] }
 0x1f4   : > { %10894 = vst [vmem:[#allocation8_spill] sm:$0xff] %v7304_v32  ;;  %10898 = vst [vmem:[#allocation15_spill] sm:$0xff] %v7312_v6  ;;  %v978_v32 = vmul.f32 %v7321_v9, %v6319_v45  ;;  %v7332_v6 = vadd.f32 %v5780_v53, %v6528_v48  ;;  %v7353_v48 = vmul.f32 %v6903_v7, %v10837_v15 }
 0x1f5   : > { %10896 = vst [vmem:[#allocation102_spill] sm:$0xff] %v7308_v2  ;;  %10899 = vst [vmem:[#allocation240_spill] sm:$0xff] %v7315_v24  ;;  %v7328_v2 = vadd.f32 %v5778_v52, %v948_v60  ;;  %v918_v24 = vmul.f32 %v6788_v14, %v6757_v23  ;;  %v7349_v60 = vmul.f32 %v6842_v12, %v10880_v56 }
 0x1f6   : > { %10900 = vst [vmem:[#allocation241_spill] sm:$0xff] %v7318_v13  ;;  %10902 = vst [vmem:[#allocation243_spill] sm:$0xff] %v7332_v6  ;;  %v7341_v13 = vpop.permute.xlu0 %1761  ;;  %v10907_v6 = vld [vmem:[#allocation24_spill] sm:$0xff]  ;;  %v7372_v15 = vmul.f32 %v6878_v61, %v10859_v3 }
 0x1f7   : > { %10901 = vst [vmem:[#allocation242_spill] sm:$0xff] %v7328_v2  ;;  %10903 = vst [vmem:[#allocation244_spill] sm:$0xff] %v7341_v13  ;;  %v7359_v2 = vmul.f32 %v6818_v39, %v10907_v6  ;;  %v10909_v13 = vld [vmem:[#allocation17_spill] sm:$0xff]  ;;  %v7393_v22 = vadd.f32 %v5786_v58, %v918_v24 }
 0x1f8   : > { %10904 = vst [vmem:[#allocation245_spill] sm:$0xff] %v7345_v11  ;;  %10905 = vst [vmem:[#allocation246_spill] sm:$0xff] %v7349_v60  ;;  %v7363_v26 = vmul.f32 %v6818_v39, %v10909_v13  ;;  %v10911_v11 = vld [vmem:[#allocation105_spill] sm:$0xff]  ;;  %v7381_v39 = vadd.f32 %v10893_v33, %v856_v27  ;;  %v886_v27 = vmul.f32 %v6757_v23, %v6699_v25 }
 0x1f9   : > { %10906 = vst [vmem:[#allocation247_spill] sm:$0xff] %v7353_v48  ;;  %10908 = vst [vmem:[#allocation24_spill] sm:$0xff] %v7359_v2  ;;  %v7368_v60 = vadd.f32 %v5764_v41, %v10911_v11  ;;  %v7375_v48 = vpop.permute.xlu1 %2451  ;;  %v7378_v2 = vadd.f32 %v5770_v46, %v978_v32  ;;  %v932_v11 = vmul.f32 %v6793_v20, %v6306_v1 }
 0x1fa   : > { %10910 = vst [vmem:[#allocation17_spill] sm:$0xff] %v7363_v26  ;;  %10913 = vst [vmem:[#allocation248_spill] sm:$0xff] %v7372_v15  ;;  %v10917_v26 = vld [vmem:[#allocation106_spill] sm:$0xff]  ;;  %v7396_v15 = vld [vmem:[%s5733_s17 + $0xb] ss:$0 sm:$0xff] }
 0x1fb   : > { %10912 = vst [vmem:[#allocation105_spill] sm:$0xff] %v7368_v60  ;;  %10914 = vst [vmem:[#allocation249_spill] sm:$0xff] %v7375_v48  ;;  %v7385_v54 = vadd.f32 %v5772_v47, %v10917_v26  ;;  %v7390_v60 = vadd.f32 %v5762_v40, %v1040_v17  ;;  %v996_v32 = vmul.f32 %v7396_v15, %v6306_v1  ;;  %v7402_v48 = vpop.permute.xlu0 %2071  ;;  %v10925_v17 = vld [vmem:[#allocation108_spill] sm:$0xff] }
 0x1fc   : > { %10915 = vst [vmem:[#allocation250_spill] sm:$0xff] %v7378_v2  ;;  %10916 = vst [vmem:[#allocation251_spill] sm:$0xff] %v7381_v39  ;;  %v7405_v26 = vadd.f32 %v5786_v58, %v870_v10  ;;  %v7413_v24 = vadd.f32 %v5772_v47, %v10925_v17  ;;  %v7420_v39 = vmul.f32 %v6868_v18, %v10859_v3 }
 0x1fd   : > { %10918 = vst [vmem:[#allocation106_spill] sm:$0xff] %v7385_v54  ;;  %10919 = vst [vmem:[#allocation252_spill] sm:$0xff] %v7390_v60  ;;  %v10923_v54 = vld [vmem:[#allocation9_spill] sm:$0xff]  ;;  %v7435_v29 = vpop.permute.xlu1 %2756  ;;  %v872_v3 = vmul.f32 %v7242_v21, %v6617_v42  ;;  %v7597_v42 = vmul.f32 %v6903_v7, %v10839_v35  ;;  %v934_v35 = vmul.f32 %v6793_v20, %v6757_v23 }
 0x1fe   : > { %10920 = vst [vmem:[#allocation253_spill] sm:$0xff] %v7393_v22  ;;  %10921 = vst [vmem:[#allocation254_spill] sm:$0xff] %v7402_v48  ;;  %v7409_v40 = vadd.f32 %v10923_v54, %v6579_v30  ;;  %v10927_v22 = vld [vmem:[#allocation49_spill] sm:$0xff] }
 0x1ff   : > { %10922 = vst [vmem:[#allocation255_spill] sm:$0xff] %v7405_v26  ;;  %10926 = vst [vmem:[#allocation108_spill] sm:$0xff] %v7413_v24  ;;  %v1058_v60 = vmul.f32 %v6319_v45, %v10927_v22  ;;  %v10929_v48 = vld [vmem:[#allocation109_spill] sm:$0xff]  ;;  %v10931_v26 = vld [vmem:[#allocation107_spill] sm:$0xff]  ;;  %v7438_v24 = vadd.f32 %v5778_v52, %v932_v11  ;;  %v1012_v11 = vmul.f32 %v7215_v38, %v6306_v1 }
 0x200   : > { %10924 = vst [vmem:[#allocation9_spill] sm:$0xff] %v7409_v40  ;;  %10928 = vst [vmem:[#allocation49_spill] sm:$0xff] %v7420_v39  ;;  %v7424_v10 = vadd.f32 %v5788_v59, %v10929_v48  ;;  %v7428_v30 = vadd.f32 %v5764_v41, %v10931_v26  ;;  %v10933_v40 = vld [vmem:[#allocation112_spill] sm:$0xff]  ;;  %v10936_v39 = vld [vmem:[#allocation110_spill] sm:$0xff] }
 0x201   : > { %v7432_v17 = vadd.f32 %v5780_v53, %v10933_v40  ;;  %v10934_v22 = vld [vmem:[#allocation160_spill] sm:$0xff]  ;;  %10935 = vst [vmem:[#allocation112_spill] sm:$0xff] %v7435_v29  ;;  %v7442_v48 = vadd.f32 %v5772_v47, %v10936_v39  ;;  %v7453_v40 = vadd.f32 %v5778_v52, %v996_v32  ;;  %v964_v39 = vmul.f32 %v7220_v0, %v6306_v1  ;;  %v7462_v29 = vpop.permute.xlu0 %2301  ;;  %v10947_v32 = vld [vmem:[#allocation119_spill] sm:$0xff] }
 0x202   : > { %10930 = vst [vmem:[#allocation109_spill] sm:$0xff] %v7424_v10  ;;  %10932 = vst [vmem:[#allocation107_spill] sm:$0xff] %v7428_v30  ;;  %2701 = vperm.xlu1 %5218, %v10934_v22   ;;  %v10938_v10 = vld [vmem:[#allocation123_spill] sm:$0xff]  ;;  %v7456_v22 = vadd.f32 %v5786_v58, %v886_v27  ;;  %v7476_v27 = vld [vmem:[%s5733_s17 + $0xd] ss:$0 sm:$0xff] }
 0x203   : > { %10937 = vst [vmem:[#allocation160_spill] sm:$0xff] %v7442_v48  ;;  %v7446_v26 = vadd.f32 %v10923_v54, %v10938_v10  ;;  %v10940_v30 = vld [vmem:[#allocation111_spill] sm:$0xff]  ;;  %10943 = vst [vmem:[#allocation256_spill] sm:$0xff] %v7462_v29  ;;  %v7465_v10 = vadd.f32 %v5770_v46, %v1058_v60  ;;  %v7483_v29 = vmul.f32 %v6837_v44, %v10891_v16  ;;  %v10950_v60 = vld [vmem:[#allocation113_spill] sm:$0xff] }
 0x204   : > { %v7450_v2 = vadd.f32 %v5764_v41, %v10940_v30  ;;  %10942 = vst [vmem:[#allocation111_spill] sm:$0xff] %v7456_v22  ;;  %v7473_v30 = vadd.f32 %v5788_v59, %v10947_v32  ;;  %v7487_v48 = vadd.f32 %v5780_v53, %v10950_v60  ;;  %v1028_v32 = vmul.f32 %v7476_v27, %v6306_v1  ;;  %v10956_v60 = vld [vmem:[#allocation120_spill] sm:$0xff]  ;;  %v10958_v22 = vld [vmem:[#allocation69_spill] sm:$0xff] }
 0x205   : > { %10939 = vst [vmem:[#allocation110_spill] sm:$0xff] %v7446_v26  ;;  %10944 = vst [vmem:[#allocation257_spill] sm:$0xff] %v7465_v10  ;;  %v10945_v26 = vld [vmem:[#allocation115_spill] sm:$0xff]  ;;  %v982_v10 = vmul.f32 %v7321_v9, %v6757_v23 }
 0x206   : > { %10941 = vst [vmem:[#allocation123_spill] sm:$0xff] %v7450_v2  ;;  %v7469_v41 = vadd.f32 %v5788_v59, %v10945_v26  ;;  %10948 = vst [vmem:[#allocation119_spill] sm:$0xff] %v7473_v30  ;;  %v1026_v2 = vmul.f32 %v7476_v27, %v6319_v45  ;;  %v966_v26 = vmul.f32 %v7220_v0, %v6757_v23  ;;  %5219 = vset.pattern.permute.xlu1 %v10652_v37  ;;  %v7494_v30 = vpop.permute.xlu1 %1756 }
 0x207   : > { %10949 = vst [vmem:[#allocation258_spill] sm:$0xff] %v7483_v29  ;;  %10951 = vst [vmem:[#allocation113_spill] sm:$0xff] %v7487_v48  ;;  %v7506_v48 = vadd.f32 %v5788_v59, %v10956_v60  ;;  %3463 = vperm.xlu1 %5219, %v10958_v22   ;;  %v7525_v60 = vpop.permute.xlu0 %2536  ;;  %v7532_v22 = vmul.f32 %v6842_v12, %v10891_v16 }
 0x208   : > { %10946 = vst [vmem:[#allocation115_spill] sm:$0xff] %v7469_v41  ;;  %10952 = vst [vmem:[#allocation259_spill] sm:$0xff] %v7494_v30  ;;  %v10954_v41 = vld [vmem:[#allocation124_spill] sm:$0xff]  ;;  %v7513_v30 = vmul.f32 %v6837_v44, %v10882_v63 }
 0x209   : > { %10953 = vst [vmem:[#allocation260_spill] sm:$0xff] %v7498_v4  ;;  %v7502_v29 = vadd.f32 %v10923_v54, %v10954_v41  ;;  %10957 = vst [vmem:[#allocation120_spill] sm:$0xff] %v7506_v48  ;;  %v7517_v4 = vmul.f32 %v6873_v5, %v10861_v36  ;;  %v7520_v41 = vadd.f32 %v5778_v52, %v1012_v11 }
 0x20a   : > { %10959 = vst [vmem:[#allocation69_spill] sm:$0xff] %v7513_v30  ;;  %10961 = vst [vmem:[#allocation262_spill] sm:$0xff] %v7525_v60  ;;  %v7528_v48 = vadd.f32 %v5770_v46, %v1026_v2  ;;  %v7536_v30 = vmul.f32 %v6847_v49, %v10880_v56  ;;  %v7547_v2 = vadd.f32 %v5778_v52, %v1028_v32  ;;  %v7555_v60 = vpop.permute.xlu1 %2066 }
 0x20b   : > { %10955 = vst [vmem:[#allocation124_spill] sm:$0xff] %v7502_v29  ;;  %10960 = vst [vmem:[#allocation261_spill] sm:$0xff] %v7517_v4  ;;  %v7523_v29 = vadd.f32 %v5778_v52, %v964_v39  ;;  %v10965_v4 = vld [vmem:[#allocation121_spill] sm:$0xff]  ;;  %v7544_v39 = vadd.f32 %v5786_v58, %v966_v26  ;;  %v1042_v26 = vmul.f32 %v7335_v57, %v6319_v45  ;;  %5220 = vset.pattern.permute.xlu1 %v10816_v62 }
 0x20c   : > { %10962 = vst [vmem:[#allocation263_spill] sm:$0xff] %v7528_v48  ;;  %10963 = vst [vmem:[#allocation264_spill] sm:$0xff] %v7532_v22  ;;  %v7540_v11 = vadd.f32 %v5788_v59, %v10965_v4  ;;  %v7551_v22 = vmul.f32 %v6878_v61, %v10880_v56  ;;  %v7558_v4 = vadd.f32 %v5786_v58, %v982_v10  ;;  %2006 = vperm.xlu1 %5220, %v6914_v51   ;;  %v11252_v48 = vld [vmem:[#allocation109_spill] sm:$0xff] }
 0x20d   : > { %10964 = vst [vmem:[#allocation265_spill] sm:$0xff] %v7536_v30  ;;  %10967 = vst [vmem:[#allocation266_spill] sm:$0xff] %v7544_v39  ;;  %v980_v30 = vmul.f32 %v7321_v9, %v6306_v1  ;;  %v998_v32 = vmul.f32 %v7396_v15, %v6757_v23 }
 0x20e   : > { %10966 = vst [vmem:[#allocation121_spill] sm:$0xff] %v7540_v11  ;;  %10968 = vst [vmem:[#allocation267_spill] sm:$0xff] %v7547_v2 }
 0x20f   : > { %10969 = vst [vmem:[#allocation268_spill] sm:$0xff] %v7551_v22  ;;  %10970 = vst [vmem:[#allocation269_spill] sm:$0xff] %v7555_v60  ;;  %v10973_v22 = vld [vmem:[#allocation125_spill] sm:$0xff]  ;;  %v10975_v60 = vld [vmem:[#allocation122_spill] sm:$0xff]  ;;  %v7609_v51 = vadd.f32 %v5778_v52, %v980_v30  ;;  %v7623_v55 = vadd.f32 %v5786_v58, %v998_v32  ;;  %v1014_v30 = vmul.f32 %v7215_v38, %v6757_v23 }
 0x210   : > { %10971 = vst [vmem:[#allocation270_spill] sm:$0xff] %v7558_v4  ;;  %10972 = vst [vmem:[#allocation271_spill] sm:$0xff] %v7562_v43  ;;  %v7571_v11 = vadd.f32 %v10923_v54, %v10973_v22  ;;  %v7575_v10 = vadd.f32 %v5788_v59, %v10975_v60  ;;  %v7580_v43 = vld [vmem:[%s5733_s17 + $0xf] ss:$0 sm:$0xff]  ;;  %v7585_v4 = vpop.permute.xlu0 %2846  ;;  %v7589_v22 = vmul.f32 %v6847_v49, %v10861_v36  ;;  %2471 = vperm.xlu1 %5220, %v6971_v8  }
 0x211   : > { %v1060_v45 = vmul.f32 %v7580_v43, %v6306_v1  ;;  %10977 = vst [vmem:[#allocation272_spill] sm:$0xff] %v7585_v4  ;;  %v7593_v60 = vmul.f32 %v6842_v12, %v10882_v63  ;;  %10980 = vst [vmem:[#allocation275_spill] sm:$0xff] %v7597_v42  ;;  %v7606_v1 = vmul.f32 %v6868_v18, %v10861_v36 }
 0x212   : > { %10974 = vst [vmem:[#allocation125_spill] sm:$0xff] %v7571_v11  ;;  %10976 = vst [vmem:[#allocation122_spill] sm:$0xff] %v7575_v10  ;;  %v7601_v10 = vmul.f32 %v6878_v61, %v10861_v36  ;;  %v7662_v8 = vmul.f32 %v6868_v18, %v10880_v56  ;;  %v11220_v11 = vld [vmem:[#allocation62_spill] sm:$0xff] }
 0x213   : > { %10978 = vst [vmem:[#allocation273_spill] sm:$0xff] %v7589_v22  ;;  %10979 = vst [vmem:[#allocation274_spill] sm:$0xff] %v7593_v60  ;;  %v7613_v60 = vmul.f32 %v6837_v44, %v10897_v31  ;;  %v7617_v22 = vpop.permute.xlu1 %2296  ;;  %v7635_v42 = vadd.f32 %v5778_v52, %v1060_v45  ;;  %v1030_v45 = vmul.f32 %v7476_v27, %v6757_v23 }
 0x214   : > { %10981 = vst [vmem:[#allocation276_spill] sm:$0xff] %v7601_v10  ;;  %10982 = vst [vmem:[#allocation277_spill] sm:$0xff] %v7606_v1  ;;  %v7620_v10 = vadd.f32 %v5770_v46, %v1042_v26  ;;  %v7627_v1 = vmul.f32 %v6873_v5, %v10882_v63  ;;  %v968_v46 = vmul.f32 %v7242_v21, %v7220_v0  ;;  %v7642_v32 = vpop.permute.xlu0 %1841  ;;  %2781 = vperm.xlu1 %5220, %v6979_v50   ;;  %v11018_v50 = vld [vmem:[#allocation136_spill] sm:$0xff] }
 0x215   : > { %10983 = vst [vmem:[#allocation278_spill] sm:$0xff] %v7609_v51  ;;  %10984 = vst [vmem:[#allocation279_spill] sm:$0xff] %v7613_v60  ;;  %v7632_v60 = vadd.f32 %v10893_v33, %v872_v3  ;;  %v888_v26 = vmul.f32 %v7242_v21, %v6699_v25  ;;  %v984_v0 = vmul.f32 %v7321_v9, %v7242_v21  ;;  %v11219_v51 = vld [vmem:[#allocation168_spill] sm:$0xff] }
 0x216   : > { %10985 = vst [vmem:[#allocation280_spill] sm:$0xff] %v7617_v22  ;;  %10986 = vst [vmem:[#allocation281_spill] sm:$0xff] %v7620_v10  ;;  %v10994_v22 = vld [vmem:[#allocation114_spill] sm:$0xff]  ;;  %v7658_v25 = vadd.f32 %v5786_v58, %v934_v35  ;;  %v7673_v9 = vadd.f32 %v5786_v58, %v1014_v30  ;;  %v7677_v35 = vadd.f32 %v10923_v54, %v11002_v34 }
 0x217   : > { %10987 = vst [vmem:[#allocation282_spill] sm:$0xff] %v7623_v55  ;;  %10988 = vst [vmem:[#allocation283_spill] sm:$0xff] %v7627_v1  ;;  %v10992_v1 = vld [vmem:[#allocation127_spill] sm:$0xff]  ;;  %v7650_v3 = vadd.f32 %v5780_v53, %v10994_v22  ;;  %v1046_v22 = vmul.f32 %v7335_v57, %v6757_v23  ;;  %v7697_v34 = vmul.f32 %v6837_v44, %v10907_v6 }
 0x218   : > { %10989 = vst [vmem:[#allocation284_spill] sm:$0xff] %v7632_v60  ;;  %10990 = vst [vmem:[#allocation285_spill] sm:$0xff] %v7635_v42  ;;  %v7646_v4 = vadd.f32 %v10923_v54, %v10992_v1  ;;  %v10998_v1 = vld [vmem:[#allocation116_spill] sm:$0xff]  ;;  %v11214_v55 = vld [vmem:[#allocation51_spill] sm:$0xff] }
 0x219   : > { %10991 = vst [vmem:[#allocation286_spill] sm:$0xff] %v7642_v32  ;;  %10995 = vst [vmem:[#allocation114_spill] sm:$0xff] %v7650_v3  ;;  %v7666_v32 = vadd.f32 %v5772_v47, %v10998_v1  ;;  %v7670_v3 = vpop.permute.xlu1 %2531  ;;  %v904_v1 = vmul.f32 %v7242_v21, %v6762_v28  ;;  %v7703_v28 = vadd.f32 %v5786_v58, %v1030_v45  ;;  %v11020_v45 = vld [vmem:[#allocation130_spill] sm:$0xff] }
 0x21a   : > { %10993 = vst [vmem:[#allocation127_spill] sm:$0xff] %v7646_v4  ;;  %10996 = vst [vmem:[#allocation287_spill] sm:$0xff] %v7658_v25  ;;  %v11004_v4 = vld [vmem:[#allocation128_spill] sm:$0xff] }
 0x21b   : > { %10997 = vst [vmem:[#allocation288_spill] sm:$0xff] %v7662_v8  ;;  %10999 = vst [vmem:[#allocation116_spill] sm:$0xff] %v7666_v32  ;;  %v7681_v25 = vadd.f32 %v5780_v53, %v11004_v4  ;;  %v7686_v8 = vadd.f32 %v10893_v33, %v968_v46  ;;  %v7689_v32 = vadd.f32 %v10893_v33, %v888_v26  ;;  %v7700_v4 = vpop.permute.xlu0 %2151 }
 0x21c   : > { %11000 = vst [vmem:[#allocation289_spill] sm:$0xff] %v7670_v3  ;;  %11001 = vst [vmem:[#allocation290_spill] sm:$0xff] %v7673_v9  ;;  %v11008_v3 = vld [vmem:[#allocation126_spill] sm:$0xff]  ;;  %v7706_v46 = vadd.f32 %v10893_v33, %v984_v0  ;;  %v7710_v26 = vmul.f32 %v6873_v5, %v10891_v16  ;;  %v7724_v0 = vadd.f32 %v5788_v59, %v11020_v45  ;;  %v11189_v9 = vld [vmem:[#allocation179_spill] sm:$0xff] }
 0x21d   : > { %11003 = vst [vmem:[#allocation135_spill] sm:$0xff] %v7677_v35  ;;  %11005 = vst [vmem:[#allocation128_spill] sm:$0xff] %v7681_v25  ;;  %v7693_v30 = vadd.f32 %v5772_v47, %v11008_v3  ;;  %v11015_v3 = vld [vmem:[#allocation234_spill] sm:$0xff]  ;;  %v1032_v45 = vmul.f32 %v7476_v27, %v7242_v21  ;;  %v7764_v27 = vmul.f32 %v6878_v61, %v10882_v63  ;;  %v11183_v35 = vld [vmem:[#allocation164_spill] sm:$0xff] }
 0x21e   : > { %11006 = vst [vmem:[#allocation291_spill] sm:$0xff] %v7686_v8  ;;  %11007 = vst [vmem:[#allocation292_spill] sm:$0xff] %v7689_v32  ;;  %v11016_v25 = vld [vmem:[#allocation190_spill] sm:$0xff]  ;;  %v7720_v32 = vadd.f32 %v10923_v54, %v11018_v50 }
 0x21f   : > { %11009 = vst [vmem:[#allocation126_spill] sm:$0xff] %v7693_v30  ;;  %11010 = vst [vmem:[#allocation293_spill] sm:$0xff] %v7697_v34  ;;  %v950_v30 = vmul.f32 %v11015_v3, %v6757_v23  ;;  %1861 = vperm.xlu0 %5229, %v11016_v25   ;;  %v7716_v34 = vadd.f32 %v5786_v58, %v1046_v22  ;;  %v11026_v25 = vld [vmem:[#allocation139_spill] sm:$0xff]  ;;  %v11182_v8 = vld [vmem:[#allocation50_spill] sm:$0xff] }
 0x220   : > { %11011 = vst [vmem:[#allocation294_spill] sm:$0xff] %v7700_v4  ;;  %11012 = vst [vmem:[#allocation295_spill] sm:$0xff] %v7703_v28  ;;  %v7733_v4 = vadd.f32 %v10893_v33, %v904_v1  ;;  %v7737_v22 = vadd.f32 %v10923_v54, %v11026_v25  ;;  %v11032_v1 = vld [vmem:[#allocation140_spill] sm:$0xff]  ;;  %v920_v25 = vmul.f32 %v7242_v21, %v6788_v14  ;;  %v11041_v14 = vld [vmem:[#allocation101_spill] sm:$0xff] }
 0x221   : > { %11013 = vst [vmem:[#allocation296_spill] sm:$0xff] %v7706_v46  ;;  %11014 = vst [vmem:[#allocation297_spill] sm:$0xff] %v7710_v26  ;;  %v11022_v46 = vld [vmem:[#allocation131_spill] sm:$0xff]  ;;  %v7730_v26 = vpop.permute.xlu1 %2836 }
 0x222   : > { %11017 = vst [vmem:[#allocation234_spill] sm:$0xff] %v7716_v34  ;;  %11019 = vst [vmem:[#allocation190_spill] sm:$0xff] %v7720_v32  ;;  %v7728_v28 = vadd.f32 %v5780_v53, %v11022_v46  ;;  %v11028_v34 = vld [vmem:[#allocation129_spill] sm:$0xff]  ;;  %v7747_v46 = vmul.f32 %v6842_v12, %v10897_v31 }
 0x223   : > { %11021 = vst [vmem:[#allocation136_spill] sm:$0xff] %v7724_v0  ;;  %11024 = vst [vmem:[#allocation131_spill] sm:$0xff] %v7730_v26  ;;  %v7741_v50 = vadd.f32 %v5772_v47, %v11028_v34  ;;  %v7755_v0 = vadd.f32 %v5788_v59, %v11032_v1  ;;  %v11034_v47 = vld [vmem:[#allocation100_spill] sm:$0xff]  ;;  %v7760_v34 = vpop.permute.xlu0 %2616  ;;  %v11039_v1 = vld [vmem:[#allocation143_spill] sm:$0xff]  ;;  %2171 = vperm.xlu0 %5229, %v11041_v14   ;;  %v7798_v14 = vadd.f32 %v10893_v33, %v1032_v45 }
 0x224   : > { %11023 = vst [vmem:[#allocation130_spill] sm:$0xff] %v7728_v28  ;;  %11025 = vst [vmem:[#allocation298_spill] sm:$0xff] %v7733_v4  ;;  %v7751_v28 = vmul.f32 %v6847_v49, %v10882_v63  ;;  %1931 = vperm.xlu1 %5220, %v11034_v47   ;;  %v7780_v47 = vmul.f32 %v6868_v18, %v10882_v63  ;;  %v11104_v32 = vld [vmem:[#allocation241_spill] sm:$0xff]  ;;  %v11133_v4 = vld [vmem:[#allocation242_spill] sm:$0xff] }
 0x225   : > { %11027 = vst [vmem:[#allocation139_spill] sm:$0xff] %v7737_v22  ;;  %11029 = vst [vmem:[#allocation129_spill] sm:$0xff] %v7741_v50  ;;  %v7813_v50 = vadd.f32 %v10893_v33, %v920_v25  ;;  %v11051_v22 = vld [vmem:[#allocation132_spill] sm:$0xff]  ;;  %v11205_v26 = vld [vmem:[#allocation47_spill] sm:$0xff] }
 0x226   : > { %11030 = vst [vmem:[#allocation299_spill] sm:$0xff] %v7747_v46  ;;  %11031 = vst [vmem:[#allocation300_spill] sm:$0xff] %v7751_v28  ;;  %v7768_v46 = vmul.f32 %v6903_v7, %v10861_v36  ;;  %v7771_v28 = vadd.f32 %v5786_v58, %v950_v30  ;;  %v7788_v36 = vmul.f32 %v6878_v61, %v10891_v16  ;;  %v7793_v30 = vld [vmem:[%s10428_s6 + $0x50] sm:$0xff] }
 0x227   : > { %11033 = vst [vmem:[#allocation140_spill] sm:$0xff] %v7755_v0  ;;  %11035 = vst [vmem:[#allocation100_spill] sm:$0xff] %v7760_v34  ;;  %v7775_v0 = vadd.f32 %v10923_v54, %v11039_v1  ;;  %v1044_v1 = vmul.f32 %v7793_v30, %v7335_v57  ;;  %v7817_v45 = vadd.f32 %v5780_v53, %v11051_v22  ;;  %v11184_v34 = vld [vmem:[#allocation44_spill] sm:$0xff] }
 0x228   : > { %11036 = vst [vmem:[#allocation301_spill] sm:$0xff] %v7764_v27  ;;  %11037 = vst [vmem:[#allocation302_spill] sm:$0xff] %v7768_v46  ;;  %v7784_v27 = vmul.f32 %v6842_v12, %v10907_v6 }
 0x229   : > { %11038 = vst [vmem:[#allocation303_spill] sm:$0xff] %v7771_v28  ;;  %11040 = vst [vmem:[#allocation143_spill] sm:$0xff] %v7775_v0  ;;  %v7810_v0 = vpop.permute.xlu1 %3451  ;;  %v11058_v28 = vld [vmem:[#allocation149_spill] sm:$0xff] }
 0x22a   : > { %11042 = vst [vmem:[#allocation101_spill] sm:$0xff] %v7780_v47  ;;  %11043 = vst [vmem:[#allocation304_spill] sm:$0xff] %v7784_v27  ;;  %v7802_v47 = vmul.f32 %v6847_v49, %v10891_v16  ;;  %v11047_v27 = vld [vmem:[#allocation145_spill] sm:$0xff]  ;;  %v7832_v25 = vadd.f32 %v10923_v54, %v11058_v28  ;;  %v7852_v28 = vmul.f32 %v6837_v44, %v10909_v13  ;;  %v11074_v44 = vld [vmem:[#allocation150_spill] sm:$0xff] }
 0x22b   : > { %11044 = vst [vmem:[#allocation305_spill] sm:$0xff] %v7788_v36  ;;  %11045 = vst [vmem:[#allocation306_spill] sm:$0xff] %v7798_v14  ;;  %v7806_v46 = vadd.f32 %v10923_v54, %v11047_v27  ;;  %v936_v36 = vmul.f32 %v7242_v21, %v6793_v20  ;;  %v7821_v14 = vmul.f32 %v6903_v7, %v10880_v56  ;;  %v7828_v20 = vpop.permute.xlu0 %1766 }
 0x22c   : > { %11046 = vst [vmem:[#allocation307_spill] sm:$0xff] %v7802_v47  ;;  %11049 = vst [vmem:[#allocation308_spill] sm:$0xff] %v7810_v0  ;;  %v11054_v47 = vld [vmem:[#allocation146_spill] sm:$0xff] }
 0x22d   : > { %11048 = vst [vmem:[#allocation145_spill] sm:$0xff] %v7806_v46  ;;  %11050 = vst [vmem:[#allocation309_spill] sm:$0xff] %v7813_v50  ;;  %v7825_v27 = vadd.f32 %v10923_v54, %v11054_v47  ;;  %v11056_v46 = vld [vmem:[#allocation99_spill] sm:$0xff]  ;;  %v11060_v50 = vld [vmem:[#allocation141_spill] sm:$0xff]  ;;  %v7844_v47 = vmul.f32 %v6868_v18, %v10891_v16 }
 0x22e   : > { %11052 = vst [vmem:[#allocation132_spill] sm:$0xff] %v7817_v45  ;;  %11053 = vst [vmem:[#allocation310_spill] sm:$0xff] %v7821_v14  ;;  %2241 = vperm.xlu1 %5220, %v11056_v46   ;;  %v7836_v22 = vadd.f32 %v5788_v59, %v11060_v50  ;;  %v11062_v45 = vld [vmem:[#allocation137_spill] sm:$0xff]  ;;  %v11065_v14 = vld [vmem:[#allocation236_spill] sm:$0xff]  ;;  %v7848_v46 = vadd.f32 %v5778_v52, %v1044_v1  ;;  %v7856_v50 = vmul.f32 %v6873_v5, %v10897_v31 }
 0x22f   : > { %11055 = vst [vmem:[#allocation146_spill] sm:$0xff] %v7825_v27  ;;  %11057 = vst [vmem:[#allocation99_spill] sm:$0xff] %v7828_v20  ;;  %v7840_v56 = vadd.f32 %v5780_v53, %v11062_v45  ;;  %2636 = vperm.xlu0 %5229, %v11065_v14   ;;  %v952_v45 = vmul.f32 %v11015_v3, %v7242_v21  ;;  %v11072_v52 = vld [vmem:[#allocation138_spill] sm:$0xff]  ;;  %v7881_v3 = vmul.f32 %v6878_v61, %v10897_v31 }
 0x230   : > { %11059 = vst [vmem:[#allocation149_spill] sm:$0xff] %v7832_v25  ;;  %11061 = vst [vmem:[#allocation141_spill] sm:$0xff] %v7836_v22  ;;  %v7869_v1 = vadd.f32 %v5780_v53, %v11072_v52  ;;  %v5257_v22 = vld [vmem:[#allocation2 + $0xb0] ss:$12 sps:$4 sm:$0xff]   ;;  %v10576_v25 = vmov 0.0  }
 0x231   : > { %11063 = vst [vmem:[#allocation137_spill] sm:$0xff] %v7840_v56  ;;  %11064 = vst [vmem:[#allocation311_spill] sm:$0xff] %v7844_v47  ;;  %v7861_v56 = vadd.f32 %v10893_v33, %v936_v36  ;;  %v11070_v47 = vld [vmem:[#allocation144_spill] sm:$0xff]  ;;  %v11078_v36 = vld [vmem:[#allocation142_spill] sm:$0xff]  ;;  %5077 = vmatprep.subr.bf16.mxu1 %v10576_v25 }
 0x232   : > { %11066 = vst [vmem:[#allocation236_spill] sm:$0xff] %v7848_v46  ;;  %11067 = vst [vmem:[#allocation312_spill] sm:$0xff] %v7852_v28  ;;  %v7865_v14 = vadd.f32 %v5788_v59, %v11070_v47  ;;  %v7873_v28 = vadd.f32 %v5788_v59, %v11074_v44  ;;  %v7885_v47 = vadd.f32 %v5780_v53, %v11078_v36  ;;  %v11081_v52 = vld [vmem:[#allocation26_spill] sm:$0xff]  ;;  %v7890_v44 = vpop.permute.xlu0 %2076  ;;  %5078 = vmatpush3.bf16.msra.mxu1 %v5257_v22  ;;  %v11091_v46 = vld [vmem:[#allocation29_spill] sm:$0xff] }
 0x233   : > { %11068 = vst [vmem:[#allocation313_spill] sm:$0xff] %v7856_v50  ;;  %11069 = vst [vmem:[#allocation314_spill] sm:$0xff] %v7861_v56  ;;  %v7877_v50 = vmul.f32 %v6842_v12, %v10909_v13  ;;  %v11082_v56 = vld [vmem:[#allocation237_spill] sm:$0xff]  ;;  %v11085_v12 = vld [vmem:[#allocation151_spill] sm:$0xff]  ;;  %v1000_v53 = vmul.f32 %v7396_v15, %v7242_v21  ;;  %1786 = vperm.xlu0 %5229, %v7300_v19   ;;  %v7914_v15 = vmul.f32 %v6847_v49, %v10897_v31 }
 0x234   : > { %11071 = vst [vmem:[#allocation144_spill] sm:$0xff] %v7865_v14  ;;  %11073 = vst [vmem:[#allocation138_spill] sm:$0xff] %v7869_v1  ;;  %v11080_v14 = vld [vmem:[#allocation161_spill] sm:$0xff]  ;;  %2396 = vperm.xlu1 %5220, %v11082_v56   ;;  %v11087_v36 = vld [vmem:[#allocation174_spill] sm:$0xff]  ;;  %v7905_v56 = vadd.f32 %v10893_v33, %v952_v45  ;;  %v7931_v45 = vmul.f32 %v6903_v7, %v10897_v31 }
 0x235   : > { %11075 = vst [vmem:[#allocation150_spill] sm:$0xff] %v7873_v28  ;;  %11076 = vst [vmem:[#allocation315_spill] sm:$0xff] %v7877_v50  ;;  %v2914_v1 = vadd.f32 %v11081_v52, %v11080_v14  ;;  %v7892_v28 = vpop.permute.xlu1 %1991  ;;  %v7897_v50 = vadd.f32 %v5788_v59, %v11085_v12  ;;  %v1062_v52 = vmul.f32 %v7580_v43, %v6757_v23  ;;  %v11090_v25 = vld [vmem:[#allocation14_spill] sm:$0xff]  ;;  %v5258_v22 = vld [vmem:[#allocation2 + $0x98] ss:$12 sps:$4 sm:$0xff]  }
 0x236   : > { %11077 = vst [vmem:[#allocation316_spill] sm:$0xff] %v7881_v3  ;;  %11079 = vst [vmem:[#allocation142_spill] sm:$0xff] %v7885_v47  ;;  %v11088_v3 = vld [vmem:[#allocation28_spill] sm:$0xff]  ;;  %v2918_v12 = vadd.f32 %v11091_v46, %v11090_v25  ;;  %v7923_v23 = vmul.f32 %v6903_v7, %v10882_v63  ;;  %v7927_v46 = vmul.f32 %v6847_v49, %v10909_v13  ;;  %v11179_v0 = vld [vmem:[#allocation42_spill] sm:$0xff] }
 0x237   : > { %11083 = vst [vmem:[#allocation161_spill] sm:$0xff] %v7890_v44  ;;  %11084 = vst [vmem:[#allocation26_spill] sm:$0xff] %v7892_v28  ;;  %v2916_v47 = vadd.f32 %v11088_v3, %v11087_v36  ;;  %v11094_v3 = vld [vmem:[#allocation153_spill] sm:$0xff]  ;;  %v7942_v63 = vmul.f32 %v6868_v18, %v10897_v31  ;;  %2096 = vperm.xlu0 %5229, %v11104_v32   ;;  %v7959_v31 = vmul.f32 %v6847_v49, %v10907_v6  ;;  %v11112_v49 = vld [vmem:[#allocation152_spill] sm:$0xff] }
 0x238   : > { %11086 = vst [vmem:[#allocation237_spill] sm:$0xff] %v7897_v50  ;;  %11089 = vst [vmem:[#allocation151_spill] sm:$0xff] %v7905_v56  ;;  %v11092_v50 = vmov 0.0   ;;  %v7918_v19 = vadd.f32 %v10923_v54, %v11094_v3  ;;  %v3170_v3 = vmax.f32 %v2914_v1, 0.0  ;;  %v7936_v56 = vpop.permute.xlu0 %2306  ;;  %v7955_v1 = vadd.f32 %v5786_v58, %v1062_v52  ;;  %v5259_v58 = vld [vmem:[#allocation2 + $0x80] ss:$12 sps:$4 sm:$0xff]  }
 0x239   : > { %5079 = vmatprep.subr.bf16.mxu1 %v11092_v50  ;;  %11093 = vst [vmem:[#allocation174_spill] sm:$0xff] %v7914_v15  ;;  %5121 = vmatprep.subr.bf16.mxu0 %v11092_v50  ;;  %11096 = vst [vmem:[#allocation29_spill] sm:$0xff] %v7923_v23  ;;  %v1016_v15 = vmul.f32 %v7242_v21, %v7215_v38  ;;  %v7938_v27 = vpop.permute.xlu1 %2456  ;;  %v3172_v23 = vmax.f32 %v2916_v47, 0.0  ;;  %v7952_v38 = vmul.f32 %v6873_v5, %v10909_v13  ;;  %v11136_v28 = vld [vmem:[#allocation43_spill] sm:$0xff]  ;;  %v5260_v44 = vld [vmem:[#allocation2 + $0x68] ss:$12 sps:$4 sm:$0xff]  }
 0x23a   : > { %11095 = vst [vmem:[#allocation28_spill] sm:$0xff] %v7918_v19  ;;  %11097 = vst [vmem:[#allocation153_spill] sm:$0xff] %v7927_v46  ;;  %v11099_v19 = vld [vmem:[#allocation239_spill] sm:$0xff]  ;;  %v7945_v46 = vadd.f32 %v10893_v33, %v1000_v53  ;;  %5080 = vmatpush3.bf16.msra.mxu1 %v5258_v22  ;;  %v3174_v53 = vmax.f32 %v2918_v12, 0.0  ;;  %v7968_v32 = vmul.f32 %v6903_v7, %v10891_v16  ;;  %5093 = vmatprep.mubr.msk.bf16.mxu1 %vm5494_vm1, %v11092_v50 }
 0x23b   : > { %11098 = vst [vmem:[#allocation317_spill] sm:$0xff] %v7931_v45  ;;  %2706 = vperm.xlu1 %5220, %v11099_v19   ;;  %11100 = vst [vmem:[#allocation239_spill] sm:$0xff] %v7936_v56  ;;  %v1048_v45 = vmul.f32 %v7335_v57, %v7242_v21  ;;  %5081 = vmatprep.subr.bf16.mxu1 %v11092_v50  ;;  %v11108_v19 = vld [vmem:[#allocation154_spill] sm:$0xff]  ;;  %v1064_v47 = vmul.f32 %v7580_v43, %v7242_v21  ;;  %v11116_v16 = vld [vmem:[#allocation19_spill] sm:$0xff] }
 0x23c   : > { %11101 = vst [vmem:[#allocation318_spill] sm:$0xff] %v7938_v27  ;;  %11102 = vst [vmem:[#allocation319_spill] sm:$0xff] %v7942_v63  ;;  %v7964_v57 = vadd.f32 %v10923_v54, %v11108_v19  ;;  %v7973_v52 = vadd.f32 %v10893_v33, %v1016_v15  ;;  %v7977_v12 = vadd.f32 %v5788_v59, %v11112_v49  ;;  %v7989_v21 = vpop.permute.xlu0 %2541  ;;  %v11120_v59 = vld [vmem:[#allocation155_spill] sm:$0xff]  ;;  %v11125_v63 = vld [vmem:[#allocation21_spill] sm:$0xff]  ;;  %2326 = vperm.xlu0 %5229, %v11133_v4  }
 0x23d   : > { %11103 = vst [vmem:[#allocation320_spill] sm:$0xff] %v7945_v46  ;;  %11105 = vst [vmem:[#allocation241_spill] sm:$0xff] %v7952_v38  ;;  %v7981_v22 = vmul.f32 %v6878_v61, %v10909_v13  ;;  %v7985_v19 = vmul.f32 %v6903_v7, %v10909_v13  ;;  %v3490_v38 = vmul.f32 %v11116_v16, %v3170_v3  ;;  %v7991_v43 = vpop.permute.xlu1 %2766  ;;  %v11132_v46 = vld [vmem:[#allocation41_spill] sm:$0xff]  ;;  %5137 = vmatprep.mubr.msk.bf16.mxu0 %vm5494_vm1, %v11092_v50 }
 0x23e   : > { %11106 = vst [vmem:[#allocation321_spill] sm:$0xff] %v7955_v1  ;;  %11107 = vst [vmem:[#allocation322_spill] sm:$0xff] %v7959_v31  ;;  %v7994_v15 = vadd.f32 %v10893_v33, %v1048_v45  ;;  %v7998_v49 = vadd.f32 %v10923_v54, %v11120_v59  ;;  %v11124_v31 = vld [vmem:[#allocation27_spill] sm:$0xff]  ;;  %v11128_v45 = vld [vmem:[#allocation24_spill] sm:$0xff]  ;;  %5082 = vmatpush3.bf16.msra.mxu1 %v5259_v58  ;;  %v8036_v4 = vmul.f32 %v6878_v61, %v10907_v6 }
 0x23f   : > { %11109 = vst [vmem:[#allocation154_spill] sm:$0xff] %v7964_v57  ;;  %11110 = vst [vmem:[#allocation323_spill] sm:$0xff] %v7968_v32  ;;  %5221 = vset.pattern.permute.xlu1 %v10652_v37  ;;  %v11126_v32 = vld [vmem:[#allocation175_spill] sm:$0xff]  ;;  %v11127_v57 = vld [vmem:[#allocation30_spill] sm:$0xff]  ;;  %5083 = vmatprep.subr.bf16.mxu1 %v11092_v50 }
 0x240   : > { %11111 = vst [vmem:[#allocation324_spill] sm:$0xff] %v7973_v52  ;;  %11113 = vst [vmem:[#allocation152_spill] sm:$0xff] %v7977_v12  ;;  %v3492_v12 = vmul.f32 %v11125_v63, %v3172_v23  ;;  %v8011_v52 = vadd.f32 %v11127_v57, %v11126_v32  ;;  %3467 = vperm.xlu1 %5221, %v7793_v30   ;;  %v11130_v54 = vld [vmem:[#allocation23_spill] sm:$0xff]  ;;  %v11135_v23 = vld [vmem:[#allocation176_spill] sm:$0xff]  ;;  %v8028_v30 = vmul.f32 %v6873_v5, %v10907_v6  ;;  %v8049_v5 = vpop.permute.xlu0 %2851 }
 0x241   : > { %11114 = vst [vmem:[#allocation325_spill] sm:$0xff] %v7981_v22  ;;  %11115 = vst [vmem:[#allocation326_spill] sm:$0xff] %v7985_v19  ;;  %v8002_v22 = vmul.f32 %v6868_v18, %v10907_v6  ;;  %v11123_v19 = vld [vmem:[#allocation162_spill] sm:$0xff]  ;;  %v3494_v59 = vmul.f32 %v11130_v54, %v3174_v53  ;;  %v2932_v57 = vadd.f32 %v11136_v28, %v11135_v23  ;;  %v11141_v28 = vld [vmem:[#allocation31_spill] sm:$0xff] }
 0x242   : > { %11117 = vst [vmem:[#allocation19_spill] sm:$0xff] %v7989_v21  ;;  %11118 = vst [vmem:[#allocation327_spill] sm:$0xff] %v7991_v43  ;;  %v8006_v3 = vadd.f32 %v11124_v31, %v11123_v19  ;;  %v8021_v31 = vadd.f32 %v10893_v33, %v1064_v47  ;;  %v8032_v53 = vmul.f32 %v6868_v18, %v10909_v13  ;;  %v8039_v33 = vsel %vm3746_vm0, %v3490_v38, 0.0  ;;  %v11143_v58 = vld [vmem:[#allocation10_spill] sm:$0xff]  ;;  %v11158_v38 = vld [vmem:[#allocation20_spill] sm:$0xff] }
 0x243   : > { %11119 = vst [vmem:[#allocation328_spill] sm:$0xff] %v7994_v15  ;;  %11121 = vst [vmem:[#allocation155_spill] sm:$0xff] %v7998_v49  ;;  %v11129_v15 = vld [vmem:[#allocation39_spill] sm:$0xff]  ;;  %v8055_v18 = vmul.f32 %v6903_v7, %v10907_v6  ;;  %v8059_v13 = vsel %vm3746_vm0, %v3492_v12, 0.0  ;;  %v11154_v7 = vld [vmem:[#allocation34_spill] sm:$0xff]  ;;  %v3188_v27 = vmax.f32 %v2932_v57, 0.0  ;;  %5084 = vmatpush3.bf16.msra.mxu1 %v5260_v44 }
 0x244   : > { %11122 = vst [vmem:[#allocation329_spill] sm:$0xff] %v8002_v22  ;;  %v2928_v1 = vadd.f32 %v11129_v15, %v11128_v45  ;;  %v11131_v49 = vld [vmem:[#allocation163_spill] sm:$0xff]  ;;  %11134 = vst [vmem:[#allocation162_spill] sm:$0xff] %v8021_v31  ;;  %v11144_v15 = vld [vmem:[#allocation32_spill] sm:$0xff]  ;;  %5222 = vset.pattern.permute.xlu1 %v10816_v62  ;;  %5085 = vmatprep.subr.bf16.mxu1 %v11092_v50 }
 0x245   : > { %v2930_v22 = vadd.f32 %v11132_v46, %v11131_v49  ;;  %11137 = vst [vmem:[#allocation27_spill] sm:$0xff] %v8028_v30  ;;  %11138 = vst [vmem:[#allocation21_spill] sm:$0xff] %v8032_v53  ;;  %v11140_v46 = vld [vmem:[#allocation16_spill] sm:$0xff]  ;;  %v8047_v45 = vadd.f32 %v11144_v15, %v11143_v58  ;;  %v8051_v30 = vpop.permute.xlu1 %1916  ;;  %v8064_v15 = vsel %vm3746_vm0, %v3494_v59, 0.0  ;;  %v11150_v53 = vld [vmem:[#allocation18_spill] sm:$0xff] }
 0x246   : > { %11139 = vst [vmem:[#allocation175_spill] sm:$0xff] %v8036_v4  ;;  %v8043_v47 = vadd.f32 %v11141_v28, %v11140_v46  ;;  %11146 = vst [vmem:[#allocation23_spill] sm:$0xff] %v8049_v5  ;;  %v3184_v28 = vmax.f32 %v2928_v1, 0.0  ;;  %v11151_v4 = vld [vmem:[#allocation33_spill] sm:$0xff]  ;;  %v11157_v12 = vld [vmem:[#allocation243_spill] sm:$0xff] }
 0x247   : > { %11145 = vst [vmem:[#allocation39_spill] sm:$0xff] %v8047_v45  ;;  %11147 = vst [vmem:[#allocation163_spill] sm:$0xff] %v8051_v30  ;;  %v8068_v31 = vadd.f32 %v11151_v4, %v11150_v53  ;;  %v11153_v30 = vld [vmem:[#allocation11_spill] sm:$0xff]  ;;  %v3186_v61 = vmax.f32 %v2930_v22, 0.0  ;;  %2011 = vperm.xlu1 %5222, %v11157_v12   ;;  %v11161_v43 = vld [vmem:[#allocation12_spill] sm:$0xff] }
 0x248   : > { %11142 = vst [vmem:[#allocation30_spill] sm:$0xff] %v8043_v47  ;;  %11148 = vst [vmem:[#allocation41_spill] sm:$0xff] %v8055_v18  ;;  %v8072_v6 = vadd.f32 %v11154_v7, %v11153_v30  ;;  %v11156_v18 = vld [vmem:[#allocation102_spill] sm:$0xff]  ;;  %v11159_v1 = vld [vmem:[#allocation35_spill] sm:$0xff] }
 0x249   : > { %11149 = vst [vmem:[#allocation242_spill] sm:$0xff] %v8064_v15  ;;  %11152 = vst [vmem:[#allocation43_spill] sm:$0xff] %v8068_v31  ;;  %2561 = vperm.xlu0 %5229, %v11156_v18   ;;  %v8078_v5 = vadd.f32 %v11159_v1, %v11158_v38  ;;  %v11162_v59 = vld [vmem:[#allocation36_spill] sm:$0xff]  ;;  %v11164_v4 = vld [vmem:[#allocation191_spill] sm:$0xff]  ;;  %v8098_v57 = vpop.permute.xlu1 %2226 }
 0x24a   : > { %11155 = vst [vmem:[#allocation31_spill] sm:$0xff] %v8072_v6  ;;  %v8082_v21 = vadd.f32 %v11162_v59, %v11161_v43  ;;  %v11165_v53 = vld [vmem:[#allocation45_spill] sm:$0xff]  ;;  %v5261_v7 = vld [vmem:[#allocation2 + $0x50] ss:$12 sps:$4 sm:$0xff]   ;;  %v8096_v59 = vpop.permute.xlu0 %1846  ;;  %11173 = vst [vmem:[#allocation35_spill] sm:$0xff] %v8098_v57  ;;  %v3506_v57 = vmul.f32 %v11116_v16, %v3186_v61 }
 0x24b   : > { %11160 = vst [vmem:[#allocation32_spill] sm:$0xff] %v8078_v5  ;;  %v2934_v56 = vadd.f32 %v11165_v53, %v11164_v4  ;;  %v11166_v30 = vld [vmem:[#allocation22_spill] sm:$0xff]  ;;  %v11167_v12 = vld [vmem:[#allocation37_spill] sm:$0xff]  ;;  %11172 = vst [vmem:[#allocation243_spill] sm:$0xff] %v8096_v59  ;;  %5086 = vmatpush3.bf16.msra.mxu1 %v5261_v7  ;;  %v2995_v4 = vadd.f32 %v11220_v11, %v11219_v51 }
 0x24c   : > { %11163 = vst [vmem:[#allocation33_spill] sm:$0xff] %v8082_v21  ;;  %v8090_v46 = vadd.f32 %v11167_v12, %v11166_v30  ;;  %v11169_v1 = vld [vmem:[#allocation13_spill] sm:$0xff]  ;;  %v11170_v38 = vld [vmem:[#allocation38_spill] sm:$0xff]  ;;  %v11175_v43 = vld [vmem:[#allocation15_spill] sm:$0xff]  ;;  %5087 = vmatprep.subr.bf16.mxu1 %v11092_v50  ;;  %v8141_v61 = vsel %vm3746_vm0, %v3506_v57, 0.0 }
 0x24d   : > { %v8094_v20 = vadd.f32 %v11170_v38, %v11169_v1  ;;  %v11174_v44 = vld [vmem:[#allocation25_spill] sm:$0xff]  ;;  %v11176_v22 = vld [vmem:[#allocation40_spill] sm:$0xff]  ;;  %v11187_v31 = vld [vmem:[#allocation178_spill] sm:$0xff] }
 0x24e   : > { %11168 = vst [vmem:[#allocation34_spill] sm:$0xff] %v8090_v46  ;;  %v3504_v53 = vmul.f32 %v11174_v44, %v3184_v28  ;;  %v8104_v47 = vadd.f32 %v11176_v22, %v11175_v43  ;;  %v11178_v18 = vld [vmem:[#allocation17_spill] sm:$0xff]  ;;  %v11181_v30 = vld [vmem:[#allocation172_spill] sm:$0xff]  ;;  %v8117_v28 = vadd.f32 %v11184_v34, %v11183_v35  ;;  %v11186_v22 = vld [vmem:[#allocation250_spill] sm:$0xff]  ;;  %v3190_v43 = vmax.f32 %v2934_v56, 0.0 }
 0x24f   : > { %11171 = vst [vmem:[#allocation102_spill] sm:$0xff] %v8094_v20  ;;  %v8108_v12 = vadd.f32 %v11179_v0, %v11178_v18  ;;  %v2946_v38 = vadd.f32 %v11182_v8, %v11181_v30  ;;  %v11185_v44 = vld [vmem:[#allocation105_spill] sm:$0xff]  ;;  %2476 = vperm.xlu1 %5222, %v11186_v22   ;;  %v3508_v8 = vmul.f32 %v11125_v63, %v3188_v27  ;;  %v5262_v1 = vld [vmem:[#allocation2 + $0x38] ss:$12 sps:$4 sm:$0xff]   ;;  %v8130_v22 = vpop.permute.xlu0 %2156  ;;  %v8132_v0 = vpop.permute.xlu1 %2381  ;;  %v11195_v18 = vld [vmem:[#allocation46_spill] sm:$0xff] }
 0x250   : > { %11177 = vst [vmem:[#allocation36_spill] sm:$0xff] %v8104_v47  ;;  %2871 = vperm.xlu0 %5229, %v11185_v44   ;;  %v11188_v34 = vld [vmem:[#allocation52_spill] sm:$0xff]  ;;  %v11190_v44 = vld [vmem:[#allocation54_spill] sm:$0xff]  ;;  %11191 = vst [vmem:[#allocation37_spill] sm:$0xff] %v8130_v22  ;;  %v8136_v27 = vsel %vm3746_vm0, %v3504_v53, 0.0  ;;  %5088 = vmatpush3.bf16.msra.mxu1 %v5262_v1 }
 0x251   : > { %11180 = vst [vmem:[#allocation45_spill] sm:$0xff] %v8108_v12  ;;  %v2962_v6 = vadd.f32 %v11188_v34, %v11187_v31  ;;  %v2948_v58 = vadd.f32 %v11190_v44, %v11189_v9  ;;  %11192 = vst [vmem:[#allocation38_spill] sm:$0xff] %v8132_v0  ;;  %v3202_v59 = vmax.f32 %v2946_v38, 0.0  ;;  %v11194_v44 = vld [vmem:[#allocation177_spill] sm:$0xff]  ;;  %v11198_v22 = vld [vmem:[#allocation251_spill] sm:$0xff]  ;;  %v8153_v56 = vsel %vm3746_vm0, %v3508_v8, 0.0  ;;  %5089 = vmatprep.subr.bf16.mxu1 %v11092_v50 }
 0x252   : > { %11193 = vst [vmem:[#allocation40_spill] sm:$0xff] %v8136_v27  ;;  %v8146_v46 = vadd.f32 %v11195_v18, %v11194_v44  ;;  %v11196_v20 = vld [vmem:[#allocation185_spill] sm:$0xff]  ;;  %v11199_v53 = vld [vmem:[#allocation252_spill] sm:$0xff]  ;;  %v3510_v38 = vmul.f32 %v11130_v54, %v3190_v43  ;;  %v11201_v7 = vld [vmem:[#allocation59_spill] sm:$0xff] }
 0x253   : > { %v11197_v5 = vld [vmem:[#allocation57_spill] sm:$0xff]  ;;  %2786 = vperm.xlu1 %5222, %v11199_v53   ;;  %v11200_v57 = vld [vmem:[#allocation188_spill] sm:$0xff]  ;;  %v3204_v25 = vmax.f32 %v2948_v58, 0.0  ;;  %v8166_v42 = vpop.permute.xlu0 %2621  ;;  %v3522_v1 = vmul.f32 %v11116_v16, %v3202_v59 }
 0x254   : > { %v2978_v21 = vadd.f32 %v11197_v5, %v11196_v20  ;;  %1866 = vperm.xlu0 %5229, %v11198_v22   ;;  %v2994_v12 = vadd.f32 %v11201_v7, %v11200_v57  ;;  %v11202_v34 = vld [vmem:[#allocation180_spill] sm:$0xff]  ;;  %v3218_v22 = vmax.f32 %v2962_v6, 0.0  ;;  %v11207_v53 = vld [vmem:[#allocation181_spill] sm:$0xff]  ;;  %11209 = vst [vmem:[#allocation172_spill] sm:$0xff] %v8166_v42  ;;  %v8188_v59 = vsel %vm3746_vm0, %v3510_v38, 0.0  ;;  %v11231_v20 = vld [vmem:[#allocation106_spill] sm:$0xff] }
 0x255   : > { %v11203_v27 = vld [vmem:[#allocation60_spill] sm:$0xff]  ;;  %v11208_v45 = vld [vmem:[#allocation61_spill] sm:$0xff]  ;;  %11223 = vst [vmem:[#allocation105_spill] sm:$0xff] %v8188_v59 }
 0x256   : > { %v2964_v47 = vadd.f32 %v11203_v27, %v11202_v34  ;;  %v5263_v18 = vld [vmem:[#allocation2 + $0x20] ss:$12 sps:$4 sm:$0xff]   ;;  %v2980_v8 = vadd.f32 %v11208_v45, %v11207_v53  ;;  %v3234_v42 = vmax.f32 %v2978_v21, 0.0  ;;  %v3250_v44 = vmax.f32 %v2994_v12, 0.0  ;;  %v542_v45 = vpop.f32.mrf.mxu0 }
 0x257   : > { %v11204_v0 = vld [vmem:[#allocation204_spill] sm:$0xff]  ;;  %v11213_v27 = vld [vmem:[#allocation205_spill] sm:$0xff]  ;;  %5090 = vmatpush3.bf16.msra.mxu1 %v5263_v18  ;;  %v3538_v21 = vmul.f32 %v11116_v16, %v3218_v22  ;;  %v8197_v38 = vpop.permute.xlu0 %1771  ;;  %v8209_v18 = vsel %vm3746_vm0, %v3522_v1, 0.0  ;;  %v11229_v53 = vmax.f32 %v8006_v3, 0.0 }
 0x258   : > { %v8162_v5 = vadd.f32 %v11205_v26, %v11204_v0  ;;  %v11210_v43 = vld [vmem:[#allocation192_spill] sm:$0xff]  ;;  %v8176_v10 = vadd.f32 %v11214_v55, %v11213_v27  ;;  %v11216_v26 = vld [vmem:[#allocation165_spill] sm:$0xff]  ;;  %v8180_v0 = vpop.permute.xlu1 %2691  ;;  %v11224_v55 = vld [vmem:[#allocation166_spill] sm:$0xff]  ;;  %11226 = vst [vmem:[#allocation250_spill] sm:$0xff] %v8197_v38  ;;  %5091 = vmatprep.subr.bf16.mxu1 %v11092_v50  ;;  %v3554_v38 = vmul.f32 %v11116_v16, %v3234_v42  ;;  %v544_v1 = vpop.f32.mrf.mxu0 }
 0x259   : > { %v11211_v7 = vld [vmem:[#allocation48_spill] sm:$0xff]  ;;  %v11217_v6 = vld [vmem:[#allocation53_spill] sm:$0xff]  ;;  %11218 = vst [vmem:[#allocation44_spill] sm:$0xff] %v8180_v0  ;;  %v11225_v27 = vld [vmem:[#allocation55_spill] sm:$0xff]  ;;  %v3858_v42 = vsel %vm3746_vm0, %v3538_v21, 0.0 }
 0x25a   : > { %11206 = vst [vmem:[#allocation42_spill] sm:$0xff] %v8162_v5  ;;  %v8171_v60 = vadd.f32 %v11211_v7, %v11210_v43  ;;  %11215 = vst [vmem:[#allocation164_spill] sm:$0xff] %v8176_v10  ;;  %v2947_v58 = vadd.f32 %v11217_v6, %v11216_v26  ;;  %v11221_v57 = vld [vmem:[#allocation253_spill] sm:$0xff]  ;;  %v11222_v7 = vld [vmem:[#allocation255_spill] sm:$0xff]  ;;  %v2963_v43 = vadd.f32 %v11225_v27, %v11224_v55  ;;  %v3220_v6 = vmax.f32 %v2964_v47, 0.0 }
 0x25b   : > { %2176 = vperm.xlu0 %5229, %v11221_v57   ;;  %1936 = vperm.xlu1 %5222, %v11222_v7   ;;  %v5264_v0 = vld [vmem:[#allocation2 + $0x8] ss:$12 sps:$4 sm:$0xff]   ;;  %v3524_v57 = vmul.f32 %v11125_v63, %v3204_v25  ;;  %v3236_v7 = vmax.f32 %v2980_v8, 0.0  ;;  %v8202_v47 = vld [vmem:[%s10427_s5 + $0x1] ss:$0 sm:$0xff]  ;;  %v11227_v8 = vld [vmem:[#allocation167_spill] sm:$0xff] }
 0x25c   : > { %11212 = vst [vmem:[#allocation50_spill] sm:$0xff] %v8171_v60  ;;  %v3203_v22 = vmax.f32 %v2947_v58, 0.0  ;;  %v11228_v27 = vld [vmem:[#allocation56_spill] sm:$0xff]  ;;  %v3251_v5 = vmax.f32 %v2995_v4, 0.0  ;;  %v8220_v12 = vpop.permute.xlu1 %3455  ;;  %v3219_v60 = vmax.f32 %v2963_v43, 0.0  ;;  %v3570_v58 = vmul.f32 %v11116_v16, %v3250_v44  ;;  %5092 = vmatpush3.bf16.msra.mxu1 %v5264_v0  ;;  %v11236_v21 = vld [vmem:[#allocation71_spill] sm:$0xff] }
 0x25d   : > { %v2979_v11 = vadd.f32 %v11228_v27, %v11227_v8  ;;  %v11230_v9 = vld [vmem:[#allocation64_spill] sm:$0xff]  ;;  %11232 = vst [vmem:[#allocation178_spill] sm:$0xff] %v8220_v12  ;;  %v3540_v25 = vmul.f32 %v11125_v63, %v3220_v6  ;;  %v602_v27 = vadd.f32 %v8202_v47, %v544_v1  ;;  %v8227_v3 = vsel %vm3746_vm0, %v3524_v57, 0.0  ;;  %5097 = vmatprep.subr.bf16.mxu1 %v11092_v50  ;;  %v11235_v6 = vld [vmem:[#allocation169_spill] sm:$0xff]  ;;  %v11256_v55 = vld [vmem:[#allocation75_spill] sm:$0xff] }
 0x25e   : > { %v3491_v2 = vmul.f32 %v11230_v9, %v11229_v53  ;;  %v8233_v53 = vpop.permute.xlu0 %2081  ;;  %v8238_v44 = vld [vmem:[%s10427_s5] ss:$0 sm:$0xff]  ;;  %v3523_v0 = vmul.f32 %v11230_v9, %v3203_v22  ;;  %v3539_v43 = vmul.f32 %v11230_v9, %v3219_v60  ;;  %v3011_v57 = vadd.f32 %v11236_v21, %v11235_v6  ;;  %v11239_v60 = vld [vmem:[#allocation195_spill] sm:$0xff] }
 0x25f   : > { %2641 = vperm.xlu0 %5229, %v11231_v20   ;;  %2246 = vperm.xlu1 %5222, %v7438_v24   ;;  %v3556_v20 = vmul.f32 %v11125_v63, %v3236_v7  ;;  %v11233_v24 = vmax.f32 %v8117_v28, 0.0  ;;  %11234 = vst [vmem:[#allocation52_spill] sm:$0xff] %v8233_v53  ;;  %v612_v7 = vpack.c.bf16 %v602_v27, %v602_v27  ;;  %v3235_v28 = vmax.f32 %v2979_v11, 0.0  ;;  %v11237_v53 = vld [vmem:[#allocation9_spill] sm:$0xff]  ;;  %v11238_v12 = vld [vmem:[#allocation108_spill] sm:$0xff]  ;;  %v11244_v27 = vld [vmem:[#allocation63_spill] sm:$0xff] }
 0x260   : > { %v3895_v1 = vsel %vm3746_vm0, %v3554_v38, 0.0  ;;  %v3571_v10 = vmul.f32 %v11230_v9, %v3251_v5  ;;  %v3932_v39 = vsel %vm3746_vm0, %v3570_v58, 0.0  ;;  %v3861_v22 = vsel %vm3746_vm0, %v3540_v25, 0.0  ;;  %v11240_v59 = vld [vmem:[#allocation68_spill] sm:$0xff]  ;;  %v8254_v21 = vpop.permute.xlu1 %1996  ;;  %v11242_v38 = vld [vmem:[#allocation58_spill] sm:$0xff]  ;;  %v11243_v5 = vld [vmem:[#allocation189_spill] sm:$0xff] }
 0x261   : > { %v3507_v4 = vmul.f32 %v11230_v9, %v11233_v24  ;;  %v3748_v24 = vsel %vm3746_vm0, %v3491_v2, 0.0  ;;  %v3010_v23 = vadd.f32 %v11240_v59, %v11239_v60  ;;  %11241 = vst [vmem:[#allocation54_spill] sm:$0xff] %v8254_v21  ;;  %v596_v11 = vadd.f32 %v8238_v44, %v542_v45  ;;  %5094 = vmatmul.mubr.bf16.vlgmr.msra.gmra.mxu1 %v11242_v38  ;;  %v11247_v21 = vld [vmem:[#allocation65_spill] sm:$0xff] }
 0x262   : > { %v8259_v2 = vsel %vm3746_vm0, %v3556_v20, 0.0  ;;  %v3555_v25 = vmul.f32 %v11230_v9, %v3235_v28  ;;  %v8267_v58 = vpop.permute.xlu0 %2311  ;;  %5098 = vmatpush3.bf16.xpose.msra.mxu1 %v612_v7  ;;  %5099 = vmatprep.mubr.msk.bf16.mxu1 %vm5494_vm1, %v11092_v50  ;;  %v3749_v45 = vadd.f32 %v3748_v24, %v8039_v33  ;;  %v3822_v59 = vsel %vm3746_vm0, %v3523_v0, 0.0  ;;  %v11249_v28 = vld [vmem:[#allocation67_spill] sm:$0xff]  ;;  %v11251_v7 = vld [vmem:[#allocation70_spill] sm:$0xff]  ;;  %v11255_v24 = vld [vmem:[#allocation173_spill] sm:$0xff] }
 0x263   : > { %1791 = vperm.xlu0 %5229, %v11237_v53   ;;  %2401 = vperm.xlu1 %5222, %v11238_v12   ;;  %v8263_v53 = vadd.f32 %v11244_v27, %v11243_v5  ;;  %v3785_v12 = vsel %vm3746_vm0, %v3507_v4, 0.0  ;;  %11245 = vst [vmem:[#allocation46_spill] sm:$0xff] %v8267_v58  ;;  %v3859_v20 = vsel %vm3746_vm0, %v3539_v43, 0.0  ;;  %v3267_v38 = vmax.f32 %v3011_v57, 0.0  ;;  %v11246_v27 = vld [vmem:[#allocation193_spill] sm:$0xff]  ;;  %v11248_v5 = vld [vmem:[#allocation182_spill] sm:$0xff] }
 0x264   : > { %5103 = vmatprep.subr.bf16.mxu1 %v11092_v50  ;;  %v3026_v4 = vadd.f32 %v11247_v21, %v11246_v27  ;;  %v3012_v60 = vadd.f32 %v11249_v28, %v11248_v5  ;;  %v11250_v58 = vld [vmem:[#allocation186_spill] sm:$0xff]  ;;  %v3933_v15 = vsel %vm3746_vm0, %v3571_v10, 0.0  ;;  %v11253_v33 = vld [vmem:[#allocation107_spill] sm:$0xff]  ;;  %v3266_v0 = vmax.f32 %v3010_v23, 0.0  ;;  %v11254_v43 = vld [vmem:[#allocation72_spill] sm:$0xff]  ;;  %v8288_v21 = vpop.permute.xlu1 %2461 }
 0x265   : > { %v3028_v6 = vadd.f32 %v11251_v7, %v11250_v58  ;;  %v3043_v57 = vadd.f32 %v11254_v43, %v11123_v19  ;;  %v3027_v51 = vadd.f32 %v11256_v55, %v11255_v24  ;;  %11257 = vst [vmem:[#allocation57_spill] sm:$0xff] %v8288_v21  ;;  %v610_v27 = vpack.c.bf16 %v596_v11, %v596_v11  ;;  %v11259_v23 = vld [vmem:[#allocation66_spill] sm:$0xff]  ;;  %v11260_v43 = vld [vmem:[#allocation187_spill] sm:$0xff]  ;;  %v11261_v55 = vld [vmem:[#allocation73_spill] sm:$0xff] }
 0x266   : > { %v3786_v7 = vadd.f32 %v3785_v12, %v8141_v61  ;;  %v3823_v10 = vadd.f32 %v3822_v59, %v8209_v18  ;;  %v3860_v5 = vadd.f32 %v3859_v20, %v3858_v42  ;;  %v3587_v19 = vmul.f32 %v11230_v9, %v3267_v38  ;;  %v11264_v38 = vld [vmem:[#allocation74_spill] sm:$0xff] }
 0x267   : > { %2101 = vperm.xlu0 %5229, %v11252_v48   ;;  %2711 = vperm.xlu1 %5222, %v11253_v33   ;;  %v8293_v48 = vpop.permute.xlu0 %2546  ;;  %v11258_v33 = vld [vmem:[#allocation194_spill] sm:$0xff]  ;;  %v2996_v24 = vadd.f32 %v11261_v55, %v11260_v43  ;;  %v3896_v11 = vsel %vm3746_vm0, %v3555_v25, 0.0  ;;  %v3282_v21 = vmax.f32 %v3026_v4, 0.0  ;;  %v3268_v28 = vmax.f32 %v3012_v60, 0.0  ;;  %v5388_v25 = vld [vmem:[%s10428_s6 + $0x58] sm:$0xff] }
 0x268   : > { %v8297_v58 = vadd.f32 %v11259_v23, %v11258_v33  ;;  %v3284_v34 = vmax.f32 %v3028_v6, 0.0  ;;  %v8303_v61 = vadd.f32 %v3933_v15, %v3932_v39  ;;  %v3586_v18 = vmul.f32 %v11116_v16, %v3266_v0  ;;  %v8314_v60 = vpop.permute.xlu1 %2771  ;;  %v11265_v0 = vld [vmem:[#allocation196_spill] sm:$0xff]  ;;  %v11270_v23 = vld [vmem:[#allocation197_spill] sm:$0xff] }
 0x269   : > { %v3299_v42 = vmax.f32 %v3043_v57, 0.0  ;;  %v3283_v12 = vmax.f32 %v3027_v51, 0.0  ;;  %v8309_v59 = vadd.f32 %v8059_v13, %v3749_v45  ;;  %11262 = vst [vmem:[#allocation251_spill] sm:$0xff] %v8314_v60  ;;  %5100 = vmatmul.mubr.bf16.vlgmr.msra.gmra.mxu1 %v610_v27  ;;  %v8317_v39 = vadd.f32 %v8153_v56, %v3786_v7  ;;  %v11266_v57 = vld [vmem:[#allocation77_spill] sm:$0xff] }
 0x26a   : > { %5105 = vmatprep.mubr.msk.bf16.mxu1 %vm5494_vm1, %v11092_v50  ;;  %v8324_v51 = vadd.f32 %v8227_v3, %v3823_v10  ;;  %v8326_v13 = vadd.f32 %v3861_v22, %v3860_v5  ;;  %v3970_v45 = vsel %vm3746_vm0, %v3587_v19, 0.0  ;;  %v3252_v20 = vmax.f32 %v2996_v24, 0.0  ;;  %v11267_v7 = vld [vmem:[#allocation85_spill] sm:$0xff] }
 0x26b   : > { %2331 = vperm.xlu0 %5229, %v7432_v17   ;;  %5223 = vset.pattern.permute.xlu1 %v10652_v37  ;;  %v3897_v17 = vadd.f32 %v3896_v11, %v3895_v1  ;;  %v8319_v15 = vpop.permute.xlu0 %2856  ;;  %v3059_v56 = vadd.f32 %v11264_v38, %v11183_v35  ;;  %v3602_v1 = vmul.f32 %v11116_v16, %v3282_v21  ;;  %v3969_v22 = vsel %vm3746_vm0, %v3586_v18, 0.0  ;;  %v11271_v19 = vld [vmem:[#allocation81_spill] sm:$0xff]  ;;  %v11272_v11 = vld [vmem:[#allocation111_spill] sm:$0xff] }
 0x26c   : > { %3471 = vperm.xlu1 %5223, %v5388_v25   ;;  %11263 = vst [vmem:[#allocation252_spill] sm:$0xff] %v8319_v15  ;;  %v3588_v27 = vmul.f32 %v11125_v63, %v3268_v28  ;;  %v3604_v4 = vmul.f32 %v11125_v63, %v3284_v34  ;;  %v2950_v3 = vadd.f32 %v11266_v57, %v11265_v0  ;;  %v8344_v21 = vpop.permute.xlu1 %1921  ;;  %v11269_v34 = vld [vmem:[#allocation80_spill] sm:$0xff]  ;;  %v11275_v25 = vld [vmem:[#allocation82_spill] sm:$0xff] }
 0x26d   : > { %v3619_v5 = vmul.f32 %v11230_v9, %v3299_v42  ;;  %v3603_v24 = vmul.f32 %v11230_v9, %v3283_v12  ;;  %v3042_v35 = vadd.f32 %v11267_v7, %v11080_v14  ;;  %11268 = vst [vmem:[#allocation59_spill] sm:$0xff] %v8344_v21  ;;  %v3971_v28 = vadd.f32 %v3970_v45, %v3969_v22  ;;  %v11274_v12 = vld [vmem:[#allocation200_spill] sm:$0xff]  ;;  %v11277_v7 = vld [vmem:[#allocation257_spill] sm:$0xff] }
 0x26e   : > { %v3075_v10 = vadd.f32 %v11269_v34, %v11216_v26  ;;  %v8351_v55 = vadd.f32 %v8259_v2, %v3897_v17  ;;  %v3572_v14 = vmul.f32 %v11125_v63, %v3252_v20  ;;  %v3315_v42 = vmax.f32 %v3059_v56, 0.0  ;;  %v11276_v45 = vld [vmem:[#allocation84_spill] sm:$0xff] }
 0x26f   : > { %2566 = vperm.xlu0 %5229, %v7453_v40   ;;  %v2966_v40 = vadd.f32 %v11271_v19, %v11270_v23  ;;  %v8354_v18 = vpop.permute.xlu0 %1851  ;;  %v2998_v38 = vadd.f32 %v11275_v25, %v11274_v12  ;;  %v3044_v57 = vadd.f32 %v11276_v45, %v11087_v36  ;;  %v4006_v26 = vsel %vm3746_vm0, %v3602_v1, 0.0  ;;  %v11278_v19 = vld [vmem:[#allocation87_spill] sm:$0xff]  ;;  %v11284_v12 = vld [vmem:[#allocation76_spill] sm:$0xff] }
 0x270   : > { %5224 = vset.pattern.permute.xlu1 %v10816_v62  ;;  %11273 = vst [vmem:[#allocation60_spill] sm:$0xff] %v8354_v18  ;;  %v3972_v22 = vsel %vm3746_vm0, %v3588_v27, 0.0  ;;  %v4009_v2 = vsel %vm3746_vm0, %v3604_v4, 0.0  ;;  %v3206_v17 = vmax.f32 %v2950_v3, 0.0  ;;  %v4044_v34 = vsel %vm3746_vm0, %v3619_v5, 0.0  ;;  %v8369_v25 = vpop.permute.xlu1 %2231  ;;  %v11280_v27 = vld [vmem:[#allocation86_spill] sm:$0xff] }
 0x271   : > { %2016 = vperm.xlu1 %5224, %v11272_v11   ;;  %v4007_v20 = vsel %vm3746_vm0, %v3603_v24, 0.0  ;;  %v3298_v56 = vmax.f32 %v3042_v35, 0.0  ;;  %v3058_v11 = vadd.f32 %v11278_v19, %v11131_v49  ;;  %11279 = vst [vmem:[#allocation47_spill] sm:$0xff] %v8369_v25  ;;  %v8371_v36 = vadd.f32 %v3972_v22, %v3971_v28  ;;  %v11281_v3 = vld [vmem:[#allocation160_spill] sm:$0xff]  ;;  %v11283_v19 = vld [vmem:[#allocation206_spill] sm:$0xff] }
 0x272   : > { %v3331_v1 = vmax.f32 %v3075_v10, 0.0  ;;  %v3222_v45 = vmax.f32 %v2966_v40, 0.0  ;;  %v3090_v4 = vadd.f32 %v11280_v27, %v11187_v31  ;;  %v3935_v5 = vsel %vm3746_vm0, %v3572_v14, 0.0  ;;  %v11285_v40 = vld [vmem:[#allocation207_spill] sm:$0xff]  ;;  %v11286_v22 = vld [vmem:[#allocation78_spill] sm:$0xff] }
 0x273   : > { %2876 = vperm.xlu0 %5229, %v11277_v7   ;;  %v8376_v7 = vpop.permute.xlu0 %2161  ;;  %v3635_v24 = vmul.f32 %v11230_v9, %v3315_v42  ;;  %v3254_v35 = vmax.f32 %v2998_v38, 0.0  ;;  %v3300_v6 = vmax.f32 %v3044_v57, 0.0  ;;  %v4008_v49 = vadd.f32 %v4007_v20, %v4006_v26  ;;  %v11287_v27 = vld [vmem:[#allocation110_spill] sm:$0xff]  ;;  %v11290_v38 = vld [vmem:[#allocation201_spill] sm:$0xff]  ;;  %v11291_v57 = vld [vmem:[#allocation88_spill] sm:$0xff] }
 0x274   : > { %11282 = vst [vmem:[#allocation61_spill] sm:$0xff] %v8376_v7  ;;  %v8382_v28 = vadd.f32 %v11284_v12, %v11283_v19  ;;  %v3526_v10 = vmul.f32 %v11130_v54, %v3206_v17  ;;  %v3013_v31 = vadd.f32 %v11286_v22, %v11285_v40  ;;  %v11289_v7 = vld [vmem:[#allocation79_spill] sm:$0xff]  ;;  %v3618_v14 = vmul.f32 %v11116_v16, %v3298_v56  ;;  %v8393_v20 = vpop.permute.xlu1 %2386 }
 0x275   : > { %2481 = vperm.xlu1 %5224, %v11281_v3   ;;  %v11288_v3 = vld [vmem:[#allocation208_spill] sm:$0xff]  ;;  %v3314_v42 = vmax.f32 %v3058_v11, 0.0  ;;  %v3014_v26 = vadd.f32 %v11291_v57, %v11290_v38  ;;  %11292 = vst [vmem:[#allocation48_spill] sm:$0xff] %v8393_v20  ;;  %v8396_v12 = vadd.f32 %v3935_v5, %v8303_v61  ;;  %v3651_v17 = vmul.f32 %v11230_v9, %v3331_v1  ;;  %v11296_v57 = vld [vmem:[#allocation83_spill] sm:$0xff] }
 0x276   : > { %v2981_v18 = vadd.f32 %v11289_v7, %v11288_v3  ;;  %v3542_v22 = vmul.f32 %v11130_v54, %v3222_v45  ;;  %v3346_v21 = vmax.f32 %v3090_v4, 0.0  ;;  %v4081_v56 = vsel %vm3746_vm0, %v3635_v24, 0.0  ;;  %v11295_v7 = vld [vmem:[#allocation209_spill] sm:$0xff]  ;;  %v11297_v5 = vld [vmem:[#allocation115_spill] sm:$0xff] }
 0x277   : > { %1871 = vperm.xlu0 %5229, %v11287_v27   ;;  %v11293_v27 = vld [vmem:[#allocation123_spill] sm:$0xff]  ;;  %v8401_v25 = vpop.permute.xlu0 %2626  ;;  %v3574_v11 = vmul.f32 %v11130_v54, %v3254_v35  ;;  %v2997_v38 = vadd.f32 %v11296_v57, %v11295_v7  ;;  %v3620_v20 = vmul.f32 %v11125_v63, %v3300_v6  ;;  %v8410_v1 = vsel %vm3746_vm0, %v3526_v10, 0.0  ;;  %v546_v57 = vpop.f32.mrf.mxu0 }
 0x278   : > { %11294 = vst [vmem:[#allocation51_spill] sm:$0xff] %v8401_v25  ;;  %v3269_v45 = vmax.f32 %v3013_v31, 0.0  ;;  %v8412_v4 = vadd.f32 %v4009_v2, %v4008_v49  ;;  %v4043_v24 = vsel %vm3746_vm0, %v3618_v14, 0.0  ;;  %v3634_v35 = vmul.f32 %v11116_v16, %v3314_v42  ;;  %v8417_v15 = vpop.permute.xlu1 %2696  ;;  %v11300_v31 = vld [vmem:[#allocation89_spill] sm:$0xff] }
 0x279   : > { %2791 = vperm.xlu1 %5224, %v11293_v27   ;;  %v3237_v27 = vmax.f32 %v2981_v18, 0.0  ;;  %v3270_v25 = vmax.f32 %v3014_v26, 0.0  ;;  %11298 = vst [vmem:[#allocation165_spill] sm:$0xff] %v8417_v15  ;;  %v8420_v6 = vsel %vm3746_vm0, %v3651_v17, 0.0  ;;  %v8423_v10 = vsel %vm3746_vm0, %v3542_v22, 0.0  ;;  %v548_v15 = vpop.f32.mrf.mxu0 }
 0x27a   : > { %v3666_v2 = vmul.f32 %v11116_v16, %v3346_v21  ;;  %v11299_v49 = vmax.f32 %v8011_v52, 0.0  ;;  %v8433_v42 = vsel %vm3746_vm0, %v3574_v11, 0.0  ;;  %v3253_v26 = vmax.f32 %v2997_v38, 0.0 }
 0x27b   : > { %2181 = vperm.xlu0 %5229, %v11297_v5   ;;  %v11301_v5 = vld [vmem:[#allocation119_spill] sm:$0xff]  ;;  %v8430_v14 = vpop.permute.xlu0 %1776  ;;  %v4046_v17 = vsel %vm3746_vm0, %v3620_v20, 0.0  ;;  %v11303_v61 = vmax.f32 %v8146_v46, 0.0  ;;  %v4045_v21 = vadd.f32 %v4044_v34, %v4043_v24  ;;  %v11304_v52 = vmax.f32 %v8297_v58, 0.0 }
 0x27c   : > { %v3493_v18 = vmul.f32 %v11300_v31, %v11299_v49  ;;  %11302 = vst [vmem:[#allocation53_spill] sm:$0xff] %v8430_v14  ;;  %v603_v11 = vadd.f32 %v8202_v47, %v548_v15  ;;  %v4080_v38 = vsel %vm3746_vm0, %v3634_v35, 0.0  ;;  %v3590_v20 = vmul.f32 %v11130_v54, %v3270_v25  ;;  %v11307_v14 = vld [vmem:[#allocation92_spill] sm:$0xff] }
 0x27d   : > { %1941 = vperm.xlu1 %5224, %v11301_v5   ;;  %v3509_v22 = vmul.f32 %v11300_v31, %v11303_v61  ;;  %v3525_v49 = vmul.f32 %v11300_v31, %v11304_v52  ;;  %v11305_v5 = vld [vmem:[#allocation90_spill] sm:$0xff]  ;;  %v3557_v46 = vmul.f32 %v11300_v31, %v3237_v27  ;;  %v8452_v58 = vsel %vm3746_vm0, %v3666_v2, 0.0  ;;  %v11308_v52 = vld [vmem:[#allocation113_spill] sm:$0xff] }
 0x27e   : > { %v3107_v60 = vadd.f32 %v11305_v5, %v11227_v8  ;;  %v11306_v61 = vld [vmem:[#allocation202_spill] sm:$0xff]  ;;  %v3752_v24 = vsel %vm3746_vm0, %v3493_v18, 0.0  ;;  %v8456_v8 = vpop.permute.xlu1 %3459  ;;  %v613_v47 = vpack.c.bf16 %v603_v11, %v603_v11  ;;  %v3573_v15 = vmul.f32 %v11300_v31, %v3253_v26  ;;  %v11311_v27 = vld [vmem:[#allocation93_spill] sm:$0xff] }
 0x27f   : > { %2646 = vperm.xlu0 %5229, %v7520_v41   ;;  %v2982_v34 = vadd.f32 %v11307_v14, %v11306_v61  ;;  %11309 = vst [vmem:[#allocation62_spill] sm:$0xff] %v8456_v8  ;;  %v8458_v41 = vpop.permute.xlu0 %2086  ;;  %v3789_v25 = vsel %vm3746_vm0, %v3509_v22, 0.0  ;;  %v3045_v35 = vadd.f32 %v11311_v27, %v11126_v32  ;;  %v597_v14 = vadd.f32 %v8238_v44, %v546_v57  ;;  %v11313_v8 = vld [vmem:[#allocation124_spill] sm:$0xff]  ;;  %v11314_v44 = vld [vmem:[#allocation94_spill] sm:$0xff] }
 0x280   : > { %11310 = vst [vmem:[#allocation253_spill] sm:$0xff] %v8458_v41  ;;  %v3589_v2 = vmul.f32 %v11300_v31, %v3269_v45  ;;  %v8466_v5 = vadd.f32 %v4081_v56, %v4080_v38  ;;  %v11312_v18 = vmax.f32 %v8263_v53, 0.0  ;;  %v3826_v41 = vsel %vm3746_vm0, %v3525_v49, 0.0  ;;  %5104 = vmatpush3.bf16.xpose.msra.mxu1 %v613_v47  ;;  %v11323_v27 = vld [vmem:[#allocation120_spill] sm:$0xff] }
 0x281   : > { %2251 = vperm.xlu1 %5224, %v11308_v52   ;;  %v3363_v11 = vmax.f32 %v3107_v60, 0.0  ;;  %v3976_v26 = vsel %vm3746_vm0, %v3590_v20, 0.0  ;;  %v3900_v32 = vsel %vm3746_vm0, %v3557_v46, 0.0  ;;  %v3238_v22 = vmax.f32 %v2982_v34, 0.0  ;;  %5109 = vmatprep.subr.bf16.mxu1 %v11092_v50  ;;  %v11316_v20 = vld [vmem:[#allocation214_spill] sm:$0xff] }
 0x282   : > { %v3541_v52 = vmul.f32 %v11300_v31, %v11312_v18  ;;  %v3074_v45 = vadd.f32 %v11314_v44, %v11181_v30  ;;  %v3753_v53 = vadd.f32 %v3752_v24, %v8309_v59  ;;  %v3790_v56 = vadd.f32 %v3789_v25, %v8317_v39  ;;  %v11317_v46 = vld [vmem:[#allocation98_spill] sm:$0xff]  ;;  %v11320_v39 = vld [vmem:[#allocation91_spill] sm:$0xff]  ;;  %v11324_v44 = vld [vmem:[#allocation168_spill] sm:$0xff] }
 0x283   : > { %1951 = vperm.xlu0 %5229, %v11313_v8   ;;  %v4047_v57 = vadd.f32 %v4046_v17, %v4045_v21  ;;  %v8481_v60 = vpop.permute.xlu0 %2316  ;;  %v3937_v49 = vsel %vm3746_vm0, %v3573_v15, 0.0  ;;  %v3301_v38 = vmax.f32 %v3045_v35, 0.0  ;;  %v3029_v34 = vadd.f32 %v11317_v46, %v11316_v20  ;;  %v8486_v8 = vpop.permute.xlu1 %2001  ;;  %v11319_v24 = vld [vmem:[#allocation210_spill] sm:$0xff]  ;;  %v11321_v21 = vld [vmem:[#allocation180_spill] sm:$0xff]  ;;  %v11322_v25 = vld [vmem:[#allocation95_spill] sm:$0xff] }
 0x284   : > { %11315 = vst [vmem:[#allocation255_spill] sm:$0xff] %v8481_v60  ;;  %11318 = vst [vmem:[#allocation55_spill] sm:$0xff] %v8486_v8  ;;  %v611_v30 = vpack.c.bf16 %v597_v14, %v597_v14  ;;  %v3974_v47 = vsel %vm3746_vm0, %v3589_v2, 0.0  ;;  %v3683_v59 = vmul.f32 %v11230_v9, %v3363_v11  ;;  %v8492_v17 = vadd.f32 %v11320_v39, %v11319_v24  ;;  %v11325_v14 = vld [vmem:[#allocation97_spill] sm:$0xff]  ;;  %v11326_v11 = vld [vmem:[#allocation166_spill] sm:$0xff] }
 0x285   : > { %2406 = vperm.xlu1 %5224, %v7523_v29   ;;  %v3901_v29 = vadd.f32 %v3900_v32, %v8351_v55  ;;  %v3092_v15 = vadd.f32 %v11322_v25, %v11321_v21  ;;  %v3558_v35 = vmul.f32 %v11130_v54, %v3238_v22  ;;  %v3330_v18 = vmax.f32 %v3074_v45, 0.0  ;;  %v11327_v8 = vld [vmem:[#allocation118_spill] sm:$0xff]  ;;  %v11328_v39 = vld [vmem:[#allocation263_spill] sm:$0xff] }
 0x286   : > { %v3123_v46 = vadd.f32 %v11325_v14, %v11324_v44  ;;  %v3863_v2 = vsel %vm3746_vm0, %v3541_v52, 0.0  ;;  %v3091_v60 = vadd.f32 %v11327_v8, %v11326_v11  ;;  %v3938_v55 = vadd.f32 %v3937_v49, %v8396_v12  ;;  %v11330_v21 = vld [vmem:[#allocation242_spill] sm:$0xff]  ;;  %v11332_v44 = vld [vmem:[#allocation104_spill] sm:$0xff]  ;;  %v11334_v8 = vld [vmem:[#allocation105_spill] sm:$0xff] }
 0x287   : > { %2261 = vperm.xlu0 %5229, %v11323_v27   ;;  %v8505_v24 = vpop.permute.xlu0 %2551  ;;  %v3975_v32 = vadd.f32 %v3974_v47, %v8371_v36  ;;  %v8510_v25 = vadd.f32 %v11330_v21, %v3753_v53  ;;  %v3621_v22 = vmul.f32 %v11300_v31, %v3301_v38  ;;  %v3285_v45 = vmax.f32 %v3029_v34, 0.0  ;;  %v11331_v27 = vld [vmem:[#allocation176_spill] sm:$0xff]  ;;  %v8515_v14 = vpop.permute.xlu1 %2466  ;;  %5106 = vmatmul.mubr.bf16.vlgmr.msra.gmra.mxu1 %v611_v30  ;;  %v11335_v36 = vld [vmem:[#allocation266_spill] sm:$0xff]  ;;  %v11336_v47 = vld [vmem:[#allocation211_spill] sm:$0xff] }
 0x288   : > { %11329 = vst [vmem:[#allocation167_spill] sm:$0xff] %v8505_v24  ;;  %v3060_v52 = vadd.f32 %v11332_v44, %v11331_v27  ;;  %11333 = vst [vmem:[#allocation56_spill] sm:$0xff] %v8515_v14  ;;  %v8518_v11 = vadd.f32 %v11334_v8, %v3790_v56  ;;  %v3348_v12 = vmax.f32 %v3092_v15, 0.0  ;;  %v3827_v53 = vadd.f32 %v3826_v41, %v8324_v51  ;;  %v11340_v27 = vld [vmem:[#allocation159_spill] sm:$0xff] }
 0x289   : > { %2716 = vperm.xlu1 %5224, %v11328_v39   ;;  %v8521_v39 = vsel %vm3746_vm0, %v3683_v59, 0.0  ;;  %v3864_v49 = vadd.f32 %v3863_v2, %v8326_v13  ;;  %5111 = vmatprep.mubr.msk.bf16.mxu1 %vm5494_vm1, %v11092_v50  ;;  %v3902_v34 = vsel %vm3746_vm0, %v3558_v35, 0.0  ;;  %v3650_v56 = vmul.f32 %v11116_v16, %v3330_v18  ;;  %v11337_v59 = vld [vmem:[#allocation96_spill] sm:$0xff]  ;;  %v11352_v38 = vld [vmem:[#allocation147_spill] sm:$0xff] }
 0x28a   : > { %v3379_v30 = vmax.f32 %v3123_v46, 0.0  ;;  %v8533_v21 = vadd.f32 %v11337_v59, %v11336_v47  ;;  %v3347_v15 = vmax.f32 %v3091_v60, 0.0  ;;  %v8539_v13 = vadd.f32 %v8433_v42, %v3938_v55  ;;  %v11339_v46 = vld [vmem:[#allocation185_spill] sm:$0xff]  ;;  %v5389_v60 = vld [vmem:[%s10428_s6 + $0x60] sm:$0xff]  ;;  %v11344_v59 = vld [vmem:[#allocation103_spill] sm:$0xff] }
 0x28b   : > { %2416 = vperm.xlu0 %5229, %v11335_v36   ;;  %v8536_v51 = vpop.permute.xlu0 %2861  ;;  %v8541_v41 = vadd.f32 %v3976_v26, %v3975_v32  ;;  %v4048_v2 = vsel %vm3746_vm0, %v3621_v22, 0.0  ;;  %v3605_v35 = vmul.f32 %v11300_v31, %v3285_v45  ;;  %v3316_v18 = vmax.f32 %v3060_v52, 0.0  ;;  %v8550_v8 = vpop.permute.xlu1 %2776  ;;  %v11342_v26 = vld [vmem:[#allocation267_spill] sm:$0xff] }
 0x28c   : > { %11338 = vst [vmem:[#allocation64_spill] sm:$0xff] %v8536_v51  ;;  %v3106_v44 = vadd.f32 %v11340_v27, %v11339_v46  ;;  %11341 = vst [vmem:[#allocation106_spill] sm:$0xff] %v8550_v8  ;;  %v8552_v36 = vadd.f32 %v3902_v34, %v3901_v29  ;;  %v3668_v42 = vmul.f32 %v11125_v63, %v3348_v12  ;;  %v4117_v22 = vsel %vm3746_vm0, %v3650_v56, 0.0  ;;  %v11343_v52 = vld [vmem:[#allocation215_spill] sm:$0xff]  ;;  %v11347_v34 = vld [vmem:[#allocation157_spill] sm:$0xff] }
 0x28d   : > { %5225 = vset.pattern.permute.xlu1 %v10652_v37  ;;  %v8557_v55 = vadd.f32 %v8410_v1, %v3827_v53  ;;  %v8560_v32 = vadd.f32 %v8423_v10, %v3864_v49  ;;  %v3699_v45 = vmul.f32 %v11230_v9, %v3379_v30  ;;  %v8566_v46 = vadd.f32 %v11344_v59, %v11343_v52  ;;  %v11346_v29 = vld [vmem:[#allocation179_spill] sm:$0xff]  ;;  %v11348_v53 = vld [vmem:[#allocation181_spill] sm:$0xff]  ;;  %v11366_v51 = vld [vmem:[#allocation170_spill] sm:$0xff] }
 0x28e   : > { %3475 = vperm.xlu1 %5225, %v5389_v60   ;;  %v3076_v27 = vadd.f32 %v11347_v34, %v11346_v29  ;;  %v8570_v12 = vadd.f32 %v4048_v2, %v4047_v57  ;;  %v3667_v1 = vmul.f32 %v11230_v9, %v3347_v15  ;;  %v11349_v10 = vld [vmem:[#allocation133_spill] sm:$0xff]  ;;  %v4011_v56 = vsel %vm3746_vm0, %v3605_v35, 0.0  ;;  %v11354_v29 = vld [vmem:[#allocation216_spill] sm:$0xff] }
 0x28f   : > { %2726 = vperm.xlu0 %5229, %v11342_v26   ;;  %11345 = vst [vmem:[#allocation71_spill] sm:$0xff] %v8566_v46  ;;  %v3108_v49 = vadd.f32 %v11349_v10, %v11348_v53  ;;  %v8576_v26 = vpop.permute.xlu0 %1856  ;;  %v3636_v30 = vmul.f32 %v11125_v63, %v3316_v18  ;;  %v11351_v59 = vld [vmem:[#allocation169_spill] sm:$0xff]  ;;  %v3362_v52 = vmax.f32 %v3106_v44, 0.0  ;;  %v8583_v57 = vpop.permute.xlu1 %1926  ;;  %v4119_v2 = vadd.f32 %v8420_v6, %v4117_v22  ;;  %v11356_v10 = vld [vmem:[#allocation203_spill] sm:$0xff]  ;;  %v11357_v35 = vld [vmem:[#allocation184_spill] sm:$0xff] }
 0x290   : > { %11350 = vst [vmem:[#allocation9_spill] sm:$0xff] %v8576_v26  ;;  %v3139_v50 = vadd.f32 %v11352_v38, %v11351_v59  ;;  %11353 = vst [vmem:[#allocation108_spill] sm:$0xff] %v8583_v57  ;;  %v4157_v15 = vsel %vm3746_vm0, %v3668_v42, 0.0  ;;  %v11355_v34 = vld [vmem:[#allocation117_spill] sm:$0xff]  ;;  %v3030_v60 = vadd.f32 %v11357_v35, %v11356_v10  ;;  %v11358_v18 = vld [vmem:[#allocation270_spill] sm:$0xff]  ;;  %v8596_v38 = vsel %vm3746_vm0, %v3699_v45, 0.0 }
 0x291   : > { %v8589_v53 = vadd.f32 %v11355_v34, %v11354_v29  ;;  %v11359_v26 = vld [vmem:[#allocation121_spill] sm:$0xff]  ;;  %v3332_v59 = vmax.f32 %v3076_v27, 0.0  ;;  %v11361_v22 = vld [vmem:[#allocation199_spill] sm:$0xff]  ;;  %v8602_v57 = vadd.f32 %v4011_v56, %v8412_v4  ;;  %v4155_v34 = vsel %vm3746_vm0, %v3667_v1, 0.0  ;;  %v11362_v35 = vld [vmem:[#allocation188_spill] sm:$0xff] }
 0x292   : > { %5226 = vset.pattern.permute.xlu1 %v10816_v62  ;;  %v11360_v6 = vld [vmem:[#allocation177_spill] sm:$0xff]  ;;  %v3364_v29 = vmax.f32 %v3108_v49, 0.0  ;;  %v4083_v45 = vsel %vm3746_vm0, %v3636_v30, 0.0  ;;  %v3682_v44 = vmul.f32 %v11116_v16, %v3362_v52  ;;  %v11365_v27 = vld [vmem:[#allocation191_spill] sm:$0xff]  ;;  %v11369_v1 = vld [vmem:[#allocation134_spill] sm:$0xff]  ;;  %v4156_v52 = vadd.f32 %v4155_v34, %v8452_v58 }
 0x293   : > { %2496 = vperm.xlu0 %5229, %v11358_v18   ;;  %2021 = vperm.xlu1 %5226, %v11359_v26   ;;  %v3061_v42 = vadd.f32 %v11361_v22, %v11360_v6  ;;  %v11363_v8 = vld [vmem:[#allocation213_spill] sm:$0xff]  ;;  %v8607_v14 = vpop.permute.xlu0 %2166  ;;  %v3395_v26 = vmax.f32 %v3139_v50, 0.0  ;;  %v3062_v24 = vadd.f32 %v11366_v51, %v11365_v27  ;;  %v8613_v6 = vpop.permute.xlu1 %2236  ;;  %v3271_v4 = vmax.f32 %v8589_v53, 0.0  ;;  %v11372_v50 = vld [vmem:[#allocation278_spill] sm:$0xff]  ;;  %v11376_v10 = vld [vmem:[#allocation148_spill] sm:$0xff] }
 0x294   : > { %v3122_v18 = vadd.f32 %v11363_v8, %v11362_v35  ;;  %11364 = vst [vmem:[#allocation68_spill] sm:$0xff] %v8607_v14  ;;  %11367 = vst [vmem:[#allocation58_spill] sm:$0xff] %v8613_v6  ;;  %v11368_v56 = vld [vmem:[#allocation217_spill] sm:$0xff]  ;;  %v11370_v8 = vld [vmem:[#allocation183_spill] sm:$0xff]  ;;  %v3286_v35 = vmax.f32 %v3030_v60, 0.0  ;;  %v3652_v51 = vmul.f32 %v11125_v63, %v3332_v59  ;;  %v4084_v46 = vadd.f32 %v4083_v45, %v8466_v5 }
 0x295   : > { %v8618_v49 = vadd.f32 %v11369_v1, %v11368_v56  ;;  %v3124_v22 = vadd.f32 %v11370_v8, %v11260_v43  ;;  %v11371_v14 = vld [vmem:[#allocation125_spill] sm:$0xff]  ;;  %v11374_v27 = vld [vmem:[#allocation198_spill] sm:$0xff]  ;;  %v3317_v53 = vmax.f32 %v3061_v42, 0.0  ;;  %v3684_v1 = vmul.f32 %v11125_v63, %v3364_v29  ;;  %v11381_v42 = vld [vmem:[#allocation219_spill] sm:$0xff] }
 0x296   : > { %v11373_v30 = vld [vmem:[#allocation173_spill] sm:$0xff]  ;;  %v11375_v56 = vld [vmem:[#allocation218_spill] sm:$0xff]  ;;  %v3378_v60 = vmax.f32 %v3122_v18, 0.0  ;;  %v4191_v59 = vsel %vm3746_vm0, %v3682_v44, 0.0  ;;  %v3318_v40 = vmax.f32 %v3062_v24, 0.0  ;;  %v11382_v29 = vld [vmem:[#allocation156_spill] sm:$0xff]  ;;  %v3606_v18 = vmul.f32 %v11130_v54, %v3286_v35 }
 0x297   : > { %2111 = vperm.xlu0 %5229, %v11371_v14   ;;  %2486 = vperm.xlu1 %5226, %v11372_v50   ;;  %v3155_v6 = vadd.f32 %v11374_v27, %v11373_v30  ;;  %v2983_v43 = vadd.f32 %v11376_v10, %v11375_v56  ;;  %v8632_v8 = vpop.permute.xlu0 %2631  ;;  %v3715_v14 = vmul.f32 %v11230_v9, %v3395_v26  ;;  %v11378_v50 = vld [vmem:[#allocation220_spill] sm:$0xff]  ;;  %v11379_v58 = vld [vmem:[#allocation158_spill] sm:$0xff]  ;;  %v8638_v30 = vpop.permute.xlu1 %2391  ;;  %v3380_v10 = vmax.f32 %v3124_v22, 0.0  ;;  %v11384_v26 = vld [vmem:[#allocation281_spill] sm:$0xff] }
 0x298   : > { %11377 = vst [vmem:[#allocation63_spill] sm:$0xff] %v8632_v8  ;;  %v3031_v34 = vadd.f32 %v11379_v58, %v11378_v50  ;;  %11380 = vst [vmem:[#allocation65_spill] sm:$0xff] %v8638_v30  ;;  %v8643_v45 = vadd.f32 %v11382_v29, %v11381_v42  ;;  %v11383_v27 = vld [vmem:[#allocation122_spill] sm:$0xff]  ;;  %v4120_v58 = vsel %vm3746_vm0, %v3652_v51, 0.0  ;;  %v3637_v24 = vmul.f32 %v11300_v31, %v3317_v53  ;;  %v11385_v29 = vld [vmem:[#allocation221_spill] sm:$0xff] }
 0x299   : > { %v3411_v8 = vmax.f32 %v3155_v6, 0.0  ;;  %v8650_v44 = vadd.f32 %v4157_v15, %v4156_v52  ;;  %v4194_v5 = vsel %vm3746_vm0, %v3684_v1, 0.0  ;;  %v4193_v30 = vadd.f32 %v8521_v39, %v4191_v59  ;;  %v11386_v50 = vld [vmem:[#allocation171_spill] sm:$0xff]  ;;  %v11390_v59 = vld [vmem:[#allocation284_spill] sm:$0xff] }
 0x29a   : > { %v8656_v22 = vadd.f32 %v11386_v50, %v11385_v29  ;;  %v3698_v35 = vmul.f32 %v11116_v16, %v3378_v60  ;;  %v3239_v6 = vmax.f32 %v2983_v43, 0.0  ;;  %v3287_v51 = vmax.f32 %v3031_v34, 0.0  ;;  %v11389_v60 = vld [vmem:[#allocation282_spill] sm:$0xff]  ;;  %v11415_v42 = vld [vmem:[#allocation280_spill] sm:$0xff] }
 0x29b   : > { %2341 = vperm.xlu0 %5229, %v11383_v27   ;;  %2796 = vperm.xlu1 %5226, %v11384_v26   ;;  %v8659_v27 = vpop.permute.xlu0 %1781  ;;  %v8662_v26 = vsel %vm3746_vm0, %v3715_v14, 0.0  ;;  %v3638_v15 = vmul.f32 %v11130_v54, %v3318_v40  ;;  %v8665_v52 = vpop.permute.xlu1 %2701  ;;  %v8668_v39 = vadd.f32 %v4120_v58, %v4119_v2  ;;  %v3700_v1 = vmul.f32 %v11125_v63, %v3380_v10  ;;  %v11391_v34 = vld [vmem:[#allocation222_spill] sm:$0xff]  ;;  %v11392_v40 = vld [vmem:[#allocation212_spill] sm:$0xff] }
 0x29c   : > { %11387 = vst [vmem:[#allocation67_spill] sm:$0xff] %v8659_v27  ;;  %11388 = vst [vmem:[#allocation70_spill] sm:$0xff] %v8665_v52  ;;  %v4013_v50 = vsel %vm3746_vm0, %v3606_v18, 0.0  ;;  %v3731_v14 = vmul.f32 %v11230_v9, %v3411_v8  ;;  %v4085_v43 = vsel %vm3746_vm0, %v3637_v24, 0.0  ;;  %v8678_v27 = vadd.f32 %v11392_v40, %v11391_v34  ;;  %v11394_v52 = vld [vmem:[#allocation227_spill] sm:$0xff]  ;;  %v11397_v24 = vld [vmem:[#allocation224_spill] sm:$0xff] }
 0x29d   : > { %v3607_v53 = vmul.f32 %v11394_v52, %v3287_v51  ;;  %v4228_v10 = vsel %vm3746_vm0, %v3698_v35, 0.0  ;;  %v8683_v58 = vadd.f32 %v4194_v5, %v4193_v30  ;;  %v4087_v9 = vsel %vm3746_vm0, %v3638_v15, 0.0  ;;  %v11396_v8 = vld [vmem:[#allocation223_spill] sm:$0xff] }
 0x29e   : > { %11393 = vst [vmem:[#allocation109_spill] sm:$0xff] %v8678_v27  ;;  %v11398_v40 = vmax.f32 %v8492_v17, 0.0  ;;  %v3591_v2 = vmul.f32 %v11394_v52, %v3271_v4  ;;  %v4231_v35 = vsel %vm3746_vm0, %v3700_v1, 0.0  ;;  %v4014_v30 = vadd.f32 %v4013_v50, %v8602_v57  ;;  %v11399_v34 = vld [vmem:[#allocation235_spill] sm:$0xff] }
 0x29f   : > { %2576 = vperm.xlu0 %5229, %v11389_v60   ;;  %1946 = vperm.xlu1 %5226, %v11390_v59   ;;  %v8685_v18 = vpop.permute.xlu0 %2091  ;;  %v3559_v60 = vmul.f32 %v11394_v52, %v3239_v6  ;;  %v8691_v59 = vadd.f32 %v11397_v24, %v11396_v8  ;;  %v4086_v5 = vadd.f32 %v4085_v43, %v4084_v46  ;;  %v11401_v15 = vld [vmem:[#allocation287_spill] sm:$0xff]  ;;  %v8703_v24 = vpop.permute.xlu1 %3463  ;;  %v8706_v17 = vsel %vm3746_vm0, %v3731_v14, 0.0 }
 0x2a0   : > { %11395 = vst [vmem:[#allocation107_spill] sm:$0xff] %v8685_v18  ;;  %v3575_v51 = vmul.f32 %v11394_v52, %v11398_v40  ;;  %v3109_v6 = vadd.f32 %v11399_v34, %v11288_v3  ;;  %v11400_v18 = vld [vmem:[#allocation285_spill] sm:$0xff]  ;;  %11402 = vst [vmem:[#allocation72_spill] sm:$0xff] %v8703_v24  ;;  %v4230_v4 = vadd.f32 %v8596_v38, %v4228_v10  ;;  %v4015_v1 = vsel %vm3746_vm0, %v3607_v53, 0.0  ;;  %v11403_v57 = vld [vmem:[#allocation39_spill] sm:$0xff] }
 0x2a1   : > { %v11404_v46 = vmax.f32 %v11403_v57, 0.0  ;;  %v11405_v3 = vld [vmem:[#allocation50_spill] sm:$0xff]  ;;  %v3904_v40 = vsel %vm3746_vm0, %v3559_v60, 0.0  ;;  %v11409_v53 = vld [vmem:[#allocation249_spill] sm:$0xff]  ;;  %v11410_v8 = vld [vmem:[#allocation195_spill] sm:$0xff] }
 0x2a2   : > { %v11406_v43 = vmax.f32 %v11405_v3, 0.0  ;;  %v3077_v10 = vadd.f32 %v11409_v53, %v11258_v33  ;;  %v3941_v57 = vsel %vm3746_vm0, %v3575_v51, 0.0  ;;  %v3365_v3 = vmax.f32 %v3109_v6, 0.0  ;;  %v11412_v24 = vld [vmem:[#allocation127_spill] sm:$0xff]  ;;  %v11413_v60 = vld [vmem:[#allocation114_spill] sm:$0xff] }
 0x2a3   : > { %2886 = vperm.xlu0 %5229, %v11400_v18   ;;  %2256 = vperm.xlu1 %5226, %v11401_v15   ;;  %v3495_v50 = vmul.f32 %v11394_v52, %v11404_v46  ;;  %v11407_v18 = vmax.f32 %v8382_v28, 0.0  ;;  %v8720_v14 = vpop.permute.xlu0 %2321  ;;  %v3978_v46 = vsel %vm3746_vm0, %v3591_v2, 0.0  ;;  %v8730_v28 = vadd.f32 %v4015_v1, %v4014_v30  ;;  %v11414_v38 = vld [vmem:[#allocation14_spill] sm:$0xff]  ;;  %v8740_v51 = vpop.permute.xlu1 %2006  ;;  %v11421_v1 = vld [vmem:[#allocation289_spill] sm:$0xff] }
 0x2a4   : > { %v3511_v34 = vmul.f32 %v11394_v52, %v11406_v43  ;;  %11408 = vst [vmem:[#allocation75_spill] sm:$0xff] %v8720_v14  ;;  %v11411_v43 = vld [vmem:[#allocation112_spill] sm:$0xff]  ;;  %v3046_v14 = vadd.f32 %v11415_v42, %v11414_v38  ;;  %v8738_v33 = vadd.f32 %v4231_v35, %v4230_v4  ;;  %11416 = vst [vmem:[#allocation194_spill] sm:$0xff] %v8740_v51 }
 0x2a5   : > { %v3527_v15 = vmul.f32 %v11394_v52, %v11407_v18  ;;  %v3138_v27 = vadd.f32 %v11411_v43, %v11410_v8  ;;  %v8732_v18 = vadd.f32 %v4087_v9, %v4086_v5  ;;  %v8743_v2 = vadd.f32 %v3904_v40, %v8552_v36  ;;  %v11418_v9 = vld [vmem:[#allocation225_spill] sm:$0xff]  ;;  %v11419_v5 = vld [vmem:[#allocation240_spill] sm:$0xff] }
 0x2a6   : > { %v11417_v8 = vmax.f32 %v8533_v21, 0.0  ;;  %v8750_v6 = vadd.f32 %v11419_v5, %v11418_v9  ;;  %v8757_v42 = vadd.f32 %v3941_v57, %v8539_v13  ;;  %v8760_v35 = vadd.f32 %v3978_v46, %v8541_v41  ;;  %v11423_v40 = vld [vmem:[#allocation193_spill] sm:$0xff]  ;;  %v11424_v21 = vld [vmem:[#allocation131_spill] sm:$0xff]  ;;  %v11427_v13 = vld [vmem:[#allocation262_spill] sm:$0xff] }
 0x2a7   : > { %2191 = vperm.xlu0 %5229, %v11412_v24   ;;  %2411 = vperm.xlu1 %5226, %v11413_v60   ;;  %v11420_v24 = vld [vmem:[#allocation189_spill] sm:$0xff]  ;;  %v8754_v43 = vpop.permute.xlu0 %2556  ;;  %v3333_v36 = vmax.f32 %v3077_v10, 0.0  ;;  %v3154_v4 = vadd.f32 %v11424_v21, %v11423_v40  ;;  %v3756_v38 = vsel %vm3746_vm0, %v3495_v50, 0.0  ;;  %v3793_v60 = vsel %vm3746_vm0, %v3511_v34, 0.0  ;;  %v11429_v41 = vld [vmem:[#allocation116_spill] sm:$0xff]  ;;  %v11430_v10 = vld [vmem:[#allocation186_spill] sm:$0xff]  ;;  %v8775_v50 = vpop.permute.xlu1 %2471 }
 0x2a8   : > { %v3543_v30 = vmul.f32 %v11394_v52, %v11417_v8  ;;  %v3093_v53 = vadd.f32 %v11421_v1, %v11420_v24  ;;  %11422 = vst [vmem:[#allocation66_spill] sm:$0xff] %v8754_v43  ;;  %v3685_v8 = vmul.f32 %v11300_v31, %v3365_v3  ;;  %v3394_v5 = vmax.f32 %v3138_v27, 0.0  ;;  %v11425_v24 = vld [vmem:[#allocation10_spill] sm:$0xff]  ;;  %v11426_v1 = vld [vmem:[#allocation256_spill] sm:$0xff]  ;;  %11432 = vst [vmem:[#allocation187_spill] sm:$0xff] %v8775_v50 }
 0x2a9   : > { %v3047_v51 = vadd.f32 %v11426_v1, %v11425_v24  ;;  %v3094_v57 = vadd.f32 %v11427_v13, %v11270_v23  ;;  %v11428_v43 = vld [vmem:[#allocation290_spill] sm:$0xff]  ;;  %v11431_v46 = vld [vmem:[#allocation272_spill] sm:$0xff]  ;;  %v3302_v21 = vmax.f32 %v3046_v14, 0.0  ;;  %v3830_v34 = vsel %vm3746_vm0, %v3527_v15, 0.0 }
 0x2aa   : > { %v3156_v40 = vadd.f32 %v11431_v46, %v11430_v10  ;;  %v3867_v27 = vsel %vm3746_vm0, %v3543_v30, 0.0  ;;  %v3240_v3 = vmax.f32 %v8750_v6, 0.0  ;;  %v11433_v24 = vld [vmem:[#allocation226_spill] sm:$0xff]  ;;  %v11434_v1 = vld [vmem:[#allocation244_spill] sm:$0xff]  ;;  %v3349_v23 = vmax.f32 %v3093_v53, 0.0 }
 0x2ab   : > { %2656 = vperm.xlu0 %5229, %v11428_v43   ;;  %2721 = vperm.xlu1 %5226, %v11429_v41   ;;  %v8782_v9 = vadd.f32 %v11434_v1, %v11433_v24  ;;  %v8784_v43 = vpop.permute.xlu0 %2866  ;;  %v8787_v13 = vadd.f32 %v3756_v38, %v8510_v25  ;;  %v3653_v14 = vmul.f32 %v11300_v31, %v3333_v36  ;;  %v3410_v41 = vmax.f32 %v3154_v4, 0.0  ;;  %v11436_v10 = vld [vmem:[#allocation100_spill] sm:$0xff]  ;;  %v11437_v24 = vld [vmem:[#allocation135_spill] sm:$0xff]  ;;  %v11439_v38 = vld [vmem:[#allocation254_spill] sm:$0xff] }
 0x2ac   : > { %v3110_v15 = vadd.f32 %v11436_v10, %v11306_v61  ;;  %v8793_v30 = vadd.f32 %v3793_v60, %v8518_v11  ;;  %v4196_v6 = vsel %vm3746_vm0, %v3685_v8, 0.0  ;;  %v3714_v46 = vmul.f32 %v11116_v16, %v3394_v5  ;;  %v11438_v25 = vld [vmem:[#allocation228_spill] sm:$0xff]  ;;  %v5390_v11 = vld [vmem:[%s10428_s6 + $0x68] sm:$0xff]  ;;  %v8807_v60 = vpop.permute.xlu1 %2781 }
 0x2ad   : > { %11435 = vst [vmem:[#allocation73_spill] sm:$0xff] %v8782_v9  ;;  %v3303_v1 = vmax.f32 %v3047_v51, 0.0  ;;  %v3350_v53 = vmax.f32 %v3094_v57, 0.0  ;;  %v8801_v36 = vadd.f32 %v11439_v38, %v11438_v25  ;;  %v3412_v4 = vmax.f32 %v3156_v40, 0.0  ;;  %11440 = vst [vmem:[#allocation74_spill] sm:$0xff] %v8807_v60  ;;  %v11441_v5 = vld [vmem:[#allocation229_spill] sm:$0xff] }
 0x2ae   : > { %v3622_v61 = vmul.f32 %v11130_v54, %v3302_v21  ;;  %v8810_v51 = vadd.f32 %v3830_v34, %v8557_v55  ;;  %v11442_v57 = vld [vmem:[#allocation259_spill] sm:$0xff]  ;;  %v3669_v40 = vmul.f32 %v11300_v31, %v3349_v23  ;;  %v8821_v21 = vadd.f32 %v3867_v27, %v8560_v32  ;;  %v11444_v9 = vld [vmem:[#allocation230_spill] sm:$0xff]  ;;  %v11445_v23 = vld [vmem:[#allocation269_spill] sm:$0xff] }
 0x2af   : > { %2271 = vperm.xlu0 %5229, %v11437_v24   ;;  %5227 = vset.pattern.permute.xlu1 %v10652_v37  ;;  %v8815_v24 = vadd.f32 %v11442_v57, %v11441_v5  ;;  %v8818_v10 = vpop.permute.xlu0 %1861  ;;  %v4197_v38 = vadd.f32 %v4196_v6, %v8683_v58  ;;  %v3730_v55 = vmul.f32 %v11116_v16, %v3410_v41  ;;  %v3366_v34 = vmax.f32 %v3110_v15, 0.0  ;;  %v11448_v16 = vld [vmem:[#allocation286_spill] sm:$0xff]  ;;  %v11471_v60 = vld [vmem:[#allocation296_spill] sm:$0xff] }
 0x2b0   : > { %3479 = vperm.xlu1 %5227, %v5390_v11   ;;  %11443 = vst [vmem:[#allocation196_spill] sm:$0xff] %v8818_v10  ;;  %v4122_v11 = vsel %vm3746_vm0, %v3653_v14, 0.0  ;;  %v4265_v8 = vsel %vm3746_vm0, %v3714_v46, 0.0  ;;  %v3623_v25 = vmul.f32 %v11394_v52, %v3303_v1  ;;  %v3670_v57 = vmul.f32 %v11130_v54, %v3350_v53  ;;  %v11446_v10 = vld [vmem:[#allocation291_spill] sm:$0xff]  ;;  %v8840_v15 = vpop.permute.xlu1 %1931  ;;  %v11451_v53 = vld [vmem:[#allocation232_spill] sm:$0xff] }
 0x2b1   : > { %v3000_v5 = vadd.f32 %v11445_v23, %v11444_v9  ;;  %v3732_v58 = vmul.f32 %v11125_v63, %v3412_v4  ;;  %v4050_v27 = vsel %vm3746_vm0, %v3622_v61, 0.0  ;;  %v11447_v14 = vld [vmem:[#allocation231_spill] sm:$0xff]  ;;  %11450 = vst [vmem:[#allocation85_spill] sm:$0xff] %v8840_v15  ;;  %v8843_v6 = vadd.f32 %v4122_v11, %v8668_v39  ;;  %v11453_v61 = vld [vmem:[#allocation292_spill] sm:$0xff]  ;;  %v11469_v9 = vld [vmem:[#allocation182_spill] sm:$0xff] }
 0x2b2   : > { %v8837_v41 = vadd.f32 %v11448_v16, %v11447_v14  ;;  %v4159_v1 = vsel %vm3746_vm0, %v3669_v40, 0.0  ;;  %v8855_v16 = vadd.f32 %v8662_v26, %v4265_v8  ;;  %v4302_v32 = vsel %vm3746_vm0, %v3730_v55, 0.0  ;;  %v11455_v11 = vld [vmem:[#allocation308_spill] sm:$0xff]  ;;  %v11457_v55 = vld [vmem:[#allocation233_spill] sm:$0xff] }
 0x2b3   : > { %2426 = vperm.xlu0 %5229, %v11446_v10   ;;  %v11452_v10 = vld [vmem:[#allocation294_spill] sm:$0xff]  ;;  %v8852_v23 = vpop.permute.xlu0 %2171  ;;  %v3686_v39 = vmul.f32 %v11130_v54, %v3366_v34  ;;  %v3560_v14 = vmul.f32 %v11455_v11, %v3240_v3  ;;  %v4052_v46 = vsel %vm3746_vm0, %v3623_v25, 0.0  ;;  %v4161_v40 = vsel %vm3746_vm0, %v3670_v57, 0.0  ;;  %v11461_v57 = vld [vmem:[#allocation16_spill] sm:$0xff] }
 0x2b4   : > { %11449 = vst [vmem:[#allocation77_spill] sm:$0xff] %v8837_v41  ;;  %5228 = vset.pattern.permute.xlu1 %v10816_v62  ;;  %v8849_v4 = vadd.f32 %v11452_v10, %v11451_v53  ;;  %11454 = vst [vmem:[#allocation80_spill] sm:$0xff] %v8852_v23  ;;  %v3256_v15 = vmax.f32 %v3000_v5, 0.0  ;;  %v4051_v10 = vadd.f32 %v4050_v27, %v8570_v12  ;;  %v11456_v53 = vld [vmem:[#allocation295_spill] sm:$0xff]  ;;  %v8871_v3 = vpop.permute.xlu1 %2241  ;;  %v11465_v25 = vmax.f32 %v8691_v59, 0.0 }
 0x2b5   : > { %2026 = vperm.xlu1 %5228, %v11453_v61   ;;  %v4305_v61 = vsel %vm3746_vm0, %v3732_v58, 0.0  ;;  %v4160_v8 = vadd.f32 %v4159_v1, %v8650_v44  ;;  %v11458_v23 = vld [vmem:[#allocation99_spill] sm:$0xff]  ;;  %11460 = vst [vmem:[#allocation81_spill] sm:$0xff] %v8871_v3  ;;  %v4304_v5 = vadd.f32 %v8706_v17, %v4302_v32  ;;  %v4198_v44 = vsel %vm3746_vm0, %v3686_v39, 0.0  ;;  %v11464_v1 = vld [vmem:[#allocation318_spill] sm:$0xff] }
 0x2b6   : > { %v8869_v34 = vadd.f32 %v11458_v23, %v11457_v55  ;;  %v11462_v12 = vld [vmem:[#allocation239_spill] sm:$0xff]  ;;  %v3576_v26 = vmul.f32 %v11455_v11, %v3256_v15  ;;  %v3078_v23 = vadd.f32 %v11464_v1, %v11265_v0  ;;  %v3906_v55 = vsel %vm3746_vm0, %v3560_v14, 0.0  ;;  %v11466_v32 = vld [vmem:[#allocation30_spill] sm:$0xff] }
 0x2b7   : > { %2736 = vperm.xlu0 %5229, %v11456_v53   ;;  %v3048_v27 = vadd.f32 %v11462_v12, %v11461_v57  ;;  %v11463_v53 = vld [vmem:[#allocation128_spill] sm:$0xff]  ;;  %v8878_v58 = vpop.permute.xlu0 %2636  ;;  %v3592_v17 = vmul.f32 %v11455_v11, %v11465_v25  ;;  %v11467_v41 = vmax.f32 %v11466_v32, 0.0  ;;  %v8891_v12 = vadd.f32 %v4052_v46, %v4051_v10  ;;  %v11470_v39 = vld [vmem:[#allocation327_spill] sm:$0xff]  ;;  %v11472_v0 = vld [vmem:[#allocation42_spill] sm:$0xff] }
 0x2b8   : > { %11459 = vst [vmem:[#allocation197_spill] sm:$0xff] %v8869_v34  ;;  %v3140_v3 = vadd.f32 %v11470_v39, %v11469_v9  ;;  %v11473_v14 = vmax.f32 %v11472_v0, 0.0  ;;  %v8902_v1 = vadd.f32 %v4161_v40, %v4160_v8  ;;  %v8904_v32 = vpop.permute.xlu1 %2396  ;;  %v11476_v9 = vld [vmem:[#allocation23_spill] sm:$0xff]  ;;  %v8917_v0 = vadd.f32 %v3906_v55, %v8743_v2  ;;  %v11483_v34 = vld [vmem:[#allocation234_spill] sm:$0xff]  ;;  %v11485_v2 = vld [vmem:[#allocation161_spill] sm:$0xff] }
 0x2b9   : > { %2491 = vperm.xlu1 %5228, %v11463_v53   ;;  %v3496_v57 = vmul.f32 %v11455_v11, %v11467_v41  ;;  %v11468_v53 = vld [vmem:[#allocation19_spill] sm:$0xff]  ;;  %11474 = vst [vmem:[#allocation111_spill] sm:$0xff] %v8904_v32  ;;  %v11475_v41 = vmax.f32 %v8618_v49, 0.0  ;;  %v3304_v10 = vmax.f32 %v3048_v27, 0.0  ;;  %v3334_v40 = vmax.f32 %v3078_v23, 0.0  ;;  %v11492_v32 = vld [vmem:[#allocation298_spill] sm:$0xff] }
 0x2ba   : > { %v3095_v15 = vadd.f32 %v11468_v53, %v11336_v47  ;;  %v3512_v59 = vmul.f32 %v11455_v11, %v11473_v14  ;;  %v8909_v47 = vadd.f32 %v4198_v44, %v4197_v38  ;;  %v11477_v53 = vld [vmem:[#allocation126_spill] sm:$0xff]  ;;  %v8919_v8 = vadd.f32 %v4305_v61, %v4304_v5  ;;  %v11479_v27 = vld [vmem:[#allocation247_spill] sm:$0xff]  ;;  %v11486_v61 = vld [vmem:[#allocation245_spill] sm:$0xff] }
 0x2bb   : > { %2506 = vperm.xlu0 %5229, %v11471_v60   ;;  %v3528_v46 = vmul.f32 %v11455_v11, %v11475_v41  ;;  %v3157_v60 = vadd.f32 %v11476_v9, %v11316_v20  ;;  %v8914_v39 = vpop.permute.xlu0 %1786  ;;  %v3943_v49 = vsel %vm3746_vm0, %v3576_v26, 0.0  ;;  %v3980_v14 = vsel %vm3746_vm0, %v3592_v17, 0.0  ;;  %v11480_v41 = vld [vmem:[#allocation35_spill] sm:$0xff]  ;;  %v11481_v20 = vld [vmem:[#allocation192_spill] sm:$0xff]  ;;  %v11482_v9 = vld [vmem:[#allocation38_spill] sm:$0xff] }
 0x2bc   : > { %11478 = vst [vmem:[#allocation82_spill] sm:$0xff] %v8914_v39  ;;  %v3351_v38 = vmax.f32 %v3095_v15, 0.0  ;;  %v3396_v44 = vmax.f32 %v3140_v3, 0.0  ;;  %v3032_v25 = vadd.f32 %v11480_v41, %v11479_v27  ;;  %v11484_v39 = vld [vmem:[#allocation238_spill] sm:$0xff]  ;;  %v8936_v26 = vpop.permute.xlu1 %2706  ;;  %v11489_v3 = vmax.f32 %v8656_v22, 0.0 }
 0x2bd   : > { %2801 = vperm.xlu1 %5228, %v11477_v53   ;;  %v3063_v53 = vadd.f32 %v11482_v9, %v11481_v20  ;;  %v8930_v55 = vadd.f32 %v11485_v2, %v11484_v39  ;;  %v11487_v5 = vld [vmem:[#allocation26_spill] sm:$0xff]  ;;  %11488 = vst [vmem:[#allocation84_spill] sm:$0xff] %v8936_v26  ;;  %v3758_v15 = vsel %vm3746_vm0, %v3496_v57, 0.0  ;;  %v3624_v41 = vmul.f32 %v11455_v11, %v3304_v10  ;;  %v11491_v2 = vld [vmem:[#allocation44_spill] sm:$0xff] }
 0x2be   : > { %v8934_v23 = vadd.f32 %v11487_v5, %v11486_v61  ;;  %v3544_v17 = vmul.f32 %v11455_v11, %v11489_v3  ;;  %v3413_v20 = vmax.f32 %v3157_v60, 0.0  ;;  %v3125_v39 = vadd.f32 %v11491_v2, %v11295_v7 }
 0x2bf   : > { %2816 = vperm.xlu0 %5229, %v11483_v34   ;;  %v11490_v34 = vld [vmem:[#allocation172_spill] sm:$0xff]  ;;  %v8948_v5 = vpop.permute.xlu0 %2096  ;;  %v3654_v26 = vmul.f32 %v11130_v54, %v3334_v40  ;;  %v8952_v22 = vadd.f32 %v3943_v49, %v8757_v42  ;;  %v8955_v57 = vadd.f32 %v3980_v14, %v8760_v35  ;;  %v3795_v10 = vsel %vm3746_vm0, %v3512_v59, 0.0 }
 0x2c0   : > { %v3111_v9 = vadd.f32 %v11490_v34, %v11375_v56  ;;  %11493 = vst [vmem:[#allocation257_spill] sm:$0xff] %v8948_v5  ;;  %v3671_v60 = vmul.f32 %v11394_v52, %v3351_v38  ;;  %v3716_v56 = vmul.f32 %v11125_v63, %v3396_v44  ;;  %v3288_v3 = vmax.f32 %v3032_v25, 0.0  ;;  %v11494_v34 = vld [vmem:[#allocation190_spill] sm:$0xff]  ;;  %v11495_v63 = vld [vmem:[#allocation303_spill] sm:$0xff]  ;;  %v8970_v25 = vpop.permute.xlu1 %3467 }
 0x2c1   : > { %2106 = vperm.xlu1 %5228, %v11492_v32   ;;  %v3319_v7 = vmax.f32 %v3063_v53, 0.0  ;;  %v8963_v40 = vadd.f32 %v3758_v15, %v8787_v13  ;;  %v3832_v42 = vsel %vm3746_vm0, %v3528_v46, 0.0  ;;  %v3869_v35 = vsel %vm3746_vm0, %v3544_v17, 0.0  ;;  %v11496_v13 = vld [vmem:[#allocation8_spill] sm:$0xff]  ;;  %v11497_v15 = vld [vmem:[#allocation163_spill] sm:$0xff]  ;;  %v11512_v32 = vld [vmem:[#allocation57_spill] sm:$0xff] }
 0x2c2   : > { %v4054_v49 = vsel %vm3746_vm0, %v3624_v41, 0.0  ;;  %v3733_v59 = vmul.f32 %v11300_v31, %v3413_v20  ;;  %v3367_v14 = vmax.f32 %v3111_v9, 0.0  ;;  %v3381_v38 = vmax.f32 %v3125_v39, 0.0  ;;  %v11538_v5 = vld [vmem:[#allocation306_spill] sm:$0xff] }
 0x2c3   : > { %2431 = vperm.xlu0 %5229, %v11494_v34   ;;  %v3241_v44 = vmax.f32 %v8934_v23, 0.0  ;;  %v4124_v53 = vsel %vm3746_vm0, %v3654_v26, 0.0  ;;  %v8976_v2 = vadd.f32 %v11497_v15, %v11496_v13  ;;  %v8978_v46 = vpop.permute.xlu0 %2326  ;;  %v8981_v17 = vadd.f32 %v3795_v10, %v8793_v30  ;;  %v11498_v23 = vld [vmem:[#allocation136_spill] sm:$0xff]  ;;  %v11499_v34 = vld [vmem:[#allocation246_spill] sm:$0xff] }
 0x2c4   : > { %v4163_v41 = vsel %vm3746_vm0, %v3671_v60, 0.0  ;;  %v4268_v39 = vsel %vm3746_vm0, %v3716_v56, 0.0  ;;  %v3608_v20 = vmul.f32 %v11455_v11, %v3288_v3  ;;  %v3639_v9 = vmul.f32 %v11394_v52, %v3319_v7  ;;  %v11502_v7 = vld [vmem:[#allocation130_spill] sm:$0xff] }
 0x2c5   : > { %2336 = vperm.xlu1 %5228, %v11495_v63   ;;  %v8989_v26 = vadd.f32 %v4054_v49, %v8891_v12  ;;  %v11500_v63 = vld [vmem:[#allocation243_spill] sm:$0xff]  ;;  %v8996_v30 = vadd.f32 %v3832_v42, %v8810_v51  ;;  %v8999_v10 = vadd.f32 %v3869_v35, %v8821_v21  ;;  %v9002_v60 = vadd.f32 %v4124_v53, %v8843_v6  ;;  %v11503_v42 = vld [vmem:[#allocation248_spill] sm:$0xff]  ;;  %v11504_v35 = vld [vmem:[#allocation37_spill] sm:$0xff] }
 0x2c6   : > { %v8993_v15 = vadd.f32 %v11500_v63, %v11499_v34  ;;  %v4307_v56 = vsel %vm3746_vm0, %v3733_v59, 0.0  ;;  %v3687_v3 = vmul.f32 %v11394_v52, %v3367_v14  ;;  %v3701_v12 = vmul.f32 %v11300_v31, %v3381_v38  ;;  %v9021_v59 = vpop.permute.xlu1 %2011 }
 0x2c7   : > { %2741 = vperm.xlu0 %5229, %v11498_v23   ;;  %v9009_v49 = vadd.f32 %v4163_v41, %v8902_v1  ;;  %v9012_v51 = vadd.f32 %v4268_v39, %v8855_v16  ;;  %v9017_v6 = vadd.f32 %v11504_v35, %v11503_v42  ;;  %v9019_v53 = vpop.permute.xlu0 %2561  ;;  %11505 = vst [vmem:[#allocation86_spill] sm:$0xff] %v9021_v59  ;;  %v4017_v14 = vsel %vm3746_vm0, %v3608_v20, 0.0  ;;  %v11506_v23 = vld [vmem:[#allocation69_spill] sm:$0xff]  ;;  %v11507_v1 = vld [vmem:[#allocation250_spill] sm:$0xff]  ;;  %v11509_v16 = vld [vmem:[#allocation11_spill] sm:$0xff] }
 0x2c8   : > { %11501 = vst [vmem:[#allocation87_spill] sm:$0xff] %v8993_v15  ;;  %v4089_v38 = vsel %vm3746_vm0, %v3639_v9, 0.0  ;;  %v9027_v41 = vadd.f32 %v11507_v1, %v11506_v23  ;;  %v11510_v39 = vld [vmem:[#allocation46_spill] sm:$0xff]  ;;  %v9033_v35 = vadd.f32 %v4307_v56, %v8919_v8  ;;  %v3079_v42 = vadd.f32 %v11512_v32, %v11283_v19  ;;  %v11536_v15 = vld [vmem:[#allocation275_spill] sm:$0xff] }
 0x2c9   : > { %2571 = vperm.xlu1 %5228, %v11502_v7   ;;  %v3049_v63 = vadd.f32 %v11510_v39, %v11509_v16  ;;  %v11511_v7 = vld [vmem:[#allocation139_spill] sm:$0xff]  ;;  %v11513_v20 = vld [vmem:[#allocation178_spill] sm:$0xff]  ;;  %v4200_v9 = vsel %vm3746_vm0, %v3687_v3, 0.0  ;;  %v4233_v1 = vsel %vm3746_vm0, %v3701_v12, 0.0  ;;  %v3096_v23 = vadd.f32 %v8293_v48, %v11385_v29  ;;  %v11514_v16 = vld [vmem:[#allocation129_spill] sm:$0xff] }
 0x2ca   : > { %11508 = vst [vmem:[#allocation160_spill] sm:$0xff] %v9027_v41  ;;  %v3561_v34 = vmul.f32 %v11513_v20, %v3241_v44  ;;  %v11515_v39 = vmax.f32 %v8801_v36, 0.0  ;;  %v9048_v56 = vadd.f32 %v4017_v14, %v8730_v28  ;;  %v9052_v32 = vadd.f32 %v4089_v38, %v8732_v18  ;;  %v11516_v44 = vld [vmem:[#allocation261_spill] sm:$0xff]  ;;  %v11517_v3 = vld [vmem:[#allocation52_spill] sm:$0xff]  ;;  %v9060_v48 = vpop.permute.xlu1 %2476 }
 0x2cb   : > { %2511 = vperm.xlu0 %5229, %v11511_v7   ;;  %v9056_v12 = vadd.f32 %v11517_v3, %v11516_v44  ;;  %v9058_v7 = vpop.permute.xlu0 %2871  ;;  %11519 = vst [vmem:[#allocation76_spill] sm:$0xff] %v9060_v48  ;;  %v3305_v36 = vmax.f32 %v3049_v63, 0.0  ;;  %v11522_v14 = vld [vmem:[#allocation140_spill] sm:$0xff]  ;;  %v11523_v21 = vmax.f32 %v8849_v4, 0.0  ;;  %v9070_v38 = vadd.f32 %v4200_v9, %v8909_v47  ;;  %v328_v63 = vld [vmem:[%s10427_s5 + $0xa] sm:$0x1] }
 0x2cc   : > { %v3577_v8 = vmul.f32 %v11513_v20, %v11515_v39  ;;  %v11521_v39 = vld [vmem:[#allocation251_spill] sm:$0xff]  ;;  %v9073_v3 = vadd.f32 %v4233_v1, %v8738_v33  ;;  %v3335_v19 = vmax.f32 %v3079_v42, 0.0  ;;  %v3908_v44 = vsel %vm3746_vm0, %v3561_v34, 0.0  ;;  %5141 = vpush %v328_v63  ;;  %v11527_v9 = vld [vmem:[#allocation164_spill] sm:$0xff] }
 0x2cd   : > { %2881 = vperm.xlu1 %5228, %v11514_v16   ;;  %11518 = vst [vmem:[#allocation206_spill] sm:$0xff] %v9056_v12  ;;  %v11520_v16 = vld [vmem:[#allocation207_spill] sm:$0xff]  ;;  %v3593_v18 = vmul.f32 %v11513_v20, %v11523_v21  ;;  %v11528_v33 = vmax.f32 %v11527_v9, 0.0  ;;  %v11530_v29 = vld [vmem:[#allocation252_spill] sm:$0xff]  ;;  %v3625_v9 = vmul.f32 %v11513_v20, %v3305_v36 }
 0x2ce   : > { %v3141_v28 = vadd.f32 %v11521_v39, %v11520_v16  ;;  %v3352_v16 = vmax.f32 %v3096_v23, 0.0  ;;  %v11524_v39 = vld [vmem:[#allocation143_spill] sm:$0xff]  ;;  %v3945_v4 = vsel %vm3746_vm0, %v3577_v8, 0.0  ;;  %v9092_v23 = vpop.permute.xlu1 %2786 }
 0x2cf   : > { %2821 = vperm.xlu0 %5229, %v11522_v14   ;;  %v11525_v21 = vld [vmem:[#allocation31_spill] sm:$0xff]  ;;  %v3513_v42 = vmul.f32 %v11513_v20, %v11528_v33  ;;  %v9090_v59 = vpop.permute.xlu0 %1866  ;;  %11532 = vst [vmem:[#allocation110_spill] sm:$0xff] %v9092_v23  ;;  %v11540_v23 = vld [vmem:[#allocation54_spill] sm:$0xff] }
 0x2d0   : > { %v11526_v14 = vmax.f32 %v11525_v21, 0.0  ;;  %v11529_v1 = vld [vmem:[#allocation203_spill] sm:$0xff]  ;;  %11531 = vst [vmem:[#allocation78_spill] sm:$0xff] %v9090_v59  ;;  %v11535_v21 = vmax.f32 %v8643_v45, 0.0  ;;  %v3397_v33 = vmax.f32 %v3141_v28, 0.0  ;;  %v9111_v45 = vadd.f32 %v3908_v44, %v8917_v0  ;;  %v11541_v28 = vld [vmem:[#allocation204_spill] sm:$0xff] }
 0x2d1   : > { %2031 = vperm.xlu1 %5228, %v11524_v39   ;;  %v3158_v41 = vadd.f32 %v11530_v29, %v11529_v1  ;;  %v11533_v39 = vld [vmem:[#allocation71_spill] sm:$0xff]  ;;  %v3982_v29 = vsel %vm3746_vm0, %v3593_v18, 0.0  ;;  %v11539_v1 = vld [vmem:[#allocation49_spill] sm:$0xff]  ;;  %v3672_v36 = vmul.f32 %v11455_v11, %v3352_v16  ;;  %v4056_v16 = vsel %vm3746_vm0, %v3625_v9, 0.0 }
 0x2d2   : > { %v3497_v47 = vmul.f32 %v11513_v20, %v11526_v14  ;;  %v11534_v8 = vmax.f32 %v11533_v39, 0.0  ;;  %v3545_v14 = vmul.f32 %v11513_v20, %v11535_v21  ;;  %v11537_v34 = vld [vmem:[#allocation47_spill] sm:$0xff]  ;;  %v9107_v59 = vadd.f32 %v11540_v23, %v11539_v1  ;;  %v11549_v9 = vld [vmem:[#allocation273_spill] sm:$0xff] }
 0x2d3   : > { %v3033_v48 = vadd.f32 %v11537_v34, %v11536_v15  ;;  %2746 = vperm.xlu0 %5229, %v11538_v5   ;;  %v3655_v39 = vmul.f32 %v11394_v52, %v3335_v19  ;;  %v11542_v34 = vld [vmem:[#allocation48_spill] sm:$0xff]  ;;  %v11543_v5 = vld [vmem:[#allocation309_spill] sm:$0xff]  ;;  %v3797_v23 = vsel %vm3746_vm0, %v3513_v42, 0.0  ;;  %v3414_v12 = vmax.f32 %v3158_v41, 0.0 }
 0x2d4   : > { %v3529_v63 = vmul.f32 %v11513_v20, %v11534_v8  ;;  %v9114_v8 = vadd.f32 %v3945_v4, %v8952_v22  ;;  %v3064_v21 = vadd.f32 %v11542_v34, %v11541_v28  ;;  %v3760_v18 = vsel %vm3746_vm0, %v3497_v47, 0.0  ;;  %v11546_v47 = vld [vmem:[#allocation225_spill] sm:$0xff]  ;;  %v11547_v34 = vld [vmem:[#allocation51_spill] sm:$0xff] }
 0x2d5   : > { %2186 = vperm.xlu1 %5228, %v11543_v5   ;;  %v9127_v0 = vadd.f32 %v3982_v29, %v8955_v57  ;;  %v3871_v44 = vsel %vm3746_vm0, %v3545_v14, 0.0  ;;  %v3717_v4 = vmul.f32 %v11300_v31, %v3397_v33  ;;  %v3289_v28 = vmax.f32 %v3033_v48, 0.0  ;;  %v11548_v41 = vld [vmem:[#allocation145_spill] sm:$0xff]  ;;  %v11550_v31 = vld [vmem:[#allocation59_spill] sm:$0xff]  ;;  %v11552_v29 = vld [vmem:[#allocation18_spill] sm:$0xff] }
 0x2d6   : > { %v9122_v50 = vpop.permute.xlu0 %2176  ;;  %v9124_v19 = vpop.permute.xlu1 %1936  ;;  %v3834_v22 = vsel %vm3746_vm0, %v3529_v63, 0.0  ;;  %v3112_v42 = vadd.f32 %v11547_v34, %v11546_v47  ;;  %v9139_v57 = vadd.f32 %v3760_v18, %v8963_v40  ;;  %v9142_v63 = vadd.f32 %v3797_v23, %v8981_v17  ;;  %v11553_v47 = vld [vmem:[#allocation255_spill] sm:$0xff] }
 0x2d7   : > { %11544 = vst [vmem:[#allocation208_spill] sm:$0xff] %v9122_v50  ;;  %11545 = vst [vmem:[#allocation79_spill] sm:$0xff] %v9124_v19  ;;  %2671 = vperm.xlu0 %5229, %v11548_v41   ;;  %v4126_v19 = vsel %vm3746_vm0, %v3655_v39, 0.0  ;;  %v4165_v14 = vsel %vm3746_vm0, %v3672_v36, 0.0  ;;  %v9147_v48 = vadd.f32 %v11550_v31, %v11549_v9  ;;  %v3320_v33 = vmax.f32 %v3064_v21, 0.0  ;;  %v11554_v41 = vld [vmem:[#allocation132_spill] sm:$0xff] }
 0x2d8   : > { %v3050_v34 = vadd.f32 %v11553_v47, %v11552_v29  ;;  %v9153_v39 = vadd.f32 %v4056_v16, %v8989_v26  ;;  %v3734_v40 = vmul.f32 %v11130_v54, %v3414_v12  ;;  %v9161_v36 = vadd.f32 %v3834_v22, %v8996_v30  ;;  %v11556_v47 = vld [vmem:[#allocation12_spill] sm:$0xff]  ;;  %v11557_v26 = vld [vmem:[#allocation75_spill] sm:$0xff]  ;;  %v11559_v30 = vld [vmem:[#allocation274_spill] sm:$0xff] }
 0x2d9   : > { %11551 = vst [vmem:[#allocation88_spill] sm:$0xff] %v9147_v48  ;;  %2651 = vperm.xlu1 %5228, %v11554_v41   ;;  %v9164_v23 = vadd.f32 %v3871_v44, %v8999_v10  ;;  %v4270_v21 = vsel %vm3746_vm0, %v3717_v4, 0.0  ;;  %v3609_v31 = vmul.f32 %v11513_v20, %v3289_v28  ;;  %v3368_v29 = vmax.f32 %v3112_v42, 0.0  ;;  %v11558_v41 = vld [vmem:[#allocation146_spill] sm:$0xff]  ;;  %v11560_v22 = vld [vmem:[#allocation60_spill] sm:$0xff]  ;;  %v11562_v44 = vld [vmem:[#allocation219_spill] sm:$0xff] }
 0x2da   : > { %v9156_v18 = vpop.permute.xlu0 %2641  ;;  %v9158_v17 = vpop.permute.xlu1 %2246  ;;  %v3051_v16 = vadd.f32 %v11557_v26, %v11556_v47  ;;  %v9172_v12 = vadd.f32 %v4126_v19, %v9002_v60  ;;  %v9175_v5 = vadd.f32 %v4165_v14, %v9009_v49  ;;  %v9179_v10 = vadd.f32 %v11560_v22, %v11559_v30  ;;  %v11563_v4 = vld [vmem:[#allocation167_spill] sm:$0xff]  ;;  %v11564_v26 = vld [vmem:[#allocation20_spill] sm:$0xff]  ;;  %v11568_v22 = vld [vmem:[#allocation61_spill] sm:$0xff] }
 0x2db   : > { %11555 = vst [vmem:[#allocation123_spill] sm:$0xff] %v9158_v17  ;;  %2751 = vperm.xlu0 %5229, %v11558_v41   ;;  %v3097_v50 = vadd.f32 %v11563_v4, %v11562_v44  ;;  %v3640_v42 = vmul.f32 %v11455_v11, %v3320_v33  ;;  %v3306_v47 = vmax.f32 %v3050_v34, 0.0  ;;  %v3052_v41 = vadd.f32 %v8978_v46, %v11564_v26  ;;  %v11565_v60 = vld [vmem:[#allocation236_spill] sm:$0xff]  ;;  %v11570_v4 = vld [vmem:[#allocation165_spill] sm:$0xff] }
 0x2dc   : > { %11561 = vst [vmem:[#allocation209_spill] sm:$0xff] %v9179_v10  ;;  %v9189_v49 = vadd.f32 %v4270_v21, %v9012_v51  ;;  %v4309_v19 = vsel %vm3746_vm0, %v3734_v40, 0.0  ;;  %v11567_v14 = vld [vmem:[#allocation276_spill] sm:$0xff]  ;;  %v4019_v46 = vsel %vm3746_vm0, %v3609_v31, 0.0  ;;  %v3688_v34 = vmul.f32 %v11455_v11, %v3368_v29  ;;  %v11573_v51 = vld [vmem:[#allocation66_spill] sm:$0xff]  ;;  %v11574_v40 = vld [vmem:[#allocation149_spill] sm:$0xff] }
 0x2dd   : > { %2806 = vperm.xlu1 %5228, %v11565_v60   ;;  %v9194_v30 = vadd.f32 %v11568_v22, %v11567_v14  ;;  %v11569_v44 = vld [vmem:[#allocation200_spill] sm:$0xff]  ;;  %v3307_v26 = vmax.f32 %v3051_v16, 0.0  ;;  %v3098_v21 = vadd.f32 %v11573_v51, %v11496_v13  ;;  %v11575_v22 = vld [vmem:[#allocation258_spill] sm:$0xff]  ;;  %v11576_v14 = vld [vmem:[#allocation53_spill] sm:$0xff]  ;;  %v4091_v31 = vsel %vm3746_vm0, %v3640_v42, 0.0 }
 0x2de   : > { %11566 = vst [vmem:[#allocation83_spill] sm:$0xff] %v9189_v49  ;;  %v3126_v28 = vadd.f32 %v11570_v4, %v11569_v44  ;;  %v9198_v17 = vpop.permute.xlu0 %1791  ;;  %v9200_v33 = vpop.permute.xlu1 %2401  ;;  %v9210_v48 = vadd.f32 %v11576_v14, %v11575_v22  ;;  %v3353_v44 = vmax.f32 %v3097_v50, 0.0  ;;  %v11578_v4 = vld [vmem:[#allocation220_spill] sm:$0xff]  ;;  %v11580_v49 = vld [vmem:[#allocation62_spill] sm:$0xff]  ;;  %v3308_v16 = vmax.f32 %v3052_v41, 0.0 }
 0x2df   : > { %11571 = vst [vmem:[#allocation115_spill] sm:$0xff] %v9198_v17  ;;  %11572 = vst [vmem:[#allocation89_spill] sm:$0xff] %v9200_v33  ;;  %2831 = vperm.xlu0 %5229, %v11574_v40   ;;  %v11579_v17 = vld [vmem:[#allocation64_spill] sm:$0xff]  ;;  %v3626_v29 = vmul.f32 %v11580_v49, %v3306_v47  ;;  %v3099_v13 = vadd.f32 %v9019_v53, %v11549_v9  ;;  %v11581_v51 = vld [vmem:[#allocation314_spill] sm:$0xff]  ;;  %v9220_v40 = vadd.f32 %v4309_v19, %v9033_v35 }
 0x2e0   : > { %11577 = vst [vmem:[#allocation119_spill] sm:$0xff] %v9210_v48  ;;  %v3159_v33 = vadd.f32 %v11579_v17, %v11578_v4  ;;  %v9223_v14 = vadd.f32 %v4019_v46, %v9048_v56  ;;  %v3382_v60 = vmax.f32 %v3126_v28, 0.0  ;;  %v4202_v47 = vsel %vm3746_vm0, %v3688_v34, 0.0  ;;  %v11582_v41 = vld [vmem:[#allocation72_spill] sm:$0xff]  ;;  %v11589_v48 = vld [vmem:[#allocation137_spill] sm:$0xff] }
 0x2e1   : > { %2266 = vperm.xlu1 %5228, %v11581_v51   ;;  %v3627_v4 = vmul.f32 %v11582_v41, %v3307_v26  ;;  %v3354_v53 = vmax.f32 %v3098_v21, 0.0  ;;  %v3160_v9 = vadd.f32 %v8784_v43, %v11479_v27  ;;  %v9236_v35 = vadd.f32 %v4091_v31, %v9052_v32  ;;  %v11583_v21 = vld [vmem:[#allocation141_spill] sm:$0xff]  ;;  %v11584_v32 = vld [vmem:[#allocation260_spill] sm:$0xff] }
 0x2e2   : > { %v9226_v17 = vpop.permute.xlu0 %2101  ;;  %v9228_v42 = vpop.permute.xlu1 %2711  ;;  %v3673_v28 = vmul.f32 %v11513_v20, %v3353_v44  ;;  %v3415_v19 = vmax.f32 %v3159_v33, 0.0  ;;  %v4058_v46 = vsel %vm3746_vm0, %v3626_v29, 0.0  ;;  %v3628_v34 = vmul.f32 %v8970_v25, %v3308_v16  ;;  %v11585_v31 = vld [vmem:[#allocation253_spill] sm:$0xff] }
 0x2e3   : > { %5232 = vset.pattern.permute.xlu0 %v10652_v37  ;;  %v3355_v51 = vmax.f32 %v3099_v13, 0.0  ;;  %v3161_v26 = vadd.f32 %v9058_v7, %v11536_v15  ;;  %v9246_v43 = vadd.f32 %v4202_v47, %v9070_v38  ;;  %v3702_v27 = vmul.f32 %v11130_v54, %v3382_v60  ;;  %v11587_v13 = vld [vmem:[#allocation13_spill] sm:$0xff] }
 0x2e4   : > { %v9251_v56 = vadd.f32 %v11585_v31, %v11584_v32  ;;  %v11586_v44 = vmax.f32 %v9107_v59, 0.0  ;;  %v4060_v16 = vsel %vm3746_vm0, %v3627_v4, 0.0  ;;  %v3674_v15 = vmul.f32 %v11580_v49, %v3354_v53 }
 0x2e5   : > { %2421 = vperm.xlu1 %5228, %v11583_v21   ;;  %v3416_v7 = vmax.f32 %v3160_v9, 0.0  ;;  %v4059_v60 = vadd.f32 %v4058_v46, %v9153_v39  ;;  %v4167_v21 = vsel %vm3746_vm0, %v3673_v28, 0.0  ;;  %v3735_v31 = vmul.f32 %v11394_v52, %v3415_v19  ;;  %v11591_v46 = vld [vmem:[#allocation43_spill] sm:$0xff] }
 0x2e6   : > { %v2332_v33 = vpop.permute.xlu0 %2331  ;;  %v9256_v29 = vmul.f32 %v11580_v49, %v11586_v44  ;;  %v11588_v59 = vmax.f32 %v8930_v55, 0.0  ;;  %v4062_v50 = vsel %vm3746_vm0, %v3628_v34, 0.0  ;;  %v3675_v4 = vmul.f32 %v11582_v41, %v3355_v51 }
 0x2e7   : > { %v3053_v38 = vadd.f32 %v2332_v33, %v11587_v13  ;;  %v9261_v47 = vpop.permute.xlu1 %3471  ;;  %v3417_v53 = vmax.f32 %v3161_v26, 0.0  ;;  %v4235_v33 = vsel %vm3746_vm0, %v3702_v27, 0.0  ;;  %v4061_v13 = vadd.f32 %v4060_v16, %v4059_v60  ;;  %v11593_v26 = vld [vmem:[#allocation265_spill] sm:$0xff] }
 0x2e8   : > { %v3578_v44 = vmul.f32 %v11580_v49, %v11588_v59  ;;  %v11590_v28 = vmax.f32 %v9017_v6, 0.0  ;;  %v11592_v55 = vmax.f32 %v11591_v46, 0.0  ;;  %v4169_v34 = vsel %vm3746_vm0, %v3674_v15, 0.0  ;;  %v11594_v6 = vld [vmem:[#allocation63_spill] sm:$0xff] }
 0x2e9   : > { %v3309_v9 = vmax.f32 %v3053_v38, 0.0  ;;  %2731 = vperm.xlu1 %5228, %v11589_v48   ;;  %v3736_v51 = vmul.f32 %v11455_v11, %v3416_v7  ;;  %v4168_v27 = vadd.f32 %v4167_v21, %v9175_v5  ;;  %v4311_v16 = vsel %vm3746_vm0, %v3735_v31, 0.0  ;;  %v5391_v5 = vld [vmem:[%s10428_s6 + $0x78] sm:$0xff]  ;;  %v11597_v31 = vld [vmem:[#allocation109_spill] sm:$0xff] }
 0x2ea   : > { %v2567_v39 = vpop.permute.xlu0 %2566  ;;  %v3594_v19 = vmul.f32 %v11580_v49, %v11590_v28  ;;  %v9279_v59 = vmul.f32 %v11580_v49, %v11592_v55  ;;  %v3113_v60 = vadd.f32 %v11594_v6, %v11486_v61  ;;  %v4063_v28 = vadd.f32 %v4062_v50, %v4061_v13  ;;  %v11601_v6 = vld [vmem:[#allocation56_spill] sm:$0xff] }
 0x2eb   : > { %v3100_v38 = vadd.f32 %v2567_v39, %v11593_v26  ;;  %v3629_v48 = vmul.f32 %v9261_v47, %v3309_v9  ;;  %v4171_v55 = vsel %vm3746_vm0, %v3675_v4, 0.0  ;;  %v3737_v15 = vmul.f32 %v11513_v20, %v3417_v53 }
 0x2ec   : > { %v9289_v46 = vpop.permute.xlu1 %2016  ;;  %v4170_v9 = vadd.f32 %v4169_v34, %v4168_v27  ;;  %v11596_v50 = vmax.f32 %v8815_v24, 0.0  ;;  %v11598_v4 = vmax.f32 %v11597_v31, 0.0  ;;  %v3114_v13 = vadd.f32 %v8878_v58, %v11539_v1  ;;  %v11600_v27 = vld [vmem:[#allocation217_spill] sm:$0xff] }
 0x2ed   : > { %v3356_v10 = vmax.f32 %v3100_v38, 0.0  ;;  %5230 = vset.pattern.permute.xlu1 %v10652_v37  ;;  %v4064_v7 = vsel %vm3746_vm0, %v3629_v48, 0.0  ;;  %v4313_v37 = vsel %vm3746_vm0, %v3736_v51, 0.0  ;;  %v11599_v38 = vld [vmem:[#allocation271_spill] sm:$0xff]  ;;  %v4312_v24 = vadd.f32 %v4311_v16, %v9220_v40 }
 0x2ee   : > { %v2877_v39 = vpop.permute.xlu0 %2876  ;;  %3487 = vperm.xlu1 %5230, %v5391_v5   ;;  %v9298_v61 = vadd.f32 %v4064_v7, %v4063_v28  ;;  %v3514_v21 = vmul.f32 %v11580_v49, %v11596_v50  ;;  %v3530_v53 = vmul.f32 %v11580_v49, %v11598_v4  ;;  %v3080_v28 = vadd.f32 %v11601_v6, %v11600_v27  ;;  %v11602_v4 = vld [vmem:[#allocation277_spill] sm:$0xff] }
 0x2ef   : > { %v3676_v34 = vmul.f32 %v8970_v25, %v3356_v10  ;;  %v3162_v48 = vadd.f32 %v2877_v39, %v11599_v38  ;;  %v3369_v7 = vmax.f32 %v3113_v60, 0.0  ;;  %v4172_v5 = vadd.f32 %v4171_v55, %v4170_v9  ;;  %v11605_v55 = vld [vmem:[#allocation144_spill] sm:$0xff]  ;;  %v11607_v9 = vld [vmem:[#allocation106_spill] sm:$0xff] }
 0x2f0   : > { %11595 = vst [vmem:[#allocation90_spill] sm:$0xff] %v9298_v61  ;;  %v9314_v50 = vpop.permute.xlu1 %2481  ;;  %v4315_v31 = vsel %vm3746_vm0, %v3737_v15, 0.0  ;;  %v3115_v51 = vadd.f32 %v9156_v18, %v11602_v4  ;;  %v9321_v10 = vadd.f32 %v4235_v33, %v9073_v3  ;;  %v4314_v27 = vadd.f32 %v4313_v37, %v4312_v24  ;;  %v11606_v15 = vld [vmem:[#allocation201_spill] sm:$0xff] }
 0x2f1   : > { %v4173_v58 = vsel %vm3746_vm0, %v3676_v34, 0.0  ;;  %v3418_v1 = vmax.f32 %v3162_v48, 0.0  ;;  %v3370_v16 = vmax.f32 %v3114_v13, 0.0  ;;  %v3910_v18 = vsel %vm3746_vm0, %v9256_v29, 0.0  ;;  %v11609_v29 = vld [vmem:[#allocation205_spill] sm:$0xff] }
 0x2f2   : > { %v9324_v6 = vadd.f32 %v4173_v58, %v4172_v5  ;;  %v9326_v40 = vpop.permute.xlu0 %1871  ;;  %5231 = vset.pattern.permute.xlu1 %v10816_v62  ;;  %v3947_v3 = vsel %vm3746_vm0, %v3578_v44, 0.0  ;;  %v3336_v33 = vmax.f32 %v3080_v28, 0.0  ;;  %v3142_v37 = vadd.f32 %v11607_v9, %v11606_v15  ;;  %v11608_v62 = vld [vmem:[#allocation58_spill] sm:$0xff]  ;;  %v11655_v61 = vld [vmem:[#allocation237_spill] sm:$0xff] }
 0x2f3   : > { %11604 = vst [vmem:[#allocation92_spill] sm:$0xff] %v9326_v40  ;;  %v3738_v60 = vmul.f32 %v11580_v49, %v3418_v1  ;;  %2501 = vperm.xlu1 %5231, %v11605_v55   ;;  %v4316_v34 = vadd.f32 %v4315_v31, %v4314_v27  ;;  %v3984_v24 = vsel %vm3746_vm0, %v3594_v19, 0.0  ;;  %v3034_v13 = vadd.f32 %v11608_v62, %v11599_v38  ;;  %v11610_v55 = vld [vmem:[#allocation65_spill] sm:$0xff]  ;;  %v11613_v27 = vld [vmem:[#allocation138_spill] sm:$0xff] }
 0x2f4   : > { %11603 = vst [vmem:[#allocation202_spill] sm:$0xff] %v9324_v6  ;;  %v9336_v48 = vpop.permute.xlu1 %2791  ;;  %v3689_v5 = vmul.f32 %v11513_v20, %v3369_v7  ;;  %v3371_v58 = vmax.f32 %v3115_v51, 0.0  ;;  %v3065_v44 = vadd.f32 %v11610_v55, %v11609_v29  ;;  %v9350_v31 = vadd.f32 %v3910_v18, %v9111_v45  ;;  %v11618_v29 = vld [vmem:[#allocation70_spill] sm:$0xff] }
 0x2f5   : > { %v4317_v1 = vsel %vm3746_vm0, %v3738_v60, 0.0  ;;  %v9353_v19 = vadd.f32 %v3947_v3, %v9114_v8  ;;  %v3690_v38 = vmul.f32 %v11580_v49, %v3370_v16  ;;  %v11614_v7 = vmax.f32 %v8976_v2, 0.0  ;;  %v11616_v3 = vld [vmem:[#allocation55_spill] sm:$0xff] }
 0x2f6   : > { %v9345_v28 = vadd.f32 %v4317_v1, %v4316_v34  ;;  %v9347_v39 = vpop.permute.xlu0 %2181  ;;  %v3762_v60 = vsel %vm3746_vm0, %v9279_v59, 0.0  ;;  %v3799_v15 = vsel %vm3746_vm0, %v3514_v21, 0.0  ;;  %v3656_v9 = vmul.f32 %v11455_v11, %v3336_v33  ;;  %v11617_v21 = vld [vmem:[#allocation210_spill] sm:$0xff] }
 0x2f7   : > { %11612 = vst [vmem:[#allocation93_spill] sm:$0xff] %v9347_v39  ;;  %2811 = vperm.xlu1 %5231, %v11613_v27   ;;  %v3546_v51 = vmul.f32 %v11580_v49, %v11614_v7  ;;  %v3398_v45 = vmax.f32 %v3142_v37, 0.0  ;;  %v9367_v8 = vadd.f32 %v3984_v24, %v9127_v0  ;;  %v3836_v16 = vsel %vm3746_vm0, %v3530_v53, 0.0  ;;  %v11619_v24 = vld [vmem:[#allocation288_spill] sm:$0xff]  ;;  %v11622_v7 = vld [vmem:[#allocation9_spill] sm:$0xff] }
 0x2f8   : > { %11611 = vst [vmem:[#allocation113_spill] sm:$0xff] %v9345_v28  ;;  %v9364_v18 = vpop.permute.xlu1 %1941  ;;  %v2987_v2 = vadd.f32 %v11616_v3, %v11602_v4  ;;  %v3290_v34 = vmax.f32 %v3034_v13, 0.0  ;;  %v4204_v62 = vsel %vm3746_vm0, %v3689_v5, 0.0  ;;  %v3691_v59 = vmul.f32 %v11582_v41, %v3371_v58  ;;  %v11620_v13 = vld [vmem:[#allocation151_spill] sm:$0xff]  ;;  %v11667_v39 = vld [vmem:[#allocation300_spill] sm:$0xff] }
 0x2f9   : > { %11615 = vst [vmem:[#allocation124_spill] sm:$0xff] %v9364_v18  ;;  %v3321_v1 = vmax.f32 %v3065_v44, 0.0  ;;  %v3127_v33 = vadd.f32 %v11618_v29, %v11617_v21  ;;  %v9377_v55 = vadd.f32 %v3762_v60, %v9139_v57  ;;  %v9380_v0 = vadd.f32 %v3799_v15, %v9142_v63  ;;  %v11621_v57 = vld [vmem:[#allocation264_spill] sm:$0xff] }
 0x2fa   : > { %v2647_v37 = vpop.permute.xlu0 %2646  ;;  %v4206_v53 = vsel %vm3746_vm0, %v3690_v38, 0.0  ;;  %v9386_v5 = vadd.f32 %v3836_v16, %v9161_v36  ;;  %v3873_v58 = vsel %vm3746_vm0, %v3546_v51, 0.0  ;;  %v4128_v44 = vsel %vm3746_vm0, %v3656_v9, 0.0  ;;  %v11624_v15 = vld [vmem:[#allocation108_spill] sm:$0xff] }
 0x2fb   : > { %v3116_v4 = vadd.f32 %v2647_v37, %v11619_v24  ;;  %2346 = vperm.xlu1 %5231, %v11620_v13   ;;  %v3718_v27 = vmul.f32 %v11130_v54, %v3398_v45  ;;  %v9393_v60 = vadd.f32 %v11622_v7, %v11621_v57  ;;  %v4205_v63 = vadd.f32 %v4204_v62, %v9246_v43  ;;  %v11626_v62 = vld [vmem:[#allocation268_spill] sm:$0xff] }
 0x2fc   : > { %v9396_v38 = vpop.permute.xlu1 %2251  ;;  %v9400_v3 = vadd.f32 %v11624_v15, %v11593_v26  ;;  %v3610_v36 = vmul.f32 %v11580_v49, %v3290_v34  ;;  %v4208_v51 = vsel %vm3746_vm0, %v3691_v59, 0.0  ;;  %v3243_v9 = vmax.f32 %v2987_v2, 0.0  ;;  %v11627_v37 = vld [vmem:[#allocation68_spill] sm:$0xff]  ;;  %v11628_v34 = vld [vmem:[#allocation150_spill] sm:$0xff]  ;;  %v11632_v15 = vld [vmem:[#allocation215_spill] sm:$0xff] }
 0x2fd   : > { %11623 = vst [vmem:[#allocation94_spill] sm:$0xff] %v9393_v60  ;;  %v3372_v16 = vmax.f32 %v3116_v4, 0.0  ;;  %v3641_v54 = vmul.f32 %v11513_v20, %v3321_v1  ;;  %v3383_v45 = vmax.f32 %v3127_v33, 0.0  ;;  %v4207_v21 = vadd.f32 %v4206_v53, %v4205_v63  ;;  %v11629_v33 = vld [vmem:[#allocation279_spill] sm:$0xff]  ;;  %v11637_v7 = vld [vmem:[#allocation216_spill] sm:$0xff]  ;;  %s5142_s21 = spop %5141 }
 0x2fe   : > { %v9405_v29 = vpop.permute.xlu0 %1951  ;;  %v9408_v43 = vadd.f32 %v4128_v44, %v9172_v12  ;;  %v9412_v13 = vadd.f32 %v11627_v37, %v11626_v62  ;;  %v9417_v59 = vadd.f32 %v3873_v58, %v9164_v23  ;;  %v4272_v2 = vsel %vm3746_vm0, %v3718_v27, 0.0  ;;  %v11630_v53 = vld [vmem:[#allocation67_spill] sm:$0xff]  ;;  %v11660_v18 = vld [vmem:[#allocation88_spill] sm:$0xff] }
 0x2ff   : > { %11625 = vst [vmem:[#allocation214_spill] sm:$0xff] %v9405_v29  ;;  %v3692_v26 = vmul.f32 %v8970_v25, %v3372_v16  ;;  %2581 = vperm.xlu1 %5231, %v11628_v34   ;;  %v9423_v4 = vadd.f32 %v11630_v53, %v11629_v33  ;;  %v4209_v12 = vadd.f32 %v4208_v51, %v4207_v21  ;;  %v4021_v63 = vsel %vm3746_vm0, %v3610_v36, 0.0  ;;  %v11633_v16 = vld [vmem:[#allocation187_spill] sm:$0xff]  ;;  %v11638_v33 = vld [vmem:[#allocation74_spill] sm:$0xff]  ;;  %v11645_v36 = vld [vmem:[#allocation81_spill] sm:$0xff] }
 0x300   : > { %v9425_v44 = vpop.permute.xlu1 %2406  ;;  %v3081_v37 = vadd.f32 %v11633_v16, %v11632_v15  ;;  %v4093_v58 = vsel %vm3746_vm0, %v3641_v54, 0.0  ;;  %v3703_v27 = vmul.f32 %v11394_v52, %v3383_v45  ;;  %v3563_v51 = vmul.f32 %v11582_v41, %v3243_v9  ;;  %v11636_v21 = vld [vmem:[#allocation83_spill] sm:$0xff]  ;;  %v11639_v16 = vld [vmem:[#allocation142_spill] sm:$0xff] }
 0x301   : > { %11631 = vst [vmem:[#allocation98_spill] sm:$0xff] %v9423_v4  ;;  %v4210_v23 = vsel %vm3746_vm0, %v3692_v26, 0.0  ;;  %v9440_v1 = vadd.f32 %v4272_v2, %v11636_v21  ;;  %v3143_v15 = vadd.f32 %v11638_v33, %v11637_v7  ;;  %v11640_v26 = vld [vmem:[#allocation206_spill] sm:$0xff]  ;;  %v11642_v9 = vld [vmem:[#allocation283_spill] sm:$0xff]  ;;  %v9462_v33 = vadd.f32 %v4093_v58, %v9236_v35  ;;  %v11651_v35 = vld [vmem:[#allocation73_spill] sm:$0xff] }
 0x302   : > { %v9434_v34 = vadd.f32 %v4210_v23, %v4209_v12  ;;  %v9436_v53 = vpop.permute.xlu0 %2261  ;;  %v11641_v54 = vmax.f32 %v11640_v26, 0.0  ;;  %v9450_v12 = vadd.f32 %v4021_v63, %v9223_v14  ;;  %v11644_v21 = vld [vmem:[#allocation302_spill] sm:$0xff]  ;;  %v3337_v7 = vmax.f32 %v3081_v37, 0.0  ;;  %v11647_v26 = vld [vmem:[#allocation111_spill] sm:$0xff] }
 0x303   : > { %11635 = vst [vmem:[#allocation180_spill] sm:$0xff] %v9436_v53  ;;  %2891 = vperm.xlu1 %5231, %v11639_v16   ;;  %v3035_v62 = vadd.f32 %v11645_v36, %v11644_v21  ;;  %v11646_v16 = vld [vmem:[#allocation229_spill] sm:$0xff]  ;;  %v11648_v14 = vmax.f32 %v9194_v30, 0.0  ;;  %v4237_v23 = vsel %vm3746_vm0, %v3703_v27, 0.0  ;;  %v11652_v58 = vmax.f32 %v11651_v35, 0.0  ;;  %v11659_v29 = vld [vmem:[#allocation82_spill] sm:$0xff] }
 0x304   : > { %11634 = vst [vmem:[#allocation91_spill] sm:$0xff] %v9434_v34  ;;  %v3579_v45 = vmul.f32 %v11582_v41, %v11641_v54  ;;  %v11643_v34 = vld [vmem:[#allocation107_spill] sm:$0xff]  ;;  %v9459_v28 = vpop.permute.xlu1 %2716  ;;  %v3066_v54 = vadd.f32 %v11647_v26, %v11646_v16  ;;  %v11649_v36 = vld [vmem:[#allocation33_spill] sm:$0xff]  ;;  %v3399_v21 = vmax.f32 %v3143_v15, 0.0  ;;  %v11653_v16 = vld [vmem:[#allocation230_spill] sm:$0xff] }
 0x305   : > { %v9455_v2 = vadd.f32 %v11643_v34, %v11642_v9  ;;  %v3595_v63 = vmul.f32 %v11582_v41, %v11648_v14  ;;  %v3912_v9 = vsel %vm3746_vm0, %v3563_v51, 0.0  ;;  %v11650_v4 = vmax.f32 %v11649_v36, 0.0  ;;  %v11654_v26 = vld [vmem:[#allocation84_spill] sm:$0xff]  ;;  %v11656_v14 = vld [vmem:[#allocation77_spill] sm:$0xff] }
 0x306   : > { %v9470_v34 = vpop.permute.xlu0 %2416  ;;  %v3515_v37 = vmul.f32 %v11582_v41, %v11652_v58  ;;  %v3128_v30 = vadd.f32 %v11654_v26, %v11653_v16  ;;  %v3949_v27 = vsel %vm3746_vm0, %v3579_v45, 0.0  ;;  %v11657_v60 = vmax.f32 %v11656_v14, 0.0  ;;  %v11663_v36 = vld [vmem:[#allocation28_spill] sm:$0xff] }
 0x307   : > { %v3499_v6 = vmul.f32 %v11582_v41, %v11650_v4  ;;  %2661 = vperm.xlu1 %5231, %v11655_v61   ;;  %v3291_v53 = vmax.f32 %v3035_v62, 0.0  ;;  %v11658_v4 = vld [vmem:[#allocation293_spill] sm:$0xff]  ;;  %v11661_v58 = vmax.f32 %v11660_v18, 0.0  ;;  %v4238_v16 = vadd.f32 %v4237_v23, %v9321_v10  ;;  %v11662_v10 = vld [vmem:[#allocation194_spill] sm:$0xff] }
 0x308   : > { %v3531_v51 = vmul.f32 %v11582_v41, %v11657_v60  ;;  %v2944_v35 = vadd.f32 %v11659_v29, %v11658_v4  ;;  %v3657_v61 = vmul.f32 %v11513_v20, %v3337_v7  ;;  %v3322_v26 = vmax.f32 %v3066_v54, 0.0  ;;  %v11665_v4 = vld [vmem:[#allocation196_spill] sm:$0xff] }
 0x309   : > { %v3547_v15 = vmul.f32 %v11582_v41, %v11661_v58  ;;  %v9494_v45 = vpop.permute.xlu1 %3475  ;;  %v9497_v14 = vadd.f32 %v3912_v9, %v9350_v31  ;;  %v9502_v62 = vadd.f32 %v3949_v27, %v9353_v19  ;;  %v3986_v29 = vsel %vm3746_vm0, %v3595_v63, 0.0  ;;  %v11664_v9 = vld [vmem:[#allocation299_spill] sm:$0xff] }
 0x30a   : > { %v9499_v60 = vpop.permute.xlu0 %2726  ;;  %v3764_v18 = vsel %vm3746_vm0, %v3499_v6, 0.0  ;;  %v3801_v58 = vsel %vm3746_vm0, %v3515_v37, 0.0  ;;  %v2988_v23 = vadd.f32 %v11662_v10, %v11619_v24  ;;  %v3719_v7 = vmul.f32 %v11394_v52, %v3399_v21  ;;  %v11668_v24 = vld [vmem:[#allocation85_spill] sm:$0xff] }
 0x30b   : > { %v3384_v54 = vmax.f32 %v3128_v30, 0.0  ;;  %2351 = vperm.xlu1 %5231, %v11663_v36   ;;  %v3838_v31 = vsel %vm3746_vm0, %v3531_v51, 0.0  ;;  %v9514_v19 = vadd.f32 %v11665_v4, %v11664_v9  ;;  %v3611_v63 = vmul.f32 %v11582_v41, %v3291_v53  ;;  %v11670_v30 = vld [vmem:[#allocation301_spill] sm:$0xff]  ;;  %v11671_v51 = vld [vmem:[#allocation80_spill] sm:$0xff] }
 0x30c   : > { %v3200_v27 = vmax.f32 %v2944_v35, 0.0  ;;  %v3875_v6 = vsel %vm3746_vm0, %v3547_v15, 0.0  ;;  %v4130_v37 = vsel %vm3746_vm0, %v3657_v61, 0.0  ;;  %v9521_v10 = vadd.f32 %v11668_v24, %v11667_v39  ;;  %v11672_v24 = vld [vmem:[#allocation320_spill] sm:$0xff] }
 0x30d   : > { %11666 = vst [vmem:[#allocation95_spill] sm:$0xff] %v9514_v19  ;;  %v3642_v52 = vmul.f32 %v11580_v49, %v3322_v26  ;;  %v9525_v21 = vadd.f32 %v3986_v29, %v9367_v8  ;;  %v9529_v36 = vadd.f32 %v11671_v51, %v11670_v30  ;;  %v9536_v35 = vadd.f32 %v3764_v18, %v9377_v55  ;;  %v11673_v18 = vld [vmem:[#allocation25_spill] sm:$0xff]  ;;  %v11687_v19 = vld [vmem:[#allocation32_spill] sm:$0xff] }
 0x30e   : > { %11669 = vst [vmem:[#allocation120_spill] sm:$0xff] %v9521_v10  ;;  %v9531_v4 = vpop.permute.xlu0 %2496  ;;  %v9533_v53 = vpop.permute.xlu1 %2021  ;;  %v9539_v15 = vadd.f32 %v3801_v58, %v9380_v0  ;;  %v9542_v61 = vadd.f32 %v3838_v31, %v9386_v5  ;;  %v3244_v26 = vmax.f32 %v2988_v23, 0.0  ;;  %v4274_v8 = vsel %vm3746_vm0, %v3719_v7, 0.0 }
 0x30f   : > { %v3704_v29 = vmul.f32 %v11455_v11, %v3384_v54  ;;  %2586 = vperm.xlu1 %5231, %v11672_v24   ;;  %v9548_v51 = vadd.f32 %v3875_v6, %v9417_v59  ;;  %v9551_v30 = vadd.f32 %v4130_v37, %v9408_v43  ;;  %v4023_v0 = vsel %vm3746_vm0, %v3611_v63, 0.0  ;;  %v11675_v6 = vld [vmem:[#allocation297_spill] sm:$0xff]  ;;  %v11678_v24 = vld [vmem:[#allocation76_spill] sm:$0xff] }
 0x310   : > { %v3520_v5 = vmul.f32 %v11673_v18, %v3200_v27  ;;  %v4095_v23 = vsel %vm3746_vm0, %v3642_v52, 0.0  ;;  %v3564_v7 = vmul.f32 %v8970_v25, %v3244_v26  ;;  %v11674_v54 = vmax.f32 %v9251_v56, 0.0  ;;  %v11676_v37 = vld [vmem:[#allocation257_spill] sm:$0xff]  ;;  %v11677_v27 = vld [vmem:[#allocation222_spill] sm:$0xff] }
 0x311   : > { %v9563_v31 = vadd.f32 %v4274_v8, %v9440_v1  ;;  %v9568_v63 = vadd.f32 %v11676_v37, %v11675_v6  ;;  %v3082_v55 = vadd.f32 %v11678_v24, %v11677_v27  ;;  %v9577_v56 = vadd.f32 %v4023_v0, %v9450_v12  ;;  %v11680_v1 = vld [vmem:[#allocation310_spill] sm:$0xff]  ;;  %v11681_v8 = vld [vmem:[#allocation123_spill] sm:$0xff]  ;;  %v11682_v43 = vld [vmem:[#allocation321_spill] sm:$0xff] }
 0x312   : > { %v3580_v59 = vmul.f32 %v8970_v25, %v11674_v54  ;;  %v9572_v58 = vpop.permute.xlu0 %2111  ;;  %v9574_v52 = vpop.permute.xlu1 %2486  ;;  %v4239_v26 = vsel %vm3746_vm0, %v3704_v29, 0.0  ;;  %v3036_v54 = vadd.f32 %v11681_v8, %v11680_v1  ;;  %v11683_v37 = vmax.f32 %v9412_v13, 0.0  ;;  %v11685_v6 = vld [vmem:[#allocation226_spill] sm:$0xff]  ;;  %v11686_v12 = vld [vmem:[#allocation89_spill] sm:$0xff] }
 0x313   : > { %11679 = vst [vmem:[#allocation168_spill] sm:$0xff] %v9572_v58  ;;  %2896 = vperm.xlu1 %5231, %v11682_v43   ;;  %v9587_v27 = vadd.f32 %v4095_v23, %v9462_v33  ;;  %v9590_v24 = vsel %vm3746_vm0, %v3520_v5, 0.0  ;;  %v3067_v0 = vadd.f32 %v11686_v12, %v11685_v6  ;;  %v11688_v29 = vmax.f32 %v11687_v19, 0.0  ;;  %v11689_v8 = vld [vmem:[#allocation29_spill] sm:$0xff] }
 0x314   : > { %v3596_v9 = vmul.f32 %v8970_v25, %v11683_v37  ;;  %11684 = vst [vmem:[#allocation97_spill] sm:$0xff] %v9590_v24  ;;  %v3037_v43 = vadd.f32 %v9396_v38, %v11689_v8  ;;  %v3914_v13 = vsel %vm3746_vm0, %v3564_v7, 0.0  ;;  %v3951_v37 = vsel %vm3746_vm0, %v3580_v59, 0.0  ;;  %v11690_v1 = vld [vmem:[#allocation197_spill] sm:$0xff]  ;;  %v11695_v7 = vld [vmem:[#allocation304_spill] sm:$0xff]  ;;  %v11696_v8 = vld [vmem:[#allocation78_spill] sm:$0xff] }
 0x315   : > { %v3500_v58 = vmul.f32 %v8970_v25, %v11688_v29  ;;  %v11691_v33 = vmax.f32 %v11690_v1, 0.0  ;;  %v9604_v5 = vadd.f32 %v4239_v26, %v4238_v16  ;;  %v3338_v6 = vmax.f32 %v3082_v55, 0.0  ;;  %v11693_v29 = vld [vmem:[#allocation87_spill] sm:$0xff]  ;;  %v11697_v1 = vld [vmem:[#allocation324_spill] sm:$0xff] }
 0x316   : > { %v9607_v12 = vpop.permute.xlu0 %2341  ;;  %v9609_v19 = vpop.permute.xlu1 %2796  ;;  %v11694_v39 = vmax.f32 %v11693_v29, 0.0  ;;  %v2960_v59 = vadd.f32 %v11696_v8, %v11695_v7  ;;  %v3292_v40 = vmax.f32 %v3036_v54, 0.0  ;;  %v3988_v16 = vsel %vm3746_vm0, %v3596_v9, 0.0  ;;  %v11699_v24 = vld [vmem:[#allocation228_spill] sm:$0xff]  ;;  %v11700_v54 = vld [vmem:[#allocation233_spill] sm:$0xff] }
 0x317   : > { %v3516_v23 = vmul.f32 %v8970_v25, %v11691_v33  ;;  %11692 = vst [vmem:[#allocation166_spill] sm:$0xff] %v9607_v12  ;;  %2666 = vperm.xlu1 %5231, %v11697_v1   ;;  %v11698_v26 = vmax.f32 %v9400_v3, 0.0  ;;  %v3323_v33 = vmax.f32 %v3067_v0, 0.0  ;;  %v3129_v12 = vadd.f32 %v9228_v42, %v11699_v24  ;;  %v11701_v7 = vld [vmem:[#allocation101_spill] sm:$0xff]  ;;  %v11703_v24 = vld [vmem:[#allocation223_spill] sm:$0xff] }
 0x318   : > { %v3532_v38 = vmul.f32 %v8970_v25, %v11694_v39  ;;  %v9624_v29 = vadd.f32 %v3914_v13, %v9497_v14  ;;  %v9627_v39 = vadd.f32 %v3951_v37, %v9502_v62  ;;  %v3293_v8 = vmax.f32 %v3037_v43, 0.0  ;;  %v11704_v14 = vld [vmem:[#allocation110_spill] sm:$0xff] }
 0x319   : > { %v3548_v55 = vmul.f32 %v8970_v25, %v11698_v26  ;;  %v3068_v1 = vadd.f32 %v9425_v44, %v11700_v54  ;;  %v3766_v9 = vsel %vm3746_vm0, %v3500_v58, 0.0  ;;  %v3803_v3 = vsel %vm3746_vm0, %v3516_v23, 0.0  ;;  %v11702_v26 = vld [vmem:[#allocation86_spill] sm:$0xff] }
 0x31a   : > { %v9635_v0 = vadd.f32 %v11702_v26, %v11701_v7  ;;  %v3658_v42 = vmul.f32 %v11580_v49, %v3338_v6  ;;  %v3144_v13 = vadd.f32 %v11704_v14, %v11703_v24  ;;  %v9640_v10 = vpop.permute.xlu0 %2576  ;;  %v9642_v62 = vpop.permute.xlu1 %1946  ;;  %v3840_v43 = vsel %vm3746_vm0, %v3532_v38, 0.0  ;;  %v11705_v37 = vld [vmem:[#allocation154_spill] sm:$0xff] }
 0x31b   : > { %v3216_v44 = vmax.f32 %v2960_v59, 0.0  ;;  %v3612_v58 = vmul.f32 %v8970_v25, %v3292_v40  ;;  %2591 = vperm.xlu1 %5231, %v11705_v37   ;;  %v9648_v23 = vadd.f32 %v3988_v16, %v9525_v21  ;;  %v3877_v54 = vsel %vm3746_vm0, %v3548_v55, 0.0  ;;  %v11706_v40 = vld [vmem:[#allocation238_spill] sm:$0xff] }
 0x31c   : > { %v3643_v6 = vmul.f32 %v11582_v41, %v3323_v33  ;;  %v3385_v26 = vmax.f32 %v3129_v12, 0.0  ;;  %v9653_v24 = vadd.f32 %v3766_v9, %v9536_v35  ;;  %v9656_v14 = vadd.f32 %v3803_v3, %v9539_v15  ;;  %v11708_v9 = vld [vmem:[#allocation323_spill] sm:$0xff] }
 0x31d   : > { %v3613_v38 = vmul.f32 %v9261_v47, %v3293_v8  ;;  %v3324_v59 = vmax.f32 %v3068_v1, 0.0  ;;  %v3130_v37 = vadd.f32 %v9459_v28, %v11706_v40  ;;  %v9662_v21 = vadd.f32 %v3840_v43, %v9542_v61  ;;  %v11707_v1 = vld [vmem:[#allocation313_spill] sm:$0xff] }
 0x31e   : > { %v3245_v16 = vmax.f32 %v9635_v0, 0.0  ;;  %v9666_v55 = vsel %vm3746_vm0, %v3658_v42, 0.0  ;;  %v3400_v12 = vmax.f32 %v3144_v13, 0.0  ;;  %v9668_v35 = vpop.permute.xlu0 %2886  ;;  %v2257_v33 = vpop.permute.xlu1 %2256  ;;  %v9671_v15 = vadd.f32 %v3877_v54, %v9548_v51  ;;  %v11709_v0 = vld [vmem:[#allocation152_spill] sm:$0xff] }
 0x31f   : > { %v9674_v8 = vmul.f32 %v11673_v18, %v3216_v44  ;;  %v4025_v28 = vsel %vm3746_vm0, %v3612_v58, 0.0  ;;  %v9679_v61 = vadd.f32 %v9226_v17, %v11707_v1  ;;  %v3038_v3 = vadd.f32 %v2257_v33, %v11708_v9  ;;  %2901 = vperm.xlu1 %5231, %v11709_v0   ;;  %v11711_v0 = vld [vmem:[#allocation305_spill] sm:$0xff] }
 0x320   : > { %v4097_v42 = vsel %vm3746_vm0, %v3643_v6, 0.0  ;;  %v3705_v13 = vmul.f32 %v11513_v20, %v3385_v26  ;;  %v3070_v51 = vadd.f32 %v9470_v34, %v11575_v22  ;;  %v11710_v43 = vmax.f32 %v9455_v2, 0.0  ;;  %v11712_v6 = vld [vmem:[#allocation208_spill] sm:$0xff] }
 0x321   : > { %v4027_v58 = vsel %vm3746_vm0, %v3613_v38, 0.0  ;;  %v3644_v17 = vmul.f32 %v8970_v25, %v3324_v59  ;;  %v3386_v54 = vmax.f32 %v3130_v37, 0.0  ;;  %v3294_v40 = vmax.f32 %v3038_v3, 0.0  ;;  %v11714_v3 = vld [vmem:[#allocation328_spill] sm:$0xff] }
 0x322   : > { %v3581_v44 = vmul.f32 %v9261_v47, %v11710_v43  ;;  %v9693_v33 = vmul.f32 %v11455_v11, %v3400_v12  ;;  %v9697_v9 = vadd.f32 %v11712_v6, %v11711_v0  ;;  %v4026_v26 = vadd.f32 %v4025_v28, %v9577_v56  ;;  %v9702_v2 = vpop.permute.xlu0 %2191  ;;  %v2412_v34 = vpop.permute.xlu1 %2411  ;;  %v11713_v11 = vld [vmem:[#allocation69_spill] sm:$0xff] }
 0x323   : > { %v3132_v22 = vadd.f32 %v9499_v60, %v11584_v32  ;;  %v4098_v38 = vadd.f32 %v4097_v42, %v9587_v27  ;;  %v3263_v59 = vmax.f32 %v9679_v61, 0.0  ;;  %v3614_v37 = vmul.f32 %v9494_v45, %v3294_v40  ;;  %2826 = vperm.xlu1 %5231, %v11714_v3   ;;  %v11715_v61 = vld [vmem:[#allocation311_spill] sm:$0xff] }
 0x324   : > { %v3069_v12 = vadd.f32 %v2412_v34, %v11713_v11  ;;  %v4241_v43 = vsel %vm3746_vm0, %v3705_v13, 0.0  ;;  %v4028_v6 = vadd.f32 %v4027_v58, %v4026_v26  ;;  %v3326_v56 = vmax.f32 %v3070_v51, 0.0  ;;  %v11717_v58 = vld [vmem:[#allocation231_spill] sm:$0xff]  ;;  %v11718_v26 = vld [vmem:[#allocation261_spill] sm:$0xff] }
 0x325   : > { %v3953_v28 = vsel %vm3746_vm0, %v3581_v44, 0.0  ;;  %v4099_v32 = vsel %vm3746_vm0, %v3644_v17, 0.0  ;;  %v3706_v60 = vmul.f32 %v11580_v49, %v3386_v54  ;;  %v4029_v27 = vsel %vm3746_vm0, %v3614_v37, 0.0 }
 0x326   : > { %v3325_v42 = vmax.f32 %v3069_v12, 0.0  ;;  %v2990_v40 = vadd.f32 %v9289_v46, %v11715_v61  ;;  %v3388_v1 = vmax.f32 %v3132_v22, 0.0  ;;  %v9716_v34 = vadd.f32 %v4029_v27, %v4028_v6  ;;  %v9718_v11 = vpop.permute.xlu0 %2656  ;;  %v2722_v13 = vpop.permute.xlu1 %2721  ;;  %v11719_v12 = vld [vmem:[#allocation162_spill] sm:$0xff] }
 0x327   : > { %v11716_v51 = vmax.f32 %v9568_v63, 0.0  ;;  %v3083_v17 = vadd.f32 %v9314_v50, %v11717_v58  ;;  %v3131_v37 = vadd.f32 %v2722_v13, %v11718_v26  ;;  %2906 = vperm.xlu1 %5231, %v11719_v12   ;;  %v3565_v46 = vmul.f32 %v9261_v47, %v3245_v16 }
 0x328   : > { %v3645_v54 = vmul.f32 %v9261_v47, %v3325_v42  ;;  %v4242_v22 = vadd.f32 %v4241_v43, %v9604_v5  ;;  %v4100_v3 = vadd.f32 %v4099_v32, %v4098_v38  ;;  %v3954_v6 = vadd.f32 %v3953_v28, %v9627_v39  ;;  %v11721_v39 = vld [vmem:[#allocation232_spill] sm:$0xff]  ;;  %v11723_v32 = vld [vmem:[#allocation155_spill] sm:$0xff] }
 0x329   : > { %v3582_v44 = vmul.f32 %v9494_v45, %v11716_v51  ;;  %v3646_v63 = vmul.f32 %v9494_v45, %v3326_v56  ;;  %v4243_v27 = vsel %vm3746_vm0, %v3706_v60, 0.0  ;;  %v11720_v51 = vld [vmem:[#allocation319_spill] sm:$0xff]  ;;  %v3387_v58 = vmax.f32 %v3131_v37, 0.0  ;;  %v11722_v56 = vld [vmem:[#allocation246_spill] sm:$0xff] }
 0x32a   : > { %v2991_v50 = vadd.f32 %v9533_v53, %v11720_v51  ;;  %v4101_v42 = vsel %vm3746_vm0, %v3645_v54, 0.0  ;;  %v3246_v13 = vmax.f32 %v2990_v40, 0.0  ;;  %v3708_v26 = vmul.f32 %v8970_v25, %v3388_v1  ;;  %v9737_v16 = vpop.permute.xlu0 %2271  ;;  %v11754_v51 = vld [vmem:[#allocation180_spill] sm:$0xff] }
 0x32b   : > { %v4102_v12 = vadd.f32 %v4101_v42, %v4100_v3  ;;  %v3955_v5 = vsel %vm3746_vm0, %v3582_v44, 0.0  ;;  %v3339_v38 = vmax.f32 %v3083_v17, 0.0  ;;  %v3145_v43 = vadd.f32 %v9336_v48, %v11721_v39  ;;  %2911 = vperm.xlu1 %5231, %v11723_v32   ;;  %v9746_v60 = vpop.permute.xlu1 %3479 }
 0x32c   : > { %v3084_v28 = vadd.f32 %v9574_v52, %v11722_v56  ;;  %v3707_v53 = vmul.f32 %v11582_v41, %v3387_v58  ;;  %v4244_v40 = vadd.f32 %v4243_v27, %v4242_v22  ;;  %v3566_v1 = vmul.f32 %v9494_v45, %v3246_v13  ;;  %v11724_v13 = vld [vmem:[#allocation248_spill] sm:$0xff] }
 0x32d   : > { %v3583_v54 = vmul.f32 %v9746_v60, %v3263_v59  ;;  %v4103_v44 = vsel %vm3746_vm0, %v3646_v63, 0.0  ;;  %v3247_v17 = vmax.f32 %v2991_v50, 0.0  ;;  %v3956_v48 = vadd.f32 %v3955_v5, %v3954_v6 }
 0x32e   : > { %v4245_v37 = vsel %vm3746_vm0, %v3707_v53, 0.0  ;;  %v9752_v3 = vadd.f32 %v4103_v44, %v4102_v12  ;;  %v4247_v52 = vsel %vm3746_vm0, %v3708_v26, 0.0  ;;  %v9755_v58 = vpop.permute.xlu0 %2426  ;;  %v3916_v39 = vsel %vm3746_vm0, %v3565_v46, 0.0  ;;  %v11725_v12 = vld [vmem:[#allocation307_spill] sm:$0xff] }
 0x32f   : > { %v4246_v42 = vadd.f32 %v4245_v37, %v4244_v40  ;;  %v3957_v22 = vsel %vm3746_vm0, %v3583_v54, 0.0  ;;  %v3340_v27 = vmax.f32 %v3084_v28, 0.0  ;;  %v3146_v59 = vadd.f32 %v9609_v19, %v11724_v13  ;;  %v11726_v26 = vld [vmem:[#allocation79_spill] sm:$0xff]  ;;  %v11728_v40 = vld [vmem:[#allocation329_spill] sm:$0xff] }
 0x330   : > { %v3567_v63 = vmul.f32 %v9746_v60, %v3247_v17  ;;  %v9762_v50 = vadd.f32 %v3957_v22, %v3956_v48  ;;  %v4276_v6 = vsel %vm3746_vm0, %v9693_v33, 0.0  ;;  %v9768_v5 = vadd.f32 %v11726_v26, %v11725_v12  ;;  %v2027_v46 = vpop.permute.xlu1 %2026 }
 0x331   : > { %v3659_v56 = vmul.f32 %v11582_v41, %v3339_v38  ;;  %v9771_v53 = vadd.f32 %v4247_v52, %v4246_v42  ;;  %v3401_v28 = vmax.f32 %v3145_v43, 0.0  ;;  %v3086_v19 = vadd.f32 %v9531_v4, %v11621_v57 }
 0x332   : > { %v3918_v32 = vsel %vm3746_vm0, %v3566_v1, 0.0  ;;  %v2992_v54 = vadd.f32 %v2027_v46, %v11728_v40  ;;  %v4133_v33 = vadd.f32 %v9666_v55, %v9551_v30  ;;  %v9781_v44 = vsel %vm3746_vm0, %v9674_v8, 0.0  ;;  %v9785_v37 = vpop.permute.xlu0 %2736  ;;  %v11733_v46 = vld [vmem:[#allocation160_spill] sm:$0xff]  ;;  %v11746_v30 = vld [vmem:[#allocation93_spill] sm:$0xff] }
 0x333   : > { %11727 = vst [vmem:[#allocation118_spill] sm:$0xff] %v9771_v53  ;;  %v3917_v17 = vadd.f32 %v3916_v39, %v9624_v29  ;;  %v3660_v43 = vmul.f32 %v8970_v25, %v3340_v27  ;;  %v3402_v57 = vmax.f32 %v3146_v59, 0.0  ;;  %v3920_v4 = vsel %vm3746_vm0, %v3567_v63, 0.0  ;;  %v11729_v39 = vld [vmem:[#allocation274_spill] sm:$0xff]  ;;  %v11753_v40 = vld [vmem:[#allocation317_spill] sm:$0xff]  ;;  %v11798_v53 = vld [vmem:[#allocation304_spill] sm:$0xff] }
 0x334   : > { %v3248_v1 = vmax.f32 %v2992_v54, 0.0  ;;  %v4277_v48 = vadd.f32 %v4276_v6, %v9563_v31  ;;  %v4134_v55 = vsel %vm3746_vm0, %v3659_v56, 0.0  ;;  %v2492_v52 = vpop.permute.xlu1 %2491  ;;  %v3721_v42 = vmul.f32 %v11513_v20, %v3401_v28  ;;  %v11731_v6 = vld [vmem:[#allocation102_spill] sm:$0xff] }
 0x335   : > { %v3919_v8 = vadd.f32 %v3918_v32, %v3917_v17  ;;  %v3342_v22 = vmax.f32 %v3086_v19, 0.0  ;;  %v3085_v13 = vadd.f32 %v2492_v52, %v11729_v39  ;;  %v11730_v63 = vmax.f32 %v9529_v36, 0.0 }
 0x336   : > { %v3568_v29 = vmul.f32 %v11673_v18, %v3248_v1  ;;  %v9795_v59 = vpop.permute.xlu0 %2506  ;;  %v11732_v26 = vmax.f32 %v11731_v6, 0.0  ;;  %v11734_v32 = vmax.f32 %v11733_v46, 0.0  ;;  %v4136_v28 = vsel %vm3746_vm0, %v3660_v43, 0.0 }
 0x337   : > { %v3921_v27 = vadd.f32 %v3920_v4, %v3919_v8  ;;  %v3597_v31 = vmul.f32 %v9261_v47, %v11730_v63  ;;  %v3722_v19 = vmul.f32 %v11580_v49, %v3402_v57  ;;  %v3341_v17 = vmax.f32 %v3085_v13, 0.0  ;;  %v11736_v8 = vld [vmem:[#allocation209_spill] sm:$0xff]  ;;  %v11738_v63 = vld [vmem:[#allocation120_spill] sm:$0xff] }
 0x338   : > { %v3501_v56 = vmul.f32 %v9261_v47, %v11732_v26  ;;  %v3517_v20 = vmul.f32 %v9261_v47, %v11734_v32  ;;  %v3922_v54 = vsel %vm3746_vm0, %v3568_v29, 0.0  ;;  %v4135_v4 = vadd.f32 %v4134_v55, %v4133_v33  ;;  %v2802_v36 = vpop.permute.xlu1 %2801  ;;  %v11740_v57 = vld [vmem:[#allocation276_spill] sm:$0xff]  ;;  %v11742_v55 = vld [vmem:[#allocation115_spill] sm:$0xff] }
 0x339   : > { %v9809_v1 = vadd.f32 %v3922_v54, %v3921_v27  ;;  %v11737_v52 = vmax.f32 %v11736_v8, 0.0  ;;  %v11739_v6 = vmax.f32 %v11738_v63, 0.0  ;;  %v4278_v46 = vsel %vm3746_vm0, %v3721_v42, 0.0  ;;  %v11741_v33 = vld [vmem:[#allocation312_spill] sm:$0xff] }
 0x33a   : > { %v3662_v43 = vmul.f32 %v9494_v45, %v3342_v22  ;;  %v3661_v49 = vmul.f32 %v9261_v47, %v3341_v17  ;;  %v3147_v29 = vadd.f32 %v2802_v36, %v11740_v57  ;;  %v9823_v13 = vadd.f32 %v11742_v55, %v11741_v33  ;;  %v9825_v32 = vpop.permute.xlu0 %2816  ;;  %v11744_v55 = vld [vmem:[#allocation92_spill] sm:$0xff] }
 0x33b   : > { %11735 = vst [vmem:[#allocation263_spill] sm:$0xff] %v9809_v1  ;;  %v3533_v39 = vmul.f32 %v9261_v47, %v11737_v52  ;;  %v3549_v26 = vmul.f32 %v9261_v47, %v11739_v6  ;;  %v4137_v27 = vadd.f32 %v4136_v28, %v4135_v4  ;;  %v3990_v54 = vsel %vm3746_vm0, %v3597_v31, 0.0  ;;  %v11743_v4 = vld [vmem:[#allocation315_spill] sm:$0xff] }
 0x33c   : > { %v3768_v8 = vsel %vm3746_vm0, %v3501_v56, 0.0  ;;  %v4280_v52 = vsel %vm3746_vm0, %v3722_v19, 0.0  ;;  %v4138_v42 = vsel %vm3746_vm0, %v3661_v49, 0.0  ;;  %v3403_v22 = vmax.f32 %v3147_v29, 0.0  ;;  %v9832_v6 = vpop.permute.xlu1 %2106  ;;  %v11745_v56 = vld [vmem:[#allocation316_spill] sm:$0xff] }
 0x33d   : > { %v3805_v17 = vsel %vm3746_vm0, %v3517_v20, 0.0  ;;  %v4279_v63 = vadd.f32 %v4278_v46, %v4277_v48  ;;  %v4139_v36 = vadd.f32 %v4138_v42, %v4137_v27  ;;  %v3842_v57 = vsel %vm3746_vm0, %v3533_v39, 0.0  ;;  %v11747_v48 = vld [vmem:[#allocation174_spill] sm:$0xff]  ;;  %v11748_v46 = vld [vmem:[#allocation124_spill] sm:$0xff]  ;;  %v11749_v27 = vld [vmem:[#allocation153_spill] sm:$0xff] }
 0x33e   : > { %v3879_v28 = vsel %vm3746_vm0, %v3549_v26, 0.0  ;;  %v9838_v31 = vadd.f32 %v11744_v55, %v11743_v4  ;;  %v9842_v19 = vadd.f32 %v11746_v30, %v11745_v56  ;;  %v4140_v49 = vsel %vm3746_vm0, %v3662_v43, 0.0  ;;  %v11750_v39 = vld [vmem:[#allocation214_spill] sm:$0xff]  ;;  %v9854_v38 = vpop.permute.xlu0 %2431 }
 0x33f   : > { %v3723_v20 = vmul.f32 %v11582_v41, %v3403_v22  ;;  %v9848_v29 = vadd.f32 %v11748_v46, %v11747_v48  ;;  %v9852_v42 = vadd.f32 %v11750_v39, %v11749_v27  ;;  %v4281_v26 = vadd.f32 %v4280_v52, %v4279_v63  ;;  %v11763_v27 = vld [vmem:[#allocation300_spill] sm:$0xff] }
 0x340   : > { %v9856_v55 = vadd.f32 %v4140_v49, %v4139_v36  ;;  %v9861_v43 = vadd.f32 %v11754_v51, %v11753_v40  ;;  %v3991_v46 = vadd.f32 %v3990_v54, %v9648_v23  ;;  %v2337_v1 = vpop.permute.xlu1 %2336  ;;  %v11755_v39 = vmax.f32 %v9697_v9, 0.0  ;;  %v11756_v51 = vld [vmem:[#allocation22_spill] sm:$0xff]  ;;  %v4987_v23 = vld [vmem:[%s10427_s5 + $0x2] ss:$0 sm:$0xff]  ;;  %v585_v54 = vpop.f32.mrf.mxu1 }
 0x341   : > { %11751 = vst [vmem:[#allocation242_spill] sm:$0xff] %v9852_v42  ;;  %v4282_v22 = vsel %vm3746_vm0, %v3723_v20, 0.0  ;;  %v3769_v63 = vadd.f32 %v3768_v8, %v9653_v24  ;;  %v3806_v36 = vadd.f32 %v3805_v17, %v9656_v14  ;;  %v3054_v30 = vadd.f32 %v2337_v1, %v11756_v51  ;;  %v11758_v51 = vld [vmem:[#allocation34_spill] sm:$0xff] }
 0x342   : > { %11752 = vst [vmem:[#allocation176_spill] sm:$0xff] %v9856_v55  ;;  %v9865_v48 = vadd.f32 %v4282_v22, %v4281_v26  ;;  %v3598_v52 = vmul.f32 %v9494_v45, %v11755_v39  ;;  %v9878_v20 = vadd.f32 %v3842_v57, %v9662_v21  ;;  %v9881_v9 = vadd.f32 %v3879_v28, %v9671_v15  ;;  %v9886_v8 = vpop.permute.xlu0 %2741  ;;  %v5095_v21 = vpop.f32.mrf.mxu1  ;;  %v11760_v26 = vld [vmem:[#allocation119_spill] sm:$0xff] }
 0x343   : > { %v608_v1 = vadd.f32 %v4987_v23, %v585_v54  ;;  %v3310_v22 = vmax.f32 %v3054_v30, 0.0  ;;  %v9889_v39 = vstv %s5142_s21  ;;  %v11759_v49 = vmax.f32 %v11758_v51, 0.0  ;;  %v11762_v30 = vld [vmem:[#allocation322_spill] sm:$0xff]  ;;  %s10378_s21 = scalar_lea.hbm %s10429_s7, %s5050_s15 }
 0x344   : > { %11757 = vst [vmem:[#allocation104_spill] sm:$0xff] %v9889_v39  ;;  %v2572_v57 = vpop.permute.xlu1 %2571  ;;  %v3992_v15 = vsel %vm3746_vm0, %v3598_v52, 0.0  ;;  %v11761_v14 = vmax.f32 %v11760_v26, 0.0  ;;  %v3102_v54 = vadd.f32 %v9640_v10, %v11725_v12  ;;  %v2976_v17 = vadd.f32 %v9642_v62, %v11762_v30  ;;  %v588_v52 = vpop.f32.mrf.mxu1  ;;  %v11765_v30 = vld [vmem:[#allocation94_spill] sm:$0xff] }
 0x345   : > { %v614_v28 = vpack.c.bf16 %v608_v1, %v608_v1  ;;  %v3502_v24 = vmul.f32 %v9494_v45, %v11759_v49  ;;  %v3630_v21 = vmul.f32 %v9494_v45, %v3310_v22  ;;  %v3101_v39 = vadd.f32 %v2572_v57, %v11763_v27  ;;  %v11764_v1 = vld [vmem:[#allocation310_spill] sm:$0xff] }
 0x346   : > { %v3518_v40 = vmul.f32 %v9494_v45, %v11761_v14  ;;  %v3164_v51 = vadd.f32 %v9668_v35, %v11764_v1  ;;  %v3118_v49 = vadd.f32 %v9718_v11, %v11715_v61  ;;  %v9908_v26 = vpop.permute.xlu0 %2511  ;;  %v609_v55 = vadd.f32 %v4987_v23, %v588_v52  ;;  %v5096_v22 = vpop.f32.mrf.mxu1  ;;  %v11767_v35 = vld [vmem:[#allocation90_spill] sm:$0xff] }
 0x347   : > { %v4525_v14 = vsel %vm4523_vm2, %v614_v28, 0  ;;  %v4066_v10 = vsel %vm3746_vm0, %v3630_v21, 0.0  ;;  %v3357_v12 = vmax.f32 %v3101_v39, 0.0  ;;  %v9912_v62 = vadd.f32 %v3992_v15, %v3991_v46 }
 0x348   : > { %v11766_v27 = vmax.f32 %v11765_v30, 0.0  ;;  %5110 = vmatpush3.bf16.msra.mxu1 %v4525_v14  ;;  %v9918_v1 = vadd.f32 %v4066_v10, %v11767_v35  ;;  %v2882_v61 = vpop.permute.xlu1 %2881  ;;  %v615_v11 = vpack.c.bf16 %v609_v55, %v609_v55  ;;  %v11768_v42 = vmax.f32 %v9768_v5, 0.0  ;;  %v11770_v30 = vld [vmem:[#allocation302_spill] sm:$0xff]  ;;  %v9931_v5 = vpop.f32.mrf.mxu1  ;;  %v11773_v35 = vld [vmem:[#allocation241_spill] sm:$0xff] }
 0x349   : > { %v3770_v28 = vsel %vm3746_vm0, %v3502_v24, 0.0  ;;  %v11769_v39 = vmov 0.0   ;;  %v3358_v46 = vmax.f32 %v3102_v54, 0.0  ;;  %v3677_v15 = vmul.f32 %v9261_v47, %v3357_v12  ;;  %11772 = vst [vmem:[#allocation266_spill] sm:$0xff] %v9931_v5  ;;  %v11780_v5 = vld [vmem:[#allocation325_spill] sm:$0xff] }
 0x34a   : > { %v3534_v57 = vmul.f32 %v9494_v45, %v11766_v27  ;;  %v3550_v23 = vmul.f32 %v9494_v45, %v11768_v42  ;;  %5115 = vmatprep.subr.bf16.mxu1 %v11769_v39  ;;  %v3163_v21 = vadd.f32 %v2882_v61, %v11770_v30  ;;  %v3807_v52 = vsel %vm3746_vm0, %v3518_v40, 0.0  ;;  %v9934_v27 = vpop.permute.xlu0 %2821  ;;  %v11774_v61 = vld [vmem:[#allocation168_spill] sm:$0xff]  ;;  %v11776_v40 = vld [vmem:[#allocation202_spill] sm:$0xff] }
 0x34b   : > { %v3232_v14 = vmax.f32 %v2976_v17, 0.0  ;;  %v3420_v10 = vmax.f32 %v3164_v51, 0.0  ;;  %v3374_v22 = vmax.f32 %v3118_v49, 0.0  ;;  %v9929_v55 = vsel %vm4523_vm2, %v615_v11, 0  ;;  %v11778_v39 = vld [vmem:[#allocation166_spill] sm:$0xff] }
 0x34c   : > { %11771 = vst [vmem:[#allocation105_spill] sm:$0xff] %v9929_v55  ;;  %v4175_v42 = vsel %vm3746_vm0, %v3677_v15, 0.0  ;;  %v3419_v24 = vmax.f32 %v3163_v21, 0.0  ;;  %v3771_v54 = vadd.f32 %v3770_v28, %v3769_v63  ;;  %v3844_v12 = vsel %vm3746_vm0, %v3534_v57, 0.0  ;;  %v9944_v51 = vpop.permute.xlu1 %2031  ;;  %v5101_v15 = vpop.f32.mrf.mxu1  ;;  %v11777_v21 = vld [vmem:[#allocation15_spill] sm:$0xff]  ;;  %v11779_v57 = vld [vmem:[#allocation293_spill] sm:$0xff] }
 0x34d   : > { %v9939_v30 = vadd.f32 %v11774_v61, %v11773_v35  ;;  %v9942_v17 = vadd.f32 %v4175_v42, %v11776_v40  ;;  %v9946_v49 = vadd.f32 %v3807_v52, %v3806_v36  ;;  %v3881_v11 = vsel %vm3746_vm0, %v3550_v23, 0.0 }
 0x34e   : > { %v3055_v55 = vadd.f32 %v11778_v39, %v11777_v21  ;;  %v3678_v63 = vmul.f32 %v9494_v45, %v3358_v46  ;;  %v3072_v28 = vadd.f32 %v9755_v58, %v11779_v57  ;;  %v3739_v61 = vmul.f32 %v11582_v41, %v3419_v24  ;;  %v653_v52 = vpop.f32.mrf.mxu1  ;;  %v11783_v58 = vld [vmem:[#allocation36_spill] sm:$0xff] }
 0x34f   : > { %11775 = vst [vmem:[#allocation211_spill] sm:$0xff] %v9939_v30  ;;  %v3552_v42 = vmul.f32 %v11673_v18, %v3232_v14  ;;  %v3740_v40 = vmul.f32 %v8970_v25, %v3420_v10  ;;  %v9959_v36 = vadd.f32 %v9702_v2, %v11780_v5  ;;  %v3694_v23 = vmul.f32 %v9494_v45, %v3374_v22  ;;  %v11785_v2 = vld [vmem:[#allocation113_spill] sm:$0xff] }
 0x350   : > { %v4319_v39 = vsel %vm3746_vm0, %v3739_v61, 0.0  ;;  %v11782_v46 = vmax.f32 %v9842_v19, 0.0  ;;  %v11784_v21 = vmax.f32 %v11783_v58, 0.0  ;;  %v9970_v14 = vadd.f32 %v3844_v12, %v9878_v20  ;;  %v2187_v22 = vpop.permute.xlu1 %2186  ;;  %v5102_v52 = vpop.f32.mrf.mxu1  ;;  %v11787_v20 = vld [vmem:[#allocation326_spill] sm:$0xff] }
 0x351   : > { %11781 = vst [vmem:[#allocation96_spill] sm:$0xff] %v9959_v36  ;;  %v9974_v24 = vadd.f32 %v4319_v39, %v11785_v2  ;;  %v11786_v57 = vmax.f32 %v9861_v43, 0.0  ;;  %v9980_v19 = vadd.f32 %v3881_v11, %v9881_v9  ;;  %v9983_v58 = vsel %vm3746_vm0, %v3678_v63, 0.0  ;;  %v2747_v39 = vpop.permute.xlu0 %2746  ;;  %v11791_v63 = vld [vmem:[#allocation27_spill] sm:$0xff] }
 0x352   : > { %v3599_v15 = vmul.f32 %v9746_v60, %v11782_v46  ;;  %v3503_v41 = vmul.f32 %v9746_v60, %v11784_v21  ;;  %v3311_v46 = vmax.f32 %v3055_v55, 0.0  ;;  %v9987_v12 = vadd.f32 %v9737_v16, %v11787_v20  ;;  %v9999_v55 = vpop.f32.mrf.mxu1 }
 0x353   : > { %v3615_v61 = vmul.f32 %v9746_v60, %v11786_v57  ;;  %v3328_v21 = vmax.f32 %v3072_v28, 0.0  ;;  %v9990_v2 = vsel %vm3746_vm0, %v3552_v42, 0.0  ;;  %v9993_v43 = vsel %vm3746_vm0, %v3740_v40, 0.0  ;;  %11790 = vst [vmem:[#allocation267_spill] sm:$0xff] %v9999_v55  ;;  %v11792_v28 = vld [vmem:[#allocation98_spill] sm:$0xff] }
 0x354   : > { %11788 = vst [vmem:[#allocation185_spill] sm:$0xff] %v9987_v12  ;;  %v9997_v11 = vsel %vm3746_vm0, %v3694_v23, 0.0  ;;  %v3008_v57 = vadd.f32 %v9832_v6, %v11791_v63  ;;  %v3994_v16 = vsel %vm3746_vm0, %v3599_v15, 0.0  ;;  %v11793_v52 = vmax.f32 %v11792_v28, 0.0  ;;  %v2652_v40 = vpop.permute.xlu1 %2651  ;;  %v11794_v23 = vld [vmem:[#allocation95_spill] sm:$0xff]  ;;  %v5107_v15 = vpop.f32.mrf.mxu1 }
 0x355   : > { %11789 = vst [vmem:[#allocation159_spill] sm:$0xff] %v9997_v11  ;;  %v3772_v10 = vsel %vm3746_vm0, %v3503_v41, 0.0  ;;  %v4031_v20 = vsel %vm3746_vm0, %v3615_v61, 0.0  ;;  %v3631_v9 = vmul.f32 %v9746_v60, %v3311_v46  ;;  %v11795_v36 = vmax.f32 %v11794_v23, 0.0  ;;  %v11797_v11 = vld [vmem:[#allocation297_spill] sm:$0xff]  ;;  %v10028_v28 = vpop.permute.xlu0 %2671 }
 0x356   : > { %v3519_v42 = vmul.f32 %v9746_v60, %v11793_v52  ;;  %v11796_v30 = vmax.f32 %v9848_v29, 0.0  ;;  %v3648_v52 = vmul.f32 %v11673_v18, %v3328_v21  ;;  %v3134_v41 = vadd.f32 %v9785_v37, %v11797_v11  ;;  %v693_v23 = vpop.f32.mrf.mxu1  ;;  %v11799_v37 = vld [vmem:[#allocation313_spill] sm:$0xff] }
 0x357   : > { %v3535_v55 = vmul.f32 %v9746_v60, %v11795_v36  ;;  %v3117_v61 = vadd.f32 %v2652_v40, %v11701_v7  ;;  %v3088_v46 = vadd.f32 %v9795_v59, %v11798_v53  ;;  %v3150_v36 = vadd.f32 %v9825_v32, %v11711_v0 }
 0x358   : > { %v3551_v6 = vmul.f32 %v9746_v60, %v11796_v30  ;;  %v10026_v29 = vadd.f32 %v3994_v16, %v9912_v62  ;;  %v3773_v30 = vadd.f32 %v3772_v10, %v3771_v54  ;;  %v3264_v15 = vmax.f32 %v3008_v57, 0.0  ;;  %v2807_v59 = vpop.permute.xlu1 %2806  ;;  %v5108_v54 = vpop.f32.mrf.mxu1 }
 0x359   : > { %v3373_v21 = vmax.f32 %v3117_v61, 0.0  ;;  %v10031_v12 = vadd.f32 %v4031_v20, %v9716_v34  ;;  %v3809_v7 = vsel %vm3746_vm0, %v3519_v42, 0.0  ;;  %v3135_v53 = vadd.f32 %v9886_v8, %v11799_v37  ;;  %v11800_v20 = vld [vmem:[#allocation268_spill] sm:$0xff]  ;;  %v11802_v61 = vld [vmem:[#allocation175_spill] sm:$0xff] }
 0x35a   : > { %v10037_v0 = vsel %vm3746_vm0, %v3631_v9, 0.0  ;;  %v3846_v32 = vsel %vm3746_vm0, %v3535_v55, 0.0  ;;  %v3883_v62 = vsel %vm3746_vm0, %v3551_v6, 0.0  ;;  %v10042_v10 = vsel %vm3746_vm0, %v3648_v52, 0.0  ;;  %v11801_v8 = vld [vmem:[#allocation40_spill] sm:$0xff] }
 0x35b   : > { %v3390_v11 = vmax.f32 %v3134_v41, 0.0  ;;  %v3693_v34 = vmul.f32 %v9261_v47, %v3373_v21  ;;  %v3148_v57 = vadd.f32 %v2807_v59, %v11800_v20  ;;  %v3344_v16 = vmax.f32 %v3088_v46, 0.0  ;;  %v11803_v46 = vld [vmem:[#allocation91_spill] sm:$0xff]  ;;  %v2752_v59 = vpop.permute.xlu0 %2751 }
 0x35c   : > { %v3406_v42 = vmax.f32 %v3150_v36, 0.0  ;;  %v10047_v40 = vadd.f32 %v11801_v8, %v3773_v30  ;;  %v3810_v9 = vadd.f32 %v3809_v7, %v9946_v49  ;;  %v3584_v55 = vmul.f32 %v11673_v18, %v3264_v15  ;;  %v2267_v30 = vpop.permute.xlu1 %2266  ;;  %v11804_v7 = vld [vmem:[#allocation41_spill] sm:$0xff] }
 0x35d   : > { %v3024_v6 = vadd.f32 %v2187_v22, %v11802_v61  ;;  %v4212_v23 = vsel %vm3746_vm0, %v3693_v34, 0.0  ;;  %v3404_v52 = vmax.f32 %v3148_v57, 0.0  ;;  %v3391_v37 = vmax.f32 %v3135_v53, 0.0 }
 0x35e   : > { %v3151_v41 = vadd.f32 %v9934_v27, %v11745_v56  ;;  %v3136_v21 = vadd.f32 %v2747_v39, %v11791_v63  ;;  %v10057_v36 = vadd.f32 %v4212_v23, %v11803_v46  ;;  %v3040_v15 = vadd.f32 %v2267_v30, %v11804_v7  ;;  %v11805_v27 = vld [vmem:[#allocation97_spill] sm:$0xff] }
 0x35f   : > { %v3724_v49 = vmul.f32 %v8970_v25, %v3404_v52  ;;  %v3847_v22 = vadd.f32 %v3846_v32, %v9970_v14  ;;  %v3884_v54 = vadd.f32 %v3883_v62, %v9980_v19  ;;  %v3710_v53 = vmul.f32 %v9494_v45, %v3390_v11  ;;  %v11807_v46 = vld [vmem:[#allocation21_spill] sm:$0xff] }
 0x360   : > { %v3664_v34 = vmul.f32 %v11673_v18, %v3344_v16  ;;  %v3726_v56 = vmul.f32 %v9494_v45, %v3406_v42  ;;  %v10067_v39 = vadd.f32 %v11805_v27, %v3810_v9  ;;  %v3959_v63 = vsel %vm3746_vm0, %v3584_v55, 0.0  ;;  %v2422_v57 = vpop.permute.xlu1 %2421  ;;  %v11806_v42 = vld [vmem:[#allocation279_spill] sm:$0xff] }
 0x361   : > { %v10072_v25 = vadd.f32 %v9854_v38, %v11741_v33  ;;  %v3280_v20 = vmax.f32 %v3024_v6, 0.0  ;;  %v4284_v14 = vsel %vm3746_vm0, %v3724_v49, 0.0  ;;  %v3711_v19 = vmul.f32 %v9746_v60, %v3391_v37 }
 0x362   : > { %v3407_v32 = vmax.f32 %v3151_v41, 0.0  ;;  %v3392_v62 = vmax.f32 %v3136_v21, 0.0  ;;  %v10077_v11 = vadd.f32 %v4284_v14, %v9865_v48  ;;  %v3296_v16 = vmax.f32 %v3040_v15, 0.0 }
 0x363   : > { %v3071_v8 = vadd.f32 %v2422_v57, %v11806_v42  ;;  %v10081_v9 = vadd.f32 %v9781_v44, %v3847_v22  ;;  %v10084_v38 = vadd.f32 %v9990_v2, %v3884_v54  ;;  %v4251_v33 = vsel %vm3746_vm0, %v3710_v53, 0.0  ;;  %v2832_v2 = vpop.permute.xlu0 %2831  ;;  %v11808_v22 = vld [vmem:[#allocation283_spill] sm:$0xff] }
 0x364   : > { %v10088_v55 = vsel %vm3746_vm0, %v3664_v34, 0.0  ;;  %v10091_v6 = vsel %vm3746_vm0, %v3726_v56, 0.0  ;;  %v3089_v48 = vadd.f32 %v9908_v26, %v11743_v4  ;;  %v10096_v23 = vadd.f32 %v3959_v63, %v9762_v50  ;;  %v2732_v15 = vpop.permute.xlu1 %2731 }
 0x365   : > { %v3329_v44 = vmax.f32 %v10072_v25, 0.0  ;;  %v3600_v52 = vmul.f32 %v11673_v18, %v3280_v20  ;;  %v3327_v37 = vmax.f32 %v3071_v8, 0.0  ;;  %v4253_v41 = vsel %vm3746_vm0, %v3711_v19, 0.0 }
 0x366   : > { %v3727_v21 = vmul.f32 %v9746_v60, %v3407_v32  ;;  %v2993_v30 = vadd.f32 %v9944_v51, %v11807_v46  ;;  %v3712_v49 = vmul.f32 %v11673_v18, %v3392_v62  ;;  %v3121_v50 = vadd.f32 %v10028_v28, %v11807_v46 }
 0x367   : > { %v3616_v4 = vmul.f32 %v11673_v18, %v3296_v16  ;;  %v3647_v26 = vmul.f32 %v9746_v60, %v3327_v37  ;;  %v3133_v54 = vadd.f32 %v2732_v15, %v11808_v22  ;;  %v3345_v53 = vmax.f32 %v3089_v48, 0.0 }
 0x368   : > { %v10111_v34 = vadd.f32 %v2752_v59, %v11773_v35  ;;  %v3153_v56 = vadd.f32 %v2832_v2, %v11780_v5  ;;  %v10116_v51 = vadd.f32 %v10037_v0, %v9918_v1  ;;  %v3996_v27 = vsel %vm3746_vm0, %v3600_v52, 0.0 }
 0x369   : > { %v4105_v28 = vsel %vm3746_vm0, %v3647_v26, 0.0  ;;  %v3389_v63 = vmax.f32 %v3133_v54, 0.0  ;;  %v10122_v20 = vadd.f32 %v9983_v58, %v9942_v17  ;;  %v10125_v14 = vsel %vm3746_vm0, %v3727_v21, 0.0  ;;  %v10137_v17 = vpop.permute.xlu1 %3487  ;;  %v11813_v21 = vld [vmem:[#allocation118_spill] sm:$0xff] }
 0x36a   : > { %v3249_v35 = vmax.f32 %v2993_v30, 0.0  ;;  %v4106_v59 = vadd.f32 %v4105_v28, %v9752_v3  ;;  %v10130_v5 = vadd.f32 %v9993_v43, %v9974_v24  ;;  %v10133_v1 = vsel %vm3746_vm0, %v3712_v49, 0.0  ;;  %v11809_v43 = vld [vmem:[#allocation45_spill] sm:$0xff]  ;;  %v11814_v30 = vld [vmem:[#allocation159_spill] sm:$0xff] }
 0x36b   : > { %v3377_v0 = vmax.f32 %v3121_v50, 0.0  ;;  %v4033_v19 = vsel %vm3746_vm0, %v3616_v4, 0.0  ;;  %v3709_v32 = vmul.f32 %v9261_v47, %v3389_v63  ;;  %v10140_v58 = vadd.f32 %v3996_v27, %v10026_v29  ;;  %v11815_v50 = vld [vmem:[#allocation242_spill] sm:$0xff] }
 0x36c   : > { %v3393_v62 = vmax.f32 %v10111_v34, 0.0  ;;  %v3409_v3 = vmax.f32 %v3153_v56, 0.0  ;;  %v3665_v57 = vmul.f32 %v10137_v17, %v3345_v53  ;;  %v11810_v16 = vmax.f32 %v11809_v43, 0.0 }
 0x36d   : > { %v4249_v24 = vsel %vm3746_vm0, %v3709_v32, 0.0  ;;  %v11811_v8 = vmax.f32 %v9823_v13, 0.0  ;;  %v11812_v52 = vmax.f32 %v9838_v31, 0.0  ;;  %v10155_v2 = vadd.f32 %v4033_v19, %v10031_v12 }
 0x36e   : > { %v3505_v42 = vmul.f32 %v10137_v17, %v11810_v16  ;;  %v10158_v37 = vadd.f32 %v10042_v10, %v4106_v59  ;;  %v4250_v46 = vadd.f32 %v4249_v24, %v11813_v21  ;;  %v10163_v49 = vadd.f32 %v11814_v30, %v10057_v36  ;;  %v2502_v22 = vpop.permute.xlu1 %2501  ;;  %v11817_v36 = vld [vmem:[#allocation299_spill] sm:$0xff] }
 0x36f   : > { %v3521_v48 = vmul.f32 %v10137_v17, %v11811_v8  ;;  %v3537_v29 = vmul.f32 %v10137_v17, %v11812_v52  ;;  %v3697_v13 = vmul.f32 %v10137_v17, %v3377_v0  ;;  %v3729_v15 = vmul.f32 %v10137_v17, %v3409_v3  ;;  %v11818_v59 = vld [vmem:[#allocation211_spill] sm:$0xff] }
 0x370   : > { %v11816_v31 = vmax.f32 %v11815_v50, 0.0  ;;  %v3569_v12 = vmul.f32 %v10137_v17, %v3249_v35  ;;  %v4252_v26 = vadd.f32 %v4251_v33, %v4250_v46  ;;  %v4146_v10 = vsel %vm3746_vm0, %v3665_v57, 0.0  ;;  %v11820_v8 = vld [vmem:[#allocation263_spill] sm:$0xff] }
 0x371   : > { %v3776_v54 = vsel %vm3746_vm0, %v3505_v42, 0.0  ;;  %v3813_v53 = vsel %vm3746_vm0, %v3521_v48, 0.0  ;;  %v3087_v56 = vadd.f32 %v2502_v22, %v11817_v36  ;;  %v3850_v63 = vsel %vm3746_vm0, %v3537_v29, 0.0 }
 0x372   : > { %v3553_v4 = vmul.f32 %v10137_v17, %v11816_v31  ;;  %v3777_v27 = vadd.f32 %v3776_v54, %v10047_v40  ;;  %v3814_v28 = vadd.f32 %v3813_v53, %v10067_v39  ;;  %v11819_v0 = vmax.f32 %v11818_v59, 0.0  ;;  %v2812_v16 = vpop.permute.xlu1 %2811 }
 0x373   : > { %v3851_v33 = vadd.f32 %v3850_v63, %v10081_v9  ;;  %v3924_v32 = vsel %vm3746_vm0, %v3569_v12, 0.0  ;;  %v3343_v3 = vmax.f32 %v3087_v56, 0.0  ;;  %v4254_v40 = vadd.f32 %v4253_v41, %v4252_v26  ;;  %v11821_v9 = vld [vmem:[#allocation301_spill] sm:$0xff]  ;;  %v11822_v26 = vld [vmem:[#allocation176_spill] sm:$0xff] }
 0x374   : > { %v3585_v35 = vmul.f32 %v10137_v17, %v11819_v0  ;;  %v3887_v19 = vsel %vm3746_vm0, %v3553_v4, 0.0  ;;  %v3778_v57 = vrot.slane %v3777_v27, 4  ;;  %v3815_v24 = vrot.slane %v3814_v28, 4 }
 0x375   : > { %v3888_v43 = vadd.f32 %v3887_v19, %v10084_v38  ;;  %v10186_v39 = vsel %vm3746_vm0, %v3697_v13, 0.0  ;;  %v3852_v42 = vrot.slane %v3851_v33, 4  ;;  %v3925_v48 = vadd.f32 %v3924_v32, %v11820_v8 }
 0x376   : > { %v3663_v52 = vmul.f32 %v9746_v60, %v3343_v3  ;;  %v3149_v29 = vadd.f32 %v2812_v16, %v11821_v9  ;;  %v3779_v21 = vadd.f32 %v3778_v57, %v3777_v27  ;;  %v3816_v46 = vadd.f32 %v3815_v24, %v3814_v28  ;;  %v2347_v54 = vpop.permute.xlu1 %2346  ;;  %v11823_v27 = vld [vmem:[#allocation24_spill] sm:$0xff] }
 0x377   : > { %v3853_v30 = vadd.f32 %v3852_v42, %v3851_v33  ;;  %v3889_v50 = vrot.slane %v3888_v43, 4  ;;  %v3926_v31 = vrot.slane %v3925_v48, 4  ;;  %v3961_v4 = vsel %vm3746_vm0, %v3585_v35, 0.0 }
 0x378   : > { %v4142_v38 = vsel %vm3746_vm0, %v3663_v52, 0.0  ;;  %v3405_v41 = vmax.f32 %v3149_v29, 0.0  ;;  %v3780_v12 = vrot.slane %v3779_v21, 2  ;;  %v3817_v13 = vrot.slane %v3816_v46, 2  ;;  %v11824_v29 = vld [vmem:[#allocation174_spill] sm:$0xff] }
 0x379   : > { %v4143_v22 = vadd.f32 %v4142_v38, %v11822_v26  ;;  %v3854_v53 = vrot.slane %v3853_v30, 2  ;;  %v3890_v36 = vadd.f32 %v3889_v50, %v3888_v43  ;;  %v3927_v56 = vadd.f32 %v3926_v31, %v3925_v48 }
 0x37a   : > { %v3725_v63 = vmul.f32 %v9261_v47, %v3405_v41  ;;  %v3056_v28 = vadd.f32 %v2347_v54, %v11823_v27  ;;  %v3781_v59 = vadd.f32 %v3780_v12, %v3779_v21  ;;  %v3818_v0 = vadd.f32 %v3817_v13, %v3816_v46  ;;  %v2582_v43 = vpop.permute.xlu1 %2581  ;;  %v11825_v21 = vld [vmem:[#allocation96_spill] sm:$0xff] }
 0x37b   : > { %v4145_v33 = vadd.f32 %v10088_v55, %v4143_v22  ;;  %v3855_v35 = vadd.f32 %v3854_v53, %v3853_v30  ;;  %v3891_v19 = vrot.slane %v3890_v36, 2  ;;  %v3962_v32 = vadd.f32 %v3961_v4, %v10096_v23  ;;  %v11827_v30 = vld [vmem:[#allocation185_spill] sm:$0xff] }
 0x37c   : > { %v4286_v3 = vsel %vm3746_vm0, %v3725_v63, 0.0  ;;  %v3312_v57 = vmax.f32 %v3056_v28, 0.0  ;;  %v3782_v24 = vrot.slane %v3781_v59, 1  ;;  %v3928_v16 = vrot.slane %v3927_v56, 2  ;;  %v11829_v28 = vld [vmem:[#allocation29_spill] sm:$0xff] }
 0x37d   : > { %v4147_v42 = vadd.f32 %v4146_v10, %v4145_v33  ;;  %v10200_v8 = vsel %vm3746_vm0, %v3729_v15, 0.0  ;;  %v3819_v48 = vrot.slane %v3818_v0, 1  ;;  %v3892_v52 = vadd.f32 %v3891_v19, %v3890_v36 }
 0x37e   : > { %v3632_v9 = vmul.f32 %v11673_v18, %v3312_v57  ;;  %v3103_v55 = vadd.f32 %v2582_v43, %v11824_v29  ;;  %v11826_v46 = vmax.f32 %v11825_v21, 0.0  ;;  %v11828_v50 = vmax.f32 %v11827_v30, 0.0  ;;  %v2892_v53 = vpop.permute.xlu1 %2891  ;;  %v11831_v30 = vld [vmem:[#allocation104_spill] sm:$0xff] }
 0x37f   : > { %v10211_v10 = vadd.f32 %v10133_v1, %v4254_v40  ;;  %v4148_v4 = vrot.slane %v4147_v42, 4  ;;  %v4287_v15 = vadd.f32 %v4286_v3, %v10077_v11  ;;  %v3856_v38 = vrot.slane %v3855_v35, 1 }
 0x380   : > { %v3601_v23 = vmul.f32 %v10137_v17, %v11826_v46  ;;  %v3617_v31 = vmul.f32 %v10137_v17, %v11828_v50  ;;  %v3359_v41 = vmax.f32 %v3103_v55, 0.0  ;;  %v3783_v12 = vadd.f32 %v3782_v24, %v3781_v59 }
 0x381   : > { %v3929_v13 = vadd.f32 %v3928_v16, %v3927_v56  ;;  %v3963_v26 = vrot.slane %v3962_v32, 4  ;;  %v4149_v22 = vadd.f32 %v4148_v4, %v4147_v42  ;;  %v4070_v54 = vsel %vm3746_vm0, %v3632_v9, 0.0  ;;  %v11830_v9 = vld [vmem:[#allocation319_spill] sm:$0xff] }
 0x382   : > { %v3820_v36 = vadd.f32 %v3819_v48, %v3818_v0  ;;  %v3893_v63 = vrot.slane %v3892_v52, 1  ;;  %v3679_v27 = vmul.f32 %v9746_v60, %v3359_v41  ;;  %v3165_v33 = vadd.f32 %v2892_v53, %v11829_v28  ;;  %v2662_v43 = vpop.permute.xlu1 %2661 }
 0x383   : > { %v3930_v1 = vrot.slane %v3929_v13, 1  ;;  %v3964_v40 = vadd.f32 %v3963_v26, %v3962_v32  ;;  %v4150_v19 = vrot.slane %v4149_v22, 2  ;;  %v10218_v11 = vadd.f32 %v10091_v6, %v4287_v15 }
 0x384   : > { %v3998_v59 = vsel %vm3746_vm0, %v3601_v23, 0.0  ;;  %v4035_v56 = vsel %vm3746_vm0, %v3617_v31, 0.0  ;;  %v4071_v3 = vadd.f32 %v4070_v54, %v10116_v51  ;;  %v4179_v57 = vsel %vm3746_vm0, %v3679_v27, 0.0 }
 0x385   : > { %v3857_v0 = vadd.f32 %v3856_v38, %v3855_v35  ;;  %v3965_v24 = vrot.slane %v3964_v40, 2  ;;  %v4151_v16 = vadd.f32 %v4150_v19, %v4149_v22  ;;  %v3421_v42 = vmax.f32 %v3165_v33, 0.0 }
 0x386   : > { %v3999_v48 = vadd.f32 %v3998_v59, %v10140_v58  ;;  %v4036_v32 = vadd.f32 %v4035_v56, %v10155_v2  ;;  %v3119_v6 = vadd.f32 %v2662_v43, %v11830_v9  ;;  %v3894_v29 = vadd.f32 %v3893_v63, %v3892_v52  ;;  %v2352_v38 = vpop.permute.xlu1 %2351 }
 0x387   : > { %v3931_v55 = vadd.f32 %v3930_v1, %v3929_v13  ;;  %v3966_v21 = vadd.f32 %v3965_v24, %v3964_v40  ;;  %v4343_v51 = vadd.f32 %v11831_v30, %v3783_v12  ;;  %v4344_v50 = vadd.f32 %v11831_v30, %v3820_v36  ;;  %v11832_v13 = vld [vmem:[#allocation17_spill] sm:$0xff] }
 0x388   : > { %v4000_v46 = vrot.slane %v3999_v48, 4  ;;  %v4037_v23 = vrot.slane %v4036_v32, 4  ;;  %v4152_v35 = vrot.slane %v4151_v16, 1  ;;  %v10230_v31 = vadd.f32 %v4179_v57, %v10122_v20  ;;  %v11833_v57 = vld [vmem:[#allocation322_spill] sm:$0xff] }
 0x389   : > { %v3967_v4 = vrot.slane %v3966_v21, 1  ;;  %v4345_v58 = vadd.f32 %v11831_v30, %v3857_v0  ;;  %v3741_v2 = vmul.f32 %v9261_v47, %v3421_v42  ;;  %v3375_v15 = vmax.f32 %v3119_v6, 0.0 }
 0x38a   : > { %v4001_v52 = vadd.f32 %v4000_v46, %v3999_v48  ;;  %v4038_v41 = vadd.f32 %v4037_v23, %v4036_v32  ;;  %v3057_v26 = vadd.f32 %v2352_v38, %v11832_v13  ;;  %v4346_v12 = vadd.f32 %v11831_v30, %v3894_v29  ;;  %v2587_v40 = vpop.permute.xlu1 %2586  ;;  %v11834_v23 = vld [vmem:[#allocation323_spill] sm:$0xff] }
 0x38b   : > { %v3968_v22 = vadd.f32 %v3967_v4, %v3966_v21  ;;  %v4347_v54 = vadd.f32 %v11831_v30, %v3931_v55  ;;  %v5012_v20 = vmul.f32 -1.442695, %v4343_v51  ;;  %v5013_v63 = vmul.f32 -1.442695, %v4344_v50 }
 0x38c   : > { %v4002_v53 = vrot.slane %v4001_v52, 2  ;;  %v4039_v36 = vrot.slane %v4038_v41, 2  ;;  %v4153_v27 = vadd.f32 %v4152_v35, %v4151_v16  ;;  %v3313_v28 = vmax.f32 %v3057_v26, 0.0 }
 0x38d   : > { %v4348_v33 = vadd.f32 %v11831_v30, %v3968_v22  ;;  %v5014_v47 = vmul.f32 -1.442695, %v4345_v58  ;;  %v3695_v1 = vmul.f32 %v9746_v60, %v3375_v15  ;;  %5273 = vpow2.f32 %v5012_v20 }
 0x38e   : > { %v4003_v19 = vadd.f32 %v4002_v53, %v4001_v52  ;;  %v4040_v59 = vadd.f32 %v4039_v36, %v4038_v41  ;;  %v3633_v56 = vmul.f32 %v10137_v17, %v3313_v28  ;;  %v3104_v0 = vadd.f32 %v2587_v40, %v11833_v57  ;;  %v2897_v29 = vpop.permute.xlu1 %2896 }
 0x38f   : > { %5275 = vpow2.f32 %v5013_v63  ;;  %v5015_v24 = vmul.f32 -1.442695, %v4346_v12  ;;  %v5016_v16 = vmul.f32 -1.442695, %v4347_v54  ;;  %v5017_v9 = vmul.f32 -1.442695, %v4348_v33 }
 0x390   : > { %v4004_v42 = vrot.slane %v4003_v19, 1  ;;  %v4041_v43 = vrot.slane %v4040_v59, 1  ;;  %5277 = vpow2.f32 %v5014_v47  ;;  %v4072_v48 = vsel %vm3746_vm0, %v3633_v56, 0.0  ;;  %v11835_v12 = vld [vmem:[#allocation329_spill] sm:$0xff] }
 0x391   : > { %v3360_v32 = vmax.f32 %v3104_v0, 0.0  ;;  %5279 = vpow2.f32 %v5015_v24  ;;  %v4073_v6 = vadd.f32 %v4072_v48, %v4071_v3  ;;  %v3166_v51 = vadd.f32 %v2897_v29, %v11834_v23  ;;  %v11836_v56 = vld [vmem:[#allocation153_spill] sm:$0xff] }
 0x392   : > { %v4005_v55 = vadd.f32 %v4004_v42, %v4003_v19  ;;  %v4042_v21 = vadd.f32 %v4041_v43, %v4040_v59  ;;  %5281 = vpow2.f32 %v5016_v16  ;;  %v3649_v50 = vmul.f32 %v10137_v17, %v3329_v44  ;;  %v2667_v44 = vpop.permute.xlu1 %2666 }
 0x393   : > { %v3680_v46 = vmul.f32 %v11673_v18, %v3360_v32  ;;  %5283 = vpow2.f32 %v5017_v9  ;;  %v4074_v35 = vrot.slane %v4073_v6, 4  ;;  %v3713_v3 = vmul.f32 %v10137_v17, %v3393_v62 }
 0x394   : > { %v4349_v4 = vadd.f32 %v11831_v30, %v4005_v55  ;;  %v4350_v58 = vadd.f32 %v11831_v30, %v4042_v21  ;;  %v4323_v15 = vsel %vm3746_vm0, %v3741_v2, 0.0  ;;  %v4216_v38 = vsel %vm3746_vm0, %v3695_v1, 0.0 }
 0x395   : > { %v3422_v52 = vmax.f32 %v3166_v51, 0.0  ;;  %v4109_v41 = vsel %vm3746_vm0, %v3649_v50, 0.0  ;;  %v4075_v13 = vadd.f32 %v4074_v35, %v4073_v6  ;;  %v4181_v25 = vsel %vm3746_vm0, %v3680_v46, 0.0  ;;  %v11837_v51 = vld [vmem:[#allocation317_spill] sm:$0xff] }
 0x396   : > { %v5018_v26 = vmul.f32 -1.442695, %v4349_v4  ;;  %v5019_v22 = vmul.f32 -1.442695, %v4350_v58  ;;  %v3120_v54 = vadd.f32 %v2667_v44, %v11835_v12  ;;  %v4110_v53 = vadd.f32 %v4109_v41, %v10158_v37  ;;  %v2592_v40 = vpop.permute.xlu1 %2591 }
 0x397   : > { %v4257_v34 = vsel %vm3746_vm0, %v3713_v3, 0.0  ;;  %v4353_v62 = vadd.f32 %v11831_v30, %v4153_v27  ;;  %v4076_v2 = vrot.slane %v4075_v13, 2  ;;  %v3742_v36 = vmul.f32 %v9494_v45, %v3422_v52 }
 0x398   : > { %5285 = vpow2.f32 %v5018_v26  ;;  %v4258_v20 = vadd.f32 %v4257_v34, %v10211_v10  ;;  %v4324_v63 = vadd.f32 %v4323_v15, %v10130_v5  ;;  %v3376_v28 = vmax.f32 %v3120_v54, 0.0 }
 0x399   : > { %5287 = vpow2.f32 %v5019_v22  ;;  %v4111_v33 = vrot.slane %v4110_v53, 4  ;;  %v4217_v47 = vadd.f32 %v4216_v38, %v10163_v49  ;;  %v4077_v1 = vadd.f32 %v4076_v2, %v4075_v13 }
 0x39a   : > { %v4182_v37 = vadd.f32 %v4181_v25, %v10230_v31  ;;  %v4259_v19 = vrot.slane %v4258_v20, 4  ;;  %v5274_v59 = vpop.eup %5273  ;;  %v3696_v27 = vmul.f32 %v11673_v18, %v3376_v28  ;;  %v3105_v45 = vadd.f32 %v2592_v40, %v11836_v56  ;;  %v2902_v55 = vpop.permute.xlu1 %2901 }
 0x39b   : > { %v4112_v57 = vadd.f32 %v4111_v33, %v4110_v53  ;;  %v5022_v0 = vmul.f32 -1.442695, %v4353_v62  ;;  %v4078_v24 = vrot.slane %v4077_v1, 1  ;;  %v4325_v5 = vsel %vm3746_vm0, %v3742_v36, 0.0 }
 0x39c   : > { %v5276_v10 = vpop.eup %5275  ;;  %v4407_v42 = vadd.f32 1.0, %v5274_v59  ;;  %v4260_v43 = vadd.f32 %v4259_v19, %v4258_v20  ;;  %v4218_v49 = vsel %vm3746_vm0, %v3696_v27, 0.0  ;;  %v3361_v48 = vmax.f32 %v3105_v45, 0.0 }
 0x39d   : > { %v5278_v16 = vpop.eup %5277  ;;  %v4408_v31 = vadd.f32 1.0, %v5276_v10  ;;  %v4113_v32 = vrot.slane %v4112_v57, 2  ;;  %v4079_v6 = vadd.f32 %v4078_v24, %v4077_v1  ;;  %v4219_v29 = vadd.f32 %v4218_v49, %v4217_v47  ;;  %v11838_v49 = vld [vmem:[#allocation326_spill] sm:$0xff] }
 0x39e   : > { %v5280_v9 = vpop.eup %5279  ;;  %v4409_v21 = vadd.f32 1.0, %v5278_v16  ;;  %5289 = vrcp.f32 %v4407_v42  ;;  %v3681_v23 = vmul.f32 %v10137_v17, %v3361_v48  ;;  %v3167_v50 = vadd.f32 %v2902_v55, %v11837_v51  ;;  %v2827_v26 = vpop.permute.xlu1 %2826 }
 0x39f   : > { %v5282_v46 = vpop.eup %5281  ;;  %v4410_v35 = vadd.f32 1.0, %v5280_v9  ;;  %5291 = vrcp.f32 %v4408_v31  ;;  %v4351_v58 = vadd.f32 %v11831_v30, %v4079_v6  ;;  %v4221_v3 = vadd.f32 %v10186_v39, %v4219_v29 }
 0x3a0   : > { %v5284_v4 = vpop.eup %5283  ;;  %v4411_v15 = vadd.f32 1.0, %v5282_v46  ;;  %5293 = vrcp.f32 %v4409_v21  ;;  %v4183_v38 = vsel %vm3746_vm0, %v3681_v23, 0.0  ;;  %v3423_v52 = vmax.f32 %v3167_v50, 0.0 }
 0x3a1   : > { %v4412_v41 = vadd.f32 1.0, %v5284_v4  ;;  %5295 = vrcp.f32 %v4410_v35  ;;  %v5020_v13 = vmul.f32 -1.442695, %v4351_v58  ;;  %v4222_v25 = vrot.slane %v4221_v3, 4 }
 0x3a2   : > { %v4184_v44 = vadd.f32 %v4183_v38, %v4182_v37  ;;  %5297 = vrcp.f32 %v4411_v15  ;;  %v4291_v22 = vadd.f32 %v10125_v14, %v10218_v11  ;;  %v3152_v12 = vadd.f32 %v2827_v26, %v11802_v61  ;;  %v2907_v47 = vpop.permute.xlu1 %2906 }
 0x3a3   : > { %5299 = vrcp.f32 %v4412_v41  ;;  %v4114_v39 = vadd.f32 %v4113_v32, %v4112_v57  ;;  %v4326_v54 = vadd.f32 %v4325_v5, %v4324_v63  ;;  %v4223_v53 = vadd.f32 %v4222_v25, %v4221_v3 }
 0x3a4   : > { %v4185_v34 = vrot.slane %v4184_v44, 4  ;;  %v4261_v62 = vrot.slane %v4260_v43, 2  ;;  %v3743_v36 = vmul.f32 %v9746_v60, %v3423_v52  ;;  %v3408_v20 = vmax.f32 %v3152_v12, 0.0 }
 0x3a5   : > { %v5286_v2 = vpop.eup %5285  ;;  %v4115_v28 = vrot.slane %v4114_v39, 1  ;;  %5301 = vpow2.f32 %v5022_v0  ;;  %v4224_v14 = vrot.slane %v4223_v53, 2  ;;  %v3168_v37 = vadd.f32 %v2907_v47, %v11804_v7 }
 0x3a6   : > { %v5288_v33 = vpop.eup %5287  ;;  %5303 = vpow2.f32 %v5020_v13  ;;  %v4186_v11 = vadd.f32 %v4185_v34, %v4184_v44  ;;  %v4413_v61 = vadd.f32 1.0, %v5286_v2  ;;  %v3728_v63 = vmul.f32 %v11673_v18, %v3408_v20  ;;  %v2912_v24 = vpop.permute.xlu1 %2911 }
 0x3a7   : > { %v4414_v1 = vadd.f32 1.0, %v5288_v33  ;;  %v4116_v40 = vadd.f32 %v4115_v28, %v4114_v39  ;;  %v4225_v19 = vadd.f32 %v4224_v14, %v4223_v53  ;;  %v4262_v60 = vadd.f32 %v4261_v62, %v4260_v43 }
 0x3a8   : > { %v4187_v59 = vrot.slane %v4186_v11, 2  ;;  %5305 = vrcp.f32 %v4413_v61  ;;  %v4292_v27 = vsel %vm3746_vm0, %v3728_v63, 0.0  ;;  %v3424_v56 = vmax.f32 %v3168_v37, 0.0 }
 0x3a9   : > { %5307 = vrcp.f32 %v4414_v1  ;;  %v4352_v45 = vadd.f32 %v11831_v30, %v4116_v40  ;;  %v4226_v57 = vrot.slane %v4225_v19, 1  ;;  %v4293_v10 = vadd.f32 %v4292_v27, %v4291_v22 }
 0x3aa   : > { %v4188_v0 = vadd.f32 %v4187_v59, %v4186_v11  ;;  %v4263_v5 = vrot.slane %v4262_v60, 1  ;;  %v4327_v16 = vsel %vm3746_vm0, %v3743_v36, 0.0  ;;  %v3744_v7 = vmul.f32 %v11673_v18, %v3424_v56  ;;  %v11839_v36 = vld [vmem:[#allocation266_spill] sm:$0xff] }
 0x3ab   : > { %v5290_v42 = vpop.eup %5289  ;;  %v3169_v48 = vadd.f32 %v2912_v24, %v11838_v49  ;;  %v5021_v31 = vmul.f32 -1.442695, %v4352_v45  ;;  %v4227_v32 = vadd.f32 %v4226_v57, %v4225_v19  ;;  %v4295_v6 = vadd.f32 %v10200_v8, %v4293_v10 }
 0x3ac   : > { %v5292_v43 = vpop.eup %5291  ;;  %v4189_v9 = vrot.slane %v4188_v0, 1  ;;  %v4264_v29 = vadd.f32 %v4263_v5, %v4262_v60  ;;  %v4329_v46 = vsel %vm3746_vm0, %v3744_v7, 0.0  ;;  %v4328_v3 = vadd.f32 %v4327_v16, %v4326_v54 }
 0x3ad   : > { %v5294_v55 = vpop.eup %5293  ;;  %v4472_v21 = vsel %vm4471_vm3, %v5292_v43, %v5290_v42  ;;  %v3425_v23 = vmax.f32 %v3169_v48, 0.0  ;;  %5309 = vpow2.f32 %v5021_v31  ;;  %v4355_v50 = vadd.f32 %v11831_v30, %v4227_v32 }
 0x3ae   : > { %v5296_v51 = vpop.eup %5295  ;;  %v4190_v18 = vadd.f32 %v4189_v9, %v4188_v0  ;;  %v4296_v35 = vrot.slane %v4295_v6, 4  ;;  %v4474_v4 = vsel %vm4473_vm4, %v5294_v55, %v4472_v21  ;;  %v4356_v38 = vadd.f32 %v11831_v30, %v4264_v29 }
 0x3af   : > { %v5298_v58 = vpop.eup %5297  ;;  %v4476_v15 = vsel %vm4475_vm5, %v5296_v51, %v4474_v4  ;;  %v3745_v8 = vmul.f32 %v10137_v17, %v3425_v23  ;;  %v5024_v41 = vmul.f32 -1.442695, %v4355_v50  ;;  %v4330_v22 = vadd.f32 %v4329_v46, %v4328_v3 }
 0x3b0   : > { %v5300_v52 = vpop.eup %5299  ;;  %v4354_v13 = vadd.f32 %v11831_v30, %v4190_v18  ;;  %v4297_v25 = vadd.f32 %v4296_v35, %v4295_v6  ;;  %v4478_v44 = vsel %vm4477_vm6, %v5298_v58, %v4476_v15  ;;  %v5025_v39 = vmul.f32 -1.442695, %v4356_v38  ;;  %v11840_v38 = vld [vmem:[#allocation267_spill] sm:$0xff] }
 0x3b1   : > { %v4480_v26 = vsel %vm4479_vm7, %v5300_v52, %v4478_v44  ;;  %v4331_v12 = vsel %vm3746_vm0, %v3745_v8, 0.0  ;;  %5311 = vpow2.f32 %v5024_v41  ;;  %v696_v20 = vmul.f32 0.088388346, %v11839_v36 }
 0x3b2   : > { %v5302_v54 = vpop.eup %5301  ;;  %v5023_v53 = vmul.f32 -1.442695, %v4354_v13  ;;  %v4298_v34 = vrot.slane %v4297_v25, 2  ;;  %v4332_v62 = vadd.f32 %v4331_v12, %v4330_v22  ;;  %5313 = vpow2.f32 %v5025_v39 }
 0x3b3   : > { %v5304_v17 = vpop.eup %5303  ;;  %v4417_v19 = vadd.f32 1.0, %v5302_v54  ;;  %v697_v52 = vmul.f32 0.088388346, %v11840_v38 }
 0x3b4   : > { %v4299_v2 = vadd.f32 %v4298_v34, %v4297_v25  ;;  %5315 = vpow2.f32 %v5023_v53  ;;  %v4333_v33 = vrot.slane %v4332_v62, 4  ;;  %v4415_v47 = vadd.f32 1.0, %v5304_v17 }
 0x3b5   : > { %v5306_v28 = vpop.eup %5305 }
 0x3b6   : > { %v5308_v14 = vpop.eup %5307  ;;  %v4300_v11 = vrot.slane %v4299_v2, 1  ;;  %v4482_v61 = vsel %vm4481_vm8, %v5306_v28, %v4480_v26  ;;  %v4334_v1 = vadd.f32 %v4333_v33, %v4332_v62  ;;  %5317 = vrcp.f32 %v4415_v47  ;;  %v11841_v33 = vld [vmem:[#allocation105_spill] sm:$0xff] }
 0x3b7   : > { %v4484_v63 = vsel %vm4483_vm9, %v5308_v14, %v4482_v61  ;;  %5319 = vrcp.f32 %v4417_v19  ;;  %v11842_v14 = vmov 0.0  }
 0x3b8   : > { %v4301_v37 = vadd.f32 %v4300_v11, %v4299_v2  ;;  %v4494_v40 = vmul.f32 %v4484_v63, %v696_v20  ;;  %v4335_v59 = vrot.slane %v4334_v1, 2 }
 0x3ba   : > { %v5310_v60 = vpop.eup %5309  ;;  %v4357_v27 = vadd.f32 %v11831_v30, %v4301_v37  ;;  %v4496_v56 = vsel %vm3746_vm0, %v4494_v40, -inf  ;;  %v4336_v45 = vadd.f32 %v4335_v59, %v4334_v1 }
 0x3bb   : > { %4497 = vmax.xlane.f32.xlu0 %v4496_v56  ;;  %v4416_v57 = vadd.f32 1.0, %v5310_v60 }
 0x3bc   : > { %v5026_v0 = vmul.f32 -1.442695, %v4357_v27  ;;  %v4337_v10 = vrot.slane %v4336_v45, 1 }
 0x3bd   : > { %5321 = vrcp.f32 %v4416_v57 }
 0x3be   : > { %5323 = vpow2.f32 %v5026_v0  ;;  %v5312_v24 = vpop.eup %5311  ;;  %v4338_v5 = vadd.f32 %v4337_v10, %v4336_v45  ;;  %v5265_v0 = vld [vmem:[%s10426_s4 + $0x38] sm:$0xff]   ;;  %v5266_v10 = vld [vmem:[%s10426_s4 + $0x30] sm:$0xff]  }
 0x3bf   : > { %v5314_v42 = vpop.eup %5313  ;;  %v4419_v16 = vadd.f32 1.0, %v5312_v24  ;;  %5122 = vmatpush3.bf16.msra.mxu0 %v5265_v0  ;;  %v5267_v24 = vld [vmem:[%s10426_s4 + $0x28] sm:$0xff]   ;;  %v5041_v0 = vld [vmem:[%s10427_s5 + $0x6] ss:$0 sm:$0xff] }
 0x3c0   : > { %v4358_v7 = vadd.f32 %v11831_v30, %v4338_v5  ;;  %v4420_v43 = vadd.f32 1.0, %v5314_v42  ;;  %5123 = vmatprep.subr.bf16.mxu0 %v11842_v14  ;;  %v5268_v5 = vld [vmem:[%s10426_s4 + $0x20] sm:$0xff]   ;;  %v5269_v42 = vld [vmem:[%s10426_s4 + $0x18] sm:$0xff]  }
 0x3c1   : > { %v5316_v49 = vpop.eup %5315  ;;  %5325 = vrcp.f32 %v4419_v16  ;;  %v5270_v16 = vld [vmem:[%s10426_s4 + $0x10] sm:$0xff]  }
 0x3c2   : > { %v4418_v48 = vadd.f32 1.0, %v5316_v49  ;;  %v5027_v31 = vmul.f32 -1.442695, %v4358_v7  ;;  %v5271_v7 = vld [vmem:[%s10426_s4 + $0x8] sm:$0xff]   ;;  %v5272_v49 = vld [vmem:[%s10426_s4] sm:$0xff]  }
 0x3c3   : > { %v5318_v32 = vpop.eup %5317  ;;  %5124 = vmatpush3.bf16.msra.mxu0 %v5266_v10 }
 0x3c4   : > { %5327 = vrcp.f32 %v4418_v48  ;;  %v5320_v9 = vpop.eup %5319  ;;  %5125 = vmatprep.subr.bf16.mxu0 %v11842_v14 }
 0x3c5   : > { %5329 = vpow2.f32 %v5027_v31 }
 0x3c6   : > { %5331 = vrcp.f32 %v4420_v43 }
 0x3c7   : > { %5126 = vmatpush3.bf16.msra.mxu0 %v5267_v24  ;;  %v5042_v24 = vld [vmem:[%s10427_s5 + $0x7] ss:$0 sm:$0xff] }
 0x3c8   : > { %5127 = vmatprep.subr.bf16.mxu0 %v11842_v14 }
 0x3ca   : > { %v5322_v6 = vpop.eup %5321 }
 0x3cb   : > { %v5324_v29 = vpop.eup %5323  ;;  %v4485_v55 = vsel %vm4471_vm3, %v5322_v6, %v5318_v32  ;;  %5128 = vmatpush3.bf16.msra.mxu0 %v5268_v5 }
 0x3cc   : > { %v4421_v21 = vadd.f32 1.0, %v5324_v29  ;;  %v4486_v46 = vsel %vm4473_vm4, %v5320_v9, %v4485_v55  ;;  %5129 = vmatprep.subr.bf16.mxu0 %v11842_v14 }
 0x3ce   : > { %5333 = vrcp.f32 %v4421_v21  ;;  %v5326_v23 = vpop.eup %5325 }
 0x3cf   : > { %5130 = vmatpush3.bf16.msra.mxu0 %v5269_v42 }
 0x3d0   : > { %5131 = vmatprep.subr.bf16.mxu0 %v11842_v14 }
 0x3d1   : > { %v5328_v30 = vpop.eup %5327 }
 0x3d2   : > { %v5330_v51 = vpop.eup %5329  ;;  %v4487_v50 = vsel %vm4475_vm5, %v5328_v30, %v4486_v46 }
 0x3d3   : > { %v5332_v18 = vpop.eup %5331  ;;  %v4422_v35 = vadd.f32 1.0, %v5330_v51  ;;  %v4488_v4 = vsel %vm4477_vm6, %v5326_v23, %v4487_v50  ;;  %5132 = vmatpush3.bf16.msra.mxu0 %v5270_v16 }
 0x3d4   : > { %v4489_v58 = vsel %vm4479_vm7, %v5332_v18, %v4488_v4  ;;  %5133 = vmatprep.subr.bf16.mxu0 %v11842_v14 }
 0x3d5   : > { %5335 = vrcp.f32 %v4422_v35 }
 0x3d7   : > { %5134 = vmatpush3.bf16.msra.mxu0 %v5271_v7 }
 0x3d8   : > { %5135 = vmatprep.subr.bf16.mxu0 %v11842_v14 }
 0x3db   : > { %v5334_v3 = vpop.eup %5333  ;;  %5136 = vmatpush3.bf16.msra.mxu0 %v5272_v49 }
 0x3dc   : > { %v4490_v15 = vsel %vm4481_vm8, %v5334_v3, %v4489_v58 }
 0x3e2   : > { %v5336_v8 = vpop.eup %5335 }
 0x3e3   : > { %v4491_v41 = vsel %vm4483_vm9, %v5336_v8, %v4490_v15  ;;  %v5030_v15 = vld [vmem:[%s10427_s5 + $0x4] ss:$0 sm:$0xff] }
 0x3e4   : > { %v4495_v13 = vmul.f32 %v4491_v41, %v697_v52 }
 0x3e6   : > { %v4499_v25 = vsel %vm3746_vm0, %v4495_v13, -inf }
 0x3e7   : > { %4500 = vmax.xlane.f32.xlu1 %v4499_v25 }
 0x444   : > { %v4498_v44 = vpop.xlane.xlu0 %4497 }
 0x445   : > { %v4502_v26 = vsub.f32 %v4494_v40, %v4498_v44 }
 0x447   : > { %v4504_v22 = vmul.f32 1.442695, %v4502_v26 }
 0x449   : > { %5337 = vpow2.f32 %v4504_v22 }
 0x456   : > { %v5338_v12 = vpop.eup %5337 }
 0x457   : > { %v4508_v39 = vsel %vm3746_vm0, %v5338_v12, 0.0 }
 0x458   : > { %4509 = vadd.xlane.f32.xlu0 %v4508_v39 }
 0x470   : > { %v4501_v54 = vpop.xlane.xlu1 %4500 }
 0x471   : > { %v4503_v53 = vsub.f32 %v4495_v13, %v4501_v54  ;;  %v5031_v13 = vld [vmem:[%s10427_s5 + $0x5] ss:$0 sm:$0xff] }
 0x473   : > { %v4506_v34 = vmul.f32 1.442695, %v4503_v53 }
 0x475   : > { %5339 = vpow2.f32 %v4506_v34 }
 0x482   : > { %v5340_v17 = vpop.eup %5339 }
 0x483   : > { %v4511_v62 = vsel %vm3746_vm0, %v5340_v17, 0.0 }
 0x484   : > { %4512 = vadd.xlane.f32.xlu0 %v4511_v62 }
 0x4e1   : > { %v4510_v2 = vpop.xlane.xlu0 %4509 }
 0x4e2   : > { %5341 = vrcp.f32 %v4510_v2 }
 0x4ef   : > { %v5342_v36 = vpop.eup %5341 }
 0x4f0   : > { %v4516_v20 = vmul.f32 %v5342_v36, %v5338_v12  ;;  %v5032_v12 = vld [vmem:[%s10427_s5 + $0x3] ss:$0 sm:$0xff] }
 0x4f2   : > { %v4518_v28 = vpack.c.bf16 %v4516_v20, %v4516_v20 }
 0x4f4   : > { %5112 = vmatmul.mubr.msk.bf16.vlgmr.msra.gmra.mxu1 %vm3746_vm0, %v4518_v28 }
 0x4f5   : > { %5116 = vmatpush3.bf16.msra.mxu1 %v11841_v33  ;;  %5117 = vmatprep.mubr.msk.bf16.mxu1 %vm5494_vm1, %v11842_v14 }
 0x50d   : > { %v4513_v11 = vpop.xlane.xlu0 %4512 }
 0x50e   : > { %5343 = vrcp.f32 %v4513_v11 }
 0x51b   : > { %v5344_v61 = vpop.eup %5343 }
 0x51c   : > { %v4517_v47 = vmul.f32 %v5344_v61, %v5340_v17 }
 0x51e   : > { %v4519_v63 = vpack.c.bf16 %v4517_v47, %v4517_v47 }
 0x520   : > { %5118 = vmatmul.mubr.msk.bf16.vlgmr.msra.gmra.mxu1 %vm3746_vm0, %v4519_v63 }
 0x5b4   : > { %v4561_v1 = vpop.f32.mrf.mxu1 }
 0x5b5   : > { %4613 = vadd.xlane.f32.xlu1 %v4561_v1  ;;  %v4620_v40 = vmul.f32 %v4561_v1, %v4561_v1 }
 0x5b6   : > { %v5113_v37 = vpop.f32.mrf.mxu1 }
 0x5b8   : > { %v4564_v19 = vpop.f32.mrf.mxu1 }
 0x5b9   : > { %4622 = vadd.xlane.f32.xlu1 %v4620_v40 }
 0x5ba   : > { %v5114_v59 = vpop.f32.mrf.mxu1 }
 0x5e0   : > { %v4607_v60 = vpop.f32.mrf.mxu1 }
 0x5e1   : > { %4615 = vadd.xlane.f32.xlu0 %v4607_v60  ;;  %v4621_v56 = vmul.f32 %v4607_v60, %v4607_v60 }
 0x5e2   : > { %v5119_v27 = vpop.f32.mrf.mxu1 }
 0x5e4   : > { %v4610_v45 = vpop.f32.mrf.mxu1 }
 0x5e5   : > { %4624 = vadd.xlane.f32.xlu0 %v4621_v56 }
 0x5e6   : > { %v5120_v57 = vpop.f32.mrf.mxu1 }
 0x63e   : > { %v4614_v48 = vpop.xlane.xlu1 %4613 }
 0x63f   : > { %v4618_v43 = vmul.f32 0.0078125, %v4614_v48 }
 0x641   : > { %v4628_v9 = vmul.f32 %v4618_v43, %v4618_v43  ;;  %v4634_v58 = vsub.f32 %v4561_v1, %v4618_v43  ;;  %v5392_v43 = vld [vmem:[%s6179_s20] sm:$0xff] }
 0x642   : > { %v4623_v31 = vpop.xlane.xlu1 %4622 }
 0x643   : > { %v4626_v32 = vmul.f32 0.0078125, %v4623_v31 }
 0x645   : > { %v4630_v6 = vsub.f32 %v4626_v32, %v4628_v9 }
 0x647   : > { %v4632_v29 = vmax.f32 %v4630_v6, 0.0 }
 0x649   : > { %v4636_v46 = vadd.f32 1e-05, %v4632_v29 }
 0x64b   : > { %5345 = vrsqrt.f32 %v4636_v46 }
 0x658   : > { %v5346_v4 = vpop.eup %5345 }
 0x659   : > { %v4640_v3 = vmul.f32 %v5346_v4, %v4634_v58 }
 0x65b   : > { %v4646_v41 = vmul.f32 %v5030_v15, %v4640_v3 }
 0x65d   : > { %v4652_v44 = vadd.f32 %v5031_v13, %v4646_v41 }
 0x66a   : > { %v4616_v55 = vpop.xlane.xlu0 %4615 }
 0x66b   : > { %v4619_v21 = vmul.f32 0.0078125, %v4616_v55  ;;  %v5393_v55 = vld [vmem:[%s6179_s20 + $0x8] sm:$0xff]  ;;  %s301_s20 = sand.u32 1, %s5476_s25  }
 0x66c   : > { %s4956_s13 = sshll.u32 %s301_s20, 4  ;;  %s10382_s22 = scalar_lea.sflag [#allocation4], %s301_s20 }
 0x66d   : > { %v4629_v30 = vmul.f32 %v4619_v21, %v4619_v21  ;;  %v4635_v8 = vsub.f32 %v4607_v60, %v4619_v21  ;;  %s303_s16 = scalar_lea.vmem [#allocation5], %s4956_s13 }
 0x66e   : > { %v4625_v23 = vpop.xlane.xlu0 %4624  ;;  %s4864_s17 = sshll.u32 %s303_s16, 4  ;;  %s10380_s17 = int_to_ptr.vmem [resolvable:$true] %s4864_s17 }
 0x66f   : > { %v4627_v51 = vmul.f32 0.0078125, %v4625_v23  ;;  %s5420_s23 = scalar_lea.vmem %s10380_s17, 256  ;;  %p5427_p11 = scmp.lt.s32.totalorder %s10380_s17, %s5425_s29 }
 0x670   : > { %p5421_p8 = scmp.ne.s32.totalorder %s10380_s17, %s5420_s23  ;;  %p5428_p12 = scmp.lt.s32.totalorder %s5426_s9, %s5420_s23 }
 0x671   : > { %v4631_v50 = vsub.f32 %v4627_v51, %v4629_v30 }
 0x672   : > { %p5422_p9 = pnand %p5421_p8, %p5576_p5  ;;  %p5429_p13 = por %p5428_p12, %p5427_p11 }
 0x673   : > { %v4633_v18 = vmax.f32 %v4631_v50, 0.0 }
 0x674   : > { %p5423_p10 = pneg %p5422_p9 }
 0x675   : > { %v4637_v35 = vadd.f32 1e-05, %v4633_v18 }
 0x676   : > { %p5430_p0 = pnand %p5429_p13, %p5423_p10 }
 0x677   : > { %5347 = vrsqrt.f32 %v4637_v35 }
 0x684   : > { %v5348_v38 = vpop.eup %5347 }
 0x685   : > { %v4641_v52 = vmul.f32 %v5348_v38, %v4635_v8 }
 0x687   : > { %v4647_v25 = vmul.f32 %v5030_v15, %v4641_v52 }
 0x689   : > { %v4653_v26 = vadd.f32 %v5031_v13, %v4647_v25 }
 0x68b   : > { %v4654_v22 = vpack.c.bf16 %v4653_v26, %v4652_v44 }
 0x68d   : > { %5138 = vmatmul.mubr.bf16.vlgmr.msra.gmra.mxu0 %v4654_v22  ;;  %v5043_v22 = vld [vmem:[%s10427_s5 + $0x8] ss:$0 sm:$0xff] }
 0x74d   : > { %v4757_v39 = vpop.f32.mrf.mxu0 }
 0x74e   : > { %v4758_v54 = vadd.f32 %v5032_v12, %v4757_v39  ;;  %v5044_v39 = vld [vmem:[%s10427_s5 + $0x9] ss:$0 sm:$0xff] }
 0x74f   : > { %v5139_v53 = vpop.f32.mrf.mxu0 }
 0x750   : > { %4764 = vadd.xlane.f32.xlu1 %v4758_v54  ;;  %v4770_v62 = vmul.f32 %v4758_v54, %v4758_v54 }
 0x751   : > { %v4760_v34 = vpop.f32.mrf.mxu0 }
 0x752   : > { %v4761_v17 = vadd.f32 %v5032_v12, %v4760_v34 }
 0x753   : > { %v5140_v2 = vpop.f32.mrf.mxu0 }
 0x754   : > { %4772 = vadd.xlane.f32.xlu1 %v4770_v62  ;;  %4766 = vadd.xlane.f32.xlu0 %v4761_v17  ;;  %v4771_v36 = vmul.f32 %v4761_v17, %v4761_v17 }
 0x758   : > { %4774 = vadd.xlane.f32.xlu0 %v4771_v36 }
 0x7d9   : > { %v4765_v20 = vpop.xlane.xlu1 %4764 }
 0x7da   : > { %v4768_v28 = vmul.f32 0.0078125, %v4765_v20 }
 0x7dc   : > { %v4778_v11 = vmul.f32 %v4768_v28, %v4768_v28  ;;  %v4784_v45 = vsub.f32 %v4758_v54, %v4768_v28 }
 0x7dd   : > { %v4773_v33 = vpop.xlane.xlu1 %4772  ;;  %v4767_v14 = vpop.xlane.xlu0 %4766 }
 0x7de   : > { %v4776_v61 = vmul.f32 0.0078125, %v4773_v33  ;;  %v4769_v47 = vmul.f32 0.0078125, %v4767_v14 }
 0x7e0   : > { %v4780_v63 = vsub.f32 %v4776_v61, %v4778_v11  ;;  %v4779_v40 = vmul.f32 %v4769_v47, %v4769_v47  ;;  %v4785_v5 = vsub.f32 %v4761_v17, %v4769_v47 }
 0x7e1   : > { %v4775_v1 = vpop.xlane.xlu0 %4774 }
 0x7e2   : > { %v4782_v37 = vmax.f32 %v4780_v63, 0.0  ;;  %v4777_v19 = vmul.f32 0.0078125, %v4775_v1 }
 0x7e4   : > { %v4786_v59 = vadd.f32 1e-05, %v4782_v37  ;;  %v4781_v60 = vsub.f32 %v4777_v19, %v4779_v40 }
 0x7e6   : > { %5349 = vrsqrt.f32 %v4786_v59  ;;  %v4783_v27 = vmax.f32 %v4781_v60, 0.0 }
 0x7e8   : > { %v4787_v56 = vadd.f32 1e-05, %v4783_v27 }
 0x7ea   : > { %5351 = vrsqrt.f32 %v4787_v56 }
 0x7f3   : > { %v5350_v57 = vpop.eup %5349 }
 0x7f4   : > { %v4790_v10 = vmul.f32 %v5350_v57, %v4784_v45 }
 0x7f6   : > { %v4796_v42 = vmul.f32 %v5041_v0, %v4790_v10 }
 0x7f7   : > { %v5352_v16 = vpop.eup %5351 }
 0x7f8   : > { %v4802_v7 = vadd.f32 %v5042_v24, %v4796_v42  ;;  %v4791_v49 = vmul.f32 %v5352_v16, %v4785_v5 }
 0x7fa   : > { %v4804_v48 = vmax.f32 %v4802_v7, 0.0  ;;  %v4797_v31 = vmul.f32 %v5041_v0, %v4791_v49 }
 0x7fc   : > { %v4806_v32 = vadd.f32 %v5392_v43, %v4804_v48  ;;  %v4803_v9 = vadd.f32 %v5042_v24, %v4797_v31 }
 0x7fe   : > { %4808 = vadd.xlane.f32.xlu1 %v4806_v32  ;;  %v4805_v6 = vmax.f32 %v4803_v9, 0.0  ;;  %v4814_v29 = vmul.f32 %v4806_v32, %v4806_v32 }
 0x800   : > { %v4807_v21 = vadd.f32 %v5393_v55, %v4805_v6 }
 0x802   : > { %4816 = vadd.xlane.f32.xlu1 %v4814_v29  ;;  %4810 = vadd.xlane.f32.xlu0 %v4807_v21  ;;  %v4815_v46 = vmul.f32 %v4807_v21, %v4807_v21 }
 0x806   : > { %4818 = vadd.xlane.f32.xlu0 %v4815_v46 }
 0x887   : > { %v4809_v23 = vpop.xlane.xlu1 %4808 }
 0x888   : > { %v4812_v30 = vmul.f32 0.0078125, %v4809_v23 }
 0x88a   : > { %v4822_v18 = vmul.f32 %v4812_v30, %v4812_v30  ;;  %v4828_v44 = vsub.f32 %v4806_v32, %v4812_v30 }
 0x88b   : > { %v4817_v51 = vpop.xlane.xlu1 %4816  ;;  %v4811_v50 = vpop.xlane.xlu0 %4810 }
 0x88c   : > { %v4820_v35 = vmul.f32 0.0078125, %v4817_v51  ;;  %v4813_v4 = vmul.f32 0.0078125, %v4811_v50 }
 0x88e   : > { %v4824_v58 = vsub.f32 %v4820_v35, %v4822_v18  ;;  %v4823_v8 = vmul.f32 %v4813_v4, %v4813_v4  ;;  %v4829_v53 = vsub.f32 %v4807_v21, %v4813_v4 }
 0x88f   : > { %v4819_v3 = vpop.xlane.xlu0 %4818 }
 0x890   : > { %v4826_v15 = vmax.f32 %v4824_v58, 0.0  ;;  %v4821_v38 = vmul.f32 0.0078125, %v4819_v3 }
 0x892   : > { %v4830_v52 = vadd.f32 1e-05, %v4826_v15  ;;  %v4825_v41 = vsub.f32 %v4821_v38, %v4823_v8 }
 0x894   : > { %5353 = vrsqrt.f32 %v4830_v52  ;;  %v4827_v13 = vmax.f32 %v4825_v41, 0.0 }
 0x896   : > { %v4831_v25 = vadd.f32 1e-05, %v4827_v13 }
 0x898   : > { %5355 = vrsqrt.f32 %v4831_v25 }
 0x8a1   : > { %v5354_v26 = vpop.eup %5353 }
 0x8a2   : > { %v4834_v12 = vmul.f32 %v5354_v26, %v4828_v44 }
 0x8a4   : > { %v4840_v54 = vmul.f32 %v5043_v22, %v4834_v12 }
 0x8a5   : > { %v5356_v34 = vpop.eup %5355 }
 0x8a6   : > { %v4835_v17 = vmul.f32 %v5356_v34, %v4829_v53  ;;  %v4846_v62 = vadd.f32 %v5044_v39, %v4840_v54 }
 0x8a8   : > { %v4841_v2 = vmul.f32 %v5043_v22, %v4835_v17  ;;  %4848 = vst [vmem:[%s303_s16] sm:$0xff] %v4846_v62 }
 0x8aa   : > { %v4847_v36 = vadd.f32 %v5044_v39, %v4841_v2 }
 0x8ac   : > { %4849 = vst [vmem:[%s303_s16 + $0x8] sm:$0xff] %v4847_v36 }
 0x8ad   : > { %5433 = shalt.err (!%p5430_p0)
}
 0x8ae   : > { %s5434_s20 = scalar_lea.hbm %s10378_s21, 256  ;;  %s5438_s14 = scalar_lea.hbm %s10429_s7, 512 }
 0x8af   : > { %p5435_p1 = scmp.ne.s32.totalorder %s10378_s21, %s5434_s20  ;;  %p5439_p4 = scmp.lt.s32.totalorder %s10378_s21, %s10429_s7 }
 0x8b0   : > { %p5440_p7 = scmp.lt.s32.totalorder %s5438_s14, %s5434_s20 }
 0x8b1   : > { %p5436_p2 = pnand %p5435_p1, %p5576_p5 }
 0x8b2   : > { %p5441_p6 = por %p5440_p7, %p5439_p4 }
 0x8b3   : > { %p5437_p3 = pneg %p5436_p2 }
 0x8b5   : > { %p5442_p8 = pnand %p5441_p6, %p5437_p3 }
 0x8b7   : > { %5445 = shalt.err (!%p5442_p8)
}
 0x8b8   : > { %s5496_s18 = smov 128   ;;  %s5497_s19 = smov 8  }
 0x8b9   : > { %5147 = dma.vmem_to_hbm [thread:$0]  (%p5576_p5), %s10380_s17, 256, %s10378_s21, %s10382_s22, %s5496_s18, %s5496_s18, %s5497_s19  }
 0x8ba PF: > { %p5159_p9 = scmp.ge.s32.totalorder %s5484_s27, 2  ;;  %s4879_s23 = sand.u32 1, %s5472_s24  }
 0x8bb   : > { %p11843_p10 = scmp.ne.s32.totalorder %s10632_s12, 0  ;;  %s4880_s28 = scalar_lea.sflag [#allocation4], %s4879_s23 }
 0x8bd   : > { %p5154_p11 = pnand %p5159_p9, %p11843_p10 }
 0x8bf   : > { %p5155_p12 = pneg %p5154_p11 }
 0x8c1   : > { %5467 = dma.done.wait (%p5155_p12), %s4880_s28, 256  }
 0x8c2   : > { %5469 = vsyncadd (%p5155_p12), %s4880_s28, 4294967040  ;;  %p18_p13 = scmp.ge.s32.totalorder %s5563_s30, 4   ;;  %s11844_s24 = smov %s5476_s25 }
 0x8c3   : > { %s11845_s25 = smov %s5480_s26  ;;  %s11846_s26 = smov %s5574_s10 }
 0x8c4   : > { %s11847_s27 = smov %s5563_s30  ;;  %20 = sbr.rel (!%p18_p13) target bundleno = 4 (0x4), region = 91 }
 0x8c9   :  { %4885 = vsyncpa [#allocation3], 1 }
 0x8ca   :  { %4887 = vsyncpa [#allocation3 + $0x1], 1 }
 0x8cb   :  { %4888 = vsyncpa [#allocation4], 1 }
 0x8cc   :  { %4890 = vsyncpa [#allocation4 + $0x1], 1 }

</bundles_post_ra>
